<compile_context>
chip_gen: v7x
topology: tpu7x:2x2x1
jax: 0.10.0
libtpu: 0.0.40
codegen_flags: <defaults>
</compile_context>

<pallas_src>
import math
import functools

import jax
import jax.numpy as jnp
from jax.experimental import pallas as pl
from jax.experimental.pallas import tpu as pltpu

MAX_NUMBER_OF_SENTENCES_AE = 5
MAX_NUMBER_OF_WORDS_IN_SENTENCE = 50

_NEG = -1e9      # additive mask value (finite to avoid NaN on fully-masked rows)
_LN_EPS = 1e-5   # matches layer_norm_eps=1e-05 in the PyTorch module


# ----------------------------- in-kernel helpers (traced inside kernels) -----------------------------

def _layernorm(x, g, b, eps=_LN_EPS):
    mu = jnp.mean(x, axis=-1, keepdims=True)
    xc = x - mu
    var = jnp.mean(xc * xc, axis=-1, keepdims=True)
    return xc * jax.lax.rsqrt(var + eps) * g + b


def _ffn(x, w1, b1, w2, b2):
    h = jnp.maximum(jnp.dot(x, w1, preferred_element_type=jnp.float32) + b1, 0.0)
    return jnp.dot(h, w2, preferred_element_type=jnp.float32) + b2


def _mha(x_q, x_kv, bias, nhead, wq, bq, wk, bk, wv, bv, wo, bo):
    """Multi-head attention fully inside the kernel.

    x_q: (Sq, E), x_kv: (Sk, E), bias broadcastable to (Sq, Sk).
    Per-head weights (already loaded arrays): wq/wk/wv: (H, E, Dh), bq/bk/bv: (H, 1, Dh),
    wo: (H, Dh, E), bo: (1, E).  Returns (Sq, E); concat_h(o_h) @ Wo == sum_h o_h @ Wo[h].
    """
    dh = wq.shape[-1]
    scale = 1.0 / math.sqrt(dh)
    out = bo
    for h in range(nhead):                       # static unroll; H is small
        qh = jnp.dot(x_q, wq[h], preferred_element_type=jnp.float32) + bq[h]
        kh = jnp.dot(x_kv, wk[h], preferred_element_type=jnp.float32) + bk[h]
        vh = jnp.dot(x_kv, wv[h], preferred_element_type=jnp.float32) + bv[h]
        s = jnp.einsum('qd,kd->qk', qh, kh,
                       preferred_element_type=jnp.float32) * scale + bias
        s = s - jnp.max(s, axis=-1, keepdims=True)
        p = jnp.exp(s)
        p = p * pl.reciprocal(jnp.sum(p, axis=-1, keepdims=True), approx=True)
        oh = jnp.dot(p, vh, preferred_element_type=jnp.float32)                 # (Sq, Dh)
        out = out + jnp.dot(oh, wo[h], preferred_element_type=jnp.float32)      # (Sq, E)
    return out


# ----------------------------- fused stack kernels -----------------------------

def _encoder_stack_kernel(x_ref, bias_ref, pe_ref,
                          wq_ref, bq_ref, wk_ref, bk_ref, wv_ref, bv_ref,
                          wo_ref, bo_ref,
                          ln1g_ref, ln1b_ref,
                          w1_ref, b1_ref, w2_ref, b2_ref,
                          ln2g_ref, ln2b_ref,
                          pooled_ref, *, nhead, nlayers):
    """Positional enc + full nn.TransformerEncoder stack (post-LN, eval) + mean pooling.

    One sequence per grid step; layer weights stacked along leading axis of size nlayers.
    """
    x = x_ref[0] + pe_ref[...]        # (S, E)
    bias = bias_ref[0]                # (1, S) additive key-padding mask
    for l in range(nlayers):          # static unroll; activation stays in VMEM/vregs
        sa = _mha(x, x, bias, nhead,
                  wq_ref[l], bq_ref[l], wk_ref[l], bk_ref[l],
                  wv_ref[l], bv_ref[l], wo_ref[l], bo_ref[l])
        x = _layernorm(x + sa, ln1g_ref[l], ln1b_ref[l])
        y = _ffn(x, w1_ref[l], b1_ref[l], w2_ref[l], b2_ref[l])
        x = _layernorm(x + y, ln2g_ref[l], ln2b_ref[l])
    # torch.mean(encodedSentence, 1): mean over ALL positions (padding included)
    pooled_ref[0] = jnp.mean(x, axis=0, keepdims=True)


def _decoder_stack_kernel(tgt_ref, mem_ref, tbias_ref, mbias_ref, pe_ref,
                          red_w_ref, red_b_ref,
                          sa_wq_ref, sa_bq_ref, sa_wk_ref, sa_bk_ref,
                          sa_wv_ref, sa_bv_ref, sa_wo_ref, sa_bo_ref,
                          ln1g_ref, ln1b_ref,
                          ca_wq_ref, ca_bq_ref, ca_wk_ref, ca_bk_ref,
                          ca_wv_ref, ca_bv_ref, ca_wo_ref, ca_bo_ref,
                          ln2g_ref, ln2b_ref,
                          w1_ref, b1_ref, w2_ref, b2_ref,
                          ln3g_ref, ln3b_ref,
                          gen_w_ref, gen_b_ref,
                          o_ref, *, nhead, nlayers):
    """reduceTargetEmbDimNN + positional enc + full nn.TransformerDecoder stack + generator."""
    tgt = tgt_ref[0]                  # (St, E_tgt)
    mem = mem_ref[0]                  # (Sm, E_red)
    tbias = tbias_ref[0]              # (St, St) causal + target key-padding (additive)
    mbias = mbias_ref[0]              # (1, Sm)  memory key-padding (additive)

    # Linear(target_emb -> reduced) + ReLU, then positional encoding (dropout = identity)
    x = jnp.maximum(jnp.dot(tgt, red_w_ref[...], preferred_element_type=jnp.float32)
                    + red_b_ref[...], 0.0)
    x = x + pe_ref[...]

    for l in range(nlayers):          # static unroll
        sa = _mha(x, x, tbias, nhead,
                  sa_wq_ref[l], sa_bq_ref[l], sa_wk_ref[l], sa_bk_ref[l],
                  sa_wv_ref[l], sa_bv_ref[l], sa_wo_ref[l], sa_bo_ref[l])
        x = _layernorm(x + sa, ln1g_ref[l], ln1b_ref[l])

        ca = _mha(x, mem, mbias, nhead,
                  ca_wq_ref[l], ca_bq_ref[l], ca_wk_ref[l], ca_bk_ref[l],
                  ca_wv_ref[l], ca_bv_ref[l], ca_wo_ref[l], ca_bo_ref[l])
        x = _layernorm(x + ca, ln2g_ref[l], ln2b_ref[l])

        y = _ffn(x, w1_ref[l], b1_ref[l], w2_ref[l], b2_ref[l])
        x = _layernorm(x + y, ln3g_ref[l], ln3b_ref[l])

    # generator: Linear(reduced -> target_emb)
    o_ref[0] = jnp.dot(x, gen_w_ref[...], preferred_element_type=jnp.float32) + gen_b_ref[...]


# ----------------------------- pallas_call wrappers -----------------------------

def _rep_spec(arr):
    """Full-array block, same block for every grid step (weights; DMA'd once)."""
    zeros = (0,) * arr.ndim
    return pl.BlockSpec(arr.shape, lambda b: zeros)


def encoder_stack_pallas(x, bias, pe, p, nhead):
    """x: (Bn, S, E), bias: (Bn, 1, S) additive mask, pe: (S, E).  Returns pooled (Bn, 1, E)."""
    Bn, S, E = x.shape
    nlayers = p['sa_wq'].shape[0]
    weights = [p['sa_wq'], p['sa_bq'], p['sa_wk'], p['sa_bk'],
               p['sa_wv'], p['sa_bv'], p['sa_wo'], p['sa_bo'],
               p['ln1_g'], p['ln1_b'],
               p['ff_w1'], p['ff_b1'], p['ff_w2'], p['ff_b2'],
               p['ln2_g'], p['ln2_b']]
    in_specs = ([pl.BlockSpec((1, S, E), lambda b: (b, 0, 0)),
                 pl.BlockSpec((1, 1, S), lambda b: (b, 0, 0)),
                 _rep_spec(pe)]
                + [_rep_spec(w) for w in weights])
    return pl.pallas_call(
        functools.partial(_encoder_stack_kernel, nhead=nhead, nlayers=nlayers),
        out_shape=jax.ShapeDtypeStruct((Bn, 1, E), jnp.float32),
        grid=(Bn,),
        in_specs=in_specs,
        out_specs=pl.BlockSpec((1, 1, E), lambda b: (b, 0, 0)),
        compiler_params=pltpu.CompilerParams(dimension_semantics=("parallel",)),
    )(x, bias, pe, *weights)


def decoder_stack_pallas(tgt, memory, tgt_bias, mem_bias, pe,
                         reduce_w, reduce_b, p, gen_w, gen_b, nhead):
    """tgt: (B, St, E_tgt), memory: (B, Sm, E_red), tgt_bias: (B, St, St), mem_bias: (B, 1, Sm)."""
    B, St, E_tgt = tgt.shape
    Sm, E = memory.shape[1], memory.shape[2]
    nlayers = p['sa_wq'].shape[0]
    weights = [reduce_w, reduce_b,
               p['sa_wq'], p['sa_bq'], p['sa_wk'], p['sa_bk'],
               p['sa_wv'], p['sa_bv'], p['sa_wo'], p['sa_bo'],
               p['ln1_g'], p['ln1_b'],
               p['ca_wq'], p['ca_bq'], p['ca_wk'], p['ca_bk'],
               p['ca_wv'], p['ca_bv'], p['ca_wo'], p['ca_bo'],
               p['ln2_g'], p['ln2_b'],
               p['ff_w1'], p['ff_b1'], p['ff_w2'], p['ff_b2'],
               p['ln3_g'], p['ln3_b'],
               gen_w, gen_b]
    in_specs = ([pl.BlockSpec((1, St, E_tgt), lambda b: (b, 0, 0)),
                 pl.BlockSpec((1, Sm, E), lambda b: (b, 0, 0)),
                 pl.BlockSpec((1, St, St), lambda b: (b, 0, 0)),
                 pl.BlockSpec((1, 1, Sm), lambda b: (b, 0, 0)),
                 _rep_spec(pe)]
                + [_rep_spec(w) for w in weights])
    return pl.pallas_call(
        functools.partial(_decoder_stack_kernel, nhead=nhead, nlayers=nlayers),
        out_shape=jax.ShapeDtypeStruct((B, St, E_tgt), jnp.float32),
        grid=(B,),
        in_specs=in_specs,
        out_specs=pl.BlockSpec((1, St, E_tgt), lambda b: (b, 0, 0)),
        compiler_params=pltpu.CompilerParams(dimension_semantics=("parallel",)),
    )(tgt, memory, tgt_bias, mem_bias, pe, *weights)


# ----------------------------- mask / positional-encoding helpers (plain JAX) -----------------------------

def make_positional_encoding(d_model, max_len):
    position = jnp.arange(max_len, dtype=jnp.float32)[:, None]
    div_term = jnp.exp(jnp.arange(0, d_model, 2, dtype=jnp.float32)
                       * (-math.log(10000.0) / d_model))
    pe = jnp.zeros((max_len, d_model), jnp.float32)
    pe = pe.at[:, 0::2].set(jnp.sin(position * div_term))
    pe = pe.at[:, 1::2].set(jnp.cos(position * div_term))
    return pe


def generate_square_subsequent_mask(sz):
    i = jnp.arange(sz)[:, None]
    j = jnp.arange(sz)[None, :]
    return jnp.where(j <= i, 0.0, _NEG).astype(jnp.float32)


# ----------------------------- parameter init -----------------------------

def _normal(key, shape, scale=0.05):
    return scale * jax.random.normal(key, shape, jnp.float32)


def init_mha_stack(key, L, E, nhead, prefix):
    dh = E // nhead
    ks = jax.random.split(key, 8)
    return {
        prefix + 'wq': _normal(ks[0], (L, nhead, E, dh)),
        prefix + 'bq': _normal(ks[1], (L, nhead, 1, dh)),
        prefix + 'wk': _normal(ks[2], (L, nhead, E, dh)),
        prefix + 'bk': _normal(ks[3], (L, nhead, 1, dh)),
        prefix + 'wv': _normal(ks[4], (L, nhead, E, dh)),
        prefix + 'bv': _normal(ks[5], (L, nhead, 1, dh)),
        prefix + 'wo': _normal(ks[6], (L, nhead, dh, E)),
        prefix + 'bo': _normal(ks[7], (L, 1, E)),
    }


def init_encoder_stack(key, L, E, nhead, dff):
    ks = jax.random.split(key, 5)
    p = init_mha_stack(ks[0], L, E, nhead, 'sa_')
    p.update(
        ff_w1=_normal(ks[1], (L, E, dff)), ff_b1=_normal(ks[2], (L, 1, dff)),
        ff_w2=_normal(ks[3], (L, dff, E)), ff_b2=_normal(ks[4], (L, 1, E)),
        ln1_g=jnp.ones((L, 1, E), jnp.float32), ln1_b=jnp.zeros((L, 1, E), jnp.float32),
        ln2_g=jnp.ones((L, 1, E), jnp.float32), ln2_b=jnp.zeros((L, 1, E), jnp.float32),
    )
    return p


def init_decoder_stack(key, L, E, nhead, dff):
    ks = jax.random.split(key, 6)
    p = init_mha_stack(ks[0], L, E, nhead, 'sa_')
    p.update(init_mha_stack(ks[1], L, E, nhead, 'ca_'))
    p.update(
        ff_w1=_normal(ks[2], (L, E, dff)), ff_b1=_normal(ks[3], (L, 1, dff)),
        ff_w2=_normal(ks[4], (L, dff, E)), ff_b2=_normal(ks[5], (L, 1, E)),
        ln1_g=jnp.ones((L, 1, E), jnp.float32), ln1_b=jnp.zeros((L, 1, E), jnp.float32),
        ln2_g=jnp.ones((L, 1, E), jnp.float32), ln2_b=jnp.zeros((L, 1, E), jnp.float32),
        ln3_g=jnp.ones((L, 1, E), jnp.float32), ln3_b=jnp.zeros((L, 1, E), jnp.float32),
    )
    return p


def init_params(key, num_encoder_layers, num_decoder_layers,
                source_emb_size, nhead_encoder,
                target_emb_size, target_emb_size_reduced, nhead_decoder, dff=512):
    ks = jax.random.split(key, 6)
    return dict(
        enc=init_encoder_stack(ks[0], num_encoder_layers, source_emb_size, nhead_encoder, dff),
        dec=init_decoder_stack(ks[1], num_decoder_layers, target_emb_size_reduced,
                               nhead_decoder, dff),
        reduce_w=_normal(ks[2], (target_emb_size, target_emb_size_reduced)),
        reduce_b=_normal(ks[3], (1, target_emb_size_reduced)),
        gen_w=_normal(ks[4], (target_emb_size_reduced, target_emb_size)),
        gen_b=_normal(ks[5], (1, target_emb_size)),
        pe_src=make_positional_encoding(source_emb_size, MAX_NUMBER_OF_WORDS_IN_SENTENCE),
        pe_tgt=make_positional_encoding(target_emb_size_reduced,
                                        MAX_NUMBER_OF_WORDS_IN_SENTENCE
                                        * MAX_NUMBER_OF_SENTENCES_AE),
    )


# ----------------------------- forward pass -----------------------------

def ae_transformer_forward(params,
                           inputSentencesAsTensorsSplittedBatch,     # (B, 5, S_src, E_src)
                           whichArePaddingWordsMaskSplittedBatch,    # (B, 5, S_src) 1=word 0=pad
                           targetSentencesEmbeddedPaddedBatch,       # (B, S_tgt, E_tgt)
                           whichArePaddingWordsTargetSentenceBatch,  # (B, S_tgt) 1=word 0=pad
                           memory_key_pad_mask,                      # (B, 5) bool, True=masked
                           *, nhead_encoder, nhead_decoder):
    B, NS, S_src, E_src = inputSentencesAsTensorsSplittedBatch.shape
    S_tgt, E_tgt = targetSentencesEmbeddedPaddedBatch.shape[1:3]

    # ---- encoder: all 5 source sentences in ONE batched, fully fused pass ----
    x = inputSentencesAsTensorsSplittedBatch.reshape(B * NS, S_src, E_src)
    src_kpm = whichArePaddingWordsMaskSplittedBatch.reshape(B * NS, 1, S_src) == 0
    src_bias = jnp.where(src_kpm, _NEG, 0.0).astype(jnp.float32)
    pooled = encoder_stack_pallas(x, src_bias, params['pe_src'][:S_src],
                                  params['enc'], nhead_encoder)
    memory = pooled.reshape(B, NS, E_src)   # == stack of per-sentence means + permute(1, 0, 2)

    # ---- decoder masks (built once in plain JAX; XLA fuses them) ----
    causal = generate_square_subsequent_mask(S_tgt)                              # (St, St)
    tgt_pad_bias = jnp.where(whichArePaddingWordsTargetSentenceBatch == 0, _NEG, 0.0)
    tgt_bias = (causal[None, :, :] + tgt_pad_bias[:, None, :]).astype(jnp.float32)
    mem_bias = jnp.where(memory_key_pad_mask, _NEG, 0.0).astype(jnp.float32).reshape(B, 1, NS)

    # ---- decoder: dim-reduce + pos-enc + decoder stack + generator, all fused ----
    out = decoder_stack_pallas(targetSentencesEmbeddedPaddedBatch, memory,
                               tgt_bias, mem_bias, params['pe_tgt'][:S_tgt],
                               params['reduce_w'], params['reduce_b'],
                               params['dec'], params['gen_w'], params['gen_b'],
                               nhead_decoder)
    return out


# ----------------------------- main -----------------------------

if __name__ == "__main__":
    # Small shapes consistent with the module:
    B = 2
    S_src = 8                 # words per source sentence (<= MAX_NUMBER_OF_WORDS_IN_SENTENCE)
    S_tgt = 10                # target sequence length
    source_emb_size = 32
    target_emb_size = 48
    target_emb_size_reduced = 32   # must equal source_emb_size (decoder cross-attn dims)
    nhead_encoder = 4
    nhead_decoder = 4
    num_encoder_layers = 2
    num_decoder_layers = 2

    key = jax.random.PRNGKey(0)
    kp, k1, k2 = jax.random.split(key, 3)

    params = init_params(kp, num_encoder_layers, num_decoder_layers,
                         source_emb_size, nhead_encoder,
                         target_emb_size, target_emb_size_reduced, nhead_decoder)

    # Inputs
    inputSentences = jax.random.normal(k1, (B, MAX_NUMBER_OF_SENTENCES_AE, S_src,
                                            source_emb_size), jnp.float32)
    # padding masks: 1 = real word, 0 = padding (last 2 positions padded)
    srcPadMask = jnp.concatenate(
        [jnp.ones((B, MAX_NUMBER_OF_SENTENCES_AE, S_src - 2), jnp.float32),
         jnp.zeros((B, MAX_NUMBER_OF_SENTENCES_AE, 2), jnp.float32)], axis=-1)
    targetSentences = jax.random.normal(k2, (B, S_tgt, target_emb_size), jnp.float32)
    tgtPadMask = jnp.concatenate(
        [jnp.ones((B, S_tgt - 2), jnp.float32), jnp.zeros((B, 2), jnp.float32)], axis=-1)
    # memory key padding mask: bool, True = ignore that encoded sentence (mask last slot)
    memory_key_pad_mask = jnp.zeros((B, MAX_NUMBER_OF_SENTENCES_AE), bool).at[:, -1].set(True)

    # TODO(synk): dropout (p=0.2) in PositionalEncoding / encoder / decoder layers is
    # implemented as identity (eval-mode), since train-mode dropout randomness has no
    # deterministic equivalent in the reference forward.

    fwd = jax.jit(functools.partial(ae_transformer_forward,
                                    nhead_encoder=nhead_encoder,
                                    nhead_decoder=nhead_decoder))
    out = fwd(params, inputSentences, srcPadMask, targetSentences,
              tgtPadMask, memory_key_pad_mask)
    out = jax.block_until_ready(out)

    assert out.shape == (B, S_tgt, target_emb_size), out.shape
    assert bool(jnp.isfinite(out).all()), "non-finite values in output"
    print("KERNEL_OK")
</pallas_src>

<mosaic_0001>
module attributes {stable_mosaic.version = 11 : i64} {
  func.func @_encoder_stack_kernel(%arg0: i32, %arg1: memref<1x8x32xf32, #tpu.memory_space<vmem>>, %arg2: memref<1x1x8xf32, #tpu.memory_space<vmem>>, %arg3: memref<8x32xf32, #tpu.memory_space<vmem>>, %arg4: memref<2x4x32x8xf32, #tpu.memory_space<vmem>>, %arg5: memref<2x4x1x8xf32, #tpu.memory_space<vmem>>, %arg6: memref<2x4x32x8xf32, #tpu.memory_space<vmem>>, %arg7: memref<2x4x1x8xf32, #tpu.memory_space<vmem>>, %arg8: memref<2x4x32x8xf32, #tpu.memory_space<vmem>>, %arg9: memref<2x4x1x8xf32, #tpu.memory_space<vmem>>, %arg10: memref<2x4x8x32xf32, #tpu.memory_space<vmem>>, %arg11: memref<2x1x32xf32, #tpu.memory_space<vmem>>, %arg12: memref<2x1x32xf32, #tpu.memory_space<vmem>>, %arg13: memref<2x1x32xf32, #tpu.memory_space<vmem>>, %arg14: memref<2x32x512xf32, #tpu.memory_space<vmem>>, %arg15: memref<2x1x512xf32, #tpu.memory_space<vmem>>, %arg16: memref<2x512x32xf32, #tpu.memory_space<vmem>>, %arg17: memref<2x1x32xf32, #tpu.memory_space<vmem>>, %arg18: memref<2x1x32xf32, #tpu.memory_space<vmem>>, %arg19: memref<2x1x32xf32, #tpu.memory_space<vmem>>, %arg20: memref<1x1x32xf32, #tpu.memory_space<vmem>>) attributes {dimension_semantics = [#tpu.dimension_semantics<parallel>], iteration_bounds = array<i64: 10>, scalar_prefetch = 0 : i64, scratch_operands = 0 : i64, tpu.core_type = #tpu.core_type<tc>, window_params = [{transform_indices = @transform_0, window_bounds = array<i64: 1, 8, 32>}, {transform_indices = @transform_1, window_bounds = array<i64: 1, 1, 8>}, {pipeline_mode = #tpu.pipeline_mode<synchronous>, transform_indices = @transform_2, window_bounds = array<i64: 8, 32>}, {pipeline_mode = #tpu.pipeline_mode<synchronous>, transform_indices = @transform_3, window_bounds = array<i64: 2, 4, 32, 8>}, {pipeline_mode = #tpu.pipeline_mode<synchronous>, transform_indices = @transform_4, window_bounds = array<i64: 2, 4, 1, 8>}, {pipeline_mode = #tpu.pipeline_mode<synchronous>, transform_indices = @transform_5, window_bounds = array<i64: 2, 4, 32, 8>}, {pipeline_mode = #tpu.pipeline_mode<synchronous>, transform_indices = @transform_6, window_bounds = array<i64: 2, 4, 1, 8>}, {pipeline_mode = #tpu.pipeline_mode<synchronous>, transform_indices = @transform_7, window_bounds = array<i64: 2, 4, 32, 8>}, {pipeline_mode = #tpu.pipeline_mode<synchronous>, transform_indices = @transform_8, window_bounds = array<i64: 2, 4, 1, 8>}, {pipeline_mode = #tpu.pipeline_mode<synchronous>, transform_indices = @transform_9, window_bounds = array<i64: 2, 4, 8, 32>}, {pipeline_mode = #tpu.pipeline_mode<synchronous>, transform_indices = @transform_10, window_bounds = array<i64: 2, 1, 32>}, {pipeline_mode = #tpu.pipeline_mode<synchronous>, transform_indices = @transform_11, window_bounds = array<i64: 2, 1, 32>}, {pipeline_mode = #tpu.pipeline_mode<synchronous>, transform_indices = @transform_12, window_bounds = array<i64: 2, 1, 32>}, {pipeline_mode = #tpu.pipeline_mode<synchronous>, transform_indices = @transform_13, window_bounds = array<i64: 2, 32, 512>}, {pipeline_mode = #tpu.pipeline_mode<synchronous>, transform_indices = @transform_14, window_bounds = array<i64: 2, 1, 512>}, {pipeline_mode = #tpu.pipeline_mode<synchronous>, transform_indices = @transform_15, window_bounds = array<i64: 2, 512, 32>}, {pipeline_mode = #tpu.pipeline_mode<synchronous>, transform_indices = @transform_16, window_bounds = array<i64: 2, 1, 32>}, {pipeline_mode = #tpu.pipeline_mode<synchronous>, transform_indices = @transform_17, window_bounds = array<i64: 2, 1, 32>}, {pipeline_mode = #tpu.pipeline_mode<synchronous>, transform_indices = @transform_18, window_bounds = array<i64: 2, 1, 32>}, {transform_indices = @transform_19, window_bounds = array<i64: 1, 1, 32>}]} {
    %c0 = arith.constant 0 : index
    %c0_0 = arith.constant 0 : index
    %c0_1 = arith.constant 0 : index
    %0 = vector.load %arg1[%c0, %c0_0, %c0_1] : memref<1x8x32xf32, #tpu.memory_space<vmem>>, vector<1x8x32xf32>
    %1 = vector.shape_cast %0 : vector<1x8x32xf32> to vector<8x32xf32>
    %c0_2 = arith.constant 0 : index
    %c0_3 = arith.constant 0 : index
    %2 = vector.load %arg3[%c0_2, %c0_3] : memref<8x32xf32, #tpu.memory_space<vmem>>, vector<8x32xf32>
    %3 = arith.addf %1, %2 : vector<8x32xf32>
    %c0_4 = arith.constant 0 : index
    %c0_5 = arith.constant 0 : index
    %c0_6 = arith.constant 0 : index
    %4 = vector.load %arg2[%c0_4, %c0_5, %c0_6] : memref<1x1x8xf32, #tpu.memory_space<vmem>>, vector<1x1x8xf32>
    %5 = vector.shape_cast %4 : vector<1x1x8xf32> to vector<1x8xf32>
    %c0_7 = arith.constant 0 : index
    %c0_8 = arith.constant 0 : index
    %c0_9 = arith.constant 0 : index
    %c0_10 = arith.constant 0 : index
    %6 = vector.load %arg4[%c0_7, %c0_8, %c0_9, %c0_10] : memref<2x4x32x8xf32, #tpu.memory_space<vmem>>, vector<1x4x32x8xf32>
    %7 = vector.shape_cast %6 : vector<1x4x32x8xf32> to vector<4x32x8xf32>
    %c0_11 = arith.constant 0 : index
    %c0_12 = arith.constant 0 : index
    %c0_13 = arith.constant 0 : index
    %c0_14 = arith.constant 0 : index
    %8 = vector.load %arg5[%c0_11, %c0_12, %c0_13, %c0_14] : memref<2x4x1x8xf32, #tpu.memory_space<vmem>>, vector<1x4x1x8xf32>
    %9 = vector.shape_cast %8 : vector<1x4x1x8xf32> to vector<4x1x8xf32>
    %c0_15 = arith.constant 0 : index
    %c0_16 = arith.constant 0 : index
    %c0_17 = arith.constant 0 : index
    %c0_18 = arith.constant 0 : index
    %10 = vector.load %arg6[%c0_15, %c0_16, %c0_17, %c0_18] : memref<2x4x32x8xf32, #tpu.memory_space<vmem>>, vector<1x4x32x8xf32>
    %11 = vector.shape_cast %10 : vector<1x4x32x8xf32> to vector<4x32x8xf32>
    %c0_19 = arith.constant 0 : index
    %c0_20 = arith.constant 0 : index
    %c0_21 = arith.constant 0 : index
    %c0_22 = arith.constant 0 : index
    %12 = vector.load %arg7[%c0_19, %c0_20, %c0_21, %c0_22] : memref<2x4x1x8xf32, #tpu.memory_space<vmem>>, vector<1x4x1x8xf32>
    %13 = vector.shape_cast %12 : vector<1x4x1x8xf32> to vector<4x1x8xf32>
    %c0_23 = arith.constant 0 : index
    %c0_24 = arith.constant 0 : index
    %c0_25 = arith.constant 0 : index
    %c0_26 = arith.constant 0 : index
    %14 = vector.load %arg8[%c0_23, %c0_24, %c0_25, %c0_26] : memref<2x4x32x8xf32, #tpu.memory_space<vmem>>, vector<1x4x32x8xf32>
    %15 = vector.shape_cast %14 : vector<1x4x32x8xf32> to vector<4x32x8xf32>
    %c0_27 = arith.constant 0 : index
    %c0_28 = arith.constant 0 : index
    %c0_29 = arith.constant 0 : index
    %c0_30 = arith.constant 0 : index
    %16 = vector.load %arg9[%c0_27, %c0_28, %c0_29, %c0_30] : memref<2x4x1x8xf32, #tpu.memory_space<vmem>>, vector<1x4x1x8xf32>
    %17 = vector.shape_cast %16 : vector<1x4x1x8xf32> to vector<4x1x8xf32>
    %c0_31 = arith.constant 0 : index
    %c0_32 = arith.constant 0 : index
    %c0_33 = arith.constant 0 : index
    %c0_34 = arith.constant 0 : index
    %18 = vector.load %arg10[%c0_31, %c0_32, %c0_33, %c0_34] : memref<2x4x8x32xf32, #tpu.memory_space<vmem>>, vector<1x4x8x32xf32>
    %19 = vector.shape_cast %18 : vector<1x4x8x32xf32> to vector<4x8x32xf32>
    %c0_35 = arith.constant 0 : index
    %c0_36 = arith.constant 0 : index
    %c0_37 = arith.constant 0 : index
    %20 = vector.load %arg11[%c0_35, %c0_36, %c0_37] : memref<2x1x32xf32, #tpu.memory_space<vmem>>, vector<1x1x32xf32>
    %21 = vector.shape_cast %20 : vector<1x1x32xf32> to vector<1x32xf32>
    %22 = vector.extract_strided_slice %7 {offsets = [0, 0, 0], sizes = [1, 32, 8], strides = [1, 1, 1]} : vector<4x32x8xf32> to vector<1x32x8xf32>
    %23 = vector.shape_cast %22 : vector<1x32x8xf32> to vector<32x8xf32>
    %cst = arith.constant dense<0.000000e+00> : vector<8x8xf32>
    %24 = tpu.matmul %3, %23, %cst {dimension_numbers = #tpu.dot_dimension_numbers<[1], [0], [0], [1], [0, 0, 1, 1], [], []>} : vector<8x32xf32>, vector<32x8xf32>, vector<8x8xf32> -> vector<8x8xf32>
    %25 = vector.extract_strided_slice %9 {offsets = [0, 0, 0], sizes = [1, 1, 8], strides = [1, 1, 1]} : vector<4x1x8xf32> to vector<1x1x8xf32>
    %26 = vector.shape_cast %25 : vector<1x1x8xf32> to vector<1x8xf32>
    %27 = vector.broadcast %26 : vector<1x8xf32> to vector<8x8xf32>
    %28 = arith.addf %24, %27 : vector<8x8xf32>
    %29 = vector.extract_strided_slice %11 {offsets = [0, 0, 0], sizes = [1, 32, 8], strides = [1, 1, 1]} : vector<4x32x8xf32> to vector<1x32x8xf32>
    %30 = vector.shape_cast %29 : vector<1x32x8xf32> to vector<32x8xf32>
    %cst_38 = arith.constant dense<0.000000e+00> : vector<8x8xf32>
    %31 = tpu.matmul %3, %30, %cst_38 {dimension_numbers = #tpu.dot_dimension_numbers<[1], [0], [0], [1], [0, 0, 1, 1], [], []>} : vector<8x32xf32>, vector<32x8xf32>, vector<8x8xf32> -> vector<8x8xf32>
    %32 = vector.extract_strided_slice %13 {offsets = [0, 0, 0], sizes = [1, 1, 8], strides = [1, 1, 1]} : vector<4x1x8xf32> to vector<1x1x8xf32>
    %33 = vector.shape_cast %32 : vector<1x1x8xf32> to vector<1x8xf32>
    %34 = vector.broadcast %33 : vector<1x8xf32> to vector<8x8xf32>
    %35 = arith.addf %31, %34 : vector<8x8xf32>
    %36 = vector.extract_strided_slice %15 {offsets = [0, 0, 0], sizes = [1, 32, 8], strides = [1, 1, 1]} : vector<4x32x8xf32> to vector<1x32x8xf32>
    %37 = vector.shape_cast %36 : vector<1x32x8xf32> to vector<32x8xf32>
    %cst_39 = arith.constant dense<0.000000e+00> : vector<8x8xf32>
    %38 = tpu.matmul %3, %37, %cst_39 {dimension_numbers = #tpu.dot_dimension_numbers<[1], [0], [0], [1], [0, 0, 1, 1], [], []>} : vector<8x32xf32>, vector<32x8xf32>, vector<8x8xf32> -> vector<8x8xf32>
    %39 = vector.extract_strided_slice %17 {offsets = [0, 0, 0], sizes = [1, 1, 8], strides = [1, 1, 1]} : vector<4x1x8xf32> to vector<1x1x8xf32>
    %40 = vector.shape_cast %39 : vector<1x1x8xf32> to vector<1x8xf32>
    %41 = vector.broadcast %40 : vector<1x8xf32> to vector<8x8xf32>
    %42 = arith.addf %38, %41 : vector<8x8xf32>
    "tpu.trace_start"() <{level = 10 : i32, message = "qd,kd->qk"}> : () -> ()
    %cst_40 = arith.constant dense<0.000000e+00> : vector<8x8xf32>
    %43 = tpu.matmul %28, %35, %cst_40 {dimension_numbers = #tpu.dot_dimension_numbers<[1], [1], [0], [0], [0, 0, 1, 0], [], []>} : vector<8x8xf32>, vector<8x8xf32>, vector<8x8xf32> -> vector<8x8xf32>
    "tpu.trace_stop"() : () -> ()
    %cst_41 = arith.constant 0.353553385 : f32
    %44 = vector.broadcast %cst_41 : f32 to vector<8x8xf32>
    %45 = arith.mulf %43, %44 : vector<8x8xf32>
    %46 = vector.broadcast %5 : vector<1x8xf32> to vector<8x8xf32>
    %47 = arith.addf %45, %46 : vector<8x8xf32>
    %cst_42 = arith.constant dense<0xFF800000> : vector<8xf32>
    %48 = vector.multi_reduction <maximumf>, %47, %cst_42 [1] : vector<8x8xf32> to vector<8xf32>
    %49 = vector.shape_cast %48 : vector<8xf32> to vector<8x1xf32>
    %50 = vector.broadcast %49 : vector<8x1xf32> to vector<8x8xf32>
    %51 = arith.subf %47, %50 : vector<8x8xf32>
    %52 = math.exp %51 : vector<8x8xf32>
    %cst_43 = arith.constant dense<0.000000e+00> : vector<8xf32>
    %53 = vector.multi_reduction <add>, %52, %cst_43 [1] : vector<8x8xf32> to vector<8xf32>
    %54 = vector.shape_cast %53 : vector<8xf32> to vector<8x1xf32>
    %55 = tpu.reciprocal %54 {approx = true} : vector<8x1xf32> -> vector<8x1xf32>
    %56 = vector.broadcast %55 : vector<8x1xf32> to vector<8x8xf32>
    %57 = arith.mulf %52, %56 : vector<8x8xf32>
    %cst_44 = arith.constant dense<0.000000e+00> : vector<8x8xf32>
    %58 = tpu.matmul %57, %42, %cst_44 {dimension_numbers = #tpu.dot_dimension_numbers<[1], [0], [0], [1], [0, 0, 1, 1], [], []>} : vector<8x8xf32>, vector<8x8xf32>, vector<8x8xf32> -> vector<8x8xf32>
    %59 = vector.extract_strided_slice %19 {offsets = [0, 0, 0], sizes = [1, 8, 32], strides = [1, 1, 1]} : vector<4x8x32xf32> to vector<1x8x32xf32>
    %60 = vector.shape_cast %59 : vector<1x8x32xf32> to vector<8x32xf32>
    %cst_45 = arith.constant dense<0.000000e+00> : vector<8x32xf32>
    %61 = tpu.matmul %58, %60, %cst_45 {dimension_numbers = #tpu.dot_dimension_numbers<[1], [0], [0], [1], [0, 0, 1, 1], [], []>} : vector<8x8xf32>, vector<8x32xf32>, vector<8x32xf32> -> vector<8x32xf32>
    %62 = vector.broadcast %21 : vector<1x32xf32> to vector<8x32xf32>
    %63 = arith.addf %62, %61 : vector<8x32xf32>
    %64 = vector.extract_strided_slice %7 {offsets = [1, 0, 0], sizes = [1, 32, 8], strides = [1, 1, 1]} : vector<4x32x8xf32> to vector<1x32x8xf32>
    %65 = vector.shape_cast %64 : vector<1x32x8xf32> to vector<32x8xf32>
    %cst_46 = arith.constant dense<0.000000e+00> : vector<8x8xf32>
    %66 = tpu.matmul %3, %65, %cst_46 {dimension_numbers = #tpu.dot_dimension_numbers<[1], [0], [0], [1], [0, 0, 1, 1], [], []>} : vector<8x32xf32>, vector<32x8xf32>, vector<8x8xf32> -> vector<8x8xf32>
    %67 = vector.extract_strided_slice %9 {offsets = [1, 0, 0], sizes = [1, 1, 8], strides = [1, 1, 1]} : vector<4x1x8xf32> to vector<1x1x8xf32>
    %68 = vector.shape_cast %67 : vector<1x1x8xf32> to vector<1x8xf32>
    %69 = vector.broadcast %68 : vector<1x8xf32> to vector<8x8xf32>
    %70 = arith.addf %66, %69 : vector<8x8xf32>
    %71 = vector.extract_strided_slice %11 {offsets = [1, 0, 0], sizes = [1, 32, 8], strides = [1, 1, 1]} : vector<4x32x8xf32> to vector<1x32x8xf32>
    %72 = vector.shape_cast %71 : vector<1x32x8xf32> to vector<32x8xf32>
    %cst_47 = arith.constant dense<0.000000e+00> : vector<8x8xf32>
    %73 = tpu.matmul %3, %72, %cst_47 {dimension_numbers = #tpu.dot_dimension_numbers<[1], [0], [0], [1], [0, 0, 1, 1], [], []>} : vector<8x32xf32>, vector<32x8xf32>, vector<8x8xf32> -> vector<8x8xf32>
    %74 = vector.extract_strided_slice %13 {offsets = [1, 0, 0], sizes = [1, 1, 8], strides = [1, 1, 1]} : vector<4x1x8xf32> to vector<1x1x8xf32>
    %75 = vector.shape_cast %74 : vector<1x1x8xf32> to vector<1x8xf32>
    %76 = vector.broadcast %75 : vector<1x8xf32> to vector<8x8xf32>
    %77 = arith.addf %73, %76 : vector<8x8xf32>
    %78 = vector.extract_strided_slice %15 {offsets = [1, 0, 0], sizes = [1, 32, 8], strides = [1, 1, 1]} : vector<4x32x8xf32> to vector<1x32x8xf32>
    %79 = vector.shape_cast %78 : vector<1x32x8xf32> to vector<32x8xf32>
    %cst_48 = arith.constant dense<0.000000e+00> : vector<8x8xf32>
    %80 = tpu.matmul %3, %79, %cst_48 {dimension_numbers = #tpu.dot_dimension_numbers<[1], [0], [0], [1], [0, 0, 1, 1], [], []>} : vector<8x32xf32>, vector<32x8xf32>, vector<8x8xf32> -> vector<8x8xf32>
    %81 = vector.extract_strided_slice %17 {offsets = [1, 0, 0], sizes = [1, 1, 8], strides = [1, 1, 1]} : vector<4x1x8xf32> to vector<1x1x8xf32>
    %82 = vector.shape_cast %81 : vector<1x1x8xf32> to vector<1x8xf32>
    %83 = vector.broadcast %82 : vector<1x8xf32> to vector<8x8xf32>
    %84 = arith.addf %80, %83 : vector<8x8xf32>
    "tpu.trace_start"() <{level = 10 : i32, message = "qd,kd->qk"}> : () -> ()
    %cst_49 = arith.constant dense<0.000000e+00> : vector<8x8xf32>
    %85 = tpu.matmul %70, %77, %cst_49 {dimension_numbers = #tpu.dot_dimension_numbers<[1], [1], [0], [0], [0, 0, 1, 0], [], []>} : vector<8x8xf32>, vector<8x8xf32>, vector<8x8xf32> -> vector<8x8xf32>
    "tpu.trace_stop"() : () -> ()
    %cst_50 = arith.constant 0.353553385 : f32
    %86 = vector.broadcast %cst_50 : f32 to vector<8x8xf32>
    %87 = arith.mulf %85, %86 : vector<8x8xf32>
    %88 = vector.broadcast %5 : vector<1x8xf32> to vector<8x8xf32>
    %89 = arith.addf %87, %88 : vector<8x8xf32>
    %cst_51 = arith.constant dense<0xFF800000> : vector<8xf32>
    %90 = vector.multi_reduction <maximumf>, %89, %cst_51 [1] : vector<8x8xf32> to vector<8xf32>
    %91 = vector.shape_cast %90 : vector<8xf32> to vector<8x1xf32>
    %92 = vector.broadcast %91 : vector<8x1xf32> to vector<8x8xf32>
    %93 = arith.subf %89, %92 : vector<8x8xf32>
    %94 = math.exp %93 : vector<8x8xf32>
    %cst_52 = arith.constant dense<0.000000e+00> : vector<8xf32>
    %95 = vector.multi_reduction <add>, %94, %cst_52 [1] : vector<8x8xf32> to vector<8xf32>
    %96 = vector.shape_cast %95 : vector<8xf32> to vector<8x1xf32>
    %97 = tpu.reciprocal %96 {approx = true} : vector<8x1xf32> -> vector<8x1xf32>
    %98 = vector.broadcast %97 : vector<8x1xf32> to vector<8x8xf32>
    %99 = arith.mulf %94, %98 : vector<8x8xf32>
    %cst_53 = arith.constant dense<0.000000e+00> : vector<8x8xf32>
    %100 = tpu.matmul %99, %84, %cst_53 {dimension_numbers = #tpu.dot_dimension_numbers<[1], [0], [0], [1], [0, 0, 1, 1], [], []>} : vector<8x8xf32>, vector<8x8xf32>, vector<8x8xf32> -> vector<8x8xf32>
    %101 = vector.extract_strided_slice %19 {offsets = [1, 0, 0], sizes = [1, 8, 32], strides = [1, 1, 1]} : vector<4x8x32xf32> to vector<1x8x32xf32>
    %102 = vector.shape_cast %101 : vector<1x8x32xf32> to vector<8x32xf32>
    %cst_54 = arith.constant dense<0.000000e+00> : vector<8x32xf32>
    %103 = tpu.matmul %100, %102, %cst_54 {dimension_numbers = #tpu.dot_dimension_numbers<[1], [0], [0], [1], [0, 0, 1, 1], [], []>} : vector<8x8xf32>, vector<8x32xf32>, vector<8x32xf32> -> vector<8x32xf32>
    %104 = arith.addf %63, %103 : vector<8x32xf32>
    %105 = vector.extract_strided_slice %7 {offsets = [2, 0, 0], sizes = [1, 32, 8], strides = [1, 1, 1]} : vector<4x32x8xf32> to vector<1x32x8xf32>
    %106 = vector.shape_cast %105 : vector<1x32x8xf32> to vector<32x8xf32>
    %cst_55 = arith.constant dense<0.000000e+00> : vector<8x8xf32>
    %107 = tpu.matmul %3, %106, %cst_55 {dimension_numbers = #tpu.dot_dimension_numbers<[1], [0], [0], [1], [0, 0, 1, 1], [], []>} : vector<8x32xf32>, vector<32x8xf32>, vector<8x8xf32> -> vector<8x8xf32>
    %108 = vector.extract_strided_slice %9 {offsets = [2, 0, 0], sizes = [1, 1, 8], strides = [1, 1, 1]} : vector<4x1x8xf32> to vector<1x1x8xf32>
    %109 = vector.shape_cast %108 : vector<1x1x8xf32> to vector<1x8xf32>
    %110 = vector.broadcast %109 : vector<1x8xf32> to vector<8x8xf32>
    %111 = arith.addf %107, %110 : vector<8x8xf32>
    %112 = vector.extract_strided_slice %11 {offsets = [2, 0, 0], sizes = [1, 32, 8], strides = [1, 1, 1]} : vector<4x32x8xf32> to vector<1x32x8xf32>
    %113 = vector.shape_cast %112 : vector<1x32x8xf32> to vector<32x8xf32>
    %cst_56 = arith.constant dense<0.000000e+00> : vector<8x8xf32>
    %114 = tpu.matmul %3, %113, %cst_56 {dimension_numbers = #tpu.dot_dimension_numbers<[1], [0], [0], [1], [0, 0, 1, 1], [], []>} : vector<8x32xf32>, vector<32x8xf32>, vector<8x8xf32> -> vector<8x8xf32>
    %115 = vector.extract_strided_slice %13 {offsets = [2, 0, 0], sizes = [1, 1, 8], strides = [1, 1, 1]} : vector<4x1x8xf32> to vector<1x1x8xf32>
    %116 = vector.shape_cast %115 : vector<1x1x8xf32> to vector<1x8xf32>
    %117 = vector.broadcast %116 : vector<1x8xf32> to vector<8x8xf32>
    %118 = arith.addf %114, %117 : vector<8x8xf32>
    %119 = vector.extract_strided_slice %15 {offsets = [2, 0, 0], sizes = [1, 32, 8], strides = [1, 1, 1]} : vector<4x32x8xf32> to vector<1x32x8xf32>
    %120 = vector.shape_cast %119 : vector<1x32x8xf32> to vector<32x8xf32>
    %cst_57 = arith.constant dense<0.000000e+00> : vector<8x8xf32>
    %121 = tpu.matmul %3, %120, %cst_57 {dimension_numbers = #tpu.dot_dimension_numbers<[1], [0], [0], [1], [0, 0, 1, 1], [], []>} : vector<8x32xf32>, vector<32x8xf32>, vector<8x8xf32> -> vector<8x8xf32>
    %122 = vector.extract_strided_slice %17 {offsets = [2, 0, 0], sizes = [1, 1, 8], strides = [1, 1, 1]} : vector<4x1x8xf32> to vector<1x1x8xf32>
    %123 = vector.shape_cast %122 : vector<1x1x8xf32> to vector<1x8xf32>
    %124 = vector.broadcast %123 : vector<1x8xf32> to vector<8x8xf32>
    %125 = arith.addf %121, %124 : vector<8x8xf32>
    "tpu.trace_start"() <{level = 10 : i32, message = "qd,kd->qk"}> : () -> ()
    %cst_58 = arith.constant dense<0.000000e+00> : vector<8x8xf32>
    %126 = tpu.matmul %111, %118, %cst_58 {dimension_numbers = #tpu.dot_dimension_numbers<[1], [1], [0], [0], [0, 0, 1, 0], [], []>} : vector<8x8xf32>, vector<8x8xf32>, vector<8x8xf32> -> vector<8x8xf32>
    "tpu.trace_stop"() : () -> ()
    %cst_59 = arith.constant 0.353553385 : f32
    %127 = vector.broadcast %cst_59 : f32 to vector<8x8xf32>
    %128 = arith.mulf %126, %127 : vector<8x8xf32>
    %129 = vector.broadcast %5 : vector<1x8xf32> to vector<8x8xf32>
    %130 = arith.addf %128, %129 : vector<8x8xf32>
    %cst_60 = arith.constant dense<0xFF800000> : vector<8xf32>
    %131 = vector.multi_reduction <maximumf>, %130, %cst_60 [1] : vector<8x8xf32> to vector<8xf32>
    %132 = vector.shape_cast %131 : vector<8xf32> to vector<8x1xf32>
    %133 = vector.broadcast %132 : vector<8x1xf32> to vector<8x8xf32>
    %134 = arith.subf %130, %133 : vector<8x8xf32>
    %135 = math.exp %134 : vector<8x8xf32>
    %cst_61 = arith.constant dense<0.000000e+00> : vector<8xf32>
    %136 = vector.multi_reduction <add>, %135, %cst_61 [1] : vector<8x8xf32> to vector<8xf32>
    %137 = vector.shape_cast %136 : vector<8xf32> to vector<8x1xf32>
    %138 = tpu.reciprocal %137 {approx = true} : vector<8x1xf32> -> vector<8x1xf32>
    %139 = vector.broadcast %138 : vector<8x1xf32> to vector<8x8xf32>
    %140 = arith.mulf %135, %139 : vector<8x8xf32>
    %cst_62 = arith.constant dense<0.000000e+00> : vector<8x8xf32>
    %141 = tpu.matmul %140, %125, %cst_62 {dimension_numbers = #tpu.dot_dimension_numbers<[1], [0], [0], [1], [0, 0, 1, 1], [], []>} : vector<8x8xf32>, vector<8x8xf32>, vector<8x8xf32> -> vector<8x8xf32>
    %142 = vector.extract_strided_slice %19 {offsets = [2, 0, 0], sizes = [1, 8, 32], strides = [1, 1, 1]} : vector<4x8x32xf32> to vector<1x8x32xf32>
    %143 = vector.shape_cast %142 : vector<1x8x32xf32> to vector<8x32xf32>
    %cst_63 = arith.constant dense<0.000000e+00> : vector<8x32xf32>
    %144 = tpu.matmul %141, %143, %cst_63 {dimension_numbers = #tpu.dot_dimension_numbers<[1], [0], [0], [1], [0, 0, 1, 1], [], []>} : vector<8x8xf32>, vector<8x32xf32>, vector<8x32xf32> -> vector<8x32xf32>
    %145 = arith.addf %104, %144 : vector<8x32xf32>
    %146 = vector.extract_strided_slice %7 {offsets = [3, 0, 0], sizes = [1, 32, 8], strides = [1, 1, 1]} : vector<4x32x8xf32> to vector<1x32x8xf32>
    %147 = vector.shape_cast %146 : vector<1x32x8xf32> to vector<32x8xf32>
    %cst_64 = arith.constant dense<0.000000e+00> : vector<8x8xf32>
    %148 = tpu.matmul %3, %147, %cst_64 {dimension_numbers = #tpu.dot_dimension_numbers<[1], [0], [0], [1], [0, 0, 1, 1], [], []>} : vector<8x32xf32>, vector<32x8xf32>, vector<8x8xf32> -> vector<8x8xf32>
    %149 = vector.extract_strided_slice %9 {offsets = [3, 0, 0], sizes = [1, 1, 8], strides = [1, 1, 1]} : vector<4x1x8xf32> to vector<1x1x8xf32>
    %150 = vector.shape_cast %149 : vector<1x1x8xf32> to vector<1x8xf32>
    %151 = vector.broadcast %150 : vector<1x8xf32> to vector<8x8xf32>
    %152 = arith.addf %148, %151 : vector<8x8xf32>
    %153 = vector.extract_strided_slice %11 {offsets = [3, 0, 0], sizes = [1, 32, 8], strides = [1, 1, 1]} : vector<4x32x8xf32> to vector<1x32x8xf32>
    %154 = vector.shape_cast %153 : vector<1x32x8xf32> to vector<32x8xf32>
    %cst_65 = arith.constant dense<0.000000e+00> : vector<8x8xf32>
    %155 = tpu.matmul %3, %154, %cst_65 {dimension_numbers = #tpu.dot_dimension_numbers<[1], [0], [0], [1], [0, 0, 1, 1], [], []>} : vector<8x32xf32>, vector<32x8xf32>, vector<8x8xf32> -> vector<8x8xf32>
    %156 = vector.extract_strided_slice %13 {offsets = [3, 0, 0], sizes = [1, 1, 8], strides = [1, 1, 1]} : vector<4x1x8xf32> to vector<1x1x8xf32>
    %157 = vector.shape_cast %156 : vector<1x1x8xf32> to vector<1x8xf32>
    %158 = vector.broadcast %157 : vector<1x8xf32> to vector<8x8xf32>
    %159 = arith.addf %155, %158 : vector<8x8xf32>
    %160 = vector.extract_strided_slice %15 {offsets = [3, 0, 0], sizes = [1, 32, 8], strides = [1, 1, 1]} : vector<4x32x8xf32> to vector<1x32x8xf32>
    %161 = vector.shape_cast %160 : vector<1x32x8xf32> to vector<32x8xf32>
    %cst_66 = arith.constant dense<0.000000e+00> : vector<8x8xf32>
    %162 = tpu.matmul %3, %161, %cst_66 {dimension_numbers = #tpu.dot_dimension_numbers<[1], [0], [0], [1], [0, 0, 1, 1], [], []>} : vector<8x32xf32>, vector<32x8xf32>, vector<8x8xf32> -> vector<8x8xf32>
    %163 = vector.extract_strided_slice %17 {offsets = [3, 0, 0], sizes = [1, 1, 8], strides = [1, 1, 1]} : vector<4x1x8xf32> to vector<1x1x8xf32>
    %164 = vector.shape_cast %163 : vector<1x1x8xf32> to vector<1x8xf32>
    %165 = vector.broadcast %164 : vector<1x8xf32> to vector<8x8xf32>
    %166 = arith.addf %162, %165 : vector<8x8xf32>
    "tpu.trace_start"() <{level = 10 : i32, message = "qd,kd->qk"}> : () -> ()
    %cst_67 = arith.constant dense<0.000000e+00> : vector<8x8xf32>
    %167 = tpu.matmul %152, %159, %cst_67 {dimension_numbers = #tpu.dot_dimension_numbers<[1], [1], [0], [0], [0, 0, 1, 0], [], []>} : vector<8x8xf32>, vector<8x8xf32>, vector<8x8xf32> -> vector<8x8xf32>
    "tpu.trace_stop"() : () -> ()
    %cst_68 = arith.constant 0.353553385 : f32
    %168 = vector.broadcast %cst_68 : f32 to vector<8x8xf32>
    %169 = arith.mulf %167, %168 : vector<8x8xf32>
    %170 = vector.broadcast %5 : vector<1x8xf32> to vector<8x8xf32>
    %171 = arith.addf %169, %170 : vector<8x8xf32>
    %cst_69 = arith.constant dense<0xFF800000> : vector<8xf32>
    %172 = vector.multi_reduction <maximumf>, %171, %cst_69 [1] : vector<8x8xf32> to vector<8xf32>
    %173 = vector.shape_cast %172 : vector<8xf32> to vector<8x1xf32>
    %174 = vector.broadcast %173 : vector<8x1xf32> to vector<8x8xf32>
    %175 = arith.subf %171, %174 : vector<8x8xf32>
    %176 = math.exp %175 : vector<8x8xf32>
    %cst_70 = arith.constant dense<0.000000e+00> : vector<8xf32>
    %177 = vector.multi_reduction <add>, %176, %cst_70 [1] : vector<8x8xf32> to vector<8xf32>
    %178 = vector.shape_cast %177 : vector<8xf32> to vector<8x1xf32>
    %179 = tpu.reciprocal %178 {approx = true} : vector<8x1xf32> -> vector<8x1xf32>
    %180 = vector.broadcast %179 : vector<8x1xf32> to vector<8x8xf32>
    %181 = arith.mulf %176, %180 : vector<8x8xf32>
    %cst_71 = arith.constant dense<0.000000e+00> : vector<8x8xf32>
    %182 = tpu.matmul %181, %166, %cst_71 {dimension_numbers = #tpu.dot_dimension_numbers<[1], [0], [0], [1], [0, 0, 1, 1], [], []>} : vector<8x8xf32>, vector<8x8xf32>, vector<8x8xf32> -> vector<8x8xf32>
    %183 = vector.extract_strided_slice %19 {offsets = [3, 0, 0], sizes = [1, 8, 32], strides = [1, 1, 1]} : vector<4x8x32xf32> to vector<1x8x32xf32>
    %184 = vector.shape_cast %183 : vector<1x8x32xf32> to vector<8x32xf32>
    %cst_72 = arith.constant dense<0.000000e+00> : vector<8x32xf32>
    %185 = tpu.matmul %182, %184, %cst_72 {dimension_numbers = #tpu.dot_dimension_numbers<[1], [0], [0], [1], [0, 0, 1, 1], [], []>} : vector<8x8xf32>, vector<8x32xf32>, vector<8x32xf32> -> vector<8x32xf32>
    %186 = arith.addf %145, %185 : vector<8x32xf32>
    %187 = arith.addf %3, %186 : vector<8x32xf32>
    %c0_73 = arith.constant 0 : index
    %c0_74 = arith.constant 0 : index
    %c0_75 = arith.constant 0 : index
    %188 = vector.load %arg12[%c0_73, %c0_74, %c0_75] : memref<2x1x32xf32, #tpu.memory_space<vmem>>, vector<1x1x32xf32>
    %189 = vector.shape_cast %188 : vector<1x1x32xf32> to vector<1x32xf32>
    %c0_76 = arith.constant 0 : index
    %c0_77 = arith.constant 0 : index
    %c0_78 = arith.constant 0 : index
    %190 = vector.load %arg13[%c0_76, %c0_77, %c0_78] : memref<2x1x32xf32, #tpu.memory_space<vmem>>, vector<1x1x32xf32>
    %191 = vector.shape_cast %190 : vector<1x1x32xf32> to vector<1x32xf32>
    %cst_79 = arith.constant dense<0.000000e+00> : vector<8xf32>
    %192 = vector.multi_reduction <add>, %187, %cst_79 [1] : vector<8x32xf32> to vector<8xf32>
    %193 = vector.shape_cast %192 : vector<8xf32> to vector<8x1xf32>
    %cst_80 = arith.constant 3.200000e+01 : f32
    %194 = vector.broadcast %cst_80 : f32 to vector<8x1xf32>
    %195 = arith.divf %193, %194 : vector<8x1xf32>
    %196 = vector.broadcast %195 : vector<8x1xf32> to vector<8x32xf32>
    %197 = arith.subf %187, %196 : vector<8x32xf32>
    %198 = arith.mulf %197, %197 : vector<8x32xf32>
    %cst_81 = arith.constant dense<0.000000e+00> : vector<8xf32>
    %199 = vector.multi_reduction <add>, %198, %cst_81 [1] : vector<8x32xf32> to vector<8xf32>
    %200 = vector.shape_cast %199 : vector<8xf32> to vector<8x1xf32>
    %cst_82 = arith.constant 3.200000e+01 : f32
    %201 = vector.broadcast %cst_82 : f32 to vector<8x1xf32>
    %202 = arith.divf %200, %201 : vector<8x1xf32>
    %cst_83 = arith.constant 9.99999974E-6 : f32
    %203 = vector.broadcast %cst_83 : f32 to vector<8x1xf32>
    %204 = arith.addf %202, %203 : vector<8x1xf32>
    %205 = math.rsqrt %204 : vector<8x1xf32>
    %206 = vector.broadcast %205 : vector<8x1xf32> to vector<8x32xf32>
    %207 = arith.mulf %197, %206 : vector<8x32xf32>
    %208 = vector.broadcast %189 : vector<1x32xf32> to vector<8x32xf32>
    %209 = arith.mulf %207, %208 : vector<8x32xf32>
    %210 = vector.broadcast %191 : vector<1x32xf32> to vector<8x32xf32>
    %211 = arith.addf %209, %210 : vector<8x32xf32>
    %c0_84 = arith.constant 0 : index
    %c0_85 = arith.constant 0 : index
    %c0_86 = arith.constant 0 : index
    %212 = vector.load %arg14[%c0_84, %c0_85, %c0_86] : memref<2x32x512xf32, #tpu.memory_space<vmem>>, vector<1x32x512xf32>
    %213 = vector.shape_cast %212 : vector<1x32x512xf32> to vector<32x512xf32>
    %c0_87 = arith.constant 0 : index
    %c0_88 = arith.constant 0 : index
    %c0_89 = arith.constant 0 : index
    %214 = vector.load %arg15[%c0_87, %c0_88, %c0_89] : memref<2x1x512xf32, #tpu.memory_space<vmem>>, vector<1x1x512xf32>
    %215 = vector.shape_cast %214 : vector<1x1x512xf32> to vector<1x512xf32>
    %c0_90 = arith.constant 0 : index
    %c0_91 = arith.constant 0 : index
    %c0_92 = arith.constant 0 : index
    %216 = vector.load %arg16[%c0_90, %c0_91, %c0_92] : memref<2x512x32xf32, #tpu.memory_space<vmem>>, vector<1x512x32xf32>
    %217 = vector.shape_cast %216 : vector<1x512x32xf32> to vector<512x32xf32>
    %c0_93 = arith.constant 0 : index
    %c0_94 = arith.constant 0 : index
    %c0_95 = arith.constant 0 : index
    %218 = vector.load %arg17[%c0_93, %c0_94, %c0_95] : memref<2x1x32xf32, #tpu.memory_space<vmem>>, vector<1x1x32xf32>
    %219 = vector.shape_cast %218 : vector<1x1x32xf32> to vector<1x32xf32>
    %cst_96 = arith.constant dense<0.000000e+00> : vector<8x512xf32>
    %220 = tpu.matmul %211, %213, %cst_96 {dimension_numbers = #tpu.dot_dimension_numbers<[1], [0], [0], [1], [0, 0, 1, 1], [], []>} : vector<8x32xf32>, vector<32x512xf32>, vector<8x512xf32> -> vector<8x512xf32>
    %221 = vector.broadcast %215 : vector<1x512xf32> to vector<8x512xf32>
    %222 = arith.addf %220, %221 : vector<8x512xf32>
    %cst_97 = arith.constant 0.000000e+00 : f32
    %223 = vector.broadcast %cst_97 : f32 to vector<8x512xf32>
    %224 = arith.maximumf %222, %223 : vector<8x512xf32>
    %cst_98 = arith.constant dense<0.000000e+00> : vector<8x32xf32>
    %225 = tpu.matmul %224, %217, %cst_98 {dimension_numbers = #tpu.dot_dimension_numbers<[1], [0], [0], [1], [0, 0, 1, 1], [], []>} : vector<8x512xf32>, vector<512x32xf32>, vector<8x32xf32> -> vector<8x32xf32>
    %226 = vector.broadcast %219 : vector<1x32xf32> to vector<8x32xf32>
    %227 = arith.addf %225, %226 : vector<8x32xf32>
    %228 = arith.addf %211, %227 : vector<8x32xf32>
    %c0_99 = arith.constant 0 : index
    %c0_100 = arith.constant 0 : index
    %c0_101 = arith.constant 0 : index
    %229 = vector.load %arg18[%c0_99, %c0_100, %c0_101] : memref<2x1x32xf32, #tpu.memory_space<vmem>>, vector<1x1x32xf32>
    %230 = vector.shape_cast %229 : vector<1x1x32xf32> to vector<1x32xf32>
    %c0_102 = arith.constant 0 : index
    %c0_103 = arith.constant 0 : index
    %c0_104 = arith.constant 0 : index
    %231 = vector.load %arg19[%c0_102, %c0_103, %c0_104] : memref<2x1x32xf32, #tpu.memory_space<vmem>>, vector<1x1x32xf32>
    %232 = vector.shape_cast %231 : vector<1x1x32xf32> to vector<1x32xf32>
    %cst_105 = arith.constant dense<0.000000e+00> : vector<8xf32>
    %233 = vector.multi_reduction <add>, %228, %cst_105 [1] : vector<8x32xf32> to vector<8xf32>
    %234 = vector.shape_cast %233 : vector<8xf32> to vector<8x1xf32>
    %cst_106 = arith.constant 3.200000e+01 : f32
    %235 = vector.broadcast %cst_106 : f32 to vector<8x1xf32>
    %236 = arith.divf %234, %235 : vector<8x1xf32>
    %237 = vector.broadcast %236 : vector<8x1xf32> to vector<8x32xf32>
    %238 = arith.subf %228, %237 : vector<8x32xf32>
    %239 = arith.mulf %238, %238 : vector<8x32xf32>
    %cst_107 = arith.constant dense<0.000000e+00> : vector<8xf32>
    %240 = vector.multi_reduction <add>, %239, %cst_107 [1] : vector<8x32xf32> to vector<8xf32>
    %241 = vector.shape_cast %240 : vector<8xf32> to vector<8x1xf32>
    %cst_108 = arith.constant 3.200000e+01 : f32
    %242 = vector.broadcast %cst_108 : f32 to vector<8x1xf32>
    %243 = arith.divf %241, %242 : vector<8x1xf32>
    %cst_109 = arith.constant 9.99999974E-6 : f32
    %244 = vector.broadcast %cst_109 : f32 to vector<8x1xf32>
    %245 = arith.addf %243, %244 : vector<8x1xf32>
    %246 = math.rsqrt %245 : vector<8x1xf32>
    %247 = vector.broadcast %246 : vector<8x1xf32> to vector<8x32xf32>
    %248 = arith.mulf %238, %247 : vector<8x32xf32>
    %249 = vector.broadcast %230 : vector<1x32xf32> to vector<8x32xf32>
    %250 = arith.mulf %248, %249 : vector<8x32xf32>
    %251 = vector.broadcast %232 : vector<1x32xf32> to vector<8x32xf32>
    %252 = arith.addf %250, %251 : vector<8x32xf32>
    %c1 = arith.constant 1 : index
    %c0_110 = arith.constant 0 : index
    %c0_111 = arith.constant 0 : index
    %c0_112 = arith.constant 0 : index
    %253 = vector.load %arg4[%c1, %c0_110, %c0_111, %c0_112] : memref<2x4x32x8xf32, #tpu.memory_space<vmem>>, vector<1x4x32x8xf32>
    %254 = vector.shape_cast %253 : vector<1x4x32x8xf32> to vector<4x32x8xf32>
    %c1_113 = arith.constant 1 : index
    %c0_114 = arith.constant 0 : index
    %c0_115 = arith.constant 0 : index
    %c0_116 = arith.constant 0 : index
    %255 = vector.load %arg5[%c1_113, %c0_114, %c0_115, %c0_116] : memref<2x4x1x8xf32, #tpu.memory_space<vmem>>, vector<1x4x1x8xf32>
    %256 = vector.shape_cast %255 : vector<1x4x1x8xf32> to vector<4x1x8xf32>
    %c1_117 = arith.constant 1 : index
    %c0_118 = arith.constant 0 : index
    %c0_119 = arith.constant 0 : index
    %c0_120 = arith.constant 0 : index
    %257 = vector.load %arg6[%c1_117, %c0_118, %c0_119, %c0_120] : memref<2x4x32x8xf32, #tpu.memory_space<vmem>>, vector<1x4x32x8xf32>
    %258 = vector.shape_cast %257 : vector<1x4x32x8xf32> to vector<4x32x8xf32>
    %c1_121 = arith.constant 1 : index
    %c0_122 = arith.constant 0 : index
    %c0_123 = arith.constant 0 : index
    %c0_124 = arith.constant 0 : index
    %259 = vector.load %arg7[%c1_121, %c0_122, %c0_123, %c0_124] : memref<2x4x1x8xf32, #tpu.memory_space<vmem>>, vector<1x4x1x8xf32>
    %260 = vector.shape_cast %259 : vector<1x4x1x8xf32> to vector<4x1x8xf32>
    %c1_125 = arith.constant 1 : index
    %c0_126 = arith.constant 0 : index
    %c0_127 = arith.constant 0 : index
    %c0_128 = arith.constant 0 : index
    %261 = vector.load %arg8[%c1_125, %c0_126, %c0_127, %c0_128] : memref<2x4x32x8xf32, #tpu.memory_space<vmem>>, vector<1x4x32x8xf32>
    %262 = vector.shape_cast %261 : vector<1x4x32x8xf32> to vector<4x32x8xf32>
    %c1_129 = arith.constant 1 : index
    %c0_130 = arith.constant 0 : index
    %c0_131 = arith.constant 0 : index
    %c0_132 = arith.constant 0 : index
    %263 = vector.load %arg9[%c1_129, %c0_130, %c0_131, %c0_132] : memref<2x4x1x8xf32, #tpu.memory_space<vmem>>, vector<1x4x1x8xf32>
    %264 = vector.shape_cast %263 : vector<1x4x1x8xf32> to vector<4x1x8xf32>
    %c1_133 = arith.constant 1 : index
    %c0_134 = arith.constant 0 : index
    %c0_135 = arith.constant 0 : index
    %c0_136 = arith.constant 0 : index
    %265 = vector.load %arg10[%c1_133, %c0_134, %c0_135, %c0_136] : memref<2x4x8x32xf32, #tpu.memory_space<vmem>>, vector<1x4x8x32xf32>
    %266 = vector.shape_cast %265 : vector<1x4x8x32xf32> to vector<4x8x32xf32>
    %c1_137 = arith.constant 1 : index
    %c0_138 = arith.constant 0 : index
    %c0_139 = arith.constant 0 : index
    %267 = vector.load %arg11[%c1_137, %c0_138, %c0_139] : memref<2x1x32xf32, #tpu.memory_space<vmem>>, vector<1x1x32xf32>
    %268 = vector.shape_cast %267 : vector<1x1x32xf32> to vector<1x32xf32>
    %269 = vector.extract_strided_slice %254 {offsets = [0, 0, 0], sizes = [1, 32, 8], strides = [1, 1, 1]} : vector<4x32x8xf32> to vector<1x32x8xf32>
    %270 = vector.shape_cast %269 : vector<1x32x8xf32> to vector<32x8xf32>
    %cst_140 = arith.constant dense<0.000000e+00> : vector<8x8xf32>
    %271 = tpu.matmul %252, %270, %cst_140 {dimension_numbers = #tpu.dot_dimension_numbers<[1], [0], [0], [1], [0, 0, 1, 1], [], []>} : vector<8x32xf32>, vector<32x8xf32>, vector<8x8xf32> -> vector<8x8xf32>
    %272 = vector.extract_strided_slice %256 {offsets = [0, 0, 0], sizes = [1, 1, 8], strides = [1, 1, 1]} : vector<4x1x8xf32> to vector<1x1x8xf32>
    %273 = vector.shape_cast %272 : vector<1x1x8xf32> to vector<1x8xf32>
    %274 = vector.broadcast %273 : vector<1x8xf32> to vector<8x8xf32>
    %275 = arith.addf %271, %274 : vector<8x8xf32>
    %276 = vector.extract_strided_slice %258 {offsets = [0, 0, 0], sizes = [1, 32, 8], strides = [1, 1, 1]} : vector<4x32x8xf32> to vector<1x32x8xf32>
    %277 = vector.shape_cast %276 : vector<1x32x8xf32> to vector<32x8xf32>
    %cst_141 = arith.constant dense<0.000000e+00> : vector<8x8xf32>
    %278 = tpu.matmul %252, %277, %cst_141 {dimension_numbers = #tpu.dot_dimension_numbers<[1], [0], [0], [1], [0, 0, 1, 1], [], []>} : vector<8x32xf32>, vector<32x8xf32>, vector<8x8xf32> -> vector<8x8xf32>
    %279 = vector.extract_strided_slice %260 {offsets = [0, 0, 0], sizes = [1, 1, 8], strides = [1, 1, 1]} : vector<4x1x8xf32> to vector<1x1x8xf32>
    %280 = vector.shape_cast %279 : vector<1x1x8xf32> to vector<1x8xf32>
    %281 = vector.broadcast %280 : vector<1x8xf32> to vector<8x8xf32>
    %282 = arith.addf %278, %281 : vector<8x8xf32>
    %283 = vector.extract_strided_slice %262 {offsets = [0, 0, 0], sizes = [1, 32, 8], strides = [1, 1, 1]} : vector<4x32x8xf32> to vector<1x32x8xf32>
    %284 = vector.shape_cast %283 : vector<1x32x8xf32> to vector<32x8xf32>
    %cst_142 = arith.constant dense<0.000000e+00> : vector<8x8xf32>
    %285 = tpu.matmul %252, %284, %cst_142 {dimension_numbers = #tpu.dot_dimension_numbers<[1], [0], [0], [1], [0, 0, 1, 1], [], []>} : vector<8x32xf32>, vector<32x8xf32>, vector<8x8xf32> -> vector<8x8xf32>
    %286 = vector.extract_strided_slice %264 {offsets = [0, 0, 0], sizes = [1, 1, 8], strides = [1, 1, 1]} : vector<4x1x8xf32> to vector<1x1x8xf32>
    %287 = vector.shape_cast %286 : vector<1x1x8xf32> to vector<1x8xf32>
    %288 = vector.broadcast %287 : vector<1x8xf32> to vector<8x8xf32>
    %289 = arith.addf %285, %288 : vector<8x8xf32>
    "tpu.trace_start"() <{level = 10 : i32, message = "qd,kd->qk"}> : () -> ()
    %cst_143 = arith.constant dense<0.000000e+00> : vector<8x8xf32>
    %290 = tpu.matmul %275, %282, %cst_143 {dimension_numbers = #tpu.dot_dimension_numbers<[1], [1], [0], [0], [0, 0, 1, 0], [], []>} : vector<8x8xf32>, vector<8x8xf32>, vector<8x8xf32> -> vector<8x8xf32>
    "tpu.trace_stop"() : () -> ()
    %cst_144 = arith.constant 0.353553385 : f32
    %291 = vector.broadcast %cst_144 : f32 to vector<8x8xf32>
    %292 = arith.mulf %290, %291 : vector<8x8xf32>
    %293 = vector.broadcast %5 : vector<1x8xf32> to vector<8x8xf32>
    %294 = arith.addf %292, %293 : vector<8x8xf32>
    %cst_145 = arith.constant dense<0xFF800000> : vector<8xf32>
    %295 = vector.multi_reduction <maximumf>, %294, %cst_145 [1] : vector<8x8xf32> to vector<8xf32>
    %296 = vector.shape_cast %295 : vector<8xf32> to vector<8x1xf32>
    %297 = vector.broadcast %296 : vector<8x1xf32> to vector<8x8xf32>
    %298 = arith.subf %294, %297 : vector<8x8xf32>
    %299 = math.exp %298 : vector<8x8xf32>
    %cst_146 = arith.constant dense<0.000000e+00> : vector<8xf32>
    %300 = vector.multi_reduction <add>, %299, %cst_146 [1] : vector<8x8xf32> to vector<8xf32>
    %301 = vector.shape_cast %300 : vector<8xf32> to vector<8x1xf32>
    %302 = tpu.reciprocal %301 {approx = true} : vector<8x1xf32> -> vector<8x1xf32>
    %303 = vector.broadcast %302 : vector<8x1xf32> to vector<8x8xf32>
    %304 = arith.mulf %299, %303 : vector<8x8xf32>
    %cst_147 = arith.constant dense<0.000000e+00> : vector<8x8xf32>
    %305 = tpu.matmul %304, %289, %cst_147 {dimension_numbers = #tpu.dot_dimension_numbers<[1], [0], [0], [1], [0, 0, 1, 1], [], []>} : vector<8x8xf32>, vector<8x8xf32>, vector<8x8xf32> -> vector<8x8xf32>
    %306 = vector.extract_strided_slice %266 {offsets = [0, 0, 0], sizes = [1, 8, 32], strides = [1, 1, 1]} : vector<4x8x32xf32> to vector<1x8x32xf32>
    %307 = vector.shape_cast %306 : vector<1x8x32xf32> to vector<8x32xf32>
    %cst_148 = arith.constant dense<0.000000e+00> : vector<8x32xf32>
    %308 = tpu.matmul %305, %307, %cst_148 {dimension_numbers = #tpu.dot_dimension_numbers<[1], [0], [0], [1], [0, 0, 1, 1], [], []>} : vector<8x8xf32>, vector<8x32xf32>, vector<8x32xf32> -> vector<8x32xf32>
    %309 = vector.broadcast %268 : vector<1x32xf32> to vector<8x32xf32>
    %310 = arith.addf %309, %308 : vector<8x32xf32>
    %311 = vector.extract_strided_slice %254 {offsets = [1, 0, 0], sizes = [1, 32, 8], strides = [1, 1, 1]} : vector<4x32x8xf32> to vector<1x32x8xf32>
    %312 = vector.shape_cast %311 : vector<1x32x8xf32> to vector<32x8xf32>
    %cst_149 = arith.constant dense<0.000000e+00> : vector<8x8xf32>
    %313 = tpu.matmul %252, %312, %cst_149 {dimension_numbers = #tpu.dot_dimension_numbers<[1], [0], [0], [1], [0, 0, 1, 1], [], []>} : vector<8x32xf32>, vector<32x8xf32>, vector<8x8xf32> -> vector<8x8xf32>
    %314 = vector.extract_strided_slice %256 {offsets = [1, 0, 0], sizes = [1, 1, 8], strides = [1, 1, 1]} : vector<4x1x8xf32> to vector<1x1x8xf32>
    %315 = vector.shape_cast %314 : vector<1x1x8xf32> to vector<1x8xf32>
    %316 = vector.broadcast %315 : vector<1x8xf32> to vector<8x8xf32>
    %317 = arith.addf %313, %316 : vector<8x8xf32>
    %318 = vector.extract_strided_slice %258 {offsets = [1, 0, 0], sizes = [1, 32, 8], strides = [1, 1, 1]} : vector<4x32x8xf32> to vector<1x32x8xf32>
    %319 = vector.shape_cast %318 : vector<1x32x8xf32> to vector<32x8xf32>
    %cst_150 = arith.constant dense<0.000000e+00> : vector<8x8xf32>
    %320 = tpu.matmul %252, %319, %cst_150 {dimension_numbers = #tpu.dot_dimension_numbers<[1], [0], [0], [1], [0, 0, 1, 1], [], []>} : vector<8x32xf32>, vector<32x8xf32>, vector<8x8xf32> -> vector<8x8xf32>
    %321 = vector.extract_strided_slice %260 {offsets = [1, 0, 0], sizes = [1, 1, 8], strides = [1, 1, 1]} : vector<4x1x8xf32> to vector<1x1x8xf32>
    %322 = vector.shape_cast %321 : vector<1x1x8xf32> to vector<1x8xf32>
    %323 = vector.broadcast %322 : vector<1x8xf32> to vector<8x8xf32>
    %324 = arith.addf %320, %323 : vector<8x8xf32>
    %325 = vector.extract_strided_slice %262 {offsets = [1, 0, 0], sizes = [1, 32, 8], strides = [1, 1, 1]} : vector<4x32x8xf32> to vector<1x32x8xf32>
    %326 = vector.shape_cast %325 : vector<1x32x8xf32> to vector<32x8xf32>
    %cst_151 = arith.constant dense<0.000000e+00> : vector<8x8xf32>
    %327 = tpu.matmul %252, %326, %cst_151 {dimension_numbers = #tpu.dot_dimension_numbers<[1], [0], [0], [1], [0, 0, 1, 1], [], []>} : vector<8x32xf32>, vector<32x8xf32>, vector<8x8xf32> -> vector<8x8xf32>
    %328 = vector.extract_strided_slice %264 {offsets = [1, 0, 0], sizes = [1, 1, 8], strides = [1, 1, 1]} : vector<4x1x8xf32> to vector<1x1x8xf32>
    %329 = vector.shape_cast %328 : vector<1x1x8xf32> to vector<1x8xf32>
    %330 = vector.broadcast %329 : vector<1x8xf32> to vector<8x8xf32>
    %331 = arith.addf %327, %330 : vector<8x8xf32>
    "tpu.trace_start"() <{level = 10 : i32, message = "qd,kd->qk"}> : () -> ()
    %cst_152 = arith.constant dense<0.000000e+00> : vector<8x8xf32>
    %332 = tpu.matmul %317, %324, %cst_152 {dimension_numbers = #tpu.dot_dimension_numbers<[1], [1], [0], [0], [0, 0, 1, 0], [], []>} : vector<8x8xf32>, vector<8x8xf32>, vector<8x8xf32> -> vector<8x8xf32>
    "tpu.trace_stop"() : () -> ()
    %cst_153 = arith.constant 0.353553385 : f32
    %333 = vector.broadcast %cst_153 : f32 to vector<8x8xf32>
    %334 = arith.mulf %332, %333 : vector<8x8xf32>
    %335 = vector.broadcast %5 : vector<1x8xf32> to vector<8x8xf32>
    %336 = arith.addf %334, %335 : vector<8x8xf32>
    %cst_154 = arith.constant dense<0xFF800000> : vector<8xf32>
    %337 = vector.multi_reduction <maximumf>, %336, %cst_154 [1] : vector<8x8xf32> to vector<8xf32>
    %338 = vector.shape_cast %337 : vector<8xf32> to vector<8x1xf32>
    %339 = vector.broadcast %338 : vector<8x1xf32> to vector<8x8xf32>
    %340 = arith.subf %336, %339 : vector<8x8xf32>
    %341 = math.exp %340 : vector<8x8xf32>
    %cst_155 = arith.constant dense<0.000000e+00> : vector<8xf32>
    %342 = vector.multi_reduction <add>, %341, %cst_155 [1] : vector<8x8xf32> to vector<8xf32>
    %343 = vector.shape_cast %342 : vector<8xf32> to vector<8x1xf32>
    %344 = tpu.reciprocal %343 {approx = true} : vector<8x1xf32> -> vector<8x1xf32>
    %345 = vector.broadcast %344 : vector<8x1xf32> to vector<8x8xf32>
    %346 = arith.mulf %341, %345 : vector<8x8xf32>
    %cst_156 = arith.constant dense<0.000000e+00> : vector<8x8xf32>
    %347 = tpu.matmul %346, %331, %cst_156 {dimension_numbers = #tpu.dot_dimension_numbers<[1], [0], [0], [1], [0, 0, 1, 1], [], []>} : vector<8x8xf32>, vector<8x8xf32>, vector<8x8xf32> -> vector<8x8xf32>
    %348 = vector.extract_strided_slice %266 {offsets = [1, 0, 0], sizes = [1, 8, 32], strides = [1, 1, 1]} : vector<4x8x32xf32> to vector<1x8x32xf32>
    %349 = vector.shape_cast %348 : vector<1x8x32xf32> to vector<8x32xf32>
    %cst_157 = arith.constant dense<0.000000e+00> : vector<8x32xf32>
    %350 = tpu.matmul %347, %349, %cst_157 {dimension_numbers = #tpu.dot_dimension_numbers<[1], [0], [0], [1], [0, 0, 1, 1], [], []>} : vector<8x8xf32>, vector<8x32xf32>, vector<8x32xf32> -> vector<8x32xf32>
    %351 = arith.addf %310, %350 : vector<8x32xf32>
    %352 = vector.extract_strided_slice %254 {offsets = [2, 0, 0], sizes = [1, 32, 8], strides = [1, 1, 1]} : vector<4x32x8xf32> to vector<1x32x8xf32>
    %353 = vector.shape_cast %352 : vector<1x32x8xf32> to vector<32x8xf32>
    %cst_158 = arith.constant dense<0.000000e+00> : vector<8x8xf32>
    %354 = tpu.matmul %252, %353, %cst_158 {dimension_numbers = #tpu.dot_dimension_numbers<[1], [0], [0], [1], [0, 0, 1, 1], [], []>} : vector<8x32xf32>, vector<32x8xf32>, vector<8x8xf32> -> vector<8x8xf32>
    %355 = vector.extract_strided_slice %256 {offsets = [2, 0, 0], sizes = [1, 1, 8], strides = [1, 1, 1]} : vector<4x1x8xf32> to vector<1x1x8xf32>
    %356 = vector.shape_cast %355 : vector<1x1x8xf32> to vector<1x8xf32>
    %357 = vector.broadcast %356 : vector<1x8xf32> to vector<8x8xf32>
    %358 = arith.addf %354, %357 : vector<8x8xf32>
    %359 = vector.extract_strided_slice %258 {offsets = [2, 0, 0], sizes = [1, 32, 8], strides = [1, 1, 1]} : vector<4x32x8xf32> to vector<1x32x8xf32>
    %360 = vector.shape_cast %359 : vector<1x32x8xf32> to vector<32x8xf32>
    %cst_159 = arith.constant dense<0.000000e+00> : vector<8x8xf32>
    %361 = tpu.matmul %252, %360, %cst_159 {dimension_numbers = #tpu.dot_dimension_numbers<[1], [0], [0], [1], [0, 0, 1, 1], [], []>} : vector<8x32xf32>, vector<32x8xf32>, vector<8x8xf32> -> vector<8x8xf32>
    %362 = vector.extract_strided_slice %260 {offsets = [2, 0, 0], sizes = [1, 1, 8], strides = [1, 1, 1]} : vector<4x1x8xf32> to vector<1x1x8xf32>
    %363 = vector.shape_cast %362 : vector<1x1x8xf32> to vector<1x8xf32>
    %364 = vector.broadcast %363 : vector<1x8xf32> to vector<8x8xf32>
    %365 = arith.addf %361, %364 : vector<8x8xf32>
    %366 = vector.extract_strided_slice %262 {offsets = [2, 0, 0], sizes = [1, 32, 8], strides = [1, 1, 1]} : vector<4x32x8xf32> to vector<1x32x8xf32>
    %367 = vector.shape_cast %366 : vector<1x32x8xf32> to vector<32x8xf32>
    %cst_160 = arith.constant dense<0.000000e+00> : vector<8x8xf32>
    %368 = tpu.matmul %252, %367, %cst_160 {dimension_numbers = #tpu.dot_dimension_numbers<[1], [0], [0], [1], [0, 0, 1, 1], [], []>} : vector<8x32xf32>, vector<32x8xf32>, vector<8x8xf32> -> vector<8x8xf32>
    %369 = vector.extract_strided_slice %264 {offsets = [2, 0, 0], sizes = [1, 1, 8], strides = [1, 1, 1]} : vector<4x1x8xf32> to vector<1x1x8xf32>
    %370 = vector.shape_cast %369 : vector<1x1x8xf32> to vector<1x8xf32>
    %371 = vector.broadcast %370 : vector<1x8xf32> to vector<8x8xf32>
    %372 = arith.addf %368, %371 : vector<8x8xf32>
    "tpu.trace_start"() <{level = 10 : i32, message = "qd,kd->qk"}> : () -> ()
    %cst_161 = arith.constant dense<0.000000e+00> : vector<8x8xf32>
    %373 = tpu.matmul %358, %365, %cst_161 {dimension_numbers = #tpu.dot_dimension_numbers<[1], [1], [0], [0], [0, 0, 1, 0], [], []>} : vector<8x8xf32>, vector<8x8xf32>, vector<8x8xf32> -> vector<8x8xf32>
    "tpu.trace_stop"() : () -> ()
    %cst_162 = arith.constant 0.353553385 : f32
    %374 = vector.broadcast %cst_162 : f32 to vector<8x8xf32>
    %375 = arith.mulf %373, %374 : vector<8x8xf32>
    %376 = vector.broadcast %5 : vector<1x8xf32> to vector<8x8xf32>
    %377 = arith.addf %375, %376 : vector<8x8xf32>
    %cst_163 = arith.constant dense<0xFF800000> : vector<8xf32>
    %378 = vector.multi_reduction <maximumf>, %377, %cst_163 [1] : vector<8x8xf32> to vector<8xf32>
    %379 = vector.shape_cast %378 : vector<8xf32> to vector<8x1xf32>
    %380 = vector.broadcast %379 : vector<8x1xf32> to vector<8x8xf32>
    %381 = arith.subf %377, %380 : vector<8x8xf32>
    %382 = math.exp %381 : vector<8x8xf32>
    %cst_164 = arith.constant dense<0.000000e+00> : vector<8xf32>
    %383 = vector.multi_reduction <add>, %382, %cst_164 [1] : vector<8x8xf32> to vector<8xf32>
    %384 = vector.shape_cast %383 : vector<8xf32> to vector<8x1xf32>
    %385 = tpu.reciprocal %384 {approx = true} : vector<8x1xf32> -> vector<8x1xf32>
    %386 = vector.broadcast %385 : vector<8x1xf32> to vector<8x8xf32>
    %387 = arith.mulf %382, %386 : vector<8x8xf32>
    %cst_165 = arith.constant dense<0.000000e+00> : vector<8x8xf32>
    %388 = tpu.matmul %387, %372, %cst_165 {dimension_numbers = #tpu.dot_dimension_numbers<[1], [0], [0], [1], [0, 0, 1, 1], [], []>} : vector<8x8xf32>, vector<8x8xf32>, vector<8x8xf32> -> vector<8x8xf32>
    %389 = vector.extract_strided_slice %266 {offsets = [2, 0, 0], sizes = [1, 8, 32], strides = [1, 1, 1]} : vector<4x8x32xf32> to vector<1x8x32xf32>
    %390 = vector.shape_cast %389 : vector<1x8x32xf32> to vector<8x32xf32>
    %cst_166 = arith.constant dense<0.000000e+00> : vector<8x32xf32>
    %391 = tpu.matmul %388, %390, %cst_166 {dimension_numbers = #tpu.dot_dimension_numbers<[1], [0], [0], [1], [0, 0, 1, 1], [], []>} : vector<8x8xf32>, vector<8x32xf32>, vector<8x32xf32> -> vector<8x32xf32>
    %392 = arith.addf %351, %391 : vector<8x32xf32>
    %393 = vector.extract_strided_slice %254 {offsets = [3, 0, 0], sizes = [1, 32, 8], strides = [1, 1, 1]} : vector<4x32x8xf32> to vector<1x32x8xf32>
    %394 = vector.shape_cast %393 : vector<1x32x8xf32> to vector<32x8xf32>
    %cst_167 = arith.constant dense<0.000000e+00> : vector<8x8xf32>
    %395 = tpu.matmul %252, %394, %cst_167 {dimension_numbers = #tpu.dot_dimension_numbers<[1], [0], [0], [1], [0, 0, 1, 1], [], []>} : vector<8x32xf32>, vector<32x8xf32>, vector<8x8xf32> -> vector<8x8xf32>
    %396 = vector.extract_strided_slice %256 {offsets = [3, 0, 0], sizes = [1, 1, 8], strides = [1, 1, 1]} : vector<4x1x8xf32> to vector<1x1x8xf32>
    %397 = vector.shape_cast %396 : vector<1x1x8xf32> to vector<1x8xf32>
    %398 = vector.broadcast %397 : vector<1x8xf32> to vector<8x8xf32>
    %399 = arith.addf %395, %398 : vector<8x8xf32>
    %400 = vector.extract_strided_slice %258 {offsets = [3, 0, 0], sizes = [1, 32, 8], strides = [1, 1, 1]} : vector<4x32x8xf32> to vector<1x32x8xf32>
    %401 = vector.shape_cast %400 : vector<1x32x8xf32> to vector<32x8xf32>
    %cst_168 = arith.constant dense<0.000000e+00> : vector<8x8xf32>
    %402 = tpu.matmul %252, %401, %cst_168 {dimension_numbers = #tpu.dot_dimension_numbers<[1], [0], [0], [1], [0, 0, 1, 1], [], []>} : vector<8x32xf32>, vector<32x8xf32>, vector<8x8xf32> -> vector<8x8xf32>
    %403 = vector.extract_strided_slice %260 {offsets = [3, 0, 0], sizes = [1, 1, 8], strides = [1, 1, 1]} : vector<4x1x8xf32> to vector<1x1x8xf32>
    %404 = vector.shape_cast %403 : vector<1x1x8xf32> to vector<1x8xf32>
    %405 = vector.broadcast %404 : vector<1x8xf32> to vector<8x8xf32>
    %406 = arith.addf %402, %405 : vector<8x8xf32>
    %407 = vector.extract_strided_slice %262 {offsets = [3, 0, 0], sizes = [1, 32, 8], strides = [1, 1, 1]} : vector<4x32x8xf32> to vector<1x32x8xf32>
    %408 = vector.shape_cast %407 : vector<1x32x8xf32> to vector<32x8xf32>
    %cst_169 = arith.constant dense<0.000000e+00> : vector<8x8xf32>
    %409 = tpu.matmul %252, %408, %cst_169 {dimension_numbers = #tpu.dot_dimension_numbers<[1], [0], [0], [1], [0, 0, 1, 1], [], []>} : vector<8x32xf32>, vector<32x8xf32>, vector<8x8xf32> -> vector<8x8xf32>
    %410 = vector.extract_strided_slice %264 {offsets = [3, 0, 0], sizes = [1, 1, 8], strides = [1, 1, 1]} : vector<4x1x8xf32> to vector<1x1x8xf32>
    %411 = vector.shape_cast %410 : vector<1x1x8xf32> to vector<1x8xf32>
    %412 = vector.broadcast %411 : vector<1x8xf32> to vector<8x8xf32>
    %413 = arith.addf %409, %412 : vector<8x8xf32>
    "tpu.trace_start"() <{level = 10 : i32, message = "qd,kd->qk"}> : () -> ()
    %cst_170 = arith.constant dense<0.000000e+00> : vector<8x8xf32>
    %414 = tpu.matmul %399, %406, %cst_170 {dimension_numbers = #tpu.dot_dimension_numbers<[1], [1], [0], [0], [0, 0, 1, 0], [], []>} : vector<8x8xf32>, vector<8x8xf32>, vector<8x8xf32> -> vector<8x8xf32>
    "tpu.trace_stop"() : () -> ()
    %cst_171 = arith.constant 0.353553385 : f32
    %415 = vector.broadcast %cst_171 : f32 to vector<8x8xf32>
    %416 = arith.mulf %414, %415 : vector<8x8xf32>
    %417 = vector.broadcast %5 : vector<1x8xf32> to vector<8x8xf32>
    %418 = arith.addf %416, %417 : vector<8x8xf32>
    %cst_172 = arith.constant dense<0xFF800000> : vector<8xf32>
    %419 = vector.multi_reduction <maximumf>, %418, %cst_172 [1] : vector<8x8xf32> to vector<8xf32>
    %420 = vector.shape_cast %419 : vector<8xf32> to vector<8x1xf32>
    %421 = vector.broadcast %420 : vector<8x1xf32> to vector<8x8xf32>
    %422 = arith.subf %418, %421 : vector<8x8xf32>
    %423 = math.exp %422 : vector<8x8xf32>
    %cst_173 = arith.constant dense<0.000000e+00> : vector<8xf32>
    %424 = vector.multi_reduction <add>, %423, %cst_173 [1] : vector<8x8xf32> to vector<8xf32>
    %425 = vector.shape_cast %424 : vector<8xf32> to vector<8x1xf32>
    %426 = tpu.reciprocal %425 {approx = true} : vector<8x1xf32> -> vector<8x1xf32>
    %427 = vector.broadcast %426 : vector<8x1xf32> to vector<8x8xf32>
    %428 = arith.mulf %423, %427 : vector<8x8xf32>
    %cst_174 = arith.constant dense<0.000000e+00> : vector<8x8xf32>
    %429 = tpu.matmul %428, %413, %cst_174 {dimension_numbers = #tpu.dot_dimension_numbers<[1], [0], [0], [1], [0, 0, 1, 1], [], []>} : vector<8x8xf32>, vector<8x8xf32>, vector<8x8xf32> -> vector<8x8xf32>
    %430 = vector.extract_strided_slice %266 {offsets = [3, 0, 0], sizes = [1, 8, 32], strides = [1, 1, 1]} : vector<4x8x32xf32> to vector<1x8x32xf32>
    %431 = vector.shape_cast %430 : vector<1x8x32xf32> to vector<8x32xf32>
    %cst_175 = arith.constant dense<0.000000e+00> : vector<8x32xf32>
    %432 = tpu.matmul %429, %431, %cst_175 {dimension_numbers = #tpu.dot_dimension_numbers<[1], [0], [0], [1], [0, 0, 1, 1], [], []>} : vector<8x8xf32>, vector<8x32xf32>, vector<8x32xf32> -> vector<8x32xf32>
    %433 = arith.addf %392, %432 : vector<8x32xf32>
    %434 = arith.addf %252, %433 : vector<8x32xf32>
    %c1_176 = arith.constant 1 : index
    %c0_177 = arith.constant 0 : index
    %c0_178 = arith.constant 0 : index
    %435 = vector.load %arg12[%c1_176, %c0_177, %c0_178] : memref<2x1x32xf32, #tpu.memory_space<vmem>>, vector<1x1x32xf32>
    %436 = vector.shape_cast %435 : vector<1x1x32xf32> to vector<1x32xf32>
    %c1_179 = arith.constant 1 : index
    %c0_180 = arith.constant 0 : index
    %c0_181 = arith.constant 0 : index
    %437 = vector.load %arg13[%c1_179, %c0_180, %c0_181] : memref<2x1x32xf32, #tpu.memory_space<vmem>>, vector<1x1x32xf32>
    %438 = vector.shape_cast %437 : vector<1x1x32xf32> to vector<1x32xf32>
    %cst_182 = arith.constant dense<0.000000e+00> : vector<8xf32>
    %439 = vector.multi_reduction <add>, %434, %cst_182 [1] : vector<8x32xf32> to vector<8xf32>
    %440 = vector.shape_cast %439 : vector<8xf32> to vector<8x1xf32>
    %cst_183 = arith.constant 3.200000e+01 : f32
    %441 = vector.broadcast %cst_183 : f32 to vector<8x1xf32>
    %442 = arith.divf %440, %441 : vector<8x1xf32>
    %443 = vector.broadcast %442 : vector<8x1xf32> to vector<8x32xf32>
    %444 = arith.subf %434, %443 : vector<8x32xf32>
    %445 = arith.mulf %444, %444 : vector<8x32xf32>
    %cst_184 = arith.constant dense<0.000000e+00> : vector<8xf32>
    %446 = vector.multi_reduction <add>, %445, %cst_184 [1] : vector<8x32xf32> to vector<8xf32>
    %447 = vector.shape_cast %446 : vector<8xf32> to vector<8x1xf32>
    %cst_185 = arith.constant 3.200000e+01 : f32
    %448 = vector.broadcast %cst_185 : f32 to vector<8x1xf32>
    %449 = arith.divf %447, %448 : vector<8x1xf32>
    %cst_186 = arith.constant 9.99999974E-6 : f32
    %450 = vector.broadcast %cst_186 : f32 to vector<8x1xf32>
    %451 = arith.addf %449, %450 : vector<8x1xf32>
    %452 = math.rsqrt %451 : vector<8x1xf32>
    %453 = vector.broadcast %452 : vector<8x1xf32> to vector<8x32xf32>
    %454 = arith.mulf %444, %453 : vector<8x32xf32>
    %455 = vector.broadcast %436 : vector<1x32xf32> to vector<8x32xf32>
    %456 = arith.mulf %454, %455 : vector<8x32xf32>
    %457 = vector.broadcast %438 : vector<1x32xf32> to vector<8x32xf32>
    %458 = arith.addf %456, %457 : vector<8x32xf32>
    %c1_187 = arith.constant 1 : index
    %c0_188 = arith.constant 0 : index
    %c0_189 = arith.constant 0 : index
    %459 = vector.load %arg14[%c1_187, %c0_188, %c0_189] : memref<2x32x512xf32, #tpu.memory_space<vmem>>, vector<1x32x512xf32>
    %460 = vector.shape_cast %459 : vector<1x32x512xf32> to vector<32x512xf32>
    %c1_190 = arith.constant 1 : index
    %c0_191 = arith.constant 0 : index
    %c0_192 = arith.constant 0 : index
    %461 = vector.load %arg15[%c1_190, %c0_191, %c0_192] : memref<2x1x512xf32, #tpu.memory_space<vmem>>, vector<1x1x512xf32>
    %462 = vector.shape_cast %461 : vector<1x1x512xf32> to vector<1x512xf32>
    %c1_193 = arith.constant 1 : index
    %c0_194 = arith.constant 0 : index
    %c0_195 = arith.constant 0 : index
    %463 = vector.load %arg16[%c1_193, %c0_194, %c0_195] : memref<2x512x32xf32, #tpu.memory_space<vmem>>, vector<1x512x32xf32>
    %464 = vector.shape_cast %463 : vector<1x512x32xf32> to vector<512x32xf32>
    %c1_196 = arith.constant 1 : index
    %c0_197 = arith.constant 0 : index
    %c0_198 = arith.constant 0 : index
    %465 = vector.load %arg17[%c1_196, %c0_197, %c0_198] : memref<2x1x32xf32, #tpu.memory_space<vmem>>, vector<1x1x32xf32>
    %466 = vector.shape_cast %465 : vector<1x1x32xf32> to vector<1x32xf32>
    %cst_199 = arith.constant dense<0.000000e+00> : vector<8x512xf32>
    %467 = tpu.matmul %458, %460, %cst_199 {dimension_numbers = #tpu.dot_dimension_numbers<[1], [0], [0], [1], [0, 0, 1, 1], [], []>} : vector<8x32xf32>, vector<32x512xf32>, vector<8x512xf32> -> vector<8x512xf32>
    %468 = vector.broadcast %462 : vector<1x512xf32> to vector<8x512xf32>
    %469 = arith.addf %467, %468 : vector<8x512xf32>
    %cst_200 = arith.constant 0.000000e+00 : f32
    %470 = vector.broadcast %cst_200 : f32 to vector<8x512xf32>
    %471 = arith.maximumf %469, %470 : vector<8x512xf32>
    %cst_201 = arith.constant dense<0.000000e+00> : vector<8x32xf32>
    %472 = tpu.matmul %471, %464, %cst_201 {dimension_numbers = #tpu.dot_dimension_numbers<[1], [0], [0], [1], [0, 0, 1, 1], [], []>} : vector<8x512xf32>, vector<512x32xf32>, vector<8x32xf32> -> vector<8x32xf32>
    %473 = vector.broadcast %466 : vector<1x32xf32> to vector<8x32xf32>
    %474 = arith.addf %472, %473 : vector<8x32xf32>
    %475 = arith.addf %458, %474 : vector<8x32xf32>
    %c1_202 = arith.constant 1 : index
    %c0_203 = arith.constant 0 : index
    %c0_204 = arith.constant 0 : index
    %476 = vector.load %arg18[%c1_202, %c0_203, %c0_204] : memref<2x1x32xf32, #tpu.memory_space<vmem>>, vector<1x1x32xf32>
    %477 = vector.shape_cast %476 : vector<1x1x32xf32> to vector<1x32xf32>
    %c1_205 = arith.constant 1 : index
    %c0_206 = arith.constant 0 : index
    %c0_207 = arith.constant 0 : index
    %478 = vector.load %arg19[%c1_205, %c0_206, %c0_207] : memref<2x1x32xf32, #tpu.memory_space<vmem>>, vector<1x1x32xf32>
    %479 = vector.shape_cast %478 : vector<1x1x32xf32> to vector<1x32xf32>
    %cst_208 = arith.constant dense<0.000000e+00> : vector<8xf32>
    %480 = vector.multi_reduction <add>, %475, %cst_208 [1] : vector<8x32xf32> to vector<8xf32>
    %481 = vector.shape_cast %480 : vector<8xf32> to vector<8x1xf32>
    %cst_209 = arith.constant 3.200000e+01 : f32
    %482 = vector.broadcast %cst_209 : f32 to vector<8x1xf32>
    %483 = arith.divf %481, %482 : vector<8x1xf32>
    %484 = vector.broadcast %483 : vector<8x1xf32> to vector<8x32xf32>
    %485 = arith.subf %475, %484 : vector<8x32xf32>
    %486 = arith.mulf %485, %485 : vector<8x32xf32>
    %cst_210 = arith.constant dense<0.000000e+00> : vector<8xf32>
    %487 = vector.multi_reduction <add>, %486, %cst_210 [1] : vector<8x32xf32> to vector<8xf32>
    %488 = vector.shape_cast %487 : vector<8xf32> to vector<8x1xf32>
    %cst_211 = arith.constant 3.200000e+01 : f32
    %489 = vector.broadcast %cst_211 : f32 to vector<8x1xf32>
    %490 = arith.divf %488, %489 : vector<8x1xf32>
    %cst_212 = arith.constant 9.99999974E-6 : f32
    %491 = vector.broadcast %cst_212 : f32 to vector<8x1xf32>
    %492 = arith.addf %490, %491 : vector<8x1xf32>
    %493 = math.rsqrt %492 : vector<8x1xf32>
    %494 = vector.broadcast %493 : vector<8x1xf32> to vector<8x32xf32>
    %495 = arith.mulf %485, %494 : vector<8x32xf32>
    %496 = vector.broadcast %477 : vector<1x32xf32> to vector<8x32xf32>
    %497 = arith.mulf %495, %496 : vector<8x32xf32>
    %498 = vector.broadcast %479 : vector<1x32xf32> to vector<8x32xf32>
    %499 = arith.addf %497, %498 : vector<8x32xf32>
    %cst_213 = arith.constant dense<0.000000e+00> : vector<32xf32>
    %500 = vector.multi_reduction <add>, %499, %cst_213 [0] : vector<8x32xf32> to vector<32xf32>
    %501 = vector.shape_cast %500 : vector<32xf32> to vector<1x32xf32>
    %cst_214 = arith.constant 8.000000e+00 : f32
    %502 = vector.broadcast %cst_214 : f32 to vector<1x32xf32>
    %503 = arith.divf %501, %502 : vector<1x32xf32>
    %c0_215 = arith.constant 0 : index
    %c0_216 = arith.constant 0 : index
    %c0_217 = arith.constant 0 : index
    %504 = vector.load %arg20[%c0_215, %c0_216, %c0_217] : memref<1x1x32xf32, #tpu.memory_space<vmem>>, vector<1x1x32xf32>
    %505 = vector.shape_cast %504 : vector<1x1x32xf32> to vector<1x32xf32>
    %506 = vector.shape_cast %503 : vector<1x32xf32> to vector<1x1x32xf32>
    tpu.vector_store %arg20[%c0_215, %c0_216, %c0_217], %506 {strides = array<i32>} : memref<1x1x32xf32, #tpu.memory_space<vmem>>, vector<1x1x32xf32>,
    return
  }
  func.func @transform_0(%arg0: i32) -> (i32, i32, i32) {
    %c0_i32 = arith.constant 0 : i32
    %c0_i32_0 = arith.constant 0 : i32
    %c0_i32_1 = arith.constant 0 : i32
    return %arg0, %c0_i32, %c0_i32_0 : i32, i32, i32
  }
  func.func @transform_1(%arg0: i32) -> (i32, i32, i32) {
    %c0_i32 = arith.constant 0 : i32
    %c0_i32_0 = arith.constant 0 : i32
    %c0_i32_1 = arith.constant 0 : i32
    return %arg0, %c0_i32, %c0_i32_0 : i32, i32, i32
  }
  func.func @transform_2(%arg0: i32) -> (i32, i32) {
    %c0_i32 = arith.constant 0 : i32
    %c0_i32_0 = arith.constant 0 : i32
    %c0_i32_1 = arith.constant 0 : i32
    return %c0_i32, %c0_i32_0 : i32, i32
  }
  func.func @transform_3(%arg0: i32) -> (i32, i32, i32, i32) {
    %c0_i32 = arith.constant 0 : i32
    %c0_i32_0 = arith.constant 0 : i32
    %c0_i32_1 = arith.constant 0 : i32
    %c0_i32_2 = arith.constant 0 : i32
    %c0_i32_3 = arith.constant 0 : i32
    return %c0_i32, %c0_i32_0, %c0_i32_1, %c0_i32_2 : i32, i32, i32, i32
  }
  func.func @transform_4(%arg0: i32) -> (i32, i32, i32, i32) {
    %c0_i32 = arith.constant 0 : i32
    %c0_i32_0 = arith.constant 0 : i32
    %c0_i32_1 = arith.constant 0 : i32
    %c0_i32_2 = arith.constant 0 : i32
    %c0_i32_3 = arith.constant 0 : i32
    return %c0_i32, %c0_i32_0, %c0_i32_1, %c0_i32_2 : i32, i32, i32, i32
  }
  func.func @transform_5(%arg0: i32) -> (i32, i32, i32, i32) {
    %c0_i32 = arith.constant 0 : i32
    %c0_i32_0 = arith.constant 0 : i32
    %c0_i32_1 = arith.constant 0 : i32
    %c0_i32_2 = arith.constant 0 : i32
    %c0_i32_3 = arith.constant 0 : i32
    return %c0_i32, %c0_i32_0, %c0_i32_1, %c0_i32_2 : i32, i32, i32, i32
  }
  func.func @transform_6(%arg0: i32) -> (i32, i32, i32, i32) {
    %c0_i32 = arith.constant 0 : i32
    %c0_i32_0 = arith.constant 0 : i32
    %c0_i32_1 = arith.constant 0 : i32
    %c0_i32_2 = arith.constant 0 : i32
    %c0_i32_3 = arith.constant 0 : i32
    return %c0_i32, %c0_i32_0, %c0_i32_1, %c0_i32_2 : i32, i32, i32, i32
  }
  func.func @transform_7(%arg0: i32) -> (i32, i32, i32, i32) {
    %c0_i32 = arith.constant 0 : i32
    %c0_i32_0 = arith.constant 0 : i32
    %c0_i32_1 = arith.constant 0 : i32
    %c0_i32_2 = arith.constant 0 : i32
    %c0_i32_3 = arith.constant 0 : i32
    return %c0_i32, %c0_i32_0, %c0_i32_1, %c0_i32_2 : i32, i32, i32, i32
  }
  func.func @transform_8(%arg0: i32) -> (i32, i32, i32, i32) {
    %c0_i32 = arith.constant 0 : i32
    %c0_i32_0 = arith.constant 0 : i32
    %c0_i32_1 = arith.constant 0 : i32
    %c0_i32_2 = arith.constant 0 : i32
    %c0_i32_3 = arith.constant 0 : i32
    return %c0_i32, %c0_i32_0, %c0_i32_1, %c0_i32_2 : i32, i32, i32, i32
  }
  func.func @transform_9(%arg0: i32) -> (i32, i32, i32, i32) {
    %c0_i32 = arith.constant 0 : i32
    %c0_i32_0 = arith.constant 0 : i32
    %c0_i32_1 = arith.constant 0 : i32
    %c0_i32_2 = arith.constant 0 : i32
    %c0_i32_3 = arith.constant 0 : i32
    return %c0_i32, %c0_i32_0, %c0_i32_1, %c0_i32_2 : i32, i32, i32, i32
  }
  func.func @transform_10(%arg0: i32) -> (i32, i32, i32) {
    %c0_i32 = arith.constant 0 : i32
    %c0_i32_0 = arith.constant 0 : i32
    %c0_i32_1 = arith.constant 0 : i32
    %c0_i32_2 = arith.constant 0 : i32
    return %c0_i32, %c0_i32_0, %c0_i32_1 : i32, i32, i32
  }
  func.func @transform_11(%arg0: i32) -> (i32, i32, i32) {
    %c0_i32 = arith.constant 0 : i32
    %c0_i32_0 = arith.constant 0 : i32
    %c0_i32_1 = arith.constant 0 : i32
    %c0_i32_2 = arith.constant 0 : i32
    return %c0_i32, %c0_i32_0, %c0_i32_1 : i32, i32, i32
  }
  func.func @transform_12(%arg0: i32) -> (i32, i32, i32) {
    %c0_i32 = arith.constant 0 : i32
    %c0_i32_0 = arith.constant 0 : i32
    %c0_i32_1 = arith.constant 0 : i32
    %c0_i32_2 = arith.constant 0 : i32
    return %c0_i32, %c0_i32_0, %c0_i32_1 : i32, i32, i32
  }
  func.func @transform_13(%arg0: i32) -> (i32, i32, i32) {
    %c0_i32 = arith.constant 0 : i32
    %c0_i32_0 = arith.constant 0 : i32
    %c0_i32_1 = arith.constant 0 : i32
    %c0_i32_2 = arith.constant 0 : i32
    return %c0_i32, %c0_i32_0, %c0_i32_1 : i32, i32, i32
  }
  func.func @transform_14(%arg0: i32) -> (i32, i32, i32) {
    %c0_i32 = arith.constant 0 : i32
    %c0_i32_0 = arith.constant 0 : i32
    %c0_i32_1 = arith.constant 0 : i32
    %c0_i32_2 = arith.constant 0 : i32
    return %c0_i32, %c0_i32_0, %c0_i32_1 : i32, i32, i32
  }
  func.func @transform_15(%arg0: i32) -> (i32, i32, i32) {
    %c0_i32 = arith.constant 0 : i32
    %c0_i32_0 = arith.constant 0 : i32
    %c0_i32_1 = arith.constant 0 : i32
    %c0_i32_2 = arith.constant 0 : i32
    return %c0_i32, %c0_i32_0, %c0_i32_1 : i32, i32, i32
  }
  func.func @transform_16(%arg0: i32) -> (i32, i32, i32) {
    %c0_i32 = arith.constant 0 : i32
    %c0_i32_0 = arith.constant 0 : i32
    %c0_i32_1 = arith.constant 0 : i32
    %c0_i32_2 = arith.constant 0 : i32
    return %c0_i32, %c0_i32_0, %c0_i32_1 : i32, i32, i32
  }
  func.func @transform_17(%arg0: i32) -> (i32, i32, i32) {
    %c0_i32 = arith.constant 0 : i32
    %c0_i32_0 = arith.constant 0 : i32
    %c0_i32_1 = arith.constant 0 : i32
    %c0_i32_2 = arith.constant 0 : i32
    return %c0_i32, %c0_i32_0, %c0_i32_1 : i32, i32, i32
  }
  func.func @transform_18(%arg0: i32) -> (i32, i32, i32) {
    %c0_i32 = arith.constant 0 : i32
    %c0_i32_0 = arith.constant 0 : i32
    %c0_i32_1 = arith.constant 0 : i32
    %c0_i32_2 = arith.constant 0 : i32
    return %c0_i32, %c0_i32_0, %c0_i32_1 : i32, i32, i32
  }
  func.func @transform_19(%arg0: i32) -> (i32, i32, i32) {
    %c0_i32 = arith.constant 0 : i32
    %c0_i32_0 = arith.constant 0 : i32
    %c0_i32_1 = arith.constant 0 : i32
    return %arg0, %c0_i32, %c0_i32_0 : i32, i32, i32
  }
}

module attributes {stable_mosaic.version = 11 : i64} {
  func.func @_decoder_stack_kernel(%arg0: i32, %arg1: memref<1x10x48xf32, #tpu.memory_space<vmem>>, %arg2: memref<1x5x32xf32, #tpu.memory_space<vmem>>, %arg3: memref<1x10x10xf32, #tpu.memory_space<vmem>>, %arg4: memref<1x1x5xf32, #tpu.memory_space<vmem>>, %arg5: memref<10x32xf32, #tpu.memory_space<vmem>>, %arg6: memref<48x32xf32, #tpu.memory_space<vmem>>, %arg7: memref<1x32xf32, #tpu.memory_space<vmem>>, %arg8: memref<2x4x32x8xf32, #tpu.memory_space<vmem>>, %arg9: memref<2x4x1x8xf32, #tpu.memory_space<vmem>>, %arg10: memref<2x4x32x8xf32, #tpu.memory_space<vmem>>, %arg11: memref<2x4x1x8xf32, #tpu.memory_space<vmem>>, %arg12: memref<2x4x32x8xf32, #tpu.memory_space<vmem>>, %arg13: memref<2x4x1x8xf32, #tpu.memory_space<vmem>>, %arg14: memref<2x4x8x32xf32, #tpu.memory_space<vmem>>, %arg15: memref<2x1x32xf32, #tpu.memory_space<vmem>>, %arg16: memref<2x1x32xf32, #tpu.memory_space<vmem>>, %arg17: memref<2x1x32xf32, #tpu.memory_space<vmem>>, %arg18: memref<2x4x32x8xf32, #tpu.memory_space<vmem>>, %arg19: memref<2x4x1x8xf32, #tpu.memory_space<vmem>>, %arg20: memref<2x4x32x8xf32, #tpu.memory_space<vmem>>, %arg21: memref<2x4x1x8xf32, #tpu.memory_space<vmem>>, %arg22: memref<2x4x32x8xf32, #tpu.memory_space<vmem>>, %arg23: memref<2x4x1x8xf32, #tpu.memory_space<vmem>>, %arg24: memref<2x4x8x32xf32, #tpu.memory_space<vmem>>, %arg25: memref<2x1x32xf32, #tpu.memory_space<vmem>>, %arg26: memref<2x1x32xf32, #tpu.memory_space<vmem>>, %arg27: memref<2x1x32xf32, #tpu.memory_space<vmem>>, %arg28: memref<2x32x512xf32, #tpu.memory_space<vmem>>, %arg29: memref<2x1x512xf32, #tpu.memory_space<vmem>>, %arg30: memref<2x512x32xf32, #tpu.memory_space<vmem>>, %arg31: memref<2x1x32xf32, #tpu.memory_space<vmem>>, %arg32: memref<2x1x32xf32, #tpu.memory_space<vmem>>, %arg33: memref<2x1x32xf32, #tpu.memory_space<vmem>>, %arg34: memref<32x48xf32, #tpu.memory_space<vmem>>, %arg35: memref<1x48xf32, #tpu.memory_space<vmem>>, %arg36: memref<1x10x48xf32, #tpu.memory_space<vmem>>) attributes {dimension_semantics = [#tpu.dimension_semantics<parallel>], iteration_bounds = array<i64: 2>, scalar_prefetch = 0 : i64, scratch_operands = 0 : i64, tpu.core_type = #tpu.core_type<tc>, window_params = [{transform_indices = @transform_0, window_bounds = array<i64: 1, 10, 48>}, {transform_indices = @transform_1, window_bounds = array<i64: 1, 5, 32>}, {transform_indices = @transform_2, window_bounds = array<i64: 1, 10, 10>}, {transform_indices = @transform_3, window_bounds = array<i64: 1, 1, 5>}, {pipeline_mode = #tpu.pipeline_mode<synchronous>, transform_indices = @transform_4, window_bounds = array<i64: 10, 32>}, {pipeline_mode = #tpu.pipeline_mode<synchronous>, transform_indices = @transform_5, window_bounds = array<i64: 48, 32>}, {pipeline_mode = #tpu.pipeline_mode<synchronous>, transform_indices = @transform_6, window_bounds = array<i64: 1, 32>}, {pipeline_mode = #tpu.pipeline_mode<synchronous>, transform_indices = @transform_7, window_bounds = array<i64: 2, 4, 32, 8>}, {pipeline_mode = #tpu.pipeline_mode<synchronous>, transform_indices = @transform_8, window_bounds = array<i64: 2, 4, 1, 8>}, {pipeline_mode = #tpu.pipeline_mode<synchronous>, transform_indices = @transform_9, window_bounds = array<i64: 2, 4, 32, 8>}, {pipeline_mode = #tpu.pipeline_mode<synchronous>, transform_indices = @transform_10, window_bounds = array<i64: 2, 4, 1, 8>}, {pipeline_mode = #tpu.pipeline_mode<synchronous>, transform_indices = @transform_11, window_bounds = array<i64: 2, 4, 32, 8>}, {pipeline_mode = #tpu.pipeline_mode<synchronous>, transform_indices = @transform_12, window_bounds = array<i64: 2, 4, 1, 8>}, {pipeline_mode = #tpu.pipeline_mode<synchronous>, transform_indices = @transform_13, window_bounds = array<i64: 2, 4, 8, 32>}, {pipeline_mode = #tpu.pipeline_mode<synchronous>, transform_indices = @transform_14, window_bounds = array<i64: 2, 1, 32>}, {pipeline_mode = #tpu.pipeline_mode<synchronous>, transform_indices = @transform_15, window_bounds = array<i64: 2, 1, 32>}, {pipeline_mode = #tpu.pipeline_mode<synchronous>, transform_indices = @transform_16, window_bounds = array<i64: 2, 1, 32>}, {pipeline_mode = #tpu.pipeline_mode<synchronous>, transform_indices = @transform_17, window_bounds = array<i64: 2, 4, 32, 8>}, {pipeline_mode = #tpu.pipeline_mode<synchronous>, transform_indices = @transform_18, window_bounds = array<i64: 2, 4, 1, 8>}, {pipeline_mode = #tpu.pipeline_mode<synchronous>, transform_indices = @transform_19, window_bounds = array<i64: 2, 4, 32, 8>}, {pipeline_mode = #tpu.pipeline_mode<synchronous>, transform_indices = @transform_20, window_bounds = array<i64: 2, 4, 1, 8>}, {pipeline_mode = #tpu.pipeline_mode<synchronous>, transform_indices = @transform_21, window_bounds = array<i64: 2, 4, 32, 8>}, {pipeline_mode = #tpu.pipeline_mode<synchronous>, transform_indices = @transform_22, window_bounds = array<i64: 2, 4, 1, 8>}, {pipeline_mode = #tpu.pipeline_mode<synchronous>, transform_indices = @transform_23, window_bounds = array<i64: 2, 4, 8, 32>}, {pipeline_mode = #tpu.pipeline_mode<synchronous>, transform_indices = @transform_24, window_bounds = array<i64: 2, 1, 32>}, {pipeline_mode = #tpu.pipeline_mode<synchronous>, transform_indices = @transform_25, window_bounds = array<i64: 2, 1, 32>}, {pipeline_mode = #tpu.pipeline_mode<synchronous>, transform_indices = @transform_26, window_bounds = array<i64: 2, 1, 32>}, {pipeline_mode = #tpu.pipeline_mode<synchronous>, transform_indices = @transform_27, window_bounds = array<i64: 2, 32, 512>}, {pipeline_mode = #tpu.pipeline_mode<synchronous>, transform_indices = @transform_28, window_bounds = array<i64: 2, 1, 512>}, {pipeline_mode = #tpu.pipeline_mode<synchronous>, transform_indices = @transform_29, window_bounds = array<i64: 2, 512, 32>}, {pipeline_mode = #tpu.pipeline_mode<synchronous>, transform_indices = @transform_30, window_bounds = array<i64: 2, 1, 32>}, {pipeline_mode = #tpu.pipeline_mode<synchronous>, transform_indices = @transform_31, window_bounds = array<i64: 2, 1, 32>}, {pipeline_mode = #tpu.pipeline_mode<synchronous>, transform_indices = @transform_32, window_bounds = array<i64: 2, 1, 32>}, {pipeline_mode = #tpu.pipeline_mode<synchronous>, transform_indices = @transform_33, window_bounds = array<i64: 32, 48>}, {pipeline_mode = #tpu.pipeline_mode<synchronous>, transform_indices = @transform_34, window_bounds = array<i64: 1, 48>}, {transform_indices = @transform_35, window_bounds = array<i64: 1, 10, 48>}]} {
    %c0 = arith.constant 0 : index
    %c0_0 = arith.constant 0 : index
    %c0_1 = arith.constant 0 : index
    %0 = vector.load %arg1[%c0, %c0_0, %c0_1] : memref<1x10x48xf32, #tpu.memory_space<vmem>>, vector<1x10x48xf32>
    %1 = vector.shape_cast %0 : vector<1x10x48xf32> to vector<10x48xf32>
    %c0_2 = arith.constant 0 : index
    %c0_3 = arith.constant 0 : index
    %c0_4 = arith.constant 0 : index
    %2 = vector.load %arg2[%c0_2, %c0_3, %c0_4] : memref<1x5x32xf32, #tpu.memory_space<vmem>>, vector<1x5x32xf32>
    %3 = vector.shape_cast %2 : vector<1x5x32xf32> to vector<5x32xf32>
    %c0_5 = arith.constant 0 : index
    %c0_6 = arith.constant 0 : index
    %c0_7 = arith.constant 0 : index
    %4 = vector.load %arg3[%c0_5, %c0_6, %c0_7] : memref<1x10x10xf32, #tpu.memory_space<vmem>>, vector<1x10x10xf32>
    %5 = vector.shape_cast %4 : vector<1x10x10xf32> to vector<10x10xf32>
    %c0_8 = arith.constant 0 : index
    %c0_9 = arith.constant 0 : index
    %c0_10 = arith.constant 0 : index
    %6 = vector.load %arg4[%c0_8, %c0_9, %c0_10] : memref<1x1x5xf32, #tpu.memory_space<vmem>>, vector<1x1x5xf32>
    %7 = vector.shape_cast %6 : vector<1x1x5xf32> to vector<1x5xf32>
    %c0_11 = arith.constant 0 : index
    %c0_12 = arith.constant 0 : index
    %8 = vector.load %arg6[%c0_11, %c0_12] : memref<48x32xf32, #tpu.memory_space<vmem>>, vector<48x32xf32>
    %cst = arith.constant dense<0.000000e+00> : vector<10x32xf32>
    %9 = tpu.matmul %1, %8, %cst {dimension_numbers = #tpu.dot_dimension_numbers<[1], [0], [0], [1], [0, 0, 1, 1], [], []>} : vector<10x48xf32>, vector<48x32xf32>, vector<10x32xf32> -> vector<10x32xf32>
    %c0_13 = arith.constant 0 : index
    %c0_14 = arith.constant 0 : index
    %10 = vector.load %arg7[%c0_13, %c0_14] : memref<1x32xf32, #tpu.memory_space<vmem>>, vector<1x32xf32>
    %11 = vector.broadcast %10 : vector<1x32xf32> to vector<10x32xf32>
    %12 = arith.addf %9, %11 : vector<10x32xf32>
    %cst_15 = arith.constant 0.000000e+00 : f32
    %13 = vector.broadcast %cst_15 : f32 to vector<10x32xf32>
    %14 = arith.maximumf %12, %13 : vector<10x32xf32>
    %c0_16 = arith.constant 0 : index
    %c0_17 = arith.constant 0 : index
    %15 = vector.load %arg5[%c0_16, %c0_17] : memref<10x32xf32, #tpu.memory_space<vmem>>, vector<10x32xf32>
    %16 = arith.addf %14, %15 : vector<10x32xf32>
    %c0_18 = arith.constant 0 : index
    %c0_19 = arith.constant 0 : index
    %c0_20 = arith.constant 0 : index
    %c0_21 = arith.constant 0 : index
    %17 = vector.load %arg8[%c0_18, %c0_19, %c0_20, %c0_21] : memref<2x4x32x8xf32, #tpu.memory_space<vmem>>, vector<1x4x32x8xf32>
    %18 = vector.shape_cast %17 : vector<1x4x32x8xf32> to vector<4x32x8xf32>
    %c0_22 = arith.constant 0 : index
    %c0_23 = arith.constant 0 : index
    %c0_24 = arith.constant 0 : index
    %c0_25 = arith.constant 0 : index
    %19 = vector.load %arg9[%c0_22, %c0_23, %c0_24, %c0_25] : memref<2x4x1x8xf32, #tpu.memory_space<vmem>>, vector<1x4x1x8xf32>
    %20 = vector.shape_cast %19 : vector<1x4x1x8xf32> to vector<4x1x8xf32>
    %c0_26 = arith.constant 0 : index
    %c0_27 = arith.constant 0 : index
    %c0_28 = arith.constant 0 : index
    %c0_29 = arith.constant 0 : index
    %21 = vector.load %arg10[%c0_26, %c0_27, %c0_28, %c0_29] : memref<2x4x32x8xf32, #tpu.memory_space<vmem>>, vector<1x4x32x8xf32>
    %22 = vector.shape_cast %21 : vector<1x4x32x8xf32> to vector<4x32x8xf32>
    %c0_30 = arith.constant 0 : index
    %c0_31 = arith.constant 0 : index
    %c0_32 = arith.constant 0 : index
    %c0_33 = arith.constant 0 : index
    %23 = vector.load %arg11[%c0_30, %c0_31, %c0_32, %c0_33] : memref<2x4x1x8xf32, #tpu.memory_space<vmem>>, vector<1x4x1x8xf32>
    %24 = vector.shape_cast %23 : vector<1x4x1x8xf32> to vector<4x1x8xf32>
    %c0_34 = arith.constant 0 : index
    %c0_35 = arith.constant 0 : index
    %c0_36 = arith.constant 0 : index
    %c0_37 = arith.constant 0 : index
    %25 = vector.load %arg12[%c0_34, %c0_35, %c0_36, %c0_37] : memref<2x4x32x8xf32, #tpu.memory_space<vmem>>, vector<1x4x32x8xf32>
    %26 = vector.shape_cast %25 : vector<1x4x32x8xf32> to vector<4x32x8xf32>
    %c0_38 = arith.constant 0 : index
    %c0_39 = arith.constant 0 : index
    %c0_40 = arith.constant 0 : index
    %c0_41 = arith.constant 0 : index
    %27 = vector.load %arg13[%c0_38, %c0_39, %c0_40, %c0_41] : memref<2x4x1x8xf32, #tpu.memory_space<vmem>>, vector<1x4x1x8xf32>
    %28 = vector.shape_cast %27 : vector<1x4x1x8xf32> to vector<4x1x8xf32>
    %c0_42 = arith.constant 0 : index
    %c0_43 = arith.constant 0 : index
    %c0_44 = arith.constant 0 : index
    %c0_45 = arith.constant 0 : index
    %29 = vector.load %arg14[%c0_42, %c0_43, %c0_44, %c0_45] : memref<2x4x8x32xf32, #tpu.memory_space<vmem>>, vector<1x4x8x32xf32>
    %30 = vector.shape_cast %29 : vector<1x4x8x32xf32> to vector<4x8x32xf32>
    %c0_46 = arith.constant 0 : index
    %c0_47 = arith.constant 0 : index
    %c0_48 = arith.constant 0 : index
    %31 = vector.load %arg15[%c0_46, %c0_47, %c0_48] : memref<2x1x32xf32, #tpu.memory_space<vmem>>, vector<1x1x32xf32>
    %32 = vector.shape_cast %31 : vector<1x1x32xf32> to vector<1x32xf32>
    %33 = vector.extract_strided_slice %18 {offsets = [0, 0, 0], sizes = [1, 32, 8], strides = [1, 1, 1]} : vector<4x32x8xf32> to vector<1x32x8xf32>
    %34 = vector.shape_cast %33 : vector<1x32x8xf32> to vector<32x8xf32>
    %cst_49 = arith.constant dense<0.000000e+00> : vector<10x8xf32>
    %35 = tpu.matmul %16, %34, %cst_49 {dimension_numbers = #tpu.dot_dimension_numbers<[1], [0], [0], [1], [0, 0, 1, 1], [], []>} : vector<10x32xf32>, vector<32x8xf32>, vector<10x8xf32> -> vector<10x8xf32>
    %36 = vector.extract_strided_slice %20 {offsets = [0, 0, 0], sizes = [1, 1, 8], strides = [1, 1, 1]} : vector<4x1x8xf32> to vector<1x1x8xf32>
    %37 = vector.shape_cast %36 : vector<1x1x8xf32> to vector<1x8xf32>
    %38 = vector.broadcast %37 : vector<1x8xf32> to vector<10x8xf32>
    %39 = arith.addf %35, %38 : vector<10x8xf32>
    %40 = vector.extract_strided_slice %22 {offsets = [0, 0, 0], sizes = [1, 32, 8], strides = [1, 1, 1]} : vector<4x32x8xf32> to vector<1x32x8xf32>
    %41 = vector.shape_cast %40 : vector<1x32x8xf32> to vector<32x8xf32>
    %cst_50 = arith.constant dense<0.000000e+00> : vector<10x8xf32>
    %42 = tpu.matmul %16, %41, %cst_50 {dimension_numbers = #tpu.dot_dimension_numbers<[1], [0], [0], [1], [0, 0, 1, 1], [], []>} : vector<10x32xf32>, vector<32x8xf32>, vector<10x8xf32> -> vector<10x8xf32>
    %43 = vector.extract_strided_slice %24 {offsets = [0, 0, 0], sizes = [1, 1, 8], strides = [1, 1, 1]} : vector<4x1x8xf32> to vector<1x1x8xf32>
    %44 = vector.shape_cast %43 : vector<1x1x8xf32> to vector<1x8xf32>
    %45 = vector.broadcast %44 : vector<1x8xf32> to vector<10x8xf32>
    %46 = arith.addf %42, %45 : vector<10x8xf32>
    %47 = vector.extract_strided_slice %26 {offsets = [0, 0, 0], sizes = [1, 32, 8], strides = [1, 1, 1]} : vector<4x32x8xf32> to vector<1x32x8xf32>
    %48 = vector.shape_cast %47 : vector<1x32x8xf32> to vector<32x8xf32>
    %cst_51 = arith.constant dense<0.000000e+00> : vector<10x8xf32>
    %49 = tpu.matmul %16, %48, %cst_51 {dimension_numbers = #tpu.dot_dimension_numbers<[1], [0], [0], [1], [0, 0, 1, 1], [], []>} : vector<10x32xf32>, vector<32x8xf32>, vector<10x8xf32> -> vector<10x8xf32>
    %50 = vector.extract_strided_slice %28 {offsets = [0, 0, 0], sizes = [1, 1, 8], strides = [1, 1, 1]} : vector<4x1x8xf32> to vector<1x1x8xf32>
    %51 = vector.shape_cast %50 : vector<1x1x8xf32> to vector<1x8xf32>
    %52 = vector.broadcast %51 : vector<1x8xf32> to vector<10x8xf32>
    %53 = arith.addf %49, %52 : vector<10x8xf32>
    "tpu.trace_start"() <{level = 10 : i32, message = "qd,kd->qk"}> : () -> ()
    %cst_52 = arith.constant dense<0.000000e+00> : vector<10x10xf32>
    %54 = tpu.matmul %39, %46, %cst_52 {dimension_numbers = #tpu.dot_dimension_numbers<[1], [1], [0], [0], [0, 0, 1, 0], [], []>} : vector<10x8xf32>, vector<10x8xf32>, vector<10x10xf32> -> vector<10x10xf32>
    "tpu.trace_stop"() : () -> ()
    %cst_53 = arith.constant 0.353553385 : f32
    %55 = vector.broadcast %cst_53 : f32 to vector<10x10xf32>
    %56 = arith.mulf %54, %55 : vector<10x10xf32>
    %57 = arith.addf %56, %5 : vector<10x10xf32>
    %cst_54 = arith.constant dense<0xFF800000> : vector<10xf32>
    %58 = vector.multi_reduction <maximumf>, %57, %cst_54 [1] : vector<10x10xf32> to vector<10xf32>
    %59 = vector.shape_cast %58 : vector<10xf32> to vector<10x1xf32>
    %60 = vector.broadcast %59 : vector<10x1xf32> to vector<10x10xf32>
    %61 = arith.subf %57, %60 : vector<10x10xf32>
    %62 = math.exp %61 : vector<10x10xf32>
    %cst_55 = arith.constant dense<0.000000e+00> : vector<10xf32>
    %63 = vector.multi_reduction <add>, %62, %cst_55 [1] : vector<10x10xf32> to vector<10xf32>
    %64 = vector.shape_cast %63 : vector<10xf32> to vector<10x1xf32>
    %65 = tpu.reciprocal %64 {approx = true} : vector<10x1xf32> -> vector<10x1xf32>
    %66 = vector.broadcast %65 : vector<10x1xf32> to vector<10x10xf32>
    %67 = arith.mulf %62, %66 : vector<10x10xf32>
    %cst_56 = arith.constant dense<0.000000e+00> : vector<10x8xf32>
    %68 = tpu.matmul %67, %53, %cst_56 {dimension_numbers = #tpu.dot_dimension_numbers<[1], [0], [0], [1], [0, 0, 1, 1], [], []>} : vector<10x10xf32>, vector<10x8xf32>, vector<10x8xf32> -> vector<10x8xf32>
    %69 = vector.extract_strided_slice %30 {offsets = [0, 0, 0], sizes = [1, 8, 32], strides = [1, 1, 1]} : vector<4x8x32xf32> to vector<1x8x32xf32>
    %70 = vector.shape_cast %69 : vector<1x8x32xf32> to vector<8x32xf32>
    %cst_57 = arith.constant dense<0.000000e+00> : vector<10x32xf32>
    %71 = tpu.matmul %68, %70, %cst_57 {dimension_numbers = #tpu.dot_dimension_numbers<[1], [0], [0], [1], [0, 0, 1, 1], [], []>} : vector<10x8xf32>, vector<8x32xf32>, vector<10x32xf32> -> vector<10x32xf32>
    %72 = vector.broadcast %32 : vector<1x32xf32> to vector<10x32xf32>
    %73 = arith.addf %72, %71 : vector<10x32xf32>
    %74 = vector.extract_strided_slice %18 {offsets = [1, 0, 0], sizes = [1, 32, 8], strides = [1, 1, 1]} : vector<4x32x8xf32> to vector<1x32x8xf32>
    %75 = vector.shape_cast %74 : vector<1x32x8xf32> to vector<32x8xf32>
    %cst_58 = arith.constant dense<0.000000e+00> : vector<10x8xf32>
    %76 = tpu.matmul %16, %75, %cst_58 {dimension_numbers = #tpu.dot_dimension_numbers<[1], [0], [0], [1], [0, 0, 1, 1], [], []>} : vector<10x32xf32>, vector<32x8xf32>, vector<10x8xf32> -> vector<10x8xf32>
    %77 = vector.extract_strided_slice %20 {offsets = [1, 0, 0], sizes = [1, 1, 8], strides = [1, 1, 1]} : vector<4x1x8xf32> to vector<1x1x8xf32>
    %78 = vector.shape_cast %77 : vector<1x1x8xf32> to vector<1x8xf32>
    %79 = vector.broadcast %78 : vector<1x8xf32> to vector<10x8xf32>
    %80 = arith.addf %76, %79 : vector<10x8xf32>
    %81 = vector.extract_strided_slice %22 {offsets = [1, 0, 0], sizes = [1, 32, 8], strides = [1, 1, 1]} : vector<4x32x8xf32> to vector<1x32x8xf32>
    %82 = vector.shape_cast %81 : vector<1x32x8xf32> to vector<32x8xf32>
    %cst_59 = arith.constant dense<0.000000e+00> : vector<10x8xf32>
    %83 = tpu.matmul %16, %82, %cst_59 {dimension_numbers = #tpu.dot_dimension_numbers<[1], [0], [0], [1], [0, 0, 1, 1], [], []>} : vector<10x32xf32>, vector<32x8xf32>, vector<10x8xf32> -> vector<10x8xf32>
    %84 = vector.extract_strided_slice %24 {offsets = [1, 0, 0], sizes = [1, 1, 8], strides = [1, 1, 1]} : vector<4x1x8xf32> to vector<1x1x8xf32>
    %85 = vector.shape_cast %84 : vector<1x1x8xf32> to vector<1x8xf32>
    %86 = vector.broadcast %85 : vector<1x8xf32> to vector<10x8xf32>
    %87 = arith.addf %83, %86 : vector<10x8xf32>
    %88 = vector.extract_strided_slice %26 {offsets = [1, 0, 0], sizes = [1, 32, 8], strides = [1, 1, 1]} : vector<4x32x8xf32> to vector<1x32x8xf32>
    %89 = vector.shape_cast %88 : vector<1x32x8xf32> to vector<32x8xf32>
    %cst_60 = arith.constant dense<0.000000e+00> : vector<10x8xf32>
    %90 = tpu.matmul %16, %89, %cst_60 {dimension_numbers = #tpu.dot_dimension_numbers<[1], [0], [0], [1], [0, 0, 1, 1], [], []>} : vector<10x32xf32>, vector<32x8xf32>, vector<10x8xf32> -> vector<10x8xf32>
    %91 = vector.extract_strided_slice %28 {offsets = [1, 0, 0], sizes = [1, 1, 8], strides = [1, 1, 1]} : vector<4x1x8xf32> to vector<1x1x8xf32>
    %92 = vector.shape_cast %91 : vector<1x1x8xf32> to vector<1x8xf32>
    %93 = vector.broadcast %92 : vector<1x8xf32> to vector<10x8xf32>
    %94 = arith.addf %90, %93 : vector<10x8xf32>
    "tpu.trace_start"() <{level = 10 : i32, message = "qd,kd->qk"}> : () -> ()
    %cst_61 = arith.constant dense<0.000000e+00> : vector<10x10xf32>
    %95 = tpu.matmul %80, %87, %cst_61 {dimension_numbers = #tpu.dot_dimension_numbers<[1], [1], [0], [0], [0, 0, 1, 0], [], []>} : vector<10x8xf32>, vector<10x8xf32>, vector<10x10xf32> -> vector<10x10xf32>
    "tpu.trace_stop"() : () -> ()
    %cst_62 = arith.constant 0.353553385 : f32
    %96 = vector.broadcast %cst_62 : f32 to vector<10x10xf32>
    %97 = arith.mulf %95, %96 : vector<10x10xf32>
    %98 = arith.addf %97, %5 : vector<10x10xf32>
    %cst_63 = arith.constant dense<0xFF800000> : vector<10xf32>
    %99 = vector.multi_reduction <maximumf>, %98, %cst_63 [1] : vector<10x10xf32> to vector<10xf32>
    %100 = vector.shape_cast %99 : vector<10xf32> to vector<10x1xf32>
    %101 = vector.broadcast %100 : vector<10x1xf32> to vector<10x10xf32>
    %102 = arith.subf %98, %101 : vector<10x10xf32>
    %103 = math.exp %102 : vector<10x10xf32>
    %cst_64 = arith.constant dense<0.000000e+00> : vector<10xf32>
    %104 = vector.multi_reduction <add>, %103, %cst_64 [1] : vector<10x10xf32> to vector<10xf32>
    %105 = vector.shape_cast %104 : vector<10xf32> to vector<10x1xf32>
    %106 = tpu.reciprocal %105 {approx = true} : vector<10x1xf32> -> vector<10x1xf32>
    %107 = vector.broadcast %106 : vector<10x1xf32> to vector<10x10xf32>
    %108 = arith.mulf %103, %107 : vector<10x10xf32>
    %cst_65 = arith.constant dense<0.000000e+00> : vector<10x8xf32>
    %109 = tpu.matmul %108, %94, %cst_65 {dimension_numbers = #tpu.dot_dimension_numbers<[1], [0], [0], [1], [0, 0, 1, 1], [], []>} : vector<10x10xf32>, vector<10x8xf32>, vector<10x8xf32> -> vector<10x8xf32>
    %110 = vector.extract_strided_slice %30 {offsets = [1, 0, 0], sizes = [1, 8, 32], strides = [1, 1, 1]} : vector<4x8x32xf32> to vector<1x8x32xf32>
    %111 = vector.shape_cast %110 : vector<1x8x32xf32> to vector<8x32xf32>
    %cst_66 = arith.constant dense<0.000000e+00> : vector<10x32xf32>
    %112 = tpu.matmul %109, %111, %cst_66 {dimension_numbers = #tpu.dot_dimension_numbers<[1], [0], [0], [1], [0, 0, 1, 1], [], []>} : vector<10x8xf32>, vector<8x32xf32>, vector<10x32xf32> -> vector<10x32xf32>
    %113 = arith.addf %73, %112 : vector<10x32xf32>
    %114 = vector.extract_strided_slice %18 {offsets = [2, 0, 0], sizes = [1, 32, 8], strides = [1, 1, 1]} : vector<4x32x8xf32> to vector<1x32x8xf32>
    %115 = vector.shape_cast %114 : vector<1x32x8xf32> to vector<32x8xf32>
    %cst_67 = arith.constant dense<0.000000e+00> : vector<10x8xf32>
    %116 = tpu.matmul %16, %115, %cst_67 {dimension_numbers = #tpu.dot_dimension_numbers<[1], [0], [0], [1], [0, 0, 1, 1], [], []>} : vector<10x32xf32>, vector<32x8xf32>, vector<10x8xf32> -> vector<10x8xf32>
    %117 = vector.extract_strided_slice %20 {offsets = [2, 0, 0], sizes = [1, 1, 8], strides = [1, 1, 1]} : vector<4x1x8xf32> to vector<1x1x8xf32>
    %118 = vector.shape_cast %117 : vector<1x1x8xf32> to vector<1x8xf32>
    %119 = vector.broadcast %118 : vector<1x8xf32> to vector<10x8xf32>
    %120 = arith.addf %116, %119 : vector<10x8xf32>
    %121 = vector.extract_strided_slice %22 {offsets = [2, 0, 0], sizes = [1, 32, 8], strides = [1, 1, 1]} : vector<4x32x8xf32> to vector<1x32x8xf32>
    %122 = vector.shape_cast %121 : vector<1x32x8xf32> to vector<32x8xf32>
    %cst_68 = arith.constant dense<0.000000e+00> : vector<10x8xf32>
    %123 = tpu.matmul %16, %122, %cst_68 {dimension_numbers = #tpu.dot_dimension_numbers<[1], [0], [0], [1], [0, 0, 1, 1], [], []>} : vector<10x32xf32>, vector<32x8xf32>, vector<10x8xf32> -> vector<10x8xf32>
    %124 = vector.extract_strided_slice %24 {offsets = [2, 0, 0], sizes = [1, 1, 8], strides = [1, 1, 1]} : vector<4x1x8xf32> to vector<1x1x8xf32>
    %125 = vector.shape_cast %124 : vector<1x1x8xf32> to vector<1x8xf32>
    %126 = vector.broadcast %125 : vector<1x8xf32> to vector<10x8xf32>
    %127 = arith.addf %123, %126 : vector<10x8xf32>
    %128 = vector.extract_strided_slice %26 {offsets = [2, 0, 0], sizes = [1, 32, 8], strides = [1, 1, 1]} : vector<4x32x8xf32> to vector<1x32x8xf32>
    %129 = vector.shape_cast %128 : vector<1x32x8xf32> to vector<32x8xf32>
    %cst_69 = arith.constant dense<0.000000e+00> : vector<10x8xf32>
    %130 = tpu.matmul %16, %129, %cst_69 {dimension_numbers = #tpu.dot_dimension_numbers<[1], [0], [0], [1], [0, 0, 1, 1], [], []>} : vector<10x32xf32>, vector<32x8xf32>, vector<10x8xf32> -> vector<10x8xf32>
    %131 = vector.extract_strided_slice %28 {offsets = [2, 0, 0], sizes = [1, 1, 8], strides = [1, 1, 1]} : vector<4x1x8xf32> to vector<1x1x8xf32>
    %132 = vector.shape_cast %131 : vector<1x1x8xf32> to vector<1x8xf32>
    %133 = vector.broadcast %132 : vector<1x8xf32> to vector<10x8xf32>
    %134 = arith.addf %130, %133 : vector<10x8xf32>
    "tpu.trace_start"() <{level = 10 : i32, message = "qd,kd->qk"}> : () -> ()
    %cst_70 = arith.constant dense<0.000000e+00> : vector<10x10xf32>
    %135 = tpu.matmul %120, %127, %cst_70 {dimension_numbers = #tpu.dot_dimension_numbers<[1], [1], [0], [0], [0, 0, 1, 0], [], []>} : vector<10x8xf32>, vector<10x8xf32>, vector<10x10xf32> -> vector<10x10xf32>
    "tpu.trace_stop"() : () -> ()
    %cst_71 = arith.constant 0.353553385 : f32
    %136 = vector.broadcast %cst_71 : f32 to vector<10x10xf32>
    %137 = arith.mulf %135, %136 : vector<10x10xf32>
    %138 = arith.addf %137, %5 : vector<10x10xf32>
    %cst_72 = arith.constant dense<0xFF800000> : vector<10xf32>
    %139 = vector.multi_reduction <maximumf>, %138, %cst_72 [1] : vector<10x10xf32> to vector<10xf32>
    %140 = vector.shape_cast %139 : vector<10xf32> to vector<10x1xf32>
    %141 = vector.broadcast %140 : vector<10x1xf32> to vector<10x10xf32>
    %142 = arith.subf %138, %141 : vector<10x10xf32>
    %143 = math.exp %142 : vector<10x10xf32>
    %cst_73 = arith.constant dense<0.000000e+00> : vector<10xf32>
    %144 = vector.multi_reduction <add>, %143, %cst_73 [1] : vector<10x10xf32> to vector<10xf32>
    %145 = vector.shape_cast %144 : vector<10xf32> to vector<10x1xf32>
    %146 = tpu.reciprocal %145 {approx = true} : vector<10x1xf32> -> vector<10x1xf32>
    %147 = vector.broadcast %146 : vector<10x1xf32> to vector<10x10xf32>
    %148 = arith.mulf %143, %147 : vector<10x10xf32>
    %cst_74 = arith.constant dense<0.000000e+00> : vector<10x8xf32>
    %149 = tpu.matmul %148, %134, %cst_74 {dimension_numbers = #tpu.dot_dimension_numbers<[1], [0], [0], [1], [0, 0, 1, 1], [], []>} : vector<10x10xf32>, vector<10x8xf32>, vector<10x8xf32> -> vector<10x8xf32>
    %150 = vector.extract_strided_slice %30 {offsets = [2, 0, 0], sizes = [1, 8, 32], strides = [1, 1, 1]} : vector<4x8x32xf32> to vector<1x8x32xf32>
    %151 = vector.shape_cast %150 : vector<1x8x32xf32> to vector<8x32xf32>
    %cst_75 = arith.constant dense<0.000000e+00> : vector<10x32xf32>
    %152 = tpu.matmul %149, %151, %cst_75 {dimension_numbers = #tpu.dot_dimension_numbers<[1], [0], [0], [1], [0, 0, 1, 1], [], []>} : vector<10x8xf32>, vector<8x32xf32>, vector<10x32xf32> -> vector<10x32xf32>
    %153 = arith.addf %113, %152 : vector<10x32xf32>
    %154 = vector.extract_strided_slice %18 {offsets = [3, 0, 0], sizes = [1, 32, 8], strides = [1, 1, 1]} : vector<4x32x8xf32> to vector<1x32x8xf32>
    %155 = vector.shape_cast %154 : vector<1x32x8xf32> to vector<32x8xf32>
    %cst_76 = arith.constant dense<0.000000e+00> : vector<10x8xf32>
    %156 = tpu.matmul %16, %155, %cst_76 {dimension_numbers = #tpu.dot_dimension_numbers<[1], [0], [0], [1], [0, 0, 1, 1], [], []>} : vector<10x32xf32>, vector<32x8xf32>, vector<10x8xf32> -> vector<10x8xf32>
    %157 = vector.extract_strided_slice %20 {offsets = [3, 0, 0], sizes = [1, 1, 8], strides = [1, 1, 1]} : vector<4x1x8xf32> to vector<1x1x8xf32>
    %158 = vector.shape_cast %157 : vector<1x1x8xf32> to vector<1x8xf32>
    %159 = vector.broadcast %158 : vector<1x8xf32> to vector<10x8xf32>
    %160 = arith.addf %156, %159 : vector<10x8xf32>
    %161 = vector.extract_strided_slice %22 {offsets = [3, 0, 0], sizes = [1, 32, 8], strides = [1, 1, 1]} : vector<4x32x8xf32> to vector<1x32x8xf32>
    %162 = vector.shape_cast %161 : vector<1x32x8xf32> to vector<32x8xf32>
    %cst_77 = arith.constant dense<0.000000e+00> : vector<10x8xf32>
    %163 = tpu.matmul %16, %162, %cst_77 {dimension_numbers = #tpu.dot_dimension_numbers<[1], [0], [0], [1], [0, 0, 1, 1], [], []>} : vector<10x32xf32>, vector<32x8xf32>, vector<10x8xf32> -> vector<10x8xf32>
    %164 = vector.extract_strided_slice %24 {offsets = [3, 0, 0], sizes = [1, 1, 8], strides = [1, 1, 1]} : vector<4x1x8xf32> to vector<1x1x8xf32>
    %165 = vector.shape_cast %164 : vector<1x1x8xf32> to vector<1x8xf32>
    %166 = vector.broadcast %165 : vector<1x8xf32> to vector<10x8xf32>
    %167 = arith.addf %163, %166 : vector<10x8xf32>
    %168 = vector.extract_strided_slice %26 {offsets = [3, 0, 0], sizes = [1, 32, 8], strides = [1, 1, 1]} : vector<4x32x8xf32> to vector<1x32x8xf32>
    %169 = vector.shape_cast %168 : vector<1x32x8xf32> to vector<32x8xf32>
    %cst_78 = arith.constant dense<0.000000e+00> : vector<10x8xf32>
    %170 = tpu.matmul %16, %169, %cst_78 {dimension_numbers = #tpu.dot_dimension_numbers<[1], [0], [0], [1], [0, 0, 1, 1], [], []>} : vector<10x32xf32>, vector<32x8xf32>, vector<10x8xf32> -> vector<10x8xf32>
    %171 = vector.extract_strided_slice %28 {offsets = [3, 0, 0], sizes = [1, 1, 8], strides = [1, 1, 1]} : vector<4x1x8xf32> to vector<1x1x8xf32>
    %172 = vector.shape_cast %171 : vector<1x1x8xf32> to vector<1x8xf32>
    %173 = vector.broadcast %172 : vector<1x8xf32> to vector<10x8xf32>
    %174 = arith.addf %170, %173 : vector<10x8xf32>
    "tpu.trace_start"() <{level = 10 : i32, message = "qd,kd->qk"}> : () -> ()
    %cst_79 = arith.constant dense<0.000000e+00> : vector<10x10xf32>
    %175 = tpu.matmul %160, %167, %cst_79 {dimension_numbers = #tpu.dot_dimension_numbers<[1], [1], [0], [0], [0, 0, 1, 0], [], []>} : vector<10x8xf32>, vector<10x8xf32>, vector<10x10xf32> -> vector<10x10xf32>
    "tpu.trace_stop"() : () -> ()
    %cst_80 = arith.constant 0.353553385 : f32
    %176 = vector.broadcast %cst_80 : f32 to vector<10x10xf32>
    %177 = arith.mulf %175, %176 : vector<10x10xf32>
    %178 = arith.addf %177, %5 : vector<10x10xf32>
    %cst_81 = arith.constant dense<0xFF800000> : vector<10xf32>
    %179 = vector.multi_reduction <maximumf>, %178, %cst_81 [1] : vector<10x10xf32> to vector<10xf32>
    %180 = vector.shape_cast %179 : vector<10xf32> to vector<10x1xf32>
    %181 = vector.broadcast %180 : vector<10x1xf32> to vector<10x10xf32>
    %182 = arith.subf %178, %181 : vector<10x10xf32>
    %183 = math.exp %182 : vector<10x10xf32>
    %cst_82 = arith.constant dense<0.000000e+00> : vector<10xf32>
    %184 = vector.multi_reduction <add>, %183, %cst_82 [1] : vector<10x10xf32> to vector<10xf32>
    %185 = vector.shape_cast %184 : vector<10xf32> to vector<10x1xf32>
    %186 = tpu.reciprocal %185 {approx = true} : vector<10x1xf32> -> vector<10x1xf32>
    %187 = vector.broadcast %186 : vector<10x1xf32> to vector<10x10xf32>
    %188 = arith.mulf %183, %187 : vector<10x10xf32>
    %cst_83 = arith.constant dense<0.000000e+00> : vector<10x8xf32>
    %189 = tpu.matmul %188, %174, %cst_83 {dimension_numbers = #tpu.dot_dimension_numbers<[1], [0], [0], [1], [0, 0, 1, 1], [], []>} : vector<10x10xf32>, vector<10x8xf32>, vector<10x8xf32> -> vector<10x8xf32>
    %190 = vector.extract_strided_slice %30 {offsets = [3, 0, 0], sizes = [1, 8, 32], strides = [1, 1, 1]} : vector<4x8x32xf32> to vector<1x8x32xf32>
    %191 = vector.shape_cast %190 : vector<1x8x32xf32> to vector<8x32xf32>
    %cst_84 = arith.constant dense<0.000000e+00> : vector<10x32xf32>
    %192 = tpu.matmul %189, %191, %cst_84 {dimension_numbers = #tpu.dot_dimension_numbers<[1], [0], [0], [1], [0, 0, 1, 1], [], []>} : vector<10x8xf32>, vector<8x32xf32>, vector<10x32xf32> -> vector<10x32xf32>
    %193 = arith.addf %153, %192 : vector<10x32xf32>
    %194 = arith.addf %16, %193 : vector<10x32xf32>
    %c0_85 = arith.constant 0 : index
    %c0_86 = arith.constant 0 : index
    %c0_87 = arith.constant 0 : index
    %195 = vector.load %arg16[%c0_85, %c0_86, %c0_87] : memref<2x1x32xf32, #tpu.memory_space<vmem>>, vector<1x1x32xf32>
    %196 = vector.shape_cast %195 : vector<1x1x32xf32> to vector<1x32xf32>
    %c0_88 = arith.constant 0 : index
    %c0_89 = arith.constant 0 : index
    %c0_90 = arith.constant 0 : index
    %197 = vector.load %arg17[%c0_88, %c0_89, %c0_90] : memref<2x1x32xf32, #tpu.memory_space<vmem>>, vector<1x1x32xf32>
    %198 = vector.shape_cast %197 : vector<1x1x32xf32> to vector<1x32xf32>
    %cst_91 = arith.constant dense<0.000000e+00> : vector<10xf32>
    %199 = vector.multi_reduction <add>, %194, %cst_91 [1] : vector<10x32xf32> to vector<10xf32>
    %200 = vector.shape_cast %199 : vector<10xf32> to vector<10x1xf32>
    %cst_92 = arith.constant 3.200000e+01 : f32
    %201 = vector.broadcast %cst_92 : f32 to vector<10x1xf32>
    %202 = arith.divf %200, %201 : vector<10x1xf32>
    %203 = vector.broadcast %202 : vector<10x1xf32> to vector<10x32xf32>
    %204 = arith.subf %194, %203 : vector<10x32xf32>
    %205 = arith.mulf %204, %204 : vector<10x32xf32>
    %cst_93 = arith.constant dense<0.000000e+00> : vector<10xf32>
    %206 = vector.multi_reduction <add>, %205, %cst_93 [1] : vector<10x32xf32> to vector<10xf32>
    %207 = vector.shape_cast %206 : vector<10xf32> to vector<10x1xf32>
    %cst_94 = arith.constant 3.200000e+01 : f32
    %208 = vector.broadcast %cst_94 : f32 to vector<10x1xf32>
    %209 = arith.divf %207, %208 : vector<10x1xf32>
    %cst_95 = arith.constant 9.99999974E-6 : f32
    %210 = vector.broadcast %cst_95 : f32 to vector<10x1xf32>
    %211 = arith.addf %209, %210 : vector<10x1xf32>
    %212 = math.rsqrt %211 : vector<10x1xf32>
    %213 = vector.broadcast %212 : vector<10x1xf32> to vector<10x32xf32>
    %214 = arith.mulf %204, %213 : vector<10x32xf32>
    %215 = vector.broadcast %196 : vector<1x32xf32> to vector<10x32xf32>
    %216 = arith.mulf %214, %215 : vector<10x32xf32>
    %217 = vector.broadcast %198 : vector<1x32xf32> to vector<10x32xf32>
    %218 = arith.addf %216, %217 : vector<10x32xf32>
    %c0_96 = arith.constant 0 : index
    %c0_97 = arith.constant 0 : index
    %c0_98 = arith.constant 0 : index
    %c0_99 = arith.constant 0 : index
    %219 = vector.load %arg18[%c0_96, %c0_97, %c0_98, %c0_99] : memref<2x4x32x8xf32, #tpu.memory_space<vmem>>, vector<1x4x32x8xf32>
    %220 = vector.shape_cast %219 : vector<1x4x32x8xf32> to vector<4x32x8xf32>
    %c0_100 = arith.constant 0 : index
    %c0_101 = arith.constant 0 : index
    %c0_102 = arith.constant 0 : index
    %c0_103 = arith.constant 0 : index
    %221 = vector.load %arg19[%c0_100, %c0_101, %c0_102, %c0_103] : memref<2x4x1x8xf32, #tpu.memory_space<vmem>>, vector<1x4x1x8xf32>
    %222 = vector.shape_cast %221 : vector<1x4x1x8xf32> to vector<4x1x8xf32>
    %c0_104 = arith.constant 0 : index
    %c0_105 = arith.constant 0 : index
    %c0_106 = arith.constant 0 : index
    %c0_107 = arith.constant 0 : index
    %223 = vector.load %arg20[%c0_104, %c0_105, %c0_106, %c0_107] : memref<2x4x32x8xf32, #tpu.memory_space<vmem>>, vector<1x4x32x8xf32>
    %224 = vector.shape_cast %223 : vector<1x4x32x8xf32> to vector<4x32x8xf32>
    %c0_108 = arith.constant 0 : index
    %c0_109 = arith.constant 0 : index
    %c0_110 = arith.constant 0 : index
    %c0_111 = arith.constant 0 : index
    %225 = vector.load %arg21[%c0_108, %c0_109, %c0_110, %c0_111] : memref<2x4x1x8xf32, #tpu.memory_space<vmem>>, vector<1x4x1x8xf32>
    %226 = vector.shape_cast %225 : vector<1x4x1x8xf32> to vector<4x1x8xf32>
    %c0_112 = arith.constant 0 : index
    %c0_113 = arith.constant 0 : index
    %c0_114 = arith.constant 0 : index
    %c0_115 = arith.constant 0 : index
    %227 = vector.load %arg22[%c0_112, %c0_113, %c0_114, %c0_115] : memref<2x4x32x8xf32, #tpu.memory_space<vmem>>, vector<1x4x32x8xf32>
    %228 = vector.shape_cast %227 : vector<1x4x32x8xf32> to vector<4x32x8xf32>
    %c0_116 = arith.constant 0 : index
    %c0_117 = arith.constant 0 : index
    %c0_118 = arith.constant 0 : index
    %c0_119 = arith.constant 0 : index
    %229 = vector.load %arg23[%c0_116, %c0_117, %c0_118, %c0_119] : memref<2x4x1x8xf32, #tpu.memory_space<vmem>>, vector<1x4x1x8xf32>
    %230 = vector.shape_cast %229 : vector<1x4x1x8xf32> to vector<4x1x8xf32>
    %c0_120 = arith.constant 0 : index
    %c0_121 = arith.constant 0 : index
    %c0_122 = arith.constant 0 : index
    %c0_123 = arith.constant 0 : index
    %231 = vector.load %arg24[%c0_120, %c0_121, %c0_122, %c0_123] : memref<2x4x8x32xf32, #tpu.memory_space<vmem>>, vector<1x4x8x32xf32>
    %232 = vector.shape_cast %231 : vector<1x4x8x32xf32> to vector<4x8x32xf32>
    %c0_124 = arith.constant 0 : index
    %c0_125 = arith.constant 0 : index
    %c0_126 = arith.constant 0 : index
    %233 = vector.load %arg25[%c0_124, %c0_125, %c0_126] : memref<2x1x32xf32, #tpu.memory_space<vmem>>, vector<1x1x32xf32>
    %234 = vector.shape_cast %233 : vector<1x1x32xf32> to vector<1x32xf32>
    %235 = vector.extract_strided_slice %220 {offsets = [0, 0, 0], sizes = [1, 32, 8], strides = [1, 1, 1]} : vector<4x32x8xf32> to vector<1x32x8xf32>
    %236 = vector.shape_cast %235 : vector<1x32x8xf32> to vector<32x8xf32>
    %cst_127 = arith.constant dense<0.000000e+00> : vector<10x8xf32>
    %237 = tpu.matmul %218, %236, %cst_127 {dimension_numbers = #tpu.dot_dimension_numbers<[1], [0], [0], [1], [0, 0, 1, 1], [], []>} : vector<10x32xf32>, vector<32x8xf32>, vector<10x8xf32> -> vector<10x8xf32>
    %238 = vector.extract_strided_slice %222 {offsets = [0, 0, 0], sizes = [1, 1, 8], strides = [1, 1, 1]} : vector<4x1x8xf32> to vector<1x1x8xf32>
    %239 = vector.shape_cast %238 : vector<1x1x8xf32> to vector<1x8xf32>
    %240 = vector.broadcast %239 : vector<1x8xf32> to vector<10x8xf32>
    %241 = arith.addf %237, %240 : vector<10x8xf32>
    %242 = vector.extract_strided_slice %224 {offsets = [0, 0, 0], sizes = [1, 32, 8], strides = [1, 1, 1]} : vector<4x32x8xf32> to vector<1x32x8xf32>
    %243 = vector.shape_cast %242 : vector<1x32x8xf32> to vector<32x8xf32>
    %cst_128 = arith.constant dense<0.000000e+00> : vector<5x8xf32>
    %244 = tpu.matmul %3, %243, %cst_128 {dimension_numbers = #tpu.dot_dimension_numbers<[1], [0], [0], [1], [0, 0, 1, 1], [], []>} : vector<5x32xf32>, vector<32x8xf32>, vector<5x8xf32> -> vector<5x8xf32>
    %245 = vector.extract_strided_slice %226 {offsets = [0, 0, 0], sizes = [1, 1, 8], strides = [1, 1, 1]} : vector<4x1x8xf32> to vector<1x1x8xf32>
    %246 = vector.shape_cast %245 : vector<1x1x8xf32> to vector<1x8xf32>
    %247 = vector.broadcast %246 : vector<1x8xf32> to vector<5x8xf32>
    %248 = arith.addf %244, %247 : vector<5x8xf32>
    %249 = vector.extract_strided_slice %228 {offsets = [0, 0, 0], sizes = [1, 32, 8], strides = [1, 1, 1]} : vector<4x32x8xf32> to vector<1x32x8xf32>
    %250 = vector.shape_cast %249 : vector<1x32x8xf32> to vector<32x8xf32>
    %cst_129 = arith.constant dense<0.000000e+00> : vector<5x8xf32>
    %251 = tpu.matmul %3, %250, %cst_129 {dimension_numbers = #tpu.dot_dimension_numbers<[1], [0], [0], [1], [0, 0, 1, 1], [], []>} : vector<5x32xf32>, vector<32x8xf32>, vector<5x8xf32> -> vector<5x8xf32>
    %252 = vector.extract_strided_slice %230 {offsets = [0, 0, 0], sizes = [1, 1, 8], strides = [1, 1, 1]} : vector<4x1x8xf32> to vector<1x1x8xf32>
    %253 = vector.shape_cast %252 : vector<1x1x8xf32> to vector<1x8xf32>
    %254 = vector.broadcast %253 : vector<1x8xf32> to vector<5x8xf32>
    %255 = arith.addf %251, %254 : vector<5x8xf32>
    "tpu.trace_start"() <{level = 10 : i32, message = "qd,kd->qk"}> : () -> ()
    %cst_130 = arith.constant dense<0.000000e+00> : vector<10x5xf32>
    %256 = tpu.matmul %241, %248, %cst_130 {dimension_numbers = #tpu.dot_dimension_numbers<[1], [1], [0], [0], [0, 0, 1, 0], [], []>} : vector<10x8xf32>, vector<5x8xf32>, vector<10x5xf32> -> vector<10x5xf32>
    "tpu.trace_stop"() : () -> ()
    %cst_131 = arith.constant 0.353553385 : f32
    %257 = vector.broadcast %cst_131 : f32 to vector<10x5xf32>
    %258 = arith.mulf %256, %257 : vector<10x5xf32>
    %259 = vector.broadcast %7 : vector<1x5xf32> to vector<10x5xf32>
    %260 = arith.addf %258, %259 : vector<10x5xf32>
    %cst_132 = arith.constant dense<0xFF800000> : vector<10xf32>
    %261 = vector.multi_reduction <maximumf>, %260, %cst_132 [1] : vector<10x5xf32> to vector<10xf32>
    %262 = vector.shape_cast %261 : vector<10xf32> to vector<10x1xf32>
    %263 = vector.broadcast %262 : vector<10x1xf32> to vector<10x5xf32>
    %264 = arith.subf %260, %263 : vector<10x5xf32>
    %265 = math.exp %264 : vector<10x5xf32>
    %cst_133 = arith.constant dense<0.000000e+00> : vector<10xf32>
    %266 = vector.multi_reduction <add>, %265, %cst_133 [1] : vector<10x5xf32> to vector<10xf32>
    %267 = vector.shape_cast %266 : vector<10xf32> to vector<10x1xf32>
    %268 = tpu.reciprocal %267 {approx = true} : vector<10x1xf32> -> vector<10x1xf32>
    %269 = vector.broadcast %268 : vector<10x1xf32> to vector<10x5xf32>
    %270 = arith.mulf %265, %269 : vector<10x5xf32>
    %cst_134 = arith.constant dense<0.000000e+00> : vector<10x8xf32>
    %271 = tpu.matmul %270, %255, %cst_134 {dimension_numbers = #tpu.dot_dimension_numbers<[1], [0], [0], [1], [0, 0, 1, 1], [], []>} : vector<10x5xf32>, vector<5x8xf32>, vector<10x8xf32> -> vector<10x8xf32>
    %272 = vector.extract_strided_slice %232 {offsets = [0, 0, 0], sizes = [1, 8, 32], strides = [1, 1, 1]} : vector<4x8x32xf32> to vector<1x8x32xf32>
    %273 = vector.shape_cast %272 : vector<1x8x32xf32> to vector<8x32xf32>
    %cst_135 = arith.constant dense<0.000000e+00> : vector<10x32xf32>
    %274 = tpu.matmul %271, %273, %cst_135 {dimension_numbers = #tpu.dot_dimension_numbers<[1], [0], [0], [1], [0, 0, 1, 1], [], []>} : vector<10x8xf32>, vector<8x32xf32>, vector<10x32xf32> -> vector<10x32xf32>
    %275 = vector.broadcast %234 : vector<1x32xf32> to vector<10x32xf32>
    %276 = arith.addf %275, %274 : vector<10x32xf32>
    %277 = vector.extract_strided_slice %220 {offsets = [1, 0, 0], sizes = [1, 32, 8], strides = [1, 1, 1]} : vector<4x32x8xf32> to vector<1x32x8xf32>
    %278 = vector.shape_cast %277 : vector<1x32x8xf32> to vector<32x8xf32>
    %cst_136 = arith.constant dense<0.000000e+00> : vector<10x8xf32>
    %279 = tpu.matmul %218, %278, %cst_136 {dimension_numbers = #tpu.dot_dimension_numbers<[1], [0], [0], [1], [0, 0, 1, 1], [], []>} : vector<10x32xf32>, vector<32x8xf32>, vector<10x8xf32> -> vector<10x8xf32>
    %280 = vector.extract_strided_slice %222 {offsets = [1, 0, 0], sizes = [1, 1, 8], strides = [1, 1, 1]} : vector<4x1x8xf32> to vector<1x1x8xf32>
    %281 = vector.shape_cast %280 : vector<1x1x8xf32> to vector<1x8xf32>
    %282 = vector.broadcast %281 : vector<1x8xf32> to vector<10x8xf32>
    %283 = arith.addf %279, %282 : vector<10x8xf32>
    %284 = vector.extract_strided_slice %224 {offsets = [1, 0, 0], sizes = [1, 32, 8], strides = [1, 1, 1]} : vector<4x32x8xf32> to vector<1x32x8xf32>
    %285 = vector.shape_cast %284 : vector<1x32x8xf32> to vector<32x8xf32>
    %cst_137 = arith.constant dense<0.000000e+00> : vector<5x8xf32>
    %286 = tpu.matmul %3, %285, %cst_137 {dimension_numbers = #tpu.dot_dimension_numbers<[1], [0], [0], [1], [0, 0, 1, 1], [], []>} : vector<5x32xf32>, vector<32x8xf32>, vector<5x8xf32> -> vector<5x8xf32>
    %287 = vector.extract_strided_slice %226 {offsets = [1, 0, 0], sizes = [1, 1, 8], strides = [1, 1, 1]} : vector<4x1x8xf32> to vector<1x1x8xf32>
    %288 = vector.shape_cast %287 : vector<1x1x8xf32> to vector<1x8xf32>
    %289 = vector.broadcast %288 : vector<1x8xf32> to vector<5x8xf32>
    %290 = arith.addf %286, %289 : vector<5x8xf32>
    %291 = vector.extract_strided_slice %228 {offsets = [1, 0, 0], sizes = [1, 32, 8], strides = [1, 1, 1]} : vector<4x32x8xf32> to vector<1x32x8xf32>
    %292 = vector.shape_cast %291 : vector<1x32x8xf32> to vector<32x8xf32>
    %cst_138 = arith.constant dense<0.000000e+00> : vector<5x8xf32>
    %293 = tpu.matmul %3, %292, %cst_138 {dimension_numbers = #tpu.dot_dimension_numbers<[1], [0], [0], [1], [0, 0, 1, 1], [], []>} : vector<5x32xf32>, vector<32x8xf32>, vector<5x8xf32> -> vector<5x8xf32>
    %294 = vector.extract_strided_slice %230 {offsets = [1, 0, 0], sizes = [1, 1, 8], strides = [1, 1, 1]} : vector<4x1x8xf32> to vector<1x1x8xf32>
    %295 = vector.shape_cast %294 : vector<1x1x8xf32> to vector<1x8xf32>
    %296 = vector.broadcast %295 : vector<1x8xf32> to vector<5x8xf32>
    %297 = arith.addf %293, %296 : vector<5x8xf32>
    "tpu.trace_start"() <{level = 10 : i32, message = "qd,kd->qk"}> : () -> ()
    %cst_139 = arith.constant dense<0.000000e+00> : vector<10x5xf32>
    %298 = tpu.matmul %283, %290, %cst_139 {dimension_numbers = #tpu.dot_dimension_numbers<[1], [1], [0], [0], [0, 0, 1, 0], [], []>} : vector<10x8xf32>, vector<5x8xf32>, vector<10x5xf32> -> vector<10x5xf32>
    "tpu.trace_stop"() : () -> ()
    %cst_140 = arith.constant 0.353553385 : f32
    %299 = vector.broadcast %cst_140 : f32 to vector<10x5xf32>
    %300 = arith.mulf %298, %299 : vector<10x5xf32>
    %301 = vector.broadcast %7 : vector<1x5xf32> to vector<10x5xf32>
    %302 = arith.addf %300, %301 : vector<10x5xf32>
    %cst_141 = arith.constant dense<0xFF800000> : vector<10xf32>
    %303 = vector.multi_reduction <maximumf>, %302, %cst_141 [1] : vector<10x5xf32> to vector<10xf32>
    %304 = vector.shape_cast %303 : vector<10xf32> to vector<10x1xf32>
    %305 = vector.broadcast %304 : vector<10x1xf32> to vector<10x5xf32>
    %306 = arith.subf %302, %305 : vector<10x5xf32>
    %307 = math.exp %306 : vector<10x5xf32>
    %cst_142 = arith.constant dense<0.000000e+00> : vector<10xf32>
    %308 = vector.multi_reduction <add>, %307, %cst_142 [1] : vector<10x5xf32> to vector<10xf32>
    %309 = vector.shape_cast %308 : vector<10xf32> to vector<10x1xf32>
    %310 = tpu.reciprocal %309 {approx = true} : vector<10x1xf32> -> vector<10x1xf32>
    %311 = vector.broadcast %310 : vector<10x1xf32> to vector<10x5xf32>
    %312 = arith.mulf %307, %311 : vector<10x5xf32>
    %cst_143 = arith.constant dense<0.000000e+00> : vector<10x8xf32>
    %313 = tpu.matmul %312, %297, %cst_143 {dimension_numbers = #tpu.dot_dimension_numbers<[1], [0], [0], [1], [0, 0, 1, 1], [], []>} : vector<10x5xf32>, vector<5x8xf32>, vector<10x8xf32> -> vector<10x8xf32>
    %314 = vector.extract_strided_slice %232 {offsets = [1, 0, 0], sizes = [1, 8, 32], strides = [1, 1, 1]} : vector<4x8x32xf32> to vector<1x8x32xf32>
    %315 = vector.shape_cast %314 : vector<1x8x32xf32> to vector<8x32xf32>
    %cst_144 = arith.constant dense<0.000000e+00> : vector<10x32xf32>
    %316 = tpu.matmul %313, %315, %cst_144 {dimension_numbers = #tpu.dot_dimension_numbers<[1], [0], [0], [1], [0, 0, 1, 1], [], []>} : vector<10x8xf32>, vector<8x32xf32>, vector<10x32xf32> -> vector<10x32xf32>
    %317 = arith.addf %276, %316 : vector<10x32xf32>
    %318 = vector.extract_strided_slice %220 {offsets = [2, 0, 0], sizes = [1, 32, 8], strides = [1, 1, 1]} : vector<4x32x8xf32> to vector<1x32x8xf32>
    %319 = vector.shape_cast %318 : vector<1x32x8xf32> to vector<32x8xf32>
    %cst_145 = arith.constant dense<0.000000e+00> : vector<10x8xf32>
    %320 = tpu.matmul %218, %319, %cst_145 {dimension_numbers = #tpu.dot_dimension_numbers<[1], [0], [0], [1], [0, 0, 1, 1], [], []>} : vector<10x32xf32>, vector<32x8xf32>, vector<10x8xf32> -> vector<10x8xf32>
    %321 = vector.extract_strided_slice %222 {offsets = [2, 0, 0], sizes = [1, 1, 8], strides = [1, 1, 1]} : vector<4x1x8xf32> to vector<1x1x8xf32>
    %322 = vector.shape_cast %321 : vector<1x1x8xf32> to vector<1x8xf32>
    %323 = vector.broadcast %322 : vector<1x8xf32> to vector<10x8xf32>
    %324 = arith.addf %320, %323 : vector<10x8xf32>
    %325 = vector.extract_strided_slice %224 {offsets = [2, 0, 0], sizes = [1, 32, 8], strides = [1, 1, 1]} : vector<4x32x8xf32> to vector<1x32x8xf32>
    %326 = vector.shape_cast %325 : vector<1x32x8xf32> to vector<32x8xf32>
    %cst_146 = arith.constant dense<0.000000e+00> : vector<5x8xf32>
    %327 = tpu.matmul %3, %326, %cst_146 {dimension_numbers = #tpu.dot_dimension_numbers<[1], [0], [0], [1], [0, 0, 1, 1], [], []>} : vector<5x32xf32>, vector<32x8xf32>, vector<5x8xf32> -> vector<5x8xf32>
    %328 = vector.extract_strided_slice %226 {offsets = [2, 0, 0], sizes = [1, 1, 8], strides = [1, 1, 1]} : vector<4x1x8xf32> to vector<1x1x8xf32>
    %329 = vector.shape_cast %328 : vector<1x1x8xf32> to vector<1x8xf32>
    %330 = vector.broadcast %329 : vector<1x8xf32> to vector<5x8xf32>
    %331 = arith.addf %327, %330 : vector<5x8xf32>
    %332 = vector.extract_strided_slice %228 {offsets = [2, 0, 0], sizes = [1, 32, 8], strides = [1, 1, 1]} : vector<4x32x8xf32> to vector<1x32x8xf32>
    %333 = vector.shape_cast %332 : vector<1x32x8xf32> to vector<32x8xf32>
    %cst_147 = arith.constant dense<0.000000e+00> : vector<5x8xf32>
    %334 = tpu.matmul %3, %333, %cst_147 {dimension_numbers = #tpu.dot_dimension_numbers<[1], [0], [0], [1], [0, 0, 1, 1], [], []>} : vector<5x32xf32>, vector<32x8xf32>, vector<5x8xf32> -> vector<5x8xf32>
    %335 = vector.extract_strided_slice %230 {offsets = [2, 0, 0], sizes = [1, 1, 8], strides = [1, 1, 1]} : vector<4x1x8xf32> to vector<1x1x8xf32>
    %336 = vector.shape_cast %335 : vector<1x1x8xf32> to vector<1x8xf32>
    %337 = vector.broadcast %336 : vector<1x8xf32> to vector<5x8xf32>
    %338 = arith.addf %334, %337 : vector<5x8xf32>
    "tpu.trace_start"() <{level = 10 : i32, message = "qd,kd->qk"}> : () -> ()
    %cst_148 = arith.constant dense<0.000000e+00> : vector<10x5xf32>
    %339 = tpu.matmul %324, %331, %cst_148 {dimension_numbers = #tpu.dot_dimension_numbers<[1], [1], [0], [0], [0, 0, 1, 0], [], []>} : vector<10x8xf32>, vector<5x8xf32>, vector<10x5xf32> -> vector<10x5xf32>
    "tpu.trace_stop"() : () -> ()
    %cst_149 = arith.constant 0.353553385 : f32
    %340 = vector.broadcast %cst_149 : f32 to vector<10x5xf32>
    %341 = arith.mulf %339, %340 : vector<10x5xf32>
    %342 = vector.broadcast %7 : vector<1x5xf32> to vector<10x5xf32>
    %343 = arith.addf %341, %342 : vector<10x5xf32>
    %cst_150 = arith.constant dense<0xFF800000> : vector<10xf32>
    %344 = vector.multi_reduction <maximumf>, %343, %cst_150 [1] : vector<10x5xf32> to vector<10xf32>
    %345 = vector.shape_cast %344 : vector<10xf32> to vector<10x1xf32>
    %346 = vector.broadcast %345 : vector<10x1xf32> to vector<10x5xf32>
    %347 = arith.subf %343, %346 : vector<10x5xf32>
    %348 = math.exp %347 : vector<10x5xf32>
    %cst_151 = arith.constant dense<0.000000e+00> : vector<10xf32>
    %349 = vector.multi_reduction <add>, %348, %cst_151 [1] : vector<10x5xf32> to vector<10xf32>
    %350 = vector.shape_cast %349 : vector<10xf32> to vector<10x1xf32>
    %351 = tpu.reciprocal %350 {approx = true} : vector<10x1xf32> -> vector<10x1xf32>
    %352 = vector.broadcast %351 : vector<10x1xf32> to vector<10x5xf32>
    %353 = arith.mulf %348, %352 : vector<10x5xf32>
    %cst_152 = arith.constant dense<0.000000e+00> : vector<10x8xf32>
    %354 = tpu.matmul %353, %338, %cst_152 {dimension_numbers = #tpu.dot_dimension_numbers<[1], [0], [0], [1], [0, 0, 1, 1], [], []>} : vector<10x5xf32>, vector<5x8xf32>, vector<10x8xf32> -> vector<10x8xf32>
    %355 = vector.extract_strided_slice %232 {offsets = [2, 0, 0], sizes = [1, 8, 32], strides = [1, 1, 1]} : vector<4x8x32xf32> to vector<1x8x32xf32>
    %356 = vector.shape_cast %355 : vector<1x8x32xf32> to vector<8x32xf32>
    %cst_153 = arith.constant dense<0.000000e+00> : vector<10x32xf32>
    %357 = tpu.matmul %354, %356, %cst_153 {dimension_numbers = #tpu.dot_dimension_numbers<[1], [0], [0], [1], [0, 0, 1, 1], [], []>} : vector<10x8xf32>, vector<8x32xf32>, vector<10x32xf32> -> vector<10x32xf32>
    %358 = arith.addf %317, %357 : vector<10x32xf32>
    %359 = vector.extract_strided_slice %220 {offsets = [3, 0, 0], sizes = [1, 32, 8], strides = [1, 1, 1]} : vector<4x32x8xf32> to vector<1x32x8xf32>
    %360 = vector.shape_cast %359 : vector<1x32x8xf32> to vector<32x8xf32>
    %cst_154 = arith.constant dense<0.000000e+00> : vector<10x8xf32>
    %361 = tpu.matmul %218, %360, %cst_154 {dimension_numbers = #tpu.dot_dimension_numbers<[1], [0], [0], [1], [0, 0, 1, 1], [], []>} : vector<10x32xf32>, vector<32x8xf32>, vector<10x8xf32> -> vector<10x8xf32>
    %362 = vector.extract_strided_slice %222 {offsets = [3, 0, 0], sizes = [1, 1, 8], strides = [1, 1, 1]} : vector<4x1x8xf32> to vector<1x1x8xf32>
    %363 = vector.shape_cast %362 : vector<1x1x8xf32> to vector<1x8xf32>
    %364 = vector.broadcast %363 : vector<1x8xf32> to vector<10x8xf32>
    %365 = arith.addf %361, %364 : vector<10x8xf32>
    %366 = vector.extract_strided_slice %224 {offsets = [3, 0, 0], sizes = [1, 32, 8], strides = [1, 1, 1]} : vector<4x32x8xf32> to vector<1x32x8xf32>
    %367 = vector.shape_cast %366 : vector<1x32x8xf32> to vector<32x8xf32>
    %cst_155 = arith.constant dense<0.000000e+00> : vector<5x8xf32>
    %368 = tpu.matmul %3, %367, %cst_155 {dimension_numbers = #tpu.dot_dimension_numbers<[1], [0], [0], [1], [0, 0, 1, 1], [], []>} : vector<5x32xf32>, vector<32x8xf32>, vector<5x8xf32> -> vector<5x8xf32>
    %369 = vector.extract_strided_slice %226 {offsets = [3, 0, 0], sizes = [1, 1, 8], strides = [1, 1, 1]} : vector<4x1x8xf32> to vector<1x1x8xf32>
    %370 = vector.shape_cast %369 : vector<1x1x8xf32> to vector<1x8xf32>
    %371 = vector.broadcast %370 : vector<1x8xf32> to vector<5x8xf32>
    %372 = arith.addf %368, %371 : vector<5x8xf32>
    %373 = vector.extract_strided_slice %228 {offsets = [3, 0, 0], sizes = [1, 32, 8], strides = [1, 1, 1]} : vector<4x32x8xf32> to vector<1x32x8xf32>
    %374 = vector.shape_cast %373 : vector<1x32x8xf32> to vector<32x8xf32>
    %cst_156 = arith.constant dense<0.000000e+00> : vector<5x8xf32>
    %375 = tpu.matmul %3, %374, %cst_156 {dimension_numbers = #tpu.dot_dimension_numbers<[1], [0], [0], [1], [0, 0, 1, 1], [], []>} : vector<5x32xf32>, vector<32x8xf32>, vector<5x8xf32> -> vector<5x8xf32>
    %376 = vector.extract_strided_slice %230 {offsets = [3, 0, 0], sizes = [1, 1, 8], strides = [1, 1, 1]} : vector<4x1x8xf32> to vector<1x1x8xf32>
    %377 = vector.shape_cast %376 : vector<1x1x8xf32> to vector<1x8xf32>
    %378 = vector.broadcast %377 : vector<1x8xf32> to vector<5x8xf32>
    %379 = arith.addf %375, %378 : vector<5x8xf32>
    "tpu.trace_start"() <{level = 10 : i32, message = "qd,kd->qk"}> : () -> ()
    %cst_157 = arith.constant dense<0.000000e+00> : vector<10x5xf32>
    %380 = tpu.matmul %365, %372, %cst_157 {dimension_numbers = #tpu.dot_dimension_numbers<[1], [1], [0], [0], [0, 0, 1, 0], [], []>} : vector<10x8xf32>, vector<5x8xf32>, vector<10x5xf32> -> vector<10x5xf32>
    "tpu.trace_stop"() : () -> ()
    %cst_158 = arith.constant 0.353553385 : f32
    %381 = vector.broadcast %cst_158 : f32 to vector<10x5xf32>
    %382 = arith.mulf %380, %381 : vector<10x5xf32>
    %383 = vector.broadcast %7 : vector<1x5xf32> to vector<10x5xf32>
    %384 = arith.addf %382, %383 : vector<10x5xf32>
    %cst_159 = arith.constant dense<0xFF800000> : vector<10xf32>
    %385 = vector.multi_reduction <maximumf>, %384, %cst_159 [1] : vector<10x5xf32> to vector<10xf32>
    %386 = vector.shape_cast %385 : vector<10xf32> to vector<10x1xf32>
    %387 = vector.broadcast %386 : vector<10x1xf32> to vector<10x5xf32>
    %388 = arith.subf %384, %387 : vector<10x5xf32>
    %389 = math.exp %388 : vector<10x5xf32>
    %cst_160 = arith.constant dense<0.000000e+00> : vector<10xf32>
    %390 = vector.multi_reduction <add>, %389, %cst_160 [1] : vector<10x5xf32> to vector<10xf32>
    %391 = vector.shape_cast %390 : vector<10xf32> to vector<10x1xf32>
    %392 = tpu.reciprocal %391 {approx = true} : vector<10x1xf32> -> vector<10x1xf32>
    %393 = vector.broadcast %392 : vector<10x1xf32> to vector<10x5xf32>
    %394 = arith.mulf %389, %393 : vector<10x5xf32>
    %cst_161 = arith.constant dense<0.000000e+00> : vector<10x8xf32>
    %395 = tpu.matmul %394, %379, %cst_161 {dimension_numbers = #tpu.dot_dimension_numbers<[1], [0], [0], [1], [0, 0, 1, 1], [], []>} : vector<10x5xf32>, vector<5x8xf32>, vector<10x8xf32> -> vector<10x8xf32>
    %396 = vector.extract_strided_slice %232 {offsets = [3, 0, 0], sizes = [1, 8, 32], strides = [1, 1, 1]} : vector<4x8x32xf32> to vector<1x8x32xf32>
    %397 = vector.shape_cast %396 : vector<1x8x32xf32> to vector<8x32xf32>
    %cst_162 = arith.constant dense<0.000000e+00> : vector<10x32xf32>
    %398 = tpu.matmul %395, %397, %cst_162 {dimension_numbers = #tpu.dot_dimension_numbers<[1], [0], [0], [1], [0, 0, 1, 1], [], []>} : vector<10x8xf32>, vector<8x32xf32>, vector<10x32xf32> -> vector<10x32xf32>
    %399 = arith.addf %358, %398 : vector<10x32xf32>
    %400 = arith.addf %218, %399 : vector<10x32xf32>
    %c0_163 = arith.constant 0 : index
    %c0_164 = arith.constant 0 : index
    %c0_165 = arith.constant 0 : index
    %401 = vector.load %arg26[%c0_163, %c0_164, %c0_165] : memref<2x1x32xf32, #tpu.memory_space<vmem>>, vector<1x1x32xf32>
    %402 = vector.shape_cast %401 : vector<1x1x32xf32> to vector<1x32xf32>
    %c0_166 = arith.constant 0 : index
    %c0_167 = arith.constant 0 : index
    %c0_168 = arith.constant 0 : index
    %403 = vector.load %arg27[%c0_166, %c0_167, %c0_168] : memref<2x1x32xf32, #tpu.memory_space<vmem>>, vector<1x1x32xf32>
    %404 = vector.shape_cast %403 : vector<1x1x32xf32> to vector<1x32xf32>
    %cst_169 = arith.constant dense<0.000000e+00> : vector<10xf32>
    %405 = vector.multi_reduction <add>, %400, %cst_169 [1] : vector<10x32xf32> to vector<10xf32>
    %406 = vector.shape_cast %405 : vector<10xf32> to vector<10x1xf32>
    %cst_170 = arith.constant 3.200000e+01 : f32
    %407 = vector.broadcast %cst_170 : f32 to vector<10x1xf32>
    %408 = arith.divf %406, %407 : vector<10x1xf32>
    %409 = vector.broadcast %408 : vector<10x1xf32> to vector<10x32xf32>
    %410 = arith.subf %400, %409 : vector<10x32xf32>
    %411 = arith.mulf %410, %410 : vector<10x32xf32>
    %cst_171 = arith.constant dense<0.000000e+00> : vector<10xf32>
    %412 = vector.multi_reduction <add>, %411, %cst_171 [1] : vector<10x32xf32> to vector<10xf32>
    %413 = vector.shape_cast %412 : vector<10xf32> to vector<10x1xf32>
    %cst_172 = arith.constant 3.200000e+01 : f32
    %414 = vector.broadcast %cst_172 : f32 to vector<10x1xf32>
    %415 = arith.divf %413, %414 : vector<10x1xf32>
    %cst_173 = arith.constant 9.99999974E-6 : f32
    %416 = vector.broadcast %cst_173 : f32 to vector<10x1xf32>
    %417 = arith.addf %415, %416 : vector<10x1xf32>
    %418 = math.rsqrt %417 : vector<10x1xf32>
    %419 = vector.broadcast %418 : vector<10x1xf32> to vector<10x32xf32>
    %420 = arith.mulf %410, %419 : vector<10x32xf32>
    %421 = vector.broadcast %402 : vector<1x32xf32> to vector<10x32xf32>
    %422 = arith.mulf %420, %421 : vector<10x32xf32>
    %423 = vector.broadcast %404 : vector<1x32xf32> to vector<10x32xf32>
    %424 = arith.addf %422, %423 : vector<10x32xf32>
    %c0_174 = arith.constant 0 : index
    %c0_175 = arith.constant 0 : index
    %c0_176 = arith.constant 0 : index
    %425 = vector.load %arg28[%c0_174, %c0_175, %c0_176] : memref<2x32x512xf32, #tpu.memory_space<vmem>>, vector<1x32x512xf32>
    %426 = vector.shape_cast %425 : vector<1x32x512xf32> to vector<32x512xf32>
    %c0_177 = arith.constant 0 : index
    %c0_178 = arith.constant 0 : index
    %c0_179 = arith.constant 0 : index
    %427 = vector.load %arg29[%c0_177, %c0_178, %c0_179] : memref<2x1x512xf32, #tpu.memory_space<vmem>>, vector<1x1x512xf32>
    %428 = vector.shape_cast %427 : vector<1x1x512xf32> to vector<1x512xf32>
    %c0_180 = arith.constant 0 : index
    %c0_181 = arith.constant 0 : index
    %c0_182 = arith.constant 0 : index
    %429 = vector.load %arg30[%c0_180, %c0_181, %c0_182] : memref<2x512x32xf32, #tpu.memory_space<vmem>>, vector<1x512x32xf32>
    %430 = vector.shape_cast %429 : vector<1x512x32xf32> to vector<512x32xf32>
    %c0_183 = arith.constant 0 : index
    %c0_184 = arith.constant 0 : index
    %c0_185 = arith.constant 0 : index
    %431 = vector.load %arg31[%c0_183, %c0_184, %c0_185] : memref<2x1x32xf32, #tpu.memory_space<vmem>>, vector<1x1x32xf32>
    %432 = vector.shape_cast %431 : vector<1x1x32xf32> to vector<1x32xf32>
    %cst_186 = arith.constant dense<0.000000e+00> : vector<10x512xf32>
    %433 = tpu.matmul %424, %426, %cst_186 {dimension_numbers = #tpu.dot_dimension_numbers<[1], [0], [0], [1], [0, 0, 1, 1], [], []>} : vector<10x32xf32>, vector<32x512xf32>, vector<10x512xf32> -> vector<10x512xf32>
    %434 = vector.broadcast %428 : vector<1x512xf32> to vector<10x512xf32>
    %435 = arith.addf %433, %434 : vector<10x512xf32>
    %cst_187 = arith.constant 0.000000e+00 : f32
    %436 = vector.broadcast %cst_187 : f32 to vector<10x512xf32>
    %437 = arith.maximumf %435, %436 : vector<10x512xf32>
    %cst_188 = arith.constant dense<0.000000e+00> : vector<10x32xf32>
    %438 = tpu.matmul %437, %430, %cst_188 {dimension_numbers = #tpu.dot_dimension_numbers<[1], [0], [0], [1], [0, 0, 1, 1], [], []>} : vector<10x512xf32>, vector<512x32xf32>, vector<10x32xf32> -> vector<10x32xf32>
    %439 = vector.broadcast %432 : vector<1x32xf32> to vector<10x32xf32>
    %440 = arith.addf %438, %439 : vector<10x32xf32>
    %441 = arith.addf %424, %440 : vector<10x32xf32>
    %c0_189 = arith.constant 0 : index
    %c0_190 = arith.constant 0 : index
    %c0_191 = arith.constant 0 : index
    %442 = vector.load %arg32[%c0_189, %c0_190, %c0_191] : memref<2x1x32xf32, #tpu.memory_space<vmem>>, vector<1x1x32xf32>
    %443 = vector.shape_cast %442 : vector<1x1x32xf32> to vector<1x32xf32>
    %c0_192 = arith.constant 0 : index
    %c0_193 = arith.constant 0 : index
    %c0_194 = arith.constant 0 : index
    %444 = vector.load %arg33[%c0_192, %c0_193, %c0_194] : memref<2x1x32xf32, #tpu.memory_space<vmem>>, vector<1x1x32xf32>
    %445 = vector.shape_cast %444 : vector<1x1x32xf32> to vector<1x32xf32>
    %cst_195 = arith.constant dense<0.000000e+00> : vector<10xf32>
    %446 = vector.multi_reduction <add>, %441, %cst_195 [1] : vector<10x32xf32> to vector<10xf32>
    %447 = vector.shape_cast %446 : vector<10xf32> to vector<10x1xf32>
    %cst_196 = arith.constant 3.200000e+01 : f32
    %448 = vector.broadcast %cst_196 : f32 to vector<10x1xf32>
    %449 = arith.divf %447, %448 : vector<10x1xf32>
    %450 = vector.broadcast %449 : vector<10x1xf32> to vector<10x32xf32>
    %451 = arith.subf %441, %450 : vector<10x32xf32>
    %452 = arith.mulf %451, %451 : vector<10x32xf32>
    %cst_197 = arith.constant dense<0.000000e+00> : vector<10xf32>
    %453 = vector.multi_reduction <add>, %452, %cst_197 [1] : vector<10x32xf32> to vector<10xf32>
    %454 = vector.shape_cast %453 : vector<10xf32> to vector<10x1xf32>
    %cst_198 = arith.constant 3.200000e+01 : f32
    %455 = vector.broadcast %cst_198 : f32 to vector<10x1xf32>
    %456 = arith.divf %454, %455 : vector<10x1xf32>
    %cst_199 = arith.constant 9.99999974E-6 : f32
    %457 = vector.broadcast %cst_199 : f32 to vector<10x1xf32>
    %458 = arith.addf %456, %457 : vector<10x1xf32>
    %459 = math.rsqrt %458 : vector<10x1xf32>
    %460 = vector.broadcast %459 : vector<10x1xf32> to vector<10x32xf32>
    %461 = arith.mulf %451, %460 : vector<10x32xf32>
    %462 = vector.broadcast %443 : vector<1x32xf32> to vector<10x32xf32>
    %463 = arith.mulf %461, %462 : vector<10x32xf32>
    %464 = vector.broadcast %445 : vector<1x32xf32> to vector<10x32xf32>
    %465 = arith.addf %463, %464 : vector<10x32xf32>
    %c1 = arith.constant 1 : index
    %c0_200 = arith.constant 0 : index
    %c0_201 = arith.constant 0 : index
    %c0_202 = arith.constant 0 : index
    %466 = vector.load %arg8[%c1, %c0_200, %c0_201, %c0_202] : memref<2x4x32x8xf32, #tpu.memory_space<vmem>>, vector<1x4x32x8xf32>
    %467 = vector.shape_cast %466 : vector<1x4x32x8xf32> to vector<4x32x8xf32>
    %c1_203 = arith.constant 1 : index
    %c0_204 = arith.constant 0 : index
    %c0_205 = arith.constant 0 : index
    %c0_206 = arith.constant 0 : index
    %468 = vector.load %arg9[%c1_203, %c0_204, %c0_205, %c0_206] : memref<2x4x1x8xf32, #tpu.memory_space<vmem>>, vector<1x4x1x8xf32>
    %469 = vector.shape_cast %468 : vector<1x4x1x8xf32> to vector<4x1x8xf32>
    %c1_207 = arith.constant 1 : index
    %c0_208 = arith.constant 0 : index
    %c0_209 = arith.constant 0 : index
    %c0_210 = arith.constant 0 : index
    %470 = vector.load %arg10[%c1_207, %c0_208, %c0_209, %c0_210] : memref<2x4x32x8xf32, #tpu.memory_space<vmem>>, vector<1x4x32x8xf32>
    %471 = vector.shape_cast %470 : vector<1x4x32x8xf32> to vector<4x32x8xf32>
    %c1_211 = arith.constant 1 : index
    %c0_212 = arith.constant 0 : index
    %c0_213 = arith.constant 0 : index
    %c0_214 = arith.constant 0 : index
    %472 = vector.load %arg11[%c1_211, %c0_212, %c0_213, %c0_214] : memref<2x4x1x8xf32, #tpu.memory_space<vmem>>, vector<1x4x1x8xf32>
    %473 = vector.shape_cast %472 : vector<1x4x1x8xf32> to vector<4x1x8xf32>
    %c1_215 = arith.constant 1 : index
    %c0_216 = arith.constant 0 : index
    %c0_217 = arith.constant 0 : index
    %c0_218 = arith.constant 0 : index
    %474 = vector.load %arg12[%c1_215, %c0_216, %c0_217, %c0_218] : memref<2x4x32x8xf32, #tpu.memory_space<vmem>>, vector<1x4x32x8xf32>
    %475 = vector.shape_cast %474 : vector<1x4x32x8xf32> to vector<4x32x8xf32>
    %c1_219 = arith.constant 1 : index
    %c0_220 = arith.constant 0 : index
    %c0_221 = arith.constant 0 : index
    %c0_222 = arith.constant 0 : index
    %476 = vector.load %arg13[%c1_219, %c0_220, %c0_221, %c0_222] : memref<2x4x1x8xf32, #tpu.memory_space<vmem>>, vector<1x4x1x8xf32>
    %477 = vector.shape_cast %476 : vector<1x4x1x8xf32> to vector<4x1x8xf32>
    %c1_223 = arith.constant 1 : index
    %c0_224 = arith.constant 0 : index
    %c0_225 = arith.constant 0 : index
    %c0_226 = arith.constant 0 : index
    %478 = vector.load %arg14[%c1_223, %c0_224, %c0_225, %c0_226] : memref<2x4x8x32xf32, #tpu.memory_space<vmem>>, vector<1x4x8x32xf32>
    %479 = vector.shape_cast %478 : vector<1x4x8x32xf32> to vector<4x8x32xf32>
    %c1_227 = arith.constant 1 : index
    %c0_228 = arith.constant 0 : index
    %c0_229 = arith.constant 0 : index
    %480 = vector.load %arg15[%c1_227, %c0_228, %c0_229] : memref<2x1x32xf32, #tpu.memory_space<vmem>>, vector<1x1x32xf32>
    %481 = vector.shape_cast %480 : vector<1x1x32xf32> to vector<1x32xf32>
    %482 = vector.extract_strided_slice %467 {offsets = [0, 0, 0], sizes = [1, 32, 8], strides = [1, 1, 1]} : vector<4x32x8xf32> to vector<1x32x8xf32>
    %483 = vector.shape_cast %482 : vector<1x32x8xf32> to vector<32x8xf32>
    %cst_230 = arith.constant dense<0.000000e+00> : vector<10x8xf32>
    %484 = tpu.matmul %465, %483, %cst_230 {dimension_numbers = #tpu.dot_dimension_numbers<[1], [0], [0], [1], [0, 0, 1, 1], [], []>} : vector<10x32xf32>, vector<32x8xf32>, vector<10x8xf32> -> vector<10x8xf32>
    %485 = vector.extract_strided_slice %469 {offsets = [0, 0, 0], sizes = [1, 1, 8], strides = [1, 1, 1]} : vector<4x1x8xf32> to vector<1x1x8xf32>
    %486 = vector.shape_cast %485 : vector<1x1x8xf32> to vector<1x8xf32>
    %487 = vector.broadcast %486 : vector<1x8xf32> to vector<10x8xf32>
    %488 = arith.addf %484, %487 : vector<10x8xf32>
    %489 = vector.extract_strided_slice %471 {offsets = [0, 0, 0], sizes = [1, 32, 8], strides = [1, 1, 1]} : vector<4x32x8xf32> to vector<1x32x8xf32>
    %490 = vector.shape_cast %489 : vector<1x32x8xf32> to vector<32x8xf32>
    %cst_231 = arith.constant dense<0.000000e+00> : vector<10x8xf32>
    %491 = tpu.matmul %465, %490, %cst_231 {dimension_numbers = #tpu.dot_dimension_numbers<[1], [0], [0], [1], [0, 0, 1, 1], [], []>} : vector<10x32xf32>, vector<32x8xf32>, vector<10x8xf32> -> vector<10x8xf32>
    %492 = vector.extract_strided_slice %473 {offsets = [0, 0, 0], sizes = [1, 1, 8], strides = [1, 1, 1]} : vector<4x1x8xf32> to vector<1x1x8xf32>
    %493 = vector.shape_cast %492 : vector<1x1x8xf32> to vector<1x8xf32>
    %494 = vector.broadcast %493 : vector<1x8xf32> to vector<10x8xf32>
    %495 = arith.addf %491, %494 : vector<10x8xf32>
    %496 = vector.extract_strided_slice %475 {offsets = [0, 0, 0], sizes = [1, 32, 8], strides = [1, 1, 1]} : vector<4x32x8xf32> to vector<1x32x8xf32>
    %497 = vector.shape_cast %496 : vector<1x32x8xf32> to vector<32x8xf32>
    %cst_232 = arith.constant dense<0.000000e+00> : vector<10x8xf32>
    %498 = tpu.matmul %465, %497, %cst_232 {dimension_numbers = #tpu.dot_dimension_numbers<[1], [0], [0], [1], [0, 0, 1, 1], [], []>} : vector<10x32xf32>, vector<32x8xf32>, vector<10x8xf32> -> vector<10x8xf32>
    %499 = vector.extract_strided_slice %477 {offsets = [0, 0, 0], sizes = [1, 1, 8], strides = [1, 1, 1]} : vector<4x1x8xf32> to vector<1x1x8xf32>
    %500 = vector.shape_cast %499 : vector<1x1x8xf32> to vector<1x8xf32>
    %501 = vector.broadcast %500 : vector<1x8xf32> to vector<10x8xf32>
    %502 = arith.addf %498, %501 : vector<10x8xf32>
    "tpu.trace_start"() <{level = 10 : i32, message = "qd,kd->qk"}> : () -> ()
    %cst_233 = arith.constant dense<0.000000e+00> : vector<10x10xf32>
    %503 = tpu.matmul %488, %495, %cst_233 {dimension_numbers = #tpu.dot_dimension_numbers<[1], [1], [0], [0], [0, 0, 1, 0], [], []>} : vector<10x8xf32>, vector<10x8xf32>, vector<10x10xf32> -> vector<10x10xf32>
    "tpu.trace_stop"() : () -> ()
    %cst_234 = arith.constant 0.353553385 : f32
    %504 = vector.broadcast %cst_234 : f32 to vector<10x10xf32>
    %505 = arith.mulf %503, %504 : vector<10x10xf32>
    %506 = arith.addf %505, %5 : vector<10x10xf32>
    %cst_235 = arith.constant dense<0xFF800000> : vector<10xf32>
    %507 = vector.multi_reduction <maximumf>, %506, %cst_235 [1] : vector<10x10xf32> to vector<10xf32>
    %508 = vector.shape_cast %507 : vector<10xf32> to vector<10x1xf32>
    %509 = vector.broadcast %508 : vector<10x1xf32> to vector<10x10xf32>
    %510 = arith.subf %506, %509 : vector<10x10xf32>
    %511 = math.exp %510 : vector<10x10xf32>
    %cst_236 = arith.constant dense<0.000000e+00> : vector<10xf32>
    %512 = vector.multi_reduction <add>, %511, %cst_236 [1] : vector<10x10xf32> to vector<10xf32>
    %513 = vector.shape_cast %512 : vector<10xf32> to vector<10x1xf32>
    %514 = tpu.reciprocal %513 {approx = true} : vector<10x1xf32> -> vector<10x1xf32>
    %515 = vector.broadcast %514 : vector<10x1xf32> to vector<10x10xf32>
    %516 = arith.mulf %511, %515 : vector<10x10xf32>
    %cst_237 = arith.constant dense<0.000000e+00> : vector<10x8xf32>
    %517 = tpu.matmul %516, %502, %cst_237 {dimension_numbers = #tpu.dot_dimension_numbers<[1], [0], [0], [1], [0, 0, 1, 1], [], []>} : vector<10x10xf32>, vector<10x8xf32>, vector<10x8xf32> -> vector<10x8xf32>
    %518 = vector.extract_strided_slice %479 {offsets = [0, 0, 0], sizes = [1, 8, 32], strides = [1, 1, 1]} : vector<4x8x32xf32> to vector<1x8x32xf32>
    %519 = vector.shape_cast %518 : vector<1x8x32xf32> to vector<8x32xf32>
    %cst_238 = arith.constant dense<0.000000e+00> : vector<10x32xf32>
    %520 = tpu.matmul %517, %519, %cst_238 {dimension_numbers = #tpu.dot_dimension_numbers<[1], [0], [0], [1], [0, 0, 1, 1], [], []>} : vector<10x8xf32>, vector<8x32xf32>, vector<10x32xf32> -> vector<10x32xf32>
    %521 = vector.broadcast %481 : vector<1x32xf32> to vector<10x32xf32>
    %522 = arith.addf %521, %520 : vector<10x32xf32>
    %523 = vector.extract_strided_slice %467 {offsets = [1, 0, 0], sizes = [1, 32, 8], strides = [1, 1, 1]} : vector<4x32x8xf32> to vector<1x32x8xf32>
    %524 = vector.shape_cast %523 : vector<1x32x8xf32> to vector<32x8xf32>
    %cst_239 = arith.constant dense<0.000000e+00> : vector<10x8xf32>
    %525 = tpu.matmul %465, %524, %cst_239 {dimension_numbers = #tpu.dot_dimension_numbers<[1], [0], [0], [1], [0, 0, 1, 1], [], []>} : vector<10x32xf32>, vector<32x8xf32>, vector<10x8xf32> -> vector<10x8xf32>
    %526 = vector.extract_strided_slice %469 {offsets = [1, 0, 0], sizes = [1, 1, 8], strides = [1, 1, 1]} : vector<4x1x8xf32> to vector<1x1x8xf32>
    %527 = vector.shape_cast %526 : vector<1x1x8xf32> to vector<1x8xf32>
    %528 = vector.broadcast %527 : vector<1x8xf32> to vector<10x8xf32>
    %529 = arith.addf %525, %528 : vector<10x8xf32>
    %530 = vector.extract_strided_slice %471 {offsets = [1, 0, 0], sizes = [1, 32, 8], strides = [1, 1, 1]} : vector<4x32x8xf32> to vector<1x32x8xf32>
    %531 = vector.shape_cast %530 : vector<1x32x8xf32> to vector<32x8xf32>
    %cst_240 = arith.constant dense<0.000000e+00> : vector<10x8xf32>
    %532 = tpu.matmul %465, %531, %cst_240 {dimension_numbers = #tpu.dot_dimension_numbers<[1], [0], [0], [1], [0, 0, 1, 1], [], []>} : vector<10x32xf32>, vector<32x8xf32>, vector<10x8xf32> -> vector<10x8xf32>
    %533 = vector.extract_strided_slice %473 {offsets = [1, 0, 0], sizes = [1, 1, 8], strides = [1, 1, 1]} : vector<4x1x8xf32> to vector<1x1x8xf32>
    %534 = vector.shape_cast %533 : vector<1x1x8xf32> to vector<1x8xf32>
    %535 = vector.broadcast %534 : vector<1x8xf32> to vector<10x8xf32>
    %536 = arith.addf %532, %535 : vector<10x8xf32>
    %537 = vector.extract_strided_slice %475 {offsets = [1, 0, 0], sizes = [1, 32, 8], strides = [1, 1, 1]} : vector<4x32x8xf32> to vector<1x32x8xf32>
    %538 = vector.shape_cast %537 : vector<1x32x8xf32> to vector<32x8xf32>
    %cst_241 = arith.constant dense<0.000000e+00> : vector<10x8xf32>
    %539 = tpu.matmul %465, %538, %cst_241 {dimension_numbers = #tpu.dot_dimension_numbers<[1], [0], [0], [1], [0, 0, 1, 1], [], []>} : vector<10x32xf32>, vector<32x8xf32>, vector<10x8xf32> -> vector<10x8xf32>
    %540 = vector.extract_strided_slice %477 {offsets = [1, 0, 0], sizes = [1, 1, 8], strides = [1, 1, 1]} : vector<4x1x8xf32> to vector<1x1x8xf32>
    %541 = vector.shape_cast %540 : vector<1x1x8xf32> to vector<1x8xf32>
    %542 = vector.broadcast %541 : vector<1x8xf32> to vector<10x8xf32>
    %543 = arith.addf %539, %542 : vector<10x8xf32>
    "tpu.trace_start"() <{level = 10 : i32, message = "qd,kd->qk"}> : () -> ()
    %cst_242 = arith.constant dense<0.000000e+00> : vector<10x10xf32>
    %544 = tpu.matmul %529, %536, %cst_242 {dimension_numbers = #tpu.dot_dimension_numbers<[1], [1], [0], [0], [0, 0, 1, 0], [], []>} : vector<10x8xf32>, vector<10x8xf32>, vector<10x10xf32> -> vector<10x10xf32>
    "tpu.trace_stop"() : () -> ()
    %cst_243 = arith.constant 0.353553385 : f32
    %545 = vector.broadcast %cst_243 : f32 to vector<10x10xf32>
    %546 = arith.mulf %544, %545 : vector<10x10xf32>
    %547 = arith.addf %546, %5 : vector<10x10xf32>
    %cst_244 = arith.constant dense<0xFF800000> : vector<10xf32>
    %548 = vector.multi_reduction <maximumf>, %547, %cst_244 [1] : vector<10x10xf32> to vector<10xf32>
    %549 = vector.shape_cast %548 : vector<10xf32> to vector<10x1xf32>
    %550 = vector.broadcast %549 : vector<10x1xf32> to vector<10x10xf32>
    %551 = arith.subf %547, %550 : vector<10x10xf32>
    %552 = math.exp %551 : vector<10x10xf32>
    %cst_245 = arith.constant dense<0.000000e+00> : vector<10xf32>
    %553 = vector.multi_reduction <add>, %552, %cst_245 [1] : vector<10x10xf32> to vector<10xf32>
    %554 = vector.shape_cast %553 : vector<10xf32> to vector<10x1xf32>
    %555 = tpu.reciprocal %554 {approx = true} : vector<10x1xf32> -> vector<10x1xf32>
    %556 = vector.broadcast %555 : vector<10x1xf32> to vector<10x10xf32>
    %557 = arith.mulf %552, %556 : vector<10x10xf32>
    %cst_246 = arith.constant dense<0.000000e+00> : vector<10x8xf32>
    %558 = tpu.matmul %557, %543, %cst_246 {dimension_numbers = #tpu.dot_dimension_numbers<[1], [0], [0], [1], [0, 0, 1, 1], [], []>} : vector<10x10xf32>, vector<10x8xf32>, vector<10x8xf32> -> vector<10x8xf32>
    %559 = vector.extract_strided_slice %479 {offsets = [1, 0, 0], sizes = [1, 8, 32], strides = [1, 1, 1]} : vector<4x8x32xf32> to vector<1x8x32xf32>
    %560 = vector.shape_cast %559 : vector<1x8x32xf32> to vector<8x32xf32>
    %cst_247 = arith.constant dense<0.000000e+00> : vector<10x32xf32>
    %561 = tpu.matmul %558, %560, %cst_247 {dimension_numbers = #tpu.dot_dimension_numbers<[1], [0], [0], [1], [0, 0, 1, 1], [], []>} : vector<10x8xf32>, vector<8x32xf32>, vector<10x32xf32> -> vector<10x32xf32>
    %562 = arith.addf %522, %561 : vector<10x32xf32>
    %563 = vector.extract_strided_slice %467 {offsets = [2, 0, 0], sizes = [1, 32, 8], strides = [1, 1, 1]} : vector<4x32x8xf32> to vector<1x32x8xf32>
    %564 = vector.shape_cast %563 : vector<1x32x8xf32> to vector<32x8xf32>
    %cst_248 = arith.constant dense<0.000000e+00> : vector<10x8xf32>
    %565 = tpu.matmul %465, %564, %cst_248 {dimension_numbers = #tpu.dot_dimension_numbers<[1], [0], [0], [1], [0, 0, 1, 1], [], []>} : vector<10x32xf32>, vector<32x8xf32>, vector<10x8xf32> -> vector<10x8xf32>
    %566 = vector.extract_strided_slice %469 {offsets = [2, 0, 0], sizes = [1, 1, 8], strides = [1, 1, 1]} : vector<4x1x8xf32> to vector<1x1x8xf32>
    %567 = vector.shape_cast %566 : vector<1x1x8xf32> to vector<1x8xf32>
    %568 = vector.broadcast %567 : vector<1x8xf32> to vector<10x8xf32>
    %569 = arith.addf %565, %568 : vector<10x8xf32>
    %570 = vector.extract_strided_slice %471 {offsets = [2, 0, 0], sizes = [1, 32, 8], strides = [1, 1, 1]} : vector<4x32x8xf32> to vector<1x32x8xf32>
    %571 = vector.shape_cast %570 : vector<1x32x8xf32> to vector<32x8xf32>
    %cst_249 = arith.constant dense<0.000000e+00> : vector<10x8xf32>
    %572 = tpu.matmul %465, %571, %cst_249 {dimension_numbers = #tpu.dot_dimension_numbers<[1], [0], [0], [1], [0, 0, 1, 1], [], []>} : vector<10x32xf32>, vector<32x8xf32>, vector<10x8xf32> -> vector<10x8xf32>
    %573 = vector.extract_strided_slice %473 {offsets = [2, 0, 0], sizes = [1, 1, 8], strides = [1, 1, 1]} : vector<4x1x8xf32> to vector<1x1x8xf32>
    %574 = vector.shape_cast %573 : vector<1x1x8xf32> to vector<1x8xf32>
    %575 = vector.broadcast %574 : vector<1x8xf32> to vector<10x8xf32>
    %576 = arith.addf %572, %575 : vector<10x8xf32>
    %577 = vector.extract_strided_slice %475 {offsets = [2, 0, 0], sizes = [1, 32, 8], strides = [1, 1, 1]} : vector<4x32x8xf32> to vector<1x32x8xf32>
    %578 = vector.shape_cast %577 : vector<1x32x8xf32> to vector<32x8xf32>
    %cst_250 = arith.constant dense<0.000000e+00> : vector<10x8xf32>
    %579 = tpu.matmul %465, %578, %cst_250 {dimension_numbers = #tpu.dot_dimension_numbers<[1], [0], [0], [1], [0, 0, 1, 1], [], []>} : vector<10x32xf32>, vector<32x8xf32>, vector<10x8xf32> -> vector<10x8xf32>
    %580 = vector.extract_strided_slice %477 {offsets = [2, 0, 0], sizes = [1, 1, 8], strides = [1, 1, 1]} : vector<4x1x8xf32> to vector<1x1x8xf32>
    %581 = vector.shape_cast %580 : vector<1x1x8xf32> to vector<1x8xf32>
    %582 = vector.broadcast %581 : vector<1x8xf32> to vector<10x8xf32>
    %583 = arith.addf %579, %582 : vector<10x8xf32>
    "tpu.trace_start"() <{level = 10 : i32, message = "qd,kd->qk"}> : () -> ()
    %cst_251 = arith.constant dense<0.000000e+00> : vector<10x10xf32>
    %584 = tpu.matmul %569, %576, %cst_251 {dimension_numbers = #tpu.dot_dimension_numbers<[1], [1], [0], [0], [0, 0, 1, 0], [], []>} : vector<10x8xf32>, vector<10x8xf32>, vector<10x10xf32> -> vector<10x10xf32>
    "tpu.trace_stop"() : () -> ()
    %cst_252 = arith.constant 0.353553385 : f32
    %585 = vector.broadcast %cst_252 : f32 to vector<10x10xf32>
    %586 = arith.mulf %584, %585 : vector<10x10xf32>
    %587 = arith.addf %586, %5 : vector<10x10xf32>
    %cst_253 = arith.constant dense<0xFF800000> : vector<10xf32>
    %588 = vector.multi_reduction <maximumf>, %587, %cst_253 [1] : vector<10x10xf32> to vector<10xf32>
    %589 = vector.shape_cast %588 : vector<10xf32> to vector<10x1xf32>
    %590 = vector.broadcast %589 : vector<10x1xf32> to vector<10x10xf32>
    %591 = arith.subf %587, %590 : vector<10x10xf32>
    %592 = math.exp %591 : vector<10x10xf32>
    %cst_254 = arith.constant dense<0.000000e+00> : vector<10xf32>
    %593 = vector.multi_reduction <add>, %592, %cst_254 [1] : vector<10x10xf32> to vector<10xf32>
    %594 = vector.shape_cast %593 : vector<10xf32> to vector<10x1xf32>
    %595 = tpu.reciprocal %594 {approx = true} : vector<10x1xf32> -> vector<10x1xf32>
    %596 = vector.broadcast %595 : vector<10x1xf32> to vector<10x10xf32>
    %597 = arith.mulf %592, %596 : vector<10x10xf32>
    %cst_255 = arith.constant dense<0.000000e+00> : vector<10x8xf32>
    %598 = tpu.matmul %597, %583, %cst_255 {dimension_numbers = #tpu.dot_dimension_numbers<[1], [0], [0], [1], [0, 0, 1, 1], [], []>} : vector<10x10xf32>, vector<10x8xf32>, vector<10x8xf32> -> vector<10x8xf32>
    %599 = vector.extract_strided_slice %479 {offsets = [2, 0, 0], sizes = [1, 8, 32], strides = [1, 1, 1]} : vector<4x8x32xf32> to vector<1x8x32xf32>
    %600 = vector.shape_cast %599 : vector<1x8x32xf32> to vector<8x32xf32>
    %cst_256 = arith.constant dense<0.000000e+00> : vector<10x32xf32>
    %601 = tpu.matmul %598, %600, %cst_256 {dimension_numbers = #tpu.dot_dimension_numbers<[1], [0], [0], [1], [0, 0, 1, 1], [], []>} : vector<10x8xf32>, vector<8x32xf32>, vector<10x32xf32> -> vector<10x32xf32>
    %602 = arith.addf %562, %601 : vector<10x32xf32>
    %603 = vector.extract_strided_slice %467 {offsets = [3, 0, 0], sizes = [1, 32, 8], strides = [1, 1, 1]} : vector<4x32x8xf32> to vector<1x32x8xf32>
    %604 = vector.shape_cast %603 : vector<1x32x8xf32> to vector<32x8xf32>
    %cst_257 = arith.constant dense<0.000000e+00> : vector<10x8xf32>
    %605 = tpu.matmul %465, %604, %cst_257 {dimension_numbers = #tpu.dot_dimension_numbers<[1], [0], [0], [1], [0, 0, 1, 1], [], []>} : vector<10x32xf32>, vector<32x8xf32>, vector<10x8xf32> -> vector<10x8xf32>
    %606 = vector.extract_strided_slice %469 {offsets = [3, 0, 0], sizes = [1, 1, 8], strides = [1, 1, 1]} : vector<4x1x8xf32> to vector<1x1x8xf32>
    %607 = vector.shape_cast %606 : vector<1x1x8xf32> to vector<1x8xf32>
    %608 = vector.broadcast %607 : vector<1x8xf32> to vector<10x8xf32>
    %609 = arith.addf %605, %608 : vector<10x8xf32>
    %610 = vector.extract_strided_slice %471 {offsets = [3, 0, 0], sizes = [1, 32, 8], strides = [1, 1, 1]} : vector<4x32x8xf32> to vector<1x32x8xf32>
    %611 = vector.shape_cast %610 : vector<1x32x8xf32> to vector<32x8xf32>
    %cst_258 = arith.constant dense<0.000000e+00> : vector<10x8xf32>
    %612 = tpu.matmul %465, %611, %cst_258 {dimension_numbers = #tpu.dot_dimension_numbers<[1], [0], [0], [1], [0, 0, 1, 1], [], []>} : vector<10x32xf32>, vector<32x8xf32>, vector<10x8xf32> -> vector<10x8xf32>
    %613 = vector.extract_strided_slice %473 {offsets = [3, 0, 0], sizes = [1, 1, 8], strides = [1, 1, 1]} : vector<4x1x8xf32> to vector<1x1x8xf32>
    %614 = vector.shape_cast %613 : vector<1x1x8xf32> to vector<1x8xf32>
    %615 = vector.broadcast %614 : vector<1x8xf32> to vector<10x8xf32>
    %616 = arith.addf %612, %615 : vector<10x8xf32>
    %617 = vector.extract_strided_slice %475 {offsets = [3, 0, 0], sizes = [1, 32, 8], strides = [1, 1, 1]} : vector<4x32x8xf32> to vector<1x32x8xf32>
    %618 = vector.shape_cast %617 : vector<1x32x8xf32> to vector<32x8xf32>
    %cst_259 = arith.constant dense<0.000000e+00> : vector<10x8xf32>
    %619 = tpu.matmul %465, %618, %cst_259 {dimension_numbers = #tpu.dot_dimension_numbers<[1], [0], [0], [1], [0, 0, 1, 1], [], []>} : vector<10x32xf32>, vector<32x8xf32>, vector<10x8xf32> -> vector<10x8xf32>
    %620 = vector.extract_strided_slice %477 {offsets = [3, 0, 0], sizes = [1, 1, 8], strides = [1, 1, 1]} : vector<4x1x8xf32> to vector<1x1x8xf32>
    %621 = vector.shape_cast %620 : vector<1x1x8xf32> to vector<1x8xf32>
    %622 = vector.broadcast %621 : vector<1x8xf32> to vector<10x8xf32>
    %623 = arith.addf %619, %622 : vector<10x8xf32>
    "tpu.trace_start"() <{level = 10 : i32, message = "qd,kd->qk"}> : () -> ()
    %cst_260 = arith.constant dense<0.000000e+00> : vector<10x10xf32>
    %624 = tpu.matmul %609, %616, %cst_260 {dimension_numbers = #tpu.dot_dimension_numbers<[1], [1], [0], [0], [0, 0, 1, 0], [], []>} : vector<10x8xf32>, vector<10x8xf32>, vector<10x10xf32> -> vector<10x10xf32>
    "tpu.trace_stop"() : () -> ()
    %cst_261 = arith.constant 0.353553385 : f32
    %625 = vector.broadcast %cst_261 : f32 to vector<10x10xf32>
    %626 = arith.mulf %624, %625 : vector<10x10xf32>
    %627 = arith.addf %626, %5 : vector<10x10xf32>
    %cst_262 = arith.constant dense<0xFF800000> : vector<10xf32>
    %628 = vector.multi_reduction <maximumf>, %627, %cst_262 [1] : vector<10x10xf32> to vector<10xf32>
    %629 = vector.shape_cast %628 : vector<10xf32> to vector<10x1xf32>
    %630 = vector.broadcast %629 : vector<10x1xf32> to vector<10x10xf32>
    %631 = arith.subf %627, %630 : vector<10x10xf32>
    %632 = math.exp %631 : vector<10x10xf32>
    %cst_263 = arith.constant dense<0.000000e+00> : vector<10xf32>
    %633 = vector.multi_reduction <add>, %632, %cst_263 [1] : vector<10x10xf32> to vector<10xf32>
    %634 = vector.shape_cast %633 : vector<10xf32> to vector<10x1xf32>
    %635 = tpu.reciprocal %634 {approx = true} : vector<10x1xf32> -> vector<10x1xf32>
    %636 = vector.broadcast %635 : vector<10x1xf32> to vector<10x10xf32>
    %637 = arith.mulf %632, %636 : vector<10x10xf32>
    %cst_264 = arith.constant dense<0.000000e+00> : vector<10x8xf32>
    %638 = tpu.matmul %637, %623, %cst_264 {dimension_numbers = #tpu.dot_dimension_numbers<[1], [0], [0], [1], [0, 0, 1, 1], [], []>} : vector<10x10xf32>, vector<10x8xf32>, vector<10x8xf32> -> vector<10x8xf32>
    %639 = vector.extract_strided_slice %479 {offsets = [3, 0, 0], sizes = [1, 8, 32], strides = [1, 1, 1]} : vector<4x8x32xf32> to vector<1x8x32xf32>
    %640 = vector.shape_cast %639 : vector<1x8x32xf32> to vector<8x32xf32>
    %cst_265 = arith.constant dense<0.000000e+00> : vector<10x32xf32>
    %641 = tpu.matmul %638, %640, %cst_265 {dimension_numbers = #tpu.dot_dimension_numbers<[1], [0], [0], [1], [0, 0, 1, 1], [], []>} : vector<10x8xf32>, vector<8x32xf32>, vector<10x32xf32> -> vector<10x32xf32>
    %642 = arith.addf %602, %641 : vector<10x32xf32>
    %643 = arith.addf %465, %642 : vector<10x32xf32>
    %c1_266 = arith.constant 1 : index
    %c0_267 = arith.constant 0 : index
    %c0_268 = arith.constant 0 : index
    %644 = vector.load %arg16[%c1_266, %c0_267, %c0_268] : memref<2x1x32xf32, #tpu.memory_space<vmem>>, vector<1x1x32xf32>
    %645 = vector.shape_cast %644 : vector<1x1x32xf32> to vector<1x32xf32>
    %c1_269 = arith.constant 1 : index
    %c0_270 = arith.constant 0 : index
    %c0_271 = arith.constant 0 : index
    %646 = vector.load %arg17[%c1_269, %c0_270, %c0_271] : memref<2x1x32xf32, #tpu.memory_space<vmem>>, vector<1x1x32xf32>
    %647 = vector.shape_cast %646 : vector<1x1x32xf32> to vector<1x32xf32>
    %cst_272 = arith.constant dense<0.000000e+00> : vector<10xf32>
    %648 = vector.multi_reduction <add>, %643, %cst_272 [1] : vector<10x32xf32> to vector<10xf32>
    %649 = vector.shape_cast %648 : vector<10xf32> to vector<10x1xf32>
    %cst_273 = arith.constant 3.200000e+01 : f32
    %650 = vector.broadcast %cst_273 : f32 to vector<10x1xf32>
    %651 = arith.divf %649, %650 : vector<10x1xf32>
    %652 = vector.broadcast %651 : vector<10x1xf32> to vector<10x32xf32>
    %653 = arith.subf %643, %652 : vector<10x32xf32>
    %654 = arith.mulf %653, %653 : vector<10x32xf32>
    %cst_274 = arith.constant dense<0.000000e+00> : vector<10xf32>
    %655 = vector.multi_reduction <add>, %654, %cst_274 [1] : vector<10x32xf32> to vector<10xf32>
    %656 = vector.shape_cast %655 : vector<10xf32> to vector<10x1xf32>
    %cst_275 = arith.constant 3.200000e+01 : f32
    %657 = vector.broadcast %cst_275 : f32 to vector<10x1xf32>
    %658 = arith.divf %656, %657 : vector<10x1xf32>
    %cst_276 = arith.constant 9.99999974E-6 : f32
    %659 = vector.broadcast %cst_276 : f32 to vector<10x1xf32>
    %660 = arith.addf %658, %659 : vector<10x1xf32>
    %661 = math.rsqrt %660 : vector<10x1xf32>
    %662 = vector.broadcast %661 : vector<10x1xf32> to vector<10x32xf32>
    %663 = arith.mulf %653, %662 : vector<10x32xf32>
    %664 = vector.broadcast %645 : vector<1x32xf32> to vector<10x32xf32>
    %665 = arith.mulf %663, %664 : vector<10x32xf32>
    %666 = vector.broadcast %647 : vector<1x32xf32> to vector<10x32xf32>
    %667 = arith.addf %665, %666 : vector<10x32xf32>
    %c1_277 = arith.constant 1 : index
    %c0_278 = arith.constant 0 : index
    %c0_279 = arith.constant 0 : index
    %c0_280 = arith.constant 0 : index
    %668 = vector.load %arg18[%c1_277, %c0_278, %c0_279, %c0_280] : memref<2x4x32x8xf32, #tpu.memory_space<vmem>>, vector<1x4x32x8xf32>
    %669 = vector.shape_cast %668 : vector<1x4x32x8xf32> to vector<4x32x8xf32>
    %c1_281 = arith.constant 1 : index
    %c0_282 = arith.constant 0 : index
    %c0_283 = arith.constant 0 : index
    %c0_284 = arith.constant 0 : index
    %670 = vector.load %arg19[%c1_281, %c0_282, %c0_283, %c0_284] : memref<2x4x1x8xf32, #tpu.memory_space<vmem>>, vector<1x4x1x8xf32>
    %671 = vector.shape_cast %670 : vector<1x4x1x8xf32> to vector<4x1x8xf32>
    %c1_285 = arith.constant 1 : index
    %c0_286 = arith.constant 0 : index
    %c0_287 = arith.constant 0 : index
    %c0_288 = arith.constant 0 : index
    %672 = vector.load %arg20[%c1_285, %c0_286, %c0_287, %c0_288] : memref<2x4x32x8xf32, #tpu.memory_space<vmem>>, vector<1x4x32x8xf32>
    %673 = vector.shape_cast %672 : vector<1x4x32x8xf32> to vector<4x32x8xf32>
    %c1_289 = arith.constant 1 : index
    %c0_290 = arith.constant 0 : index
    %c0_291 = arith.constant 0 : index
    %c0_292 = arith.constant 0 : index
    %674 = vector.load %arg21[%c1_289, %c0_290, %c0_291, %c0_292] : memref<2x4x1x8xf32, #tpu.memory_space<vmem>>, vector<1x4x1x8xf32>
    %675 = vector.shape_cast %674 : vector<1x4x1x8xf32> to vector<4x1x8xf32>
    %c1_293 = arith.constant 1 : index
    %c0_294 = arith.constant 0 : index
    %c0_295 = arith.constant 0 : index
    %c0_296 = arith.constant 0 : index
    %676 = vector.load %arg22[%c1_293, %c0_294, %c0_295, %c0_296] : memref<2x4x32x8xf32, #tpu.memory_space<vmem>>, vector<1x4x32x8xf32>
    %677 = vector.shape_cast %676 : vector<1x4x32x8xf32> to vector<4x32x8xf32>
    %c1_297 = arith.constant 1 : index
    %c0_298 = arith.constant 0 : index
    %c0_299 = arith.constant 0 : index
    %c0_300 = arith.constant 0 : index
    %678 = vector.load %arg23[%c1_297, %c0_298, %c0_299, %c0_300] : memref<2x4x1x8xf32, #tpu.memory_space<vmem>>, vector<1x4x1x8xf32>
    %679 = vector.shape_cast %678 : vector<1x4x1x8xf32> to vector<4x1x8xf32>
    %c1_301 = arith.constant 1 : index
    %c0_302 = arith.constant 0 : index
    %c0_303 = arith.constant 0 : index
    %c0_304 = arith.constant 0 : index
    %680 = vector.load %arg24[%c1_301, %c0_302, %c0_303, %c0_304] : memref<2x4x8x32xf32, #tpu.memory_space<vmem>>, vector<1x4x8x32xf32>
    %681 = vector.shape_cast %680 : vector<1x4x8x32xf32> to vector<4x8x32xf32>
    %c1_305 = arith.constant 1 : index
    %c0_306 = arith.constant 0 : index
    %c0_307 = arith.constant 0 : index
    %682 = vector.load %arg25[%c1_305, %c0_306, %c0_307] : memref<2x1x32xf32, #tpu.memory_space<vmem>>, vector<1x1x32xf32>
    %683 = vector.shape_cast %682 : vector<1x1x32xf32> to vector<1x32xf32>
    %684 = vector.extract_strided_slice %669 {offsets = [0, 0, 0], sizes = [1, 32, 8], strides = [1, 1, 1]} : vector<4x32x8xf32> to vector<1x32x8xf32>
    %685 = vector.shape_cast %684 : vector<1x32x8xf32> to vector<32x8xf32>
    %cst_308 = arith.constant dense<0.000000e+00> : vector<10x8xf32>
    %686 = tpu.matmul %667, %685, %cst_308 {dimension_numbers = #tpu.dot_dimension_numbers<[1], [0], [0], [1], [0, 0, 1, 1], [], []>} : vector<10x32xf32>, vector<32x8xf32>, vector<10x8xf32> -> vector<10x8xf32>
    %687 = vector.extract_strided_slice %671 {offsets = [0, 0, 0], sizes = [1, 1, 8], strides = [1, 1, 1]} : vector<4x1x8xf32> to vector<1x1x8xf32>
    %688 = vector.shape_cast %687 : vector<1x1x8xf32> to vector<1x8xf32>
    %689 = vector.broadcast %688 : vector<1x8xf32> to vector<10x8xf32>
    %690 = arith.addf %686, %689 : vector<10x8xf32>
    %691 = vector.extract_strided_slice %673 {offsets = [0, 0, 0], sizes = [1, 32, 8], strides = [1, 1, 1]} : vector<4x32x8xf32> to vector<1x32x8xf32>
    %692 = vector.shape_cast %691 : vector<1x32x8xf32> to vector<32x8xf32>
    %cst_309 = arith.constant dense<0.000000e+00> : vector<5x8xf32>
    %693 = tpu.matmul %3, %692, %cst_309 {dimension_numbers = #tpu.dot_dimension_numbers<[1], [0], [0], [1], [0, 0, 1, 1], [], []>} : vector<5x32xf32>, vector<32x8xf32>, vector<5x8xf32> -> vector<5x8xf32>
    %694 = vector.extract_strided_slice %675 {offsets = [0, 0, 0], sizes = [1, 1, 8], strides = [1, 1, 1]} : vector<4x1x8xf32> to vector<1x1x8xf32>
    %695 = vector.shape_cast %694 : vector<1x1x8xf32> to vector<1x8xf32>
    %696 = vector.broadcast %695 : vector<1x8xf32> to vector<5x8xf32>
    %697 = arith.addf %693, %696 : vector<5x8xf32>
    %698 = vector.extract_strided_slice %677 {offsets = [0, 0, 0], sizes = [1, 32, 8], strides = [1, 1, 1]} : vector<4x32x8xf32> to vector<1x32x8xf32>
    %699 = vector.shape_cast %698 : vector<1x32x8xf32> to vector<32x8xf32>
    %cst_310 = arith.constant dense<0.000000e+00> : vector<5x8xf32>
    %700 = tpu.matmul %3, %699, %cst_310 {dimension_numbers = #tpu.dot_dimension_numbers<[1], [0], [0], [1], [0, 0, 1, 1], [], []>} : vector<5x32xf32>, vector<32x8xf32>, vector<5x8xf32> -> vector<5x8xf32>
    %701 = vector.extract_strided_slice %679 {offsets = [0, 0, 0], sizes = [1, 1, 8], strides = [1, 1, 1]} : vector<4x1x8xf32> to vector<1x1x8xf32>
    %702 = vector.shape_cast %701 : vector<1x1x8xf32> to vector<1x8xf32>
    %703 = vector.broadcast %702 : vector<1x8xf32> to vector<5x8xf32>
    %704 = arith.addf %700, %703 : vector<5x8xf32>
    "tpu.trace_start"() <{level = 10 : i32, message = "qd,kd->qk"}> : () -> ()
    %cst_311 = arith.constant dense<0.000000e+00> : vector<10x5xf32>
    %705 = tpu.matmul %690, %697, %cst_311 {dimension_numbers = #tpu.dot_dimension_numbers<[1], [1], [0], [0], [0, 0, 1, 0], [], []>} : vector<10x8xf32>, vector<5x8xf32>, vector<10x5xf32> -> vector<10x5xf32>
    "tpu.trace_stop"() : () -> ()
    %cst_312 = arith.constant 0.353553385 : f32
    %706 = vector.broadcast %cst_312 : f32 to vector<10x5xf32>
    %707 = arith.mulf %705, %706 : vector<10x5xf32>
    %708 = vector.broadcast %7 : vector<1x5xf32> to vector<10x5xf32>
    %709 = arith.addf %707, %708 : vector<10x5xf32>
    %cst_313 = arith.constant dense<0xFF800000> : vector<10xf32>
    %710 = vector.multi_reduction <maximumf>, %709, %cst_313 [1] : vector<10x5xf32> to vector<10xf32>
    %711 = vector.shape_cast %710 : vector<10xf32> to vector<10x1xf32>
    %712 = vector.broadcast %711 : vector<10x1xf32> to vector<10x5xf32>
    %713 = arith.subf %709, %712 : vector<10x5xf32>
    %714 = math.exp %713 : vector<10x5xf32>
    %cst_314 = arith.constant dense<0.000000e+00> : vector<10xf32>
    %715 = vector.multi_reduction <add>, %714, %cst_314 [1] : vector<10x5xf32> to vector<10xf32>
    %716 = vector.shape_cast %715 : vector<10xf32> to vector<10x1xf32>
    %717 = tpu.reciprocal %716 {approx = true} : vector<10x1xf32> -> vector<10x1xf32>
    %718 = vector.broadcast %717 : vector<10x1xf32> to vector<10x5xf32>
    %719 = arith.mulf %714, %718 : vector<10x5xf32>
    %cst_315 = arith.constant dense<0.000000e+00> : vector<10x8xf32>
    %720 = tpu.matmul %719, %704, %cst_315 {dimension_numbers = #tpu.dot_dimension_numbers<[1], [0], [0], [1], [0, 0, 1, 1], [], []>} : vector<10x5xf32>, vector<5x8xf32>, vector<10x8xf32> -> vector<10x8xf32>
    %721 = vector.extract_strided_slice %681 {offsets = [0, 0, 0], sizes = [1, 8, 32], strides = [1, 1, 1]} : vector<4x8x32xf32> to vector<1x8x32xf32>
    %722 = vector.shape_cast %721 : vector<1x8x32xf32> to vector<8x32xf32>
    %cst_316 = arith.constant dense<0.000000e+00> : vector<10x32xf32>
    %723 = tpu.matmul %720, %722, %cst_316 {dimension_numbers = #tpu.dot_dimension_numbers<[1], [0], [0], [1], [0, 0, 1, 1], [], []>} : vector<10x8xf32>, vector<8x32xf32>, vector<10x32xf32> -> vector<10x32xf32>
    %724 = vector.broadcast %683 : vector<1x32xf32> to vector<10x32xf32>
    %725 = arith.addf %724, %723 : vector<10x32xf32>
    %726 = vector.extract_strided_slice %669 {offsets = [1, 0, 0], sizes = [1, 32, 8], strides = [1, 1, 1]} : vector<4x32x8xf32> to vector<1x32x8xf32>
    %727 = vector.shape_cast %726 : vector<1x32x8xf32> to vector<32x8xf32>
    %cst_317 = arith.constant dense<0.000000e+00> : vector<10x8xf32>
    %728 = tpu.matmul %667, %727, %cst_317 {dimension_numbers = #tpu.dot_dimension_numbers<[1], [0], [0], [1], [0, 0, 1, 1], [], []>} : vector<10x32xf32>, vector<32x8xf32>, vector<10x8xf32> -> vector<10x8xf32>
    %729 = vector.extract_strided_slice %671 {offsets = [1, 0, 0], sizes = [1, 1, 8], strides = [1, 1, 1]} : vector<4x1x8xf32> to vector<1x1x8xf32>
    %730 = vector.shape_cast %729 : vector<1x1x8xf32> to vector<1x8xf32>
    %731 = vector.broadcast %730 : vector<1x8xf32> to vector<10x8xf32>
    %732 = arith.addf %728, %731 : vector<10x8xf32>
    %733 = vector.extract_strided_slice %673 {offsets = [1, 0, 0], sizes = [1, 32, 8], strides = [1, 1, 1]} : vector<4x32x8xf32> to vector<1x32x8xf32>
    %734 = vector.shape_cast %733 : vector<1x32x8xf32> to vector<32x8xf32>
    %cst_318 = arith.constant dense<0.000000e+00> : vector<5x8xf32>
    %735 = tpu.matmul %3, %734, %cst_318 {dimension_numbers = #tpu.dot_dimension_numbers<[1], [0], [0], [1], [0, 0, 1, 1], [], []>} : vector<5x32xf32>, vector<32x8xf32>, vector<5x8xf32> -> vector<5x8xf32>
    %736 = vector.extract_strided_slice %675 {offsets = [1, 0, 0], sizes = [1, 1, 8], strides = [1, 1, 1]} : vector<4x1x8xf32> to vector<1x1x8xf32>
    %737 = vector.shape_cast %736 : vector<1x1x8xf32> to vector<1x8xf32>
    %738 = vector.broadcast %737 : vector<1x8xf32> to vector<5x8xf32>
    %739 = arith.addf %735, %738 : vector<5x8xf32>
    %740 = vector.extract_strided_slice %677 {offsets = [1, 0, 0], sizes = [1, 32, 8], strides = [1, 1, 1]} : vector<4x32x8xf32> to vector<1x32x8xf32>
    %741 = vector.shape_cast %740 : vector<1x32x8xf32> to vector<32x8xf32>
    %cst_319 = arith.constant dense<0.000000e+00> : vector<5x8xf32>
    %742 = tpu.matmul %3, %741, %cst_319 {dimension_numbers = #tpu.dot_dimension_numbers<[1], [0], [0], [1], [0, 0, 1, 1], [], []>} : vector<5x32xf32>, vector<32x8xf32>, vector<5x8xf32> -> vector<5x8xf32>
    %743 = vector.extract_strided_slice %679 {offsets = [1, 0, 0], sizes = [1, 1, 8], strides = [1, 1, 1]} : vector<4x1x8xf32> to vector<1x1x8xf32>
    %744 = vector.shape_cast %743 : vector<1x1x8xf32> to vector<1x8xf32>
    %745 = vector.broadcast %744 : vector<1x8xf32> to vector<5x8xf32>
    %746 = arith.addf %742, %745 : vector<5x8xf32>
    "tpu.trace_start"() <{level = 10 : i32, message = "qd,kd->qk"}> : () -> ()
    %cst_320 = arith.constant dense<0.000000e+00> : vector<10x5xf32>
    %747 = tpu.matmul %732, %739, %cst_320 {dimension_numbers = #tpu.dot_dimension_numbers<[1], [1], [0], [0], [0, 0, 1, 0], [], []>} : vector<10x8xf32>, vector<5x8xf32>, vector<10x5xf32> -> vector<10x5xf32>
    "tpu.trace_stop"() : () -> ()
    %cst_321 = arith.constant 0.353553385 : f32
    %748 = vector.broadcast %cst_321 : f32 to vector<10x5xf32>
    %749 = arith.mulf %747, %748 : vector<10x5xf32>
    %750 = vector.broadcast %7 : vector<1x5xf32> to vector<10x5xf32>
    %751 = arith.addf %749, %750 : vector<10x5xf32>
    %cst_322 = arith.constant dense<0xFF800000> : vector<10xf32>
    %752 = vector.multi_reduction <maximumf>, %751, %cst_322 [1] : vector<10x5xf32> to vector<10xf32>
    %753 = vector.shape_cast %752 : vector<10xf32> to vector<10x1xf32>
    %754 = vector.broadcast %753 : vector<10x1xf32> to vector<10x5xf32>
    %755 = arith.subf %751, %754 : vector<10x5xf32>
    %756 = math.exp %755 : vector<10x5xf32>
    %cst_323 = arith.constant dense<0.000000e+00> : vector<10xf32>
    %757 = vector.multi_reduction <add>, %756, %cst_323 [1] : vector<10x5xf32> to vector<10xf32>
    %758 = vector.shape_cast %757 : vector<10xf32> to vector<10x1xf32>
    %759 = tpu.reciprocal %758 {approx = true} : vector<10x1xf32> -> vector<10x1xf32>
    %760 = vector.broadcast %759 : vector<10x1xf32> to vector<10x5xf32>
    %761 = arith.mulf %756, %760 : vector<10x5xf32>
    %cst_324 = arith.constant dense<0.000000e+00> : vector<10x8xf32>
    %762 = tpu.matmul %761, %746, %cst_324 {dimension_numbers = #tpu.dot_dimension_numbers<[1], [0], [0], [1], [0, 0, 1, 1], [], []>} : vector<10x5xf32>, vector<5x8xf32>, vector<10x8xf32> -> vector<10x8xf32>
    %763 = vector.extract_strided_slice %681 {offsets = [1, 0, 0], sizes = [1, 8, 32], strides = [1, 1, 1]} : vector<4x8x32xf32> to vector<1x8x32xf32>
    %764 = vector.shape_cast %763 : vector<1x8x32xf32> to vector<8x32xf32>
    %cst_325 = arith.constant dense<0.000000e+00> : vector<10x32xf32>
    %765 = tpu.matmul %762, %764, %cst_325 {dimension_numbers = #tpu.dot_dimension_numbers<[1], [0], [0], [1], [0, 0, 1, 1], [], []>} : vector<10x8xf32>, vector<8x32xf32>, vector<10x32xf32> -> vector<10x32xf32>
    %766 = arith.addf %725, %765 : vector<10x32xf32>
    %767 = vector.extract_strided_slice %669 {offsets = [2, 0, 0], sizes = [1, 32, 8], strides = [1, 1, 1]} : vector<4x32x8xf32> to vector<1x32x8xf32>
    %768 = vector.shape_cast %767 : vector<1x32x8xf32> to vector<32x8xf32>
    %cst_326 = arith.constant dense<0.000000e+00> : vector<10x8xf32>
    %769 = tpu.matmul %667, %768, %cst_326 {dimension_numbers = #tpu.dot_dimension_numbers<[1], [0], [0], [1], [0, 0, 1, 1], [], []>} : vector<10x32xf32>, vector<32x8xf32>, vector<10x8xf32> -> vector<10x8xf32>
    %770 = vector.extract_strided_slice %671 {offsets = [2, 0, 0], sizes = [1, 1, 8], strides = [1, 1, 1]} : vector<4x1x8xf32> to vector<1x1x8xf32>
    %771 = vector.shape_cast %770 : vector<1x1x8xf32> to vector<1x8xf32>
    %772 = vector.broadcast %771 : vector<1x8xf32> to vector<10x8xf32>
    %773 = arith.addf %769, %772 : vector<10x8xf32>
    %774 = vector.extract_strided_slice %673 {offsets = [2, 0, 0], sizes = [1, 32, 8], strides = [1, 1, 1]} : vector<4x32x8xf32> to vector<1x32x8xf32>
    %775 = vector.shape_cast %774 : vector<1x32x8xf32> to vector<32x8xf32>
    %cst_327 = arith.constant dense<0.000000e+00> : vector<5x8xf32>
    %776 = tpu.matmul %3, %775, %cst_327 {dimension_numbers = #tpu.dot_dimension_numbers<[1], [0], [0], [1], [0, 0, 1, 1], [], []>} : vector<5x32xf32>, vector<32x8xf32>, vector<5x8xf32> -> vector<5x8xf32>
    %777 = vector.extract_strided_slice %675 {offsets = [2, 0, 0], sizes = [1, 1, 8], strides = [1, 1, 1]} : vector<4x1x8xf32> to vector<1x1x8xf32>
    %778 = vector.shape_cast %777 : vector<1x1x8xf32> to vector<1x8xf32>
    %779 = vector.broadcast %778 : vector<1x8xf32> to vector<5x8xf32>
    %780 = arith.addf %776, %779 : vector<5x8xf32>
    %781 = vector.extract_strided_slice %677 {offsets = [2, 0, 0], sizes = [1, 32, 8], strides = [1, 1, 1]} : vector<4x32x8xf32> to vector<1x32x8xf32>
    %782 = vector.shape_cast %781 : vector<1x32x8xf32> to vector<32x8xf32>
    %cst_328 = arith.constant dense<0.000000e+00> : vector<5x8xf32>
    %783 = tpu.matmul %3, %782, %cst_328 {dimension_numbers = #tpu.dot_dimension_numbers<[1], [0], [0], [1], [0, 0, 1, 1], [], []>} : vector<5x32xf32>, vector<32x8xf32>, vector<5x8xf32> -> vector<5x8xf32>
    %784 = vector.extract_strided_slice %679 {offsets = [2, 0, 0], sizes = [1, 1, 8], strides = [1, 1, 1]} : vector<4x1x8xf32> to vector<1x1x8xf32>
    %785 = vector.shape_cast %784 : vector<1x1x8xf32> to vector<1x8xf32>
    %786 = vector.broadcast %785 : vector<1x8xf32> to vector<5x8xf32>
    %787 = arith.addf %783, %786 : vector<5x8xf32>
    "tpu.trace_start"() <{level = 10 : i32, message = "qd,kd->qk"}> : () -> ()
    %cst_329 = arith.constant dense<0.000000e+00> : vector<10x5xf32>
    %788 = tpu.matmul %773, %780, %cst_329 {dimension_numbers = #tpu.dot_dimension_numbers<[1], [1], [0], [0], [0, 0, 1, 0], [], []>} : vector<10x8xf32>, vector<5x8xf32>, vector<10x5xf32> -> vector<10x5xf32>
    "tpu.trace_stop"() : () -> ()
    %cst_330 = arith.constant 0.353553385 : f32
    %789 = vector.broadcast %cst_330 : f32 to vector<10x5xf32>
    %790 = arith.mulf %788, %789 : vector<10x5xf32>
    %791 = vector.broadcast %7 : vector<1x5xf32> to vector<10x5xf32>
    %792 = arith.addf %790, %791 : vector<10x5xf32>
    %cst_331 = arith.constant dense<0xFF800000> : vector<10xf32>
    %793 = vector.multi_reduction <maximumf>, %792, %cst_331 [1] : vector<10x5xf32> to vector<10xf32>
    %794 = vector.shape_cast %793 : vector<10xf32> to vector<10x1xf32>
    %795 = vector.broadcast %794 : vector<10x1xf32> to vector<10x5xf32>
    %796 = arith.subf %792, %795 : vector<10x5xf32>
    %797 = math.exp %796 : vector<10x5xf32>
    %cst_332 = arith.constant dense<0.000000e+00> : vector<10xf32>
    %798 = vector.multi_reduction <add>, %797, %cst_332 [1] : vector<10x5xf32> to vector<10xf32>
    %799 = vector.shape_cast %798 : vector<10xf32> to vector<10x1xf32>
    %800 = tpu.reciprocal %799 {approx = true} : vector<10x1xf32> -> vector<10x1xf32>
    %801 = vector.broadcast %800 : vector<10x1xf32> to vector<10x5xf32>
    %802 = arith.mulf %797, %801 : vector<10x5xf32>
    %cst_333 = arith.constant dense<0.000000e+00> : vector<10x8xf32>
    %803 = tpu.matmul %802, %787, %cst_333 {dimension_numbers = #tpu.dot_dimension_numbers<[1], [0], [0], [1], [0, 0, 1, 1], [], []>} : vector<10x5xf32>, vector<5x8xf32>, vector<10x8xf32> -> vector<10x8xf32>
    %804 = vector.extract_strided_slice %681 {offsets = [2, 0, 0], sizes = [1, 8, 32], strides = [1, 1, 1]} : vector<4x8x32xf32> to vector<1x8x32xf32>
    %805 = vector.shape_cast %804 : vector<1x8x32xf32> to vector<8x32xf32>
    %cst_334 = arith.constant dense<0.000000e+00> : vector<10x32xf32>
    %806 = tpu.matmul %803, %805, %cst_334 {dimension_numbers = #tpu.dot_dimension_numbers<[1], [0], [0], [1], [0, 0, 1, 1], [], []>} : vector<10x8xf32>, vector<8x32xf32>, vector<10x32xf32> -> vector<10x32xf32>
    %807 = arith.addf %766, %806 : vector<10x32xf32>
    %808 = vector.extract_strided_slice %669 {offsets = [3, 0, 0], sizes = [1, 32, 8], strides = [1, 1, 1]} : vector<4x32x8xf32> to vector<1x32x8xf32>
    %809 = vector.shape_cast %808 : vector<1x32x8xf32> to vector<32x8xf32>
    %cst_335 = arith.constant dense<0.000000e+00> : vector<10x8xf32>
    %810 = tpu.matmul %667, %809, %cst_335 {dimension_numbers = #tpu.dot_dimension_numbers<[1], [0], [0], [1], [0, 0, 1, 1], [], []>} : vector<10x32xf32>, vector<32x8xf32>, vector<10x8xf32> -> vector<10x8xf32>
    %811 = vector.extract_strided_slice %671 {offsets = [3, 0, 0], sizes = [1, 1, 8], strides = [1, 1, 1]} : vector<4x1x8xf32> to vector<1x1x8xf32>
    %812 = vector.shape_cast %811 : vector<1x1x8xf32> to vector<1x8xf32>
    %813 = vector.broadcast %812 : vector<1x8xf32> to vector<10x8xf32>
    %814 = arith.addf %810, %813 : vector<10x8xf32>
    %815 = vector.extract_strided_slice %673 {offsets = [3, 0, 0], sizes = [1, 32, 8], strides = [1, 1, 1]} : vector<4x32x8xf32> to vector<1x32x8xf32>
    %816 = vector.shape_cast %815 : vector<1x32x8xf32> to vector<32x8xf32>
    %cst_336 = arith.constant dense<0.000000e+00> : vector<5x8xf32>
    %817 = tpu.matmul %3, %816, %cst_336 {dimension_numbers = #tpu.dot_dimension_numbers<[1], [0], [0], [1], [0, 0, 1, 1], [], []>} : vector<5x32xf32>, vector<32x8xf32>, vector<5x8xf32> -> vector<5x8xf32>
    %818 = vector.extract_strided_slice %675 {offsets = [3, 0, 0], sizes = [1, 1, 8], strides = [1, 1, 1]} : vector<4x1x8xf32> to vector<1x1x8xf32>
    %819 = vector.shape_cast %818 : vector<1x1x8xf32> to vector<1x8xf32>
    %820 = vector.broadcast %819 : vector<1x8xf32> to vector<5x8xf32>
    %821 = arith.addf %817, %820 : vector<5x8xf32>
    %822 = vector.extract_strided_slice %677 {offsets = [3, 0, 0], sizes = [1, 32, 8], strides = [1, 1, 1]} : vector<4x32x8xf32> to vector<1x32x8xf32>
    %823 = vector.shape_cast %822 : vector<1x32x8xf32> to vector<32x8xf32>
    %cst_337 = arith.constant dense<0.000000e+00> : vector<5x8xf32>
    %824 = tpu.matmul %3, %823, %cst_337 {dimension_numbers = #tpu.dot_dimension_numbers<[1], [0], [0], [1], [0, 0, 1, 1], [], []>} : vector<5x32xf32>, vector<32x8xf32>, vector<5x8xf32> -> vector<5x8xf32>
    %825 = vector.extract_strided_slice %679 {offsets = [3, 0, 0], sizes = [1, 1, 8], strides = [1, 1, 1]} : vector<4x1x8xf32> to vector<1x1x8xf32>
    %826 = vector.shape_cast %825 : vector<1x1x8xf32> to vector<1x8xf32>
    %827 = vector.broadcast %826 : vector<1x8xf32> to vector<5x8xf32>
    %828 = arith.addf %824, %827 : vector<5x8xf32>
    "tpu.trace_start"() <{level = 10 : i32, message = "qd,kd->qk"}> : () -> ()
    %cst_338 = arith.constant dense<0.000000e+00> : vector<10x5xf32>
    %829 = tpu.matmul %814, %821, %cst_338 {dimension_numbers = #tpu.dot_dimension_numbers<[1], [1], [0], [0], [0, 0, 1, 0], [], []>} : vector<10x8xf32>, vector<5x8xf32>, vector<10x5xf32> -> vector<10x5xf32>
    "tpu.trace_stop"() : () -> ()
    %cst_339 = arith.constant 0.353553385 : f32
    %830 = vector.broadcast %cst_339 : f32 to vector<10x5xf32>
    %831 = arith.mulf %829, %830 : vector<10x5xf32>
    %832 = vector.broadcast %7 : vector<1x5xf32> to vector<10x5xf32>
    %833 = arith.addf %831, %832 : vector<10x5xf32>
    %cst_340 = arith.constant dense<0xFF800000> : vector<10xf32>
    %834 = vector.multi_reduction <maximumf>, %833, %cst_340 [1] : vector<10x5xf32> to vector<10xf32>
    %835 = vector.shape_cast %834 : vector<10xf32> to vector<10x1xf32>
    %836 = vector.broadcast %835 : vector<10x1xf32> to vector<10x5xf32>
    %837 = arith.subf %833, %836 : vector<10x5xf32>
    %838 = math.exp %837 : vector<10x5xf32>
    %cst_341 = arith.constant dense<0.000000e+00> : vector<10xf32>
    %839 = vector.multi_reduction <add>, %838, %cst_341 [1] : vector<10x5xf32> to vector<10xf32>
    %840 = vector.shape_cast %839 : vector<10xf32> to vector<10x1xf32>
    %841 = tpu.reciprocal %840 {approx = true} : vector<10x1xf32> -> vector<10x1xf32>
    %842 = vector.broadcast %841 : vector<10x1xf32> to vector<10x5xf32>
    %843 = arith.mulf %838, %842 : vector<10x5xf32>
    %cst_342 = arith.constant dense<0.000000e+00> : vector<10x8xf32>
    %844 = tpu.matmul %843, %828, %cst_342 {dimension_numbers = #tpu.dot_dimension_numbers<[1], [0], [0], [1], [0, 0, 1, 1], [], []>} : vector<10x5xf32>, vector<5x8xf32>, vector<10x8xf32> -> vector<10x8xf32>
    %845 = vector.extract_strided_slice %681 {offsets = [3, 0, 0], sizes = [1, 8, 32], strides = [1, 1, 1]} : vector<4x8x32xf32> to vector<1x8x32xf32>
    %846 = vector.shape_cast %845 : vector<1x8x32xf32> to vector<8x32xf32>
    %cst_343 = arith.constant dense<0.000000e+00> : vector<10x32xf32>
    %847 = tpu.matmul %844, %846, %cst_343 {dimension_numbers = #tpu.dot_dimension_numbers<[1], [0], [0], [1], [0, 0, 1, 1], [], []>} : vector<10x8xf32>, vector<8x32xf32>, vector<10x32xf32> -> vector<10x32xf32>
    %848 = arith.addf %807, %847 : vector<10x32xf32>
    %849 = arith.addf %667, %848 : vector<10x32xf32>
    %c1_344 = arith.constant 1 : index
    %c0_345 = arith.constant 0 : index
    %c0_346 = arith.constant 0 : index
    %850 = vector.load %arg26[%c1_344, %c0_345, %c0_346] : memref<2x1x32xf32, #tpu.memory_space<vmem>>, vector<1x1x32xf32>
    %851 = vector.shape_cast %850 : vector<1x1x32xf32> to vector<1x32xf32>
    %c1_347 = arith.constant 1 : index
    %c0_348 = arith.constant 0 : index
    %c0_349 = arith.constant 0 : index
    %852 = vector.load %arg27[%c1_347, %c0_348, %c0_349] : memref<2x1x32xf32, #tpu.memory_space<vmem>>, vector<1x1x32xf32>
    %853 = vector.shape_cast %852 : vector<1x1x32xf32> to vector<1x32xf32>
    %cst_350 = arith.constant dense<0.000000e+00> : vector<10xf32>
    %854 = vector.multi_reduction <add>, %849, %cst_350 [1] : vector<10x32xf32> to vector<10xf32>
    %855 = vector.shape_cast %854 : vector<10xf32> to vector<10x1xf32>
    %cst_351 = arith.constant 3.200000e+01 : f32
    %856 = vector.broadcast %cst_351 : f32 to vector<10x1xf32>
    %857 = arith.divf %855, %856 : vector<10x1xf32>
    %858 = vector.broadcast %857 : vector<10x1xf32> to vector<10x32xf32>
    %859 = arith.subf %849, %858 : vector<10x32xf32>
    %860 = arith.mulf %859, %859 : vector<10x32xf32>
    %cst_352 = arith.constant dense<0.000000e+00> : vector<10xf32>
    %861 = vector.multi_reduction <add>, %860, %cst_352 [1] : vector<10x32xf32> to vector<10xf32>
    %862 = vector.shape_cast %861 : vector<10xf32> to vector<10x1xf32>
    %cst_353 = arith.constant 3.200000e+01 : f32
    %863 = vector.broadcast %cst_353 : f32 to vector<10x1xf32>
    %864 = arith.divf %862, %863 : vector<10x1xf32>
    %cst_354 = arith.constant 9.99999974E-6 : f32
    %865 = vector.broadcast %cst_354 : f32 to vector<10x1xf32>
    %866 = arith.addf %864, %865 : vector<10x1xf32>
    %867 = math.rsqrt %866 : vector<10x1xf32>
    %868 = vector.broadcast %867 : vector<10x1xf32> to vector<10x32xf32>
    %869 = arith.mulf %859, %868 : vector<10x32xf32>
    %870 = vector.broadcast %851 : vector<1x32xf32> to vector<10x32xf32>
    %871 = arith.mulf %869, %870 : vector<10x32xf32>
    %872 = vector.broadcast %853 : vector<1x32xf32> to vector<10x32xf32>
    %873 = arith.addf %871, %872 : vector<10x32xf32>
    %c1_355 = arith.constant 1 : index
    %c0_356 = arith.constant 0 : index
    %c0_357 = arith.constant 0 : index
    %874 = vector.load %arg28[%c1_355, %c0_356, %c0_357] : memref<2x32x512xf32, #tpu.memory_space<vmem>>, vector<1x32x512xf32>
    %875 = vector.shape_cast %874 : vector<1x32x512xf32> to vector<32x512xf32>
    %c1_358 = arith.constant 1 : index
    %c0_359 = arith.constant 0 : index
    %c0_360 = arith.constant 0 : index
    %876 = vector.load %arg29[%c1_358, %c0_359, %c0_360] : memref<2x1x512xf32, #tpu.memory_space<vmem>>, vector<1x1x512xf32>
    %877 = vector.shape_cast %876 : vector<1x1x512xf32> to vector<1x512xf32>
    %c1_361 = arith.constant 1 : index
    %c0_362 = arith.constant 0 : index
    %c0_363 = arith.constant 0 : index
    %878 = vector.load %arg30[%c1_361, %c0_362, %c0_363] : memref<2x512x32xf32, #tpu.memory_space<vmem>>, vector<1x512x32xf32>
    %879 = vector.shape_cast %878 : vector<1x512x32xf32> to vector<512x32xf32>
    %c1_364 = arith.constant 1 : index
    %c0_365 = arith.constant 0 : index
    %c0_366 = arith.constant 0 : index
    %880 = vector.load %arg31[%c1_364, %c0_365, %c0_366] : memref<2x1x32xf32, #tpu.memory_space<vmem>>, vector<1x1x32xf32>
    %881 = vector.shape_cast %880 : vector<1x1x32xf32> to vector<1x32xf32>
    %cst_367 = arith.constant dense<0.000000e+00> : vector<10x512xf32>
    %882 = tpu.matmul %873, %875, %cst_367 {dimension_numbers = #tpu.dot_dimension_numbers<[1], [0], [0], [1], [0, 0, 1, 1], [], []>} : vector<10x32xf32>, vector<32x512xf32>, vector<10x512xf32> -> vector<10x512xf32>
    %883 = vector.broadcast %877 : vector<1x512xf32> to vector<10x512xf32>
    %884 = arith.addf %882, %883 : vector<10x512xf32>
    %cst_368 = arith.constant 0.000000e+00 : f32
    %885 = vector.broadcast %cst_368 : f32 to vector<10x512xf32>
    %886 = arith.maximumf %884, %885 : vector<10x512xf32>
    %cst_369 = arith.constant dense<0.000000e+00> : vector<10x32xf32>
    %887 = tpu.matmul %886, %879, %cst_369 {dimension_numbers = #tpu.dot_dimension_numbers<[1], [0], [0], [1], [0, 0, 1, 1], [], []>} : vector<10x512xf32>, vector<512x32xf32>, vector<10x32xf32> -> vector<10x32xf32>
    %888 = vector.broadcast %881 : vector<1x32xf32> to vector<10x32xf32>
    %889 = arith.addf %887, %888 : vector<10x32xf32>
    %890 = arith.addf %873, %889 : vector<10x32xf32>
    %c1_370 = arith.constant 1 : index
    %c0_371 = arith.constant 0 : index
    %c0_372 = arith.constant 0 : index
    %891 = vector.load %arg32[%c1_370, %c0_371, %c0_372] : memref<2x1x32xf32, #tpu.memory_space<vmem>>, vector<1x1x32xf32>
    %892 = vector.shape_cast %891 : vector<1x1x32xf32> to vector<1x32xf32>
    %c1_373 = arith.constant 1 : index
    %c0_374 = arith.constant 0 : index
    %c0_375 = arith.constant 0 : index
    %893 = vector.load %arg33[%c1_373, %c0_374, %c0_375] : memref<2x1x32xf32, #tpu.memory_space<vmem>>, vector<1x1x32xf32>
    %894 = vector.shape_cast %893 : vector<1x1x32xf32> to vector<1x32xf32>
    %cst_376 = arith.constant dense<0.000000e+00> : vector<10xf32>
    %895 = vector.multi_reduction <add>, %890, %cst_376 [1] : vector<10x32xf32> to vector<10xf32>
    %896 = vector.shape_cast %895 : vector<10xf32> to vector<10x1xf32>
    %cst_377 = arith.constant 3.200000e+01 : f32
    %897 = vector.broadcast %cst_377 : f32 to vector<10x1xf32>
    %898 = arith.divf %896, %897 : vector<10x1xf32>
    %899 = vector.broadcast %898 : vector<10x1xf32> to vector<10x32xf32>
    %900 = arith.subf %890, %899 : vector<10x32xf32>
    %901 = arith.mulf %900, %900 : vector<10x32xf32>
    %cst_378 = arith.constant dense<0.000000e+00> : vector<10xf32>
    %902 = vector.multi_reduction <add>, %901, %cst_378 [1] : vector<10x32xf32> to vector<10xf32>
    %903 = vector.shape_cast %902 : vector<10xf32> to vector<10x1xf32>
    %cst_379 = arith.constant 3.200000e+01 : f32
    %904 = vector.broadcast %cst_379 : f32 to vector<10x1xf32>
    %905 = arith.divf %903, %904 : vector<10x1xf32>
    %cst_380 = arith.constant 9.99999974E-6 : f32
    %906 = vector.broadcast %cst_380 : f32 to vector<10x1xf32>
    %907 = arith.addf %905, %906 : vector<10x1xf32>
    %908 = math.rsqrt %907 : vector<10x1xf32>
    %909 = vector.broadcast %908 : vector<10x1xf32> to vector<10x32xf32>
    %910 = arith.mulf %900, %909 : vector<10x32xf32>
    %911 = vector.broadcast %892 : vector<1x32xf32> to vector<10x32xf32>
    %912 = arith.mulf %910, %911 : vector<10x32xf32>
    %913 = vector.broadcast %894 : vector<1x32xf32> to vector<10x32xf32>
    %914 = arith.addf %912, %913 : vector<10x32xf32>
    %c0_381 = arith.constant 0 : index
    %c0_382 = arith.constant 0 : index
    %915 = vector.load %arg34[%c0_381, %c0_382] : memref<32x48xf32, #tpu.memory_space<vmem>>, vector<32x48xf32>
    %cst_383 = arith.constant dense<0.000000e+00> : vector<10x48xf32>
    %916 = tpu.matmul %914, %915, %cst_383 {dimension_numbers = #tpu.dot_dimension_numbers<[1], [0], [0], [1], [0, 0, 1, 1], [], []>} : vector<10x32xf32>, vector<32x48xf32>, vector<10x48xf32> -> vector<10x48xf32>
    %c0_384 = arith.constant 0 : index
    %c0_385 = arith.constant 0 : index
    %917 = vector.load %arg35[%c0_384, %c0_385] : memref<1x48xf32, #tpu.memory_space<vmem>>, vector<1x48xf32>
    %918 = vector.broadcast %917 : vector<1x48xf32> to vector<10x48xf32>
    %919 = arith.addf %916, %918 : vector<10x48xf32>
    %c0_386 = arith.constant 0 : index
    %c0_387 = arith.constant 0 : index
    %c0_388 = arith.constant 0 : index
    %920 = vector.load %arg36[%c0_386, %c0_387, %c0_388] : memref<1x10x48xf32, #tpu.memory_space<vmem>>, vector<1x10x48xf32>
    %921 = vector.shape_cast %920 : vector<1x10x48xf32> to vector<10x48xf32>
    %922 = vector.shape_cast %919 : vector<10x48xf32> to vector<1x10x48xf32>
    tpu.vector_store %arg36[%c0_386, %c0_387, %c0_388], %922 {strides = array<i32>} : memref<1x10x48xf32, #tpu.memory_space<vmem>>, vector<1x10x48xf32>,
    return
  }
  func.func @transform_0(%arg0: i32) -> (i32, i32, i32) {
    %c0_i32 = arith.constant 0 : i32
    %c0_i32_0 = arith.constant 0 : i32
    %c0_i32_1 = arith.constant 0 : i32
    return %arg0, %c0_i32, %c0_i32_0 : i32, i32, i32
  }
  func.func @transform_1(%arg0: i32) -> (i32, i32, i32) {
    %c0_i32 = arith.constant 0 : i32
    %c0_i32_0 = arith.constant 0 : i32
    %c0_i32_1 = arith.constant 0 : i32
    return %arg0, %c0_i32, %c0_i32_0 : i32, i32, i32
  }
  func.func @transform_2(%arg0: i32) -> (i32, i32, i32) {
    %c0_i32 = arith.constant 0 : i32
    %c0_i32_0 = arith.constant 0 : i32
    %c0_i32_1 = arith.constant 0 : i32
    return %arg0, %c0_i32, %c0_i32_0 : i32, i32, i32
  }
  func.func @transform_3(%arg0: i32) -> (i32, i32, i32) {
    %c0_i32 = arith.constant 0 : i32
    %c0_i32_0 = arith.constant 0 : i32
    %c0_i32_1 = arith.constant 0 : i32
    return %arg0, %c0_i32, %c0_i32_0 : i32, i32, i32
  }
  func.func @transform_4(%arg0: i32) -> (i32, i32) {
    %c0_i32 = arith.constant 0 : i32
    %c0_i32_0 = arith.constant 0 : i32
    %c0_i32_1 = arith.constant 0 : i32
    return %c0_i32, %c0_i32_0 : i32, i32
  }
  func.func @transform_5(%arg0: i32) -> (i32, i32) {
    %c0_i32 = arith.constant 0 : i32
    %c0_i32_0 = arith.constant 0 : i32
    %c0_i32_1 = arith.constant 0 : i32
    return %c0_i32, %c0_i32_0 : i32, i32
  }
  func.func @transform_6(%arg0: i32) -> (i32, i32) {
    %c0_i32 = arith.constant 0 : i32
    %c0_i32_0 = arith.constant 0 : i32
    %c0_i32_1 = arith.constant 0 : i32
    return %c0_i32, %c0_i32_0 : i32, i32
  }
  func.func @transform_7(%arg0: i32) -> (i32, i32, i32, i32) {
    %c0_i32 = arith.constant 0 : i32
    %c0_i32_0 = arith.constant 0 : i32
    %c0_i32_1 = arith.constant 0 : i32
    %c0_i32_2 = arith.constant 0 : i32
    %c0_i32_3 = arith.constant 0 : i32
    return %c0_i32, %c0_i32_0, %c0_i32_1, %c0_i32_2 : i32, i32, i32, i32
  }
  func.func @transform_8(%arg0: i32) -> (i32, i32, i32, i32) {
    %c0_i32 = arith.constant 0 : i32
    %c0_i32_0 = arith.constant 0 : i32
    %c0_i32_1 = arith.constant 0 : i32
    %c0_i32_2 = arith.constant 0 : i32
    %c0_i32_3 = arith.constant 0 : i32
    return %c0_i32, %c0_i32_0, %c0_i32_1, %c0_i32_2 : i32, i32, i32, i32
  }
  func.func @transform_9(%arg0: i32) -> (i32, i32, i32, i32) {
    %c0_i32 = arith.constant 0 : i32
    %c0_i32_0 = arith.constant 0 : i32
    %c0_i32_1 = arith.constant 0 : i32
    %c0_i32_2 = arith.constant 0 : i32
    %c0_i32_3 = arith.constant 0 : i32
    return %c0_i32, %c0_i32_0, %c0_i32_1, %c0_i32_2 : i32, i32, i32, i32
  }
  func.func @transform_10(%arg0: i32) -> (i32, i32, i32, i32) {
    %c0_i32 = arith.constant 0 : i32
    %c0_i32_0 = arith.constant 0 : i32
    %c0_i32_1 = arith.constant 0 : i32
    %c0_i32_2 = arith.constant 0 : i32
    %c0_i32_3 = arith.constant 0 : i32
    return %c0_i32, %c0_i32_0, %c0_i32_1, %c0_i32_2 : i32, i32, i32, i32
  }
  func.func @transform_11(%arg0: i32) -> (i32, i32, i32, i32) {
    %c0_i32 = arith.constant 0 : i32
    %c0_i32_0 = arith.constant 0 : i32
    %c0_i32_1 = arith.constant 0 : i32
    %c0_i32_2 = arith.constant 0 : i32
    %c0_i32_3 = arith.constant 0 : i32
    return %c0_i32, %c0_i32_0, %c0_i32_1, %c0_i32_2 : i32, i32, i32, i32
  }
  func.func @transform_12(%arg0: i32) -> (i32, i32, i32, i32) {
    %c0_i32 = arith.constant 0 : i32
    %c0_i32_0 = arith.constant 0 : i32
    %c0_i32_1 = arith.constant 0 : i32
    %c0_i32_2 = arith.constant 0 : i32
    %c0_i32_3 = arith.constant 0 : i32
    return %c0_i32, %c0_i32_0, %c0_i32_1, %c0_i32_2 : i32, i32, i32, i32
  }
  func.func @transform_13(%arg0: i32) -> (i32, i32, i32, i32) {
    %c0_i32 = arith.constant 0 : i32
    %c0_i32_0 = arith.constant 0 : i32
    %c0_i32_1 = arith.constant 0 : i32
    %c0_i32_2 = arith.constant 0 : i32
    %c0_i32_3 = arith.constant 0 : i32
    return %c0_i32, %c0_i32_0, %c0_i32_1, %c0_i32_2 : i32, i32, i32, i32
  }
  func.func @transform_14(%arg0: i32) -> (i32, i32, i32) {
    %c0_i32 = arith.constant 0 : i32
    %c0_i32_0 = arith.constant 0 : i32
    %c0_i32_1 = arith.constant 0 : i32
    %c0_i32_2 = arith.constant 0 : i32
    return %c0_i32, %c0_i32_0, %c0_i32_1 : i32, i32, i32
  }
  func.func @transform_15(%arg0: i32) -> (i32, i32, i32) {
    %c0_i32 = arith.constant 0 : i32
    %c0_i32_0 = arith.constant 0 : i32
    %c0_i32_1 = arith.constant 0 : i32
    %c0_i32_2 = arith.constant 0 : i32
    return %c0_i32, %c0_i32_0, %c0_i32_1 : i32, i32, i32
  }
  func.func @transform_16(%arg0: i32) -> (i32, i32, i32) {
    %c0_i32 = arith.constant 0 : i32
    %c0_i32_0 = arith.constant 0 : i32
    %c0_i32_1 = arith.constant 0 : i32
    %c0_i32_2 = arith.constant 0 : i32
    return %c0_i32, %c0_i32_0, %c0_i32_1 : i32, i32, i32
  }
  func.func @transform_17(%arg0: i32) -> (i32, i32, i32, i32) {
    %c0_i32 = arith.constant 0 : i32
    %c0_i32_0 = arith.constant 0 : i32
    %c0_i32_1 = arith.constant 0 : i32
    %c0_i32_2 = arith.constant 0 : i32
    %c0_i32_3 = arith.constant 0 : i32
    return %c0_i32, %c0_i32_0, %c0_i32_1, %c0_i32_2 : i32, i32, i32, i32
  }
  func.func @transform_18(%arg0: i32) -> (i32, i32, i32, i32) {
    %c0_i32 = arith.constant 0 : i32
    %c0_i32_0 = arith.constant 0 : i32
    %c0_i32_1 = arith.constant 0 : i32
    %c0_i32_2 = arith.constant 0 : i32
    %c0_i32_3 = arith.constant 0 : i32
    return %c0_i32, %c0_i32_0, %c0_i32_1, %c0_i32_2 : i32, i32, i32, i32
  }
  func.func @transform_19(%arg0: i32) -> (i32, i32, i32, i32) {
    %c0_i32 = arith.constant 0 : i32
    %c0_i32_0 = arith.constant 0 : i32
    %c0_i32_1 = arith.constant 0 : i32
    %c0_i32_2 = arith.constant 0 : i32
    %c0_i32_3 = arith.constant 0 : i32
    return %c0_i32, %c0_i32_0, %c0_i32_1, %c0_i32_2 : i32, i32, i32, i32
  }
  func.func @transform_20(%arg0: i32) -> (i32, i32, i32, i32) {
    %c0_i32 = arith.constant 0 : i32
    %c0_i32_0 = arith.constant 0 : i32
    %c0_i32_1 = arith.constant 0 : i32
    %c0_i32_2 = arith.constant 0 : i32
    %c0_i32_3 = arith.constant 0 : i32
    return %c0_i32, %c0_i32_0, %c0_i32_1, %c0_i32_2 : i32, i32, i32, i32
  }
  func.func @transform_21(%arg0: i32) -> (i32, i32, i32, i32) {
    %c0_i32 = arith.constant 0 : i32
    %c0_i32_0 = arith.constant 0 : i32
    %c0_i32_1 = arith.constant 0 : i32
    %c0_i32_2 = arith.constant 0 : i32
    %c0_i32_3 = arith.constant 0 : i32
    return %c0_i32, %c0_i32_0, %c0_i32_1, %c0_i32_2 : i32, i32, i32, i32
  }
  func.func @transform_22(%arg0: i32) -> (i32, i32, i32, i32) {
    %c0_i32 = arith.constant 0 : i32
    %c0_i32_0 = arith.constant 0 : i32
    %c0_i32_1 = arith.constant 0 : i32
    %c0_i32_2 = arith.constant 0 : i32
    %c0_i32_3 = arith.constant 0 : i32
    return %c0_i32, %c0_i32_0, %c0_i32_1, %c0_i32_2 : i32, i32, i32, i32
  }
  func.func @transform_23(%arg0: i32) -> (i32, i32, i32, i32) {
    %c0_i32 = arith.constant 0 : i32
    %c0_i32_0 = arith.constant 0 : i32
    %c0_i32_1 = arith.constant 0 : i32
    %c0_i32_2 = arith.constant 0 : i32
    %c0_i32_3 = arith.constant 0 : i32
    return %c0_i32, %c0_i32_0, %c0_i32_1, %c0_i32_2 : i32, i32, i32, i32
  }
  func.func @transform_24(%arg0: i32) -> (i32, i32, i32) {
    %c0_i32 = arith.constant 0 : i32
    %c0_i32_0 = arith.constant 0 : i32
    %c0_i32_1 = arith.constant 0 : i32
    %c0_i32_2 = arith.constant 0 : i32
    return %c0_i32, %c0_i32_0, %c0_i32_1 : i32, i32, i32
  }
  func.func @transform_25(%arg0: i32) -> (i32, i32, i32) {
    %c0_i32 = arith.constant 0 : i32
    %c0_i32_0 = arith.constant 0 : i32
    %c0_i32_1 = arith.constant 0 : i32
    %c0_i32_2 = arith.constant 0 : i32
    return %c0_i32, %c0_i32_0, %c0_i32_1 : i32, i32, i32
  }
  func.func @transform_26(%arg0: i32) -> (i32, i32, i32) {
    %c0_i32 = arith.constant 0 : i32
    %c0_i32_0 = arith.constant 0 : i32
    %c0_i32_1 = arith.constant 0 : i32
    %c0_i32_2 = arith.constant 0 : i32
    return %c0_i32, %c0_i32_0, %c0_i32_1 : i32, i32, i32
  }
  func.func @transform_27(%arg0: i32) -> (i32, i32, i32) {
    %c0_i32 = arith.constant 0 : i32
    %c0_i32_0 = arith.constant 0 : i32
    %c0_i32_1 = arith.constant 0 : i32
    %c0_i32_2 = arith.constant 0 : i32
    return %c0_i32, %c0_i32_0, %c0_i32_1 : i32, i32, i32
  }
  func.func @transform_28(%arg0: i32) -> (i32, i32, i32) {
    %c0_i32 = arith.constant 0 : i32
    %c0_i32_0 = arith.constant 0 : i32
    %c0_i32_1 = arith.constant 0 : i32
    %c0_i32_2 = arith.constant 0 : i32
    return %c0_i32, %c0_i32_0, %c0_i32_1 : i32, i32, i32
  }
  func.func @transform_29(%arg0: i32) -> (i32, i32, i32) {
    %c0_i32 = arith.constant 0 : i32
    %c0_i32_0 = arith.constant 0 : i32
    %c0_i32_1 = arith.constant 0 : i32
    %c0_i32_2 = arith.constant 0 : i32
    return %c0_i32, %c0_i32_0, %c0_i32_1 : i32, i32, i32
  }
  func.func @transform_30(%arg0: i32) -> (i32, i32, i32) {
    %c0_i32 = arith.constant 0 : i32
    %c0_i32_0 = arith.constant 0 : i32
    %c0_i32_1 = arith.constant 0 : i32
    %c0_i32_2 = arith.constant 0 : i32
    return %c0_i32, %c0_i32_0, %c0_i32_1 : i32, i32, i32
  }
  func.func @transform_31(%arg0: i32) -> (i32, i32, i32) {
    %c0_i32 = arith.constant 0 : i32
    %c0_i32_0 = arith.constant 0 : i32
    %c0_i32_1 = arith.constant 0 : i32
    %c0_i32_2 = arith.constant 0 : i32
    return %c0_i32, %c0_i32_0, %c0_i32_1 : i32, i32, i32
  }
  func.func @transform_32(%arg0: i32) -> (i32, i32, i32) {
    %c0_i32 = arith.constant 0 : i32
    %c0_i32_0 = arith.constant 0 : i32
    %c0_i32_1 = arith.constant 0 : i32
    %c0_i32_2 = arith.constant 0 : i32
    return %c0_i32, %c0_i32_0, %c0_i32_1 : i32, i32, i32
  }
  func.func @transform_33(%arg0: i32) -> (i32, i32) {
    %c0_i32 = arith.constant 0 : i32
    %c0_i32_0 = arith.constant 0 : i32
    %c0_i32_1 = arith.constant 0 : i32
    return %c0_i32, %c0_i32_0 : i32, i32
  }
  func.func @transform_34(%arg0: i32) -> (i32, i32) {
    %c0_i32 = arith.constant 0 : i32
    %c0_i32_0 = arith.constant 0 : i32
    %c0_i32_1 = arith.constant 0 : i32
    return %c0_i32, %c0_i32_0 : i32, i32
  }
  func.func @transform_35(%arg0: i32) -> (i32, i32, i32) {
    %c0_i32 = arith.constant 0 : i32
    %c0_i32_0 = arith.constant 0 : i32
    %c0_i32_1 = arith.constant 0 : i32
    return %arg0, %c0_i32, %c0_i32_0 : i32, i32, i32
  }
}

</mosaic_0001>

<bundles_post_ra>
// kernel: ae_transformer_forward.2
= control target key start
LH: loop header
LB: loop body
LE: loop exit
PB: predicated region body
PF: predicated region fallthrough
CT: control target
= control target key end

     0   :  { %s8178_s0 = inlined_call_operand.vmem [shape: f32[10,8,32], index: 0, kind: input, shape index: {}]   ;;  %s8179_s1 = inlined_call_operand.vmem [shape: f32[10,1,8], index: 1, kind: input, shape index: {}]   ;;  %s8180_s2 = inlined_call_operand.vmem [shape: f32[8,32], index: 2, kind: input, shape index: {}]   ;;  %s8181_s3 = inlined_call_operand.vmem [shape: f32[2,4,32,8], index: 3, kind: input, shape index: {}]   ;;  %s8182_s4 = inlined_call_operand.vmem [shape: f32[2,4,1,8], index: 4, kind: input, shape index: {}]   ;;  %s8183_s5 = inlined_call_operand.vmem [shape: f32[2,4,32,8], index: 5, kind: input, shape index: {}]   ;;  %s8184_s6 = inlined_call_operand.vmem [shape: f32[2,4,1,8], index: 6, kind: input, shape index: {}]   ;;  %s8185_s7 = inlined_call_operand.vmem [shape: f32[2,4,32,8], index: 7, kind: input, shape index: {}]   ;;  %s8186_s8 = inlined_call_operand.vmem [shape: f32[2,4,1,8], index: 8, kind: input, shape index: {}]   ;;  %s8187_s9 = inlined_call_operand.vmem [shape: f32[2,4,8,32], index: 9, kind: input, shape index: {}]   ;;  %s8188_s10 = inlined_call_operand.vmem [shape: f32[2,1,32], index: 10, kind: input, shape index: {}]   ;;  %s8189_s11 = inlined_call_operand.vmem [shape: f32[2,1,32], index: 11, kind: input, shape index: {}]   ;;  %s8190_s12 = inlined_call_operand.vmem [shape: f32[2,1,32], index: 12, kind: input, shape index: {}]   ;;  %s8191_s13 = inlined_call_operand.vmem [shape: f32[2,32,512], index: 13, kind: input, shape index: {}]   ;;  %s8192_s14 = inlined_call_operand.vmem [shape: f32[2,1,512], index: 14, kind: input, shape index: {}]   ;;  %s8193_s15 = inlined_call_operand.vmem [shape: f32[2,512,32], index: 15, kind: input, shape index: {}]   ;;  %s8194_s16 = inlined_call_operand.vmem [shape: f32[2,1,32], index: 16, kind: input, shape index: {}]   ;;  %s8195_s17 = inlined_call_operand.vmem [shape: f32[2,1,32], index: 17, kind: input, shape index: {}]   ;;  %s8196_s18 = inlined_call_operand.vmem [shape: f32[2,1,32], index: 18, kind: input, shape index: {}]   ;;  %s8197_s19 = inlined_call_operand.vmem [shape: f32[10,1,32], index: 19, kind: output, shape index: {}]  }
   0x1   :  { %8200 = sst [smem:[#allocation3_spill]] %s8178_s0  ;;  %s6897_s0 = smov 0  }
   0x2   :  { %8201 = sst [smem:[#allocation4_spill]] %s8179_s1 }
   0x3   :  { %8202 = sst [smem:[#allocation5_spill]] %s8180_s2 }
   0x4   :  { %8203 = sst [smem:[#allocation6_spill]] %s8181_s3 }
   0x5 LB: > { %8204 = sst [smem:[#allocation2_spill]] %s6792_s0  ;;  %s5482_s30 = sadd.s32 4294967295, %s6792_s0   ;;  %s6792_s0 = sphi %s6897_s0, %s29_s0  }
   0x6   : > { %p5486_p0 = scmp.ge.s32.totalorder %s6792_s0, 1  ;;  %p544_p1 = scmp.lt.s32.totalorder %s6792_s0, 11 }
   0x8   : > { %p545_p2 = pnand %p5486_p0, %p544_p1 }
   0x9   : > { %v634_v0 = vld [vmem:[%s8183_s5] sm:$0xff] (!%p545_p2)  ;;  %v635_v1 = vld [vmem:[%s8183_s5 + $0x8] sm:$0xff] (!%p545_p2)  ;;  %s8205_s24 = sld [smem:[#allocation6_spill]] (!%p545_p2)  ;;  %v6794_v3 = vmov (!%p545_p2), 0.0|0.0   ;;  %v636_v6 = vld [vmem:[%s8183_s5 + $0x10] sm:$0xff] (!%p545_p2)  ;;  %p600_p3 = scmp.lt.s32.totalorder (!%p545_p2), %s5482_s30, 9 }
   0xa   : > { %548 = sbr.rel (%p545_p2) target bundleno = 10321 (0x2851), region = 96  ;;  %6436 = vmatprep.subr.bf16.mxu1 (!%p545_p2), %v6794_v3  ;;  %v6437_v4 = vpack.c.bf16 (!%p545_p2), %v635_v1, %v634_v0  ;;  %6430 = vmatprep.subr.bf16.mxu0 (!%p545_p2), %v6794_v3  ;;  %v637_v7 = vld [vmem:[%s8183_s5 + $0x18] sm:$0xff] (!%p545_p2)  ;;  %vm6795_vm0 = vmmov (!%p545_p2), 0   ;;  %v6796_v11 = vmov (!%p545_p2), 0.0   ;;  %s8206_s3 = sld [smem:[#allocation5_spill]] (!%p545_p2)  ;;  %vm685_vm1 = vcmask (!%p545_p2), 261120  }
   0xb   : > { %6065 = vmatprep.mubr.msk.f32.mxu1 (!%p545_p2), %vm6795_vm0, %v6796_v11  ;;  %6054 = vmatprep.mubr.msk.f32.mxu0 (!%p545_p2), %vm6795_vm0, %v6796_v11  ;;  %v6440_v12 = vpack.c.bf16 (!%p545_p2), %v637_v7, %v636_v6  ;;  %s8207_s28 = sld [smem:[#allocation3_spill]] (!%p545_p2)  ;;  %v5490_v17 = vld [vmem:[%s8184_s6] ss:$0 sm:$0xff] (!%p545_p2)  ;;  %vm911_vm2 = vcmask (!%p545_p2), 64512   ;;  %v655_v26 = vld [vmem:[%s8185_s7 + $0x8] sm:$0xff] (!%p545_p2)  ;;  %v656_v27 = vld [vmem:[%s8185_s7 + $0x10] sm:$0xff] (!%p545_p2) }
   0xc   : > { %6438 = vmatpush3.bf16.msra.mxu1 (!%p545_p2), %v6437_v4  ;;  %v5488_v18 = vld [vmem:[%s8182_s4] ss:$0 sm:$0xff] (!%p545_p2)  ;;  %v657_v29 = vld [vmem:[%s8185_s7 + $0x18] sm:$0xff] (!%p545_p2)  ;;  %s8208_s1 = sld [smem:[#allocation4_spill]] (!%p545_p2)  ;;  %v639_v57 = vld [vmem:[%s8183_s5 + $0x28] sm:$0xff] (!%p545_p2)  ;;  %vm5424_vm3 = vcmask (!%p545_p2), 253952  }
   0xd   : > { %6439 = vmatprep.subr.bf16.mxu1 (!%p545_p2), %v6794_v3  ;;  %v654_v25 = vld [vmem:[%s8185_s7] sm:$0xff] (!%p545_p2)  ;;  %v6446_v30 = vpack.c.bf16 (!%p545_p2), %v657_v29, %v656_v27  ;;  %v640_v59 = vld [vmem:[%s8183_s5 + $0x30] sm:$0xff] (!%p545_p2)  ;;  %v641_v60 = vld [vmem:[%s8183_s5 + $0x38] sm:$0xff] (!%p545_p2) }
   0xe   : > { %v6443_v28 = vpack.c.bf16 (!%p545_p2), %v655_v26, %v654_v25  ;;  %v5492_v43 = vld [vmem:[%s8186_s8] ss:$0 sm:$0xff] (!%p545_p2)  ;;  %v6458_v63 = vpack.c.bf16 (!%p545_p2), %v641_v60, %v640_v59  ;;  %v5500_v6 = vld [vmem:[%s8182_s4 + $0x1] ss:$0 sm:$0xff] (!%p545_p2)  ;;  %v5512_v59 = vld [vmem:[%s8184_s6 + $0x2] ss:$0 sm:$0xff] (!%p545_p2) }
   0xf   : > { %v614_v2 = vld [vmem:[%s8205_s24] sm:$0xff] (!%p545_p2)  ;;  %v615_v5 = vld [vmem:[%s8205_s24 + $0x8] sm:$0xff] (!%p545_p2)  ;;  %v616_v9 = vld [vmem:[%s8205_s24 + $0x10] sm:$0xff] (!%p545_p2) }
  0x10   : > { %v6431_v8 = vpack.c.bf16 (!%p545_p2), %v615_v5, %v614_v2  ;;  %v617_v10 = vld [vmem:[%s8205_s24 + $0x18] sm:$0xff] (!%p545_p2)  ;;  %v611_v14 = vld [vmem:[%s8206_s3] sm:$0xff] (!%p545_p2)  ;;  %6441 = vmatpush3.bf16.msra.mxu1 (!%p545_p2), %v6440_v12  ;;  %v619_v51 = vld [vmem:[%s8205_s24 + $0x28] sm:$0xff] (!%p545_p2) }
  0x11   : > { %s8211_s30 = smov (!%p600_p3, %s5482_s30), 9  ;;  %v6434_v13 = vpack.c.bf16 %v617_v10, %v616_v9  ;;  %6079 = vmatprep.subr.mxu1 %v6796_v11  ;;  %v674_v46 = vld [vmem:[%s8187_s9] sm:$0xff]  ;;  %v620_v53 = vld [vmem:[%s8205_s24 + $0x30] sm:$0xff]  ;;  %v621_v54 = vld [vmem:[%s8205_s24 + $0x38] sm:$0xff] }
  0x12   : > { %6432 = vmatpush3.bf16.msra.mxu0 %v6431_v8  ;;  %s5487_s2 = sshll.u32 %s8211_s30, 3  ;;  %s6991_s22 = scalar_lea.vmem %s8208_s1, %s8211_s30  ;;  %v618_v50 = vld [vmem:[%s8205_s24 + $0x20] sm:$0xff]  ;;  %v6452_v55 = vpack.c.bf16 %v621_v54, %v620_v53 }
  0x13   : > { %6433 = vmatprep.subr.bf16.mxu0 %v6794_v3  ;;  %s603_s29 = scalar_lea.vmem %s8207_s28, %s5487_s2  ;;  %v6994_v32 = vld [vmem:[%s6991_s22] ss:$0 sm:$0xff]  ;;  %v6449_v52 = vpack.c.bf16 %v619_v51, %v618_v50  ;;  %v5502_v5 = vld [vmem:[%s8184_s6 + $0x1] ss:$0 sm:$0xff]  ;;  %v5510_v60 = vld [vmem:[%s8182_s4 + $0x2] ss:$0 sm:$0xff]  ;;  %s609_s28 = scalar_lea.vmem %s8197_s19, %s8211_s30 }
  0x14   : > { %v610_v15 = vld [vmem:[%s603_s29] sm:$0xff] }
  0x15   : > { %v6946_v16 = vadd.f32 %v611_v14, %v610_v15  ;;  %v638_v56 = vld [vmem:[%s8183_s5 + $0x20] sm:$0xff]  ;;  %v660_v14 = vld [vmem:[%s8185_s7 + $0x30] sm:$0xff] }
  0x16   : > { %6435 = vmatpush3.bf16.msra.mxu0 %v6434_v13  ;;  %v6455_v58 = vpack.c.bf16 %v639_v57, %v638_v56  ;;  %v658_v12 = vld [vmem:[%s8185_s7 + $0x20] sm:$0xff]  ;;  %v659_v13 = vld [vmem:[%s8185_s7 + $0x28] sm:$0xff] }
  0x17   : > { %6442 = vmatprep.subr.bf16.mxu0 %v6794_v3  ;;  %6066 = vmatmul.mubr.msk.f32.vlgmr.msra.gmra.mrb[0].mxu1 %vm685_vm1, %v6946_v16  ;;  %v6461_v15 = vpack.c.bf16 %v659_v13, %v658_v12  ;;  %v5499_v54 = vld [vmem:[%s8188_s10] ss:$0 sm:$0xff] }
  0x18   : > { %6081 = vmatprep.mubr.msk.f32.mxu1 %vm6795_vm0, %v6796_v11 }
  0x19   : > { %6055 = vmatmul.mubr.msk.f32.vlgmr.msra.gmra.mrb[0].mxu0 %vm685_vm1, %v6946_v16 }
  0x1a   : > { %6076 = vmatprep.mubr.msk.f32.mxu0 %vm6795_vm0, %v6796_v11  ;;  %6444 = vmatpush3.bf16.msra.mxu0 %v6443_v28 }
  0x1b   : > { %6445 = vmatprep.subr.bf16.mxu0 %v6794_v3 }
  0x1e   : > { %6447 = vmatpush3.bf16.msra.mxu0 %v6446_v30  ;;  %v5504_v30 = vld [vmem:[%s8186_s8 + $0x1] ss:$0 sm:$0xff] }
  0x1f   : > { %6089 = vmatprep.subr.mxu0 %v6796_v11 }
  0x21   : > { %6077 = vmatmul.mubr.msk.f32.vlgmr.msra.gmra.mrb[2].mxu0 %vm685_vm1, %v6946_v16 }
  0x22   : > { %6091 = vmatprep.mubr.msk.f32.mxu0 %vm6795_vm0, %v6796_v11  ;;  %6090 = vmatpush3.msra.mxu0 %v674_v46 }
  0x23   : > { %6454 = vmatprep.subr.bf16.mxu0 %v6794_v3 }
  0xea   : > { %v831_v19 = vpop.f32.mrb[0].mxu1 }
  0xeb   : > { %v832_v20 = vadd.f32 %v5490_v17, %v831_v19  ;;  %v6067_v21 = vpop.f32.mrb[1].mxu1  ;;  %v661_v17 = vld [vmem:[%s8185_s7 + $0x38] sm:$0xff] }
  0xec   : > { %v755_v22 = vpop.f32.mrb[0].mxu0 }
  0xed   : > { %v756_v23 = vadd.f32 %v5488_v18, %v755_v22  ;;  %v6056_v24 = vpop.f32.mrb[1].mxu0  ;;  %6080 = vmatpush3.xpose.msk.msra.mxu1 %vm911_vm2, %v832_v20  ;;  %v6464_v18 = vpack.c.bf16 %v661_v17, %v660_v14 }
  0xee   : > { %6084 = vmatprep.subr.mxu1 %v6796_v11 }
  0xf0   : > { %6082 = vmatmul.mubr.msk.f32.vlgmr.msra.gmra.mrb[2].mxu1 %vm911_vm2, %v756_v23 }
  0xf1   : > { %6086 = vmatprep.mubr.msk.f32.mxu1 %vm6795_vm0, %v6796_v11 }
  0xf4   : > { %v907_v42 = vpop.f32.mrb[2].mxu0 }
  0xf5   : > { %v6078_v44 = vpop.f32.mrb[3].mxu0  ;;  %v908_v45 = vadd.f32 %v5492_v43, %v907_v42  ;;  %v625_v42 = vld [vmem:[%s8205_s24 + $0x58] sm:$0xff] }
  0xf6   : > { %v642_v44 = vld [vmem:[%s8183_s5 + $0x40] sm:$0xff] }
  0xf7   : > { %6085 = vmatpush3.msra.mxu1 %v908_v45  ;;  %v643_v45 = vld [vmem:[%s8183_s5 + $0x48] sm:$0xff] }
  0xf8   : > { %6448 = vmatprep.subr.bf16.mxu1 %v6794_v3  ;;  %v6473_v46 = vpack.c.bf16 %v643_v45, %v642_v44 }
 0x1c3   : > { %v984_v31 = vpop.f32.mrb[2].mxu1 }
 0x1c4   : > { %v988_v33 = vmul.f32 0.35355338, %v984_v31  ;;  %v6083_v34 = vpop.f32.mrb[3].mxu1 }
 0x1c5   : > { %v675_v34 = vld [vmem:[%s8187_s9 + $0x8] sm:$0xff] }
 0x1c6   : > { %v995_v35 = vadd.f32 %v6994_v32, %v988_v33 }
 0x1c8   : > { %v996_v36 = vsel %vm911_vm2, %v995_v35, -inf }
 0x1c9   : > { %997 = vmax.xlane.f32.xlu0 %v996_v36 }
 0x256   : > { %v998_v37 = vpop.xlane.xlu0 %997 }
 0x257   : > { %v999_v38 = vsub.f32 %v995_v35, %v998_v37 }
 0x259   : > { %v1000_v39 = vmul.f32 1.442695, %v999_v38  ;;  %v622_v38 = vld [vmem:[%s8205_s24 + $0x40] sm:$0xff] }
 0x25b   : > { %6745 = vpow2.f32 %v1000_v39  ;;  %v623_v39 = vld [vmem:[%s8205_s24 + $0x48] sm:$0xff] }
 0x265   : > { %v6746_v40 = vpop.eup %6745 }
 0x266   : > { %v1002_v41 = vsel %vm911_vm2, %v6746_v40, 0.0 }
 0x267   : > { %1003 = vadd.xlane.f32.xlu0 %v1002_v41  ;;  %v624_v41 = vld [vmem:[%s8205_s24 + $0x50] sm:$0xff] }
 0x268   : > { %v6470_v43 = vpack.c.bf16 %v625_v42, %v624_v41 }
 0x2f4   : > { %v1004_v47 = vpop.xlane.xlu0 %1003 }
 0x2f5   : > { %6747 = vrcp.f32 %v1004_v47  ;;  %v644_v47 = vld [vmem:[%s8183_s5 + $0x50] sm:$0xff] }
 0x2ff   : > { %v6748_v48 = vpop.eup %6747 }
 0x300   : > { %v1006_v49 = vmul.f32 %v6748_v48, %v6746_v40  ;;  %v6467_v40 = vpack.c.bf16 %v623_v39, %v622_v38  ;;  %v645_v48 = vld [vmem:[%s8183_s5 + $0x58] sm:$0xff]  ;;  %v648_v38 = vld [vmem:[%s8183_s5 + $0x70] sm:$0xff] }
 0x301   : > { %v6476_v51 = vpack.c.bf16 %v645_v48, %v644_v47  ;;  %v649_v39 = vld [vmem:[%s8183_s5 + $0x78] sm:$0xff]  ;;  %v5522_v48 = vld [vmem:[%s8184_s6 + $0x3] ss:$0 sm:$0xff] }
 0x302   : > { %6087 = vmatmul.mubr.msk.f32.vlgmr.msra.gmra.mrb[4].mxu1 %vm911_vm2, %v1006_v49  ;;  %v6494_v42 = vpack.c.bf16 %v649_v39, %v648_v38  ;;  %v2589_v38 = vld [vmem:[%s8191_s13 + $0x30] sm:$0xff] }
 0x303   : > { %6102 = vmatprep.mubr.msk.f32.mxu1 %vm6795_vm0, %v6796_v11  ;;  %6450 = vmatpush3.bf16.msra.mxu1 %v6449_v52 }
 0x304   : > { %6451 = vmatprep.subr.bf16.mxu1 %v6794_v3 }
 0x307   : > { %6453 = vmatpush3.bf16.msra.mxu1 %v6452_v55 }
 0x308   : > { %6460 = vmatprep.subr.bf16.mxu1 %v6794_v3 }
 0x30a   : > { %6103 = vmatmul.mubr.msk.f32.vlgmr.msra.gmra.mrb[6].mxu1 %vm685_vm1, %v6946_v16 }
 0x30b   : > { %6124 = vmatprep.mubr.msk.f32.mxu1 %vm6795_vm0, %v6796_v11  ;;  %6462 = vmatpush3.bf16.msra.mxu1 %v6461_v15 }
 0x30c   : > { %6463 = vmatprep.subr.bf16.mxu1 %v6794_v3 }
 0x30f   : > { %6465 = vmatpush3.bf16.msra.mxu1 %v6464_v18 }
 0x310   : > { %6137 = vmatprep.subr.mxu1 %v6796_v11 }
 0x312   : > { %6125 = vmatmul.mubr.msk.f32.vlgmr.msra.gmra.mrb[8].mxu1 %vm685_vm1, %v6946_v16 }
 0x313   : > { %6139 = vmatprep.mubr.msk.f32.mxu1 %vm6795_vm0, %v6796_v11  ;;  %6138 = vmatpush3.msra.mxu1 %v675_v34 }
 0x314   : > { %6472 = vmatprep.subr.bf16.mxu1 %v6794_v3 }
 0x3d5   : > { %v1076_v61 = vpop.f32.mrb[4].mxu1 }
 0x3d6   : > { %v6088_v62 = vpop.f32.mrb[5].mxu1  ;;  %6092 = vmatmul.mubr.msk.f32.vlgmr.msra.gmra.mrb[4].mxu0 %vm911_vm2, %v1076_v61 }
 0x3d7   : > { %6456 = vmatpush3.bf16.msra.mxu0 %v6455_v58  ;;  %6113 = vmatprep.mubr.msk.f32.mxu0 %vm6795_vm0, %v6796_v11 }
 0x3d8   : > { %6457 = vmatprep.subr.bf16.mxu0 %v6794_v3 }
 0x3db   : > { %6459 = vmatpush3.bf16.msra.mxu0 %v6458_v63 }
 0x3dc   : > { %6127 = vmatprep.subr.mxu0 %v6796_v11 }
 0x3dd   : > { %v1232_v0 = vpop.f32.mrb[6].mxu1 }
 0x3de   : > { %6114 = vmatmul.mubr.msk.f32.vlgmr.msra.gmra.mrb[6].mxu0 %vm685_vm1, %v6946_v16  ;;  %v6104_v1 = vpop.f32.mrb[7].mxu1  ;;  %v1233_v10 = vadd.f32 %v5500_v6, %v1232_v0  ;;  %v665_v6 = vld [vmem:[%s8185_s7 + $0x58] sm:$0xff] }
 0x3df   : > { %6129 = vmatprep.mubr.msk.f32.mxu0 %vm6795_vm0, %v6796_v11  ;;  %v662_v1 = vld [vmem:[%s8185_s7 + $0x40] sm:$0xff] }
 0x3e5   : > { %v1384_v29 = vpop.f32.mrb[8].mxu1 }
 0x3e6   : > { %v6126_v31 = vpop.f32.mrb[9].mxu1  ;;  %v1385_v33 = vadd.f32 %v5504_v30, %v1384_v29  ;;  %v627_v29 = vld [vmem:[%s8205_s24 + $0x68] sm:$0xff] }
 0x3e7   : > { %v628_v31 = vld [vmem:[%s8205_s24 + $0x70] sm:$0xff] }
 0x4a9   : > { %v7049_v2 = vpop.f32.mrb[4].mxu0 }
 0x4aa   : > { %v6093_v4 = vpop.f32.mrb[5].mxu0  ;;  %v1159_v55 = vadd.f32 %v5499_v54, %v7049_v2  ;;  %v663_v2 = vld [vmem:[%s8185_s7 + $0x48] sm:$0xff]  ;;  %v666_v54 = vld [vmem:[%s8185_s7 + $0x60] sm:$0xff] }
 0x4ab   : > { %v664_v4 = vld [vmem:[%s8185_s7 + $0x50] sm:$0xff] }
 0x4b1   : > { %v1308_v7 = vpop.f32.mrb[6].mxu0 }
 0x4b2   : > { %v1309_v8 = vadd.f32 %v5502_v5, %v1308_v7  ;;  %v6115_v9 = vpop.f32.mrb[7].mxu0  ;;  %v6479_v5 = vpack.c.bf16 %v663_v2, %v662_v1  ;;  %v6482_v7 = vpack.c.bf16 %v665_v6, %v664_v4 }
 0x4b4   : > { %6128 = vmatpush3.xpose.msk.msra.mxu0 %vm911_vm2, %v1309_v8 }
 0x4b5   : > { %6132 = vmatprep.subr.mxu0 %v6796_v11 }
 0x4b7   : > { %6130 = vmatmul.mubr.msk.f32.vlgmr.msra.gmra.mrb[8].mxu0 %vm911_vm2, %v1233_v10 }
 0x4b8   : > { %6134 = vmatprep.mubr.msk.f32.mxu0 %vm6795_vm0, %v6796_v11  ;;  %6133 = vmatpush3.msra.mxu0 %v1385_v33  ;;  %v629_v33 = vld [vmem:[%s8205_s24 + $0x78] sm:$0xff] }
 0x4b9   : > { %6466 = vmatprep.subr.bf16.mxu0 %v6794_v3  ;;  %v6488_v34 = vpack.c.bf16 %v629_v33, %v628_v31  ;;  %v2590_v31 = vld [vmem:[%s8191_s13 + $0x38] sm:$0xff]  ;;  %v2583_v33 = vld [vmem:[%s8191_s13] sm:$0xff] }
 0x58a   : > { %v1460_v19 = vpop.f32.mrb[8].mxu0 }
 0x58b   : > { %v1464_v20 = vmul.f32 0.35355338, %v1460_v19  ;;  %v6131_v21 = vpop.f32.mrb[9].mxu0 }
 0x58c   : > { %v5514_v21 = vld [vmem:[%s8186_s8 + $0x2] ss:$0 sm:$0xff] }
 0x58d   : > { %v1465_v22 = vadd.f32 %v6994_v32, %v1464_v20 }
 0x58f   : > { %v1466_v23 = vsel %vm911_vm2, %v1465_v22, -inf }
 0x590   : > { %1467 = vmax.xlane.f32.xlu1 %v1466_v23 }
 0x61d   : > { %v1468_v24 = vpop.xlane.xlu1 %1467 }
 0x61e   : > { %v1469_v25 = vsub.f32 %v1465_v22, %v1468_v24  ;;  %v676_v24 = vld [vmem:[%s8187_s9 + $0x10] sm:$0xff] }
 0x620   : > { %v1470_v26 = vmul.f32 1.442695, %v1469_v25 }
 0x622   : > { %6749 = vpow2.f32 %v1470_v26 }
 0x62c   : > { %v6750_v27 = vpop.eup %6749 }
 0x62d   : > { %v1472_v28 = vsel %vm911_vm2, %v6750_v27, 0.0 }
 0x62e   : > { %1473 = vadd.xlane.f32.xlu1 %v1472_v28  ;;  %v626_v28 = vld [vmem:[%s8205_s24 + $0x60] sm:$0xff] }
 0x62f   : > { %v6485_v30 = vpack.c.bf16 %v627_v29, %v626_v28  ;;  %v2584_v28 = vld [vmem:[%s8191_s13 + $0x8] sm:$0xff] }
 0x630   : > { %v2588_v29 = vld [vmem:[%s8191_s13 + $0x28] sm:$0xff] }
 0x6bb   : > { %v1474_v35 = vpop.xlane.xlu1 %1473 }
 0x6bc   : > { %6751 = vrcp.f32 %v1474_v35  ;;  %v646_v35 = vld [vmem:[%s8183_s5 + $0x60] sm:$0xff] }
 0x6c6   : > { %v6752_v36 = vpop.eup %6751 }
 0x6c7   : > { %v1476_v37 = vmul.f32 %v6752_v36, %v6750_v27  ;;  %v647_v36 = vld [vmem:[%s8183_s5 + $0x68] sm:$0xff] }
 0x6c9   : > { %6135 = vmatmul.mubr.msk.f32.vlgmr.msra.gmra.mrb[10].mxu0 %vm911_vm2, %v1476_v37  ;;  %v6491_v37 = vpack.c.bf16 %v647_v36, %v646_v35 }
 0x6ca   : > { %6150 = vmatprep.mubr.msk.f32.mxu0 %vm6795_vm0, %v6796_v11  ;;  %6468 = vmatpush3.bf16.msra.mxu0 %v6467_v40 }
 0x6cb   : > { %6469 = vmatprep.subr.bf16.mxu0 %v6794_v3 }
 0x6ce   : > { %6471 = vmatpush3.bf16.msra.mxu0 %v6470_v43 }
 0x6cf   : > { %6478 = vmatprep.subr.bf16.mxu0 %v6794_v3 }
 0x6d1   : > { %6151 = vmatmul.mubr.msk.f32.vlgmr.msra.gmra.mrb[12].mxu0 %vm685_vm1, %v6946_v16 }
 0x6d2   : > { %6172 = vmatprep.mubr.msk.f32.mxu0 %vm6795_vm0, %v6796_v11  ;;  %6480 = vmatpush3.bf16.msra.mxu0 %v6479_v5 }
 0x6d3   : > { %6481 = vmatprep.subr.bf16.mxu0 %v6794_v3 }
 0x6d6   : > { %6483 = vmatpush3.bf16.msra.mxu0 %v6482_v7 }
 0x6d7   : > { %6185 = vmatprep.subr.mxu0 %v6796_v11 }
 0x6d9   : > { %6173 = vmatmul.mubr.msk.f32.vlgmr.msra.gmra.mrb[14].mxu0 %vm685_vm1, %v6946_v16 }
 0x6da   : > { %6187 = vmatprep.mubr.msk.f32.mxu0 %vm6795_vm0, %v6796_v11  ;;  %6186 = vmatpush3.msra.mxu0 %v676_v24 }
 0x6db   : > { %6490 = vmatprep.subr.bf16.mxu0 %v6794_v3 }
 0x79c   : > { %v1546_v49 = vpop.f32.mrb[10].mxu0 }
 0x79d   : > { %v6136_v50 = vpop.f32.mrb[11].mxu0  ;;  %6140 = vmatmul.mubr.msk.f32.vlgmr.msra.gmra.mrb[10].mxu1 %vm911_vm2, %v1546_v49  ;;  %v5520_v49 = vld [vmem:[%s8182_s4 + $0x3] ss:$0 sm:$0xff] }
 0x79e   : > { %6474 = vmatpush3.bf16.msra.mxu1 %v6473_v46  ;;  %6161 = vmatprep.mubr.msk.f32.mxu1 %vm6795_vm0, %v6796_v11 }
 0x79f   : > { %6475 = vmatprep.subr.bf16.mxu1 %v6794_v3 }
 0x7a2   : > { %6477 = vmatpush3.bf16.msra.mxu1 %v6476_v51 }
 0x7a3   : > { %6175 = vmatprep.subr.mxu1 %v6796_v11 }
 0x7a4   : > { %v1696_v52 = vpop.f32.mrb[12].mxu0 }
 0x7a5   : > { %6162 = vmatmul.mubr.msk.f32.vlgmr.msra.gmra.mrb[12].mxu1 %vm685_vm1, %v6946_v16  ;;  %v6152_v53 = vpop.f32.mrb[13].mxu0  ;;  %v1697_v0 = vadd.f32 %v5510_v60, %v1696_v52 }
 0x7a6   : > { %6177 = vmatprep.mubr.msk.f32.mxu1 %vm6795_vm0, %v6796_v11 }
 0x7ac   : > { %v1848_v20 = vpop.f32.mrb[14].mxu0 }
 0x7ad   : > { %v6174_v22 = vpop.f32.mrb[15].mxu0  ;;  %v1849_v23 = vadd.f32 %v5514_v21, %v1848_v20 }
 0x870   : > { %v1619_v56 = vpop.f32.mrb[10].mxu1 }
 0x871   : > { %v7137_v57 = vadd.f32 %v1619_v56, %v1159_v55  ;;  %v6141_v58 = vpop.f32.mrb[11].mxu1  ;;  %v667_v55 = vld [vmem:[%s8185_s7 + $0x68] sm:$0xff]  ;;  %v668_v56 = vld [vmem:[%s8185_s7 + $0x70] sm:$0xff] }
 0x872   : > { %v669_v58 = vld [vmem:[%s8185_s7 + $0x78] sm:$0xff] }
 0x878   : > { %v1772_v61 = vpop.f32.mrb[12].mxu1 }
 0x879   : > { %v1773_v62 = vadd.f32 %v5512_v59, %v1772_v61  ;;  %v6163_v63 = vpop.f32.mrb[13].mxu1  ;;  %v6500_v59 = vpack.c.bf16 %v669_v58, %v668_v56  ;;  %v2649_v56 = vld [vmem:[%s8193_s15 + $0x188] sm:$0xff] }
 0x87b   : > { %6176 = vmatpush3.xpose.msk.msra.mxu1 %vm911_vm2, %v1773_v62 }
 0x87c   : > { %6180 = vmatprep.subr.mxu1 %v6796_v11 }
 0x87e   : > { %6178 = vmatmul.mubr.msk.f32.vlgmr.msra.gmra.mrb[14].mxu1 %vm911_vm2, %v1697_v0 }
 0x87f   : > { %6182 = vmatprep.mubr.msk.f32.mxu1 %vm6795_vm0, %v6796_v11  ;;  %6181 = vmatpush3.msra.mxu1 %v1849_v23 }
 0x880   : > { %6484 = vmatprep.subr.bf16.mxu1 %v6794_v3 }
 0x951   : > { %v1924_v8 = vpop.f32.mrb[14].mxu1 }
 0x952   : > { %v1928_v9 = vmul.f32 0.35355338, %v1924_v8  ;;  %v6179_v10 = vpop.f32.mrb[15].mxu1  ;;  %v5524_v8 = vld [vmem:[%s8186_s8 + $0x3] ss:$0 sm:$0xff] }
 0x954   : > { %v1929_v12 = vadd.f32 %v6994_v32, %v1928_v9 }
 0x956   : > { %v1930_v13 = vsel %vm911_vm2, %v1929_v12, -inf }
 0x957   : > { %1931 = vmax.xlane.f32.xlu0 %v1930_v13 }
 0x9e4   : > { %v1932_v14 = vpop.xlane.xlu0 %1931 }
 0x9e5   : > { %v1933_v15 = vsub.f32 %v1929_v12, %v1932_v14 }
 0x9e7   : > { %v1934_v17 = vmul.f32 1.442695, %v1933_v15 }
 0x9e9   : > { %6753 = vpow2.f32 %v1934_v17 }
 0x9f3   : > { %v6754_v18 = vpop.eup %6753 }
 0x9f4   : > { %v1936_v19 = vsel %vm911_vm2, %v6754_v18, 0.0 }
 0x9f5   : > { %1937 = vadd.xlane.f32.xlu1 %v1936_v19 }
 0xa82   : > { %v1938_v25 = vpop.xlane.xlu1 %1937 }
 0xa83   : > { %6755 = vrcp.f32 %v1938_v25 }
 0xa8d   : > { %v6756_v26 = vpop.eup %6755 }
 0xa8e   : > { %v1940_v27 = vmul.f32 %v6756_v26, %v6754_v18 }
 0xa90   : > { %6183 = vmatmul.mubr.msk.f32.vlgmr.msra.gmra.mrb[16].mxu1 %vm911_vm2, %v1940_v27 }
 0xa91   : > { %6198 = vmatprep.mubr.msk.f32.mxu1 %vm6795_vm0, %v6796_v11  ;;  %6486 = vmatpush3.bf16.msra.mxu1 %v6485_v30  ;;  %v6502_v30 = vpack.c.bf16 %v2588_v29, %v2584_v28  ;;  %v2605_v28 = vld [vmem:[%s8193_s15 + $0x28] sm:$0xff] }
 0xa92   : > { %6487 = vmatprep.subr.bf16.mxu1 %v6794_v3 }
 0xa95   : > { %6489 = vmatpush3.bf16.msra.mxu1 %v6488_v34  ;;  %v2587_v34 = vld [vmem:[%s8191_s13 + $0x20] sm:$0xff] }
 0xa96   : > { %6496 = vmatprep.subr.bf16.mxu1 %v6794_v3  ;;  %v6504_v36 = vpack.c.bf16 %v2587_v34, %v2583_v33  ;;  %v2622_v33 = vld [vmem:[%s8193_s15 + $0xb0] sm:$0xff]  ;;  %v2623_v34 = vld [vmem:[%s8193_s15 + $0xb8] sm:$0xff] }
 0xa98   : > { %6199 = vmatmul.mubr.msk.f32.vlgmr.msra.gmra.mrb[18].mxu1 %vm685_vm1, %v6946_v16 }
 0xa99   : > { %6220 = vmatprep.mubr.msk.f32.mxu1 %vm6795_vm0, %v6796_v11 }
 0xb63   : > { %v2010_v40 = vpop.f32.mrb[16].mxu1 }
 0xb64   : > { %v6184_v41 = vpop.f32.mrb[17].mxu1  ;;  %6188 = vmatmul.mubr.msk.f32.vlgmr.msra.gmra.mrb[16].mxu0 %vm911_vm2, %v2010_v40  ;;  %v2592_v40 = vld [vmem:[%s8191_s13 + $0x48] sm:$0xff] }
 0xb65   : > { %6492 = vmatpush3.bf16.msra.mxu0 %v6491_v37  ;;  %6209 = vmatprep.mubr.msk.f32.mxu0 %vm6795_vm0, %v6796_v11  ;;  %v2585_v37 = vld [vmem:[%s8191_s13 + $0x10] sm:$0xff]  ;;  %v2596_v41 = vld [vmem:[%s8191_s13 + $0x68] sm:$0xff] }
 0xb66   : > { %6493 = vmatprep.subr.bf16.mxu0 %v6794_v3  ;;  %v6512_v39 = vpack.c.bf16 %v2589_v38, %v2585_v37 }
 0xb69   : > { %6495 = vmatpush3.bf16.msra.mxu0 %v6494_v42  ;;  %v2594_v42 = vld [vmem:[%s8191_s13 + $0x58] sm:$0xff] }
 0xb6a   : > { %6223 = vmatprep.subr.mxu0 %v6796_v11 }
 0xb6b   : > { %v2160_v43 = vpop.f32.mrb[18].mxu1 }
 0xb6c   : > { %6210 = vmatmul.mubr.msk.f32.vlgmr.msra.gmra.mrb[18].mxu0 %vm685_vm1, %v6946_v16  ;;  %v6200_v44 = vpop.f32.mrb[19].mxu1  ;;  %v2161_v53 = vadd.f32 %v5520_v49, %v2160_v43  ;;  %v6506_v43 = vpack.c.bf16 %v2596_v41, %v2592_v40  ;;  %v2593_v49 = vld [vmem:[%s8191_s13 + $0x50] sm:$0xff]  ;;  %v2607_v40 = vld [vmem:[%s8193_s15 + $0x38] sm:$0xff]  ;;  %v6530_v41 = vpack.c.bf16 %v2623_v34, %v2622_v33  ;;  %v2666_v34 = vlaneseq }
 0xb6d   : > { %6225 = vmatprep.mubr.msk.f32.mxu0 %vm6795_vm0, %v6796_v11  ;;  %v2598_v44 = vld [vmem:[%s8191_s13 + $0x78] sm:$0xff] }
 0xc37   : > { %v2083_v45 = vpop.f32.mrb[16].mxu0 }
 0xc38   : > { %v2087_v46 = vadd.f32 %v2083_v45, %v7137_v57  ;;  %v6189_v47 = vpop.f32.mrb[17].mxu0  ;;  %v6497_v57 = vpack.c.bf16 %v667_v55, %v666_v54  ;;  %v2591_v45 = vld [vmem:[%s8191_s13 + $0x40] sm:$0xff] }
 0xc39   : > { %v6514_v47 = vpack.c.bf16 %v2598_v44, %v2594_v42  ;;  %v2648_v54 = vld [vmem:[%s8193_s15 + $0x180] sm:$0xff]  ;;  %v2639_v44 = vld [vmem:[%s8193_s15 + $0x138] sm:$0xff] }
 0xc3a   : > { %6498 = vmatpush3.bf16.msra.mxu1 %v6497_v57  ;;  %v6550_v57 = vpack.c.bf16 %v2649_v56, %v2648_v54  ;;  %v2641_v56 = vld [vmem:[%s8193_s15 + $0x148] sm:$0xff] }
 0xc3b   : > { %6499 = vmatprep.subr.bf16.mxu1 %v6794_v3 }
 0xc3e   : > { %6501 = vmatpush3.bf16.msra.mxu1 %v6500_v59 }
 0xc3f   : > { %v2236_v50 = vpop.f32.mrb[18].mxu0  ;;  %6233 = vmatprep.subr.mxu1 %v6796_v11 }
 0xc40   : > { %v2237_v51 = vadd.f32 %v5522_v48, %v2236_v50  ;;  %v6211_v52 = vpop.f32.mrb[19].mxu0  ;;  %v2597_v50 = vld [vmem:[%s8191_s13 + $0x70] sm:$0xff] }
 0xc41   : > { %6221 = vmatmul.mubr.msk.f32.vlgmr.msra.gmra.mrb[20].mxu1 %vm685_vm1, %v6946_v16  ;;  %v2616_v52 = vld [vmem:[%s8193_s15 + $0x80] sm:$0xff] }
 0xc42   : > { %6224 = vmatpush3.xpose.msk.msra.mxu0 %vm911_vm2, %v2237_v51  ;;  %6235 = vmatprep.mubr.msk.f32.mxu1 %vm6795_vm0, %v6796_v11  ;;  %v6516_v51 = vpack.c.bf16 %v2597_v50, %v2593_v49 }
 0xc43   : > { %6228 = vmatprep.subr.mxu0 %v6796_v11 }
 0xc45   : > { %6226 = vmatmul.mubr.msk.f32.vlgmr.msra.gmra.mrb[20].mxu0 %vm911_vm2, %v2161_v53  ;;  %v2617_v53 = vld [vmem:[%s8193_s15 + $0x88] sm:$0xff] }
 0xc46   : > { %6230 = vmatprep.mubr.msk.f32.mxu0 %vm6795_vm0, %v6796_v11  ;;  %v6518_v55 = vpack.c.bf16 %v2617_v53, %v2616_v52  ;;  %v2609_v52 = vld [vmem:[%s8193_s15 + $0x48] sm:$0xff] }
 0xd14   : > { %v2312_v7 = vpop.f32.mrb[20].mxu1 }
 0xd15   : > { %v6222_v9 = vpop.f32.mrb[21].mxu1  ;;  %v2313_v10 = vadd.f32 %v5524_v8, %v2312_v7  ;;  %v2619_v7 = vld [vmem:[%s8193_s15 + $0x98] sm:$0xff]  ;;  %v2650_v8 = vld [vmem:[%s8193_s15 + $0x190] sm:$0xff] }
 0xd16   : > { %v2651_v9 = vld [vmem:[%s8193_s15 + $0x198] sm:$0xff] }
 0xd17   : > { %6229 = vmatpush3.msra.mxu0 %v2313_v10 }
 0xd18   : > { %v2388_v60 = vpop.f32.mrb[20].mxu0  ;;  %6503 = vmatprep.subr.bf16.mxu0 %v6502_v30  ;;  %v2636_v30 = vld [vmem:[%s8193_s15 + $0x120] sm:$0xff] }
 0xd19   : > { %v2392_v61 = vmul.f32 0.35355338, %v2388_v60  ;;  %v6227_v62 = vpop.f32.mrb[21].mxu0 }
 0xd1b   : > { %v2393_v63 = vadd.f32 %v6994_v32, %v2392_v61  ;;  %v677_v32 = vld [vmem:[%s8187_s9 + $0x18] sm:$0xff]  ;;  %v5530_v61 = vld [vmem:[%s8189_s11] ss:$0 sm:$0xff] }
 0xd1c   : > { %6234 = vmatpush3.msra.mxu1 %v677_v32 }
 0xd1d   : > { %v2394_v0 = vsel %vm911_vm2, %v2393_v63, -inf }
 0xd1e   : > { %2395 = vmax.xlane.f32.xlu0 %v2394_v0  ;;  %v2600_v0 = vld [vmem:[%s8193_s15] sm:$0xff] }
 0xdab   : > { %v2396_v1 = vpop.xlane.xlu0 %2395 }
 0xdac   : > { %v2397_v2 = vsub.f32 %v2393_v63, %v2396_v1  ;;  %v5531_v63 = vld [vmem:[%s8190_s12] ss:$0 sm:$0xff]  ;;  %v2601_v1 = vld [vmem:[%s8193_s15 + $0x8] sm:$0xff] }
 0xdad   : > { %v6520_v32 = vpack.c.bf16 %v2601_v1, %v2600_v0  ;;  %v2611_v0 = vld [vmem:[%s8193_s15 + $0x58] sm:$0xff] }
 0xdae   : > { %v2398_v4 = vmul.f32 1.442695, %v2397_v2 }
 0xdb0   : > { %6757 = vpow2.f32 %v2398_v4  ;;  %v2632_v4 = vld [vmem:[%s8193_s15 + $0x100] sm:$0xff] }
 0xdba   : > { %v6758_v5 = vpop.eup %6757 }
 0xdbb   : > { %v2400_v6 = vsel %vm911_vm2, %v6758_v5, 0.0 }
 0xdbc   : > { %2401 = vadd.xlane.f32.xlu1 %v2400_v6  ;;  %v2618_v6 = vld [vmem:[%s8193_s15 + $0x90] sm:$0xff] }
 0xe49   : > { %v2402_v12 = vpop.xlane.xlu1 %2401 }
 0xe4a   : > { %6759 = vrcp.f32 %v2402_v12 }
 0xe54   : > { %v6760_v13 = vpop.eup %6759 }
 0xe55   : > { %v2404_v14 = vmul.f32 %v6760_v13, %v6758_v5  ;;  %v2633_v5 = vld [vmem:[%s8193_s15 + $0x108] sm:$0xff]  ;;  %v2602_v13 = vld [vmem:[%s8193_s15 + $0x10] sm:$0xff] }
 0xe56   : > { %v6552_v12 = vpack.c.bf16 %v2633_v5, %v2632_v4  ;;  %v2642_v4 = vld [vmem:[%s8193_s15 + $0x150] sm:$0xff]  ;;  %v2643_v5 = vld [vmem:[%s8193_s15 + $0x158] sm:$0xff] }
 0xe57   : > { %6231 = vmatmul.mubr.msk.f32.vlgmr.msra.gmra.mrb[22].mxu0 %vm911_vm2, %v2404_v14  ;;  %v2603_v14 = vld [vmem:[%s8193_s15 + $0x18] sm:$0xff] }
 0xe58   : > { %2753 = vmatprep.mubr.f32.mxu0 %v6796_v11  ;;  %6505 = vmatpush1.bf16.msra.mxu0 %v6504_v36  ;;  %v2655_v36 = vld [vmem:[%s8193_s15 + $0x1b8] sm:$0xff] }
 0xe59   : > { %6507 = vmatprep.subr.bf16.mxu0 %v6506_v43  ;;  %v2638_v43 = vld [vmem:[%s8193_s15 + $0x130] sm:$0xff] }
 0xe5a   : > { %v6564_v50 = vpack.c.bf16 %v2639_v44, %v2638_v43 }
 0xf2a   : > { %v2474_v15 = vpop.f32.mrb[22].mxu0 }
 0xf2b   : > { %v6232_v17 = vpop.f32.mrb[23].mxu0  ;;  %6236 = vmatmul.mubr.msk.f32.vlgmr.msra.gmra.mrb[22].mxu1 %vm911_vm2, %v2474_v15 }
 0xf2c   : > { %2824 = vmatprep.mubr.f32.mxu1 %v6796_v11  ;;  %v6522_v17 = vpack.c.bf16 %v2619_v7, %v2618_v6  ;;  %v2628_v6 = vld [vmem:[%s8193_s15 + $0xe0] sm:$0xff]  ;;  %v2629_v7 = vld [vmem:[%s8193_s15 + $0xe8] sm:$0xff] }
 0xffe   : > { %v2547_v18 = vpop.f32.mrb[22].mxu1 }
 0xfff   : > { %v2551_v19 = vadd.f32 %v2547_v18, %v2087_v46  ;;  %v6237_v20 = vpop.f32.mrb[23].mxu1  ;;  %v2595_v46 = vld [vmem:[%s8191_s13 + $0x60] sm:$0xff]  ;;  %v6554_v18 = vpack.c.bf16 %v2651_v9, %v2650_v8  ;;  %v2661_v9 = vld [vmem:[%s8193_s15 + $0x1e8] sm:$0xff] }
0x1000   : > { %v6508_v48 = vpack.c.bf16 %v2595_v46, %v2591_v45  ;;  %v2635_v20 = vld [vmem:[%s8193_s15 + $0x118] sm:$0xff]  ;;  %v2624_v45 = vld [vmem:[%s8193_s15 + $0xc0] sm:$0xff]  ;;  %v2625_v46 = vld [vmem:[%s8193_s15 + $0xc8] sm:$0xff] }
0x1001   : > { %v2552_v21 = vadd.f32 %v2551_v19, %v6946_v16  ;;  %v2586_v16 = vld [vmem:[%s8191_s13 + $0x18] sm:$0xff]  ;;  %v2634_v19 = vld [vmem:[%s8193_s15 + $0x110] sm:$0xff]  ;;  %v6534_v53 = vpack.c.bf16 %v2625_v46, %v2624_v45  ;;  %v2660_v8 = vld [vmem:[%s8193_s15 + $0x1e0] sm:$0xff] }
0x1002   : > { %v6510_v35 = vpack.c.bf16 %v2590_v31, %v2586_v16  ;;  %6509 = vmatpush1.bf16.msra.mxu0 %v6508_v48  ;;  %v2637_v31 = vld [vmem:[%s8193_s15 + $0x128] sm:$0xff] }
0x1003   : > { %v2555_v22 = vsel %vm685_vm1, %v2552_v21, 0.0  ;;  %6519 = vmatprep.subr.bf16.mxu0 %v6518_v55  ;;  %v6560_v38 = vpack.c.bf16 %v2637_v31, %v2636_v30  ;;  %v2657_v48 = vld [vmem:[%s8193_s15 + $0x1c8] sm:$0xff]  ;;  %v2640_v55 = vld [vmem:[%s8193_s15 + $0x140] sm:$0xff]  ;;  %v2646_v30 = vld [vmem:[%s8193_s15 + $0x170] sm:$0xff] }
0x1004   : > { %2556 = vadd.xlane.f32.xlu0 %v2555_v22  ;;  %6511 = vmatprep.subr.bf16.mxu1 %v6510_v35  ;;  %v2621_v22 = vld [vmem:[%s8193_s15 + $0xa8] sm:$0xff]  ;;  %v2654_v35 = vld [vmem:[%s8193_s15 + $0x1b0] sm:$0xff]  ;;  %v2647_v31 = vld [vmem:[%s8193_s15 + $0x178] sm:$0xff] }
0x1005   : > { %6513 = vmatpush1.bf16.msra.mxu1 %v6512_v39  ;;  %v2606_v39 = vld [vmem:[%s8193_s15 + $0x30] sm:$0xff]  ;;  %v6562_v42 = vpack.c.bf16 %v2655_v36, %v2654_v35  ;;  %v6580_v33 = vpack.c.bf16 %v2647_v31, %v2646_v30  ;;  %v7521_v35 = vshrl.u32 %v2666_v34, 7  ;;  %v5536_v30 = vld [vmem:[%s8196_s18] ss:$0 sm:$0xff] }
0x1006   : > { %6515 = vmatprep.subr.bf16.mxu1 %v6514_v47  ;;  %v2656_v47 = vld [vmem:[%s8193_s15 + $0x1c0] sm:$0xff]  ;;  %v6532_v49 = vpack.c.bf16 %v2607_v40, %v2606_v39 }
0x1007   : > { %v6566_v54 = vpack.c.bf16 %v2657_v48, %v2656_v47  ;;  %v2668_v36 = vsub.s32 0, %v7521_v35  ;;  %v2672_v39 = vsub.s32 1, %v7521_v35  ;;  %v2680_v40 = vsub.s32 3, %v7521_v35 }
0x1009   : > { %6517 = vmatpush1.bf16.msra.mxu1 %v6516_v51  ;;  %v2608_v51 = vld [vmem:[%s8193_s15 + $0x40] sm:$0xff] }
0x100a   : > { %6551 = vmatprep.subr.bf16.mxu1 %v6550_v57  ;;  %v2626_v57 = vld [vmem:[%s8193_s15 + $0xd0] sm:$0xff] }
0x1091   : > { %v2557_v23 = vpop.xlane.xlu0 %2556 }
0x1092   : > { %v2559_v24 = vmul.f32 0.03125, %v2557_v23  ;;  %v2652_v23 = vld [vmem:[%s8193_s15 + $0x1a0] sm:$0xff] }
0x1094   : > { %v2560_v25 = vsub.f32 %v2552_v21, %v2559_v24  ;;  %v2620_v21 = vld [vmem:[%s8193_s15 + $0xa0] sm:$0xff]  ;;  %v2653_v24 = vld [vmem:[%s8193_s15 + $0x1a8] sm:$0xff] }
0x1095   : > { %v6526_v29 = vpack.c.bf16 %v2621_v22, %v2620_v21  ;;  %v6558_v16 = vpack.c.bf16 %v2653_v24, %v2652_v23  ;;  %v2630_v22 = vld [vmem:[%s8193_s15 + $0xf0] sm:$0xff]  ;;  %v2631_v23 = vld [vmem:[%s8193_s15 + $0xf8] sm:$0xff] }
0x1096   : > { %v2561_v26 = vmul.f32 %v2560_v25, %v2560_v25  ;;  %v2662_v24 = vld [vmem:[%s8193_s15 + $0x1f0] sm:$0xff] }
0x1098   : > { %v2562_v27 = vsel %vm685_vm1, %v2561_v26, 0.0  ;;  %v6556_v26 = vpack.c.bf16 %v2635_v20, %v2634_v19  ;;  %v2645_v20 = vld [vmem:[%s8193_s15 + $0x168] sm:$0xff] }
0x1099   : > { %2563 = vadd.xlane.f32.xlu1 %v2562_v27  ;;  %v2604_v27 = vld [vmem:[%s8193_s15 + $0x20] sm:$0xff] }
0x109a   : > { %v6528_v37 = vpack.c.bf16 %v2605_v28, %v2604_v27  ;;  %v2614_v27 = vld [vmem:[%s8193_s15 + $0x70] sm:$0xff]  ;;  %v2615_v28 = vld [vmem:[%s8193_s15 + $0x78] sm:$0xff] }
0x1126   : > { %v2564_v58 = vpop.xlane.xlu1 %2563 }
0x1127   : > { %v2565_v59 = vmul.f32 0.03125, %v2564_v58  ;;  %v2627_v58 = vld [vmem:[%s8193_s15 + $0xd8] sm:$0xff] }
0x1128   : > { %v6538_v1 = vpack.c.bf16 %v2627_v58, %v2626_v57 }
0x1129   : > { %v2566_v60 = vadd.f32 1e-05, %v2565_v59  ;;  %v2658_v59 = vld [vmem:[%s8193_s15 + $0x1d0] sm:$0xff] }
0x112b   : > { %6761 = vrsqrt.f32 %v2566_v60  ;;  %v2659_v60 = vld [vmem:[%s8193_s15 + $0x1d8] sm:$0xff] }
0x1135   : > { %v6762_v62 = vpop.eup %6761 }
0x1136   : > { %v2568_v2 = vmul.f32 %v6762_v62, %v2560_v25  ;;  %v6524_v25 = vpack.c.bf16 %v2603_v14, %v2602_v13  ;;  %v6568_v62 = vpack.c.bf16 %v2641_v56, %v2640_v55  ;;  %v6574_v13 = vpack.c.bf16 %v2661_v9, %v2660_v8  ;;  %v2612_v14 = vld [vmem:[%s8193_s15 + $0x60] sm:$0xff] }
0x1138   : > { %v2575_v10 = vmul.f32 %v5530_v61, %v2568_v2  ;;  %v6536_v61 = vpack.c.bf16 %v2609_v52, %v2608_v51  ;;  %v6570_v2 = vpack.c.bf16 %v2659_v60, %v2658_v59  ;;  %v5534_v59 = vld [vmem:[%s8194_s16] ss:$0 sm:$0xff] }
0x113a   : > { %v7363_v15 = vadd.f32 %v5531_v63, %v2575_v10  ;;  %v2610_v63 = vld [vmem:[%s8193_s15 + $0x50] sm:$0xff] }
0x113b   : > { %v6540_v10 = vpack.c.bf16 %v2611_v0, %v2610_v63 }
0x113c   : > { %5532 = vmatmul.mubr.msk.f32.vlgmr.msra.gmra.mrb[24].mxu0 %vm685_vm1, %v7363_v15  ;;  %5533 = vmatmul.mubr.msk.f32.vlgmr.msra.gmra.mrb[24].mxu1 %vm685_vm1, %v7363_v15 }
0x113d   : > { %6521 = vmatpush3.bf16.msra.mxu0 %v6520_v32  ;;  %6553 = vmatpush3.bf16.msra.mxu1 %v6552_v12  ;;  %v6572_v32 = vpack.c.bf16 %v2643_v5, %v2642_v4  ;;  %v6542_v12 = vpack.c.bf16 %v2629_v7, %v2628_v6 }
0x113e   : > { %6523 = vmatprep.subr.bf16.mxu0 %v6522_v17  ;;  %6555 = vmatprep.subr.bf16.mxu1 %v6554_v18  ;;  %v2613_v17 = vld [vmem:[%s8193_s15 + $0x68] sm:$0xff]  ;;  %v2644_v18 = vld [vmem:[%s8193_s15 + $0x160] sm:$0xff] }
0x113f   : > { %v6544_v19 = vpack.c.bf16 %v2613_v17, %v2612_v14  ;;  %v6576_v21 = vpack.c.bf16 %v2645_v20, %v2644_v18  ;;  %v5539_v17 = vld [vmem:[%s8205_s24 + $0x90] sm:$0xff]  ;;  %v5540_v18 = vld [vmem:[%s8205_s24 + $0x98] sm:$0xff] }
0x1140   : > { %v5559_v20 = vld [vmem:[%s8183_s5 + $0x90] sm:$0xff] }
0x1141   : > { %6525 = vmatpush3.bf16.msra.mxu0 %v6524_v25  ;;  %6557 = vmatpush3.bf16.msra.mxu1 %v6556_v26  ;;  %v6546_v25 = vpack.c.bf16 %v2631_v23, %v2630_v22  ;;  %v2663_v26 = vld [vmem:[%s8193_s15 + $0x1f8] sm:$0xff] }
0x1142   : > { %6527 = vmatprep.subr.bf16.mxu0 %v6526_v29  ;;  %6559 = vmatprep.subr.bf16.mxu1 %v6558_v16  ;;  %v6578_v29 = vpack.c.bf16 %v2663_v26, %v2662_v24  ;;  %v6548_v16 = vpack.c.bf16 %v2615_v28, %v2614_v27  ;;  %v5535_v27 = vld [vmem:[%s8195_s17] ss:$0 sm:$0xff] }
0x1145   : > { %6529 = vmatpush3.bf16.msra.mxu0 %v6528_v37  ;;  %6561 = vmatpush3.bf16.msra.mxu1 %v6560_v38  ;;  %v2676_v37 = vsub.s32 2, %v7521_v35  ;;  %v2599_v38 = vld [vmem:[%s8192_s14] sm:$0xf] }
0x1146   : > { %6531 = vmatprep.subr.bf16.mxu0 %v6530_v41  ;;  %6563 = vmatprep.subr.bf16.mxu1 %v6562_v42  ;;  %v2669_v41 = vrot.slane %v2599_v38, %v2668_v36  ;;  %v2673_v43 = vrot.slane %v2599_v38, %v2672_v39  ;;  %v2681_v44 = vrot.slane %v2599_v38, %v2680_v40  ;;  %v5731_v35 = vld [vmem:[%s8194_s16 + $0x1] ss:$0 sm:$0xff] }
0x1147   : > { %v2677_v42 = vrot.slane %v2599_v38, %v2676_v37  ;;  %v5579_v38 = vld [vmem:[%s8185_s7 + $0x90] sm:$0xff] }
0x1149   : > { %6533 = vmatpush3.bf16.msra.mxu0 %v6532_v49  ;;  %6565 = vmatpush3.bf16.msra.mxu1 %v6564_v50 }
0x114a   : > { %6535 = vmatprep.subr.bf16.mxu0 %v6534_v53  ;;  %6567 = vmatprep.subr.bf16.mxu1 %v6566_v54 }
0x114d   : > { %6537 = vmatpush3.bf16.msra.mxu0 %v6536_v61  ;;  %6569 = vmatpush3.bf16.msra.mxu1 %v6568_v62 }
0x114e   : > { %6539 = vmatprep.subr.bf16.mxu0 %v6538_v1  ;;  %6571 = vmatprep.subr.bf16.mxu1 %v6570_v2 }
0x1151   : > { %6541 = vmatpush3.bf16.msra.mxu0 %v6540_v10  ;;  %6573 = vmatpush3.bf16.msra.mxu1 %v6572_v32  ;;  %v5537_v10 = vld [vmem:[%s8205_s24 + $0x80] sm:$0xff]  ;;  %v5538_v32 = vld [vmem:[%s8205_s24 + $0x88] sm:$0xff] }
0x1152   : > { %6543 = vmatprep.subr.bf16.mxu0 %v6542_v12  ;;  %6575 = vmatprep.subr.bf16.mxu1 %v6574_v13  ;;  %v6583_v12 = vpack.c.bf16 %v5538_v32, %v5537_v10  ;;  %v5558_v13 = vld [vmem:[%s8183_s5 + $0x88] sm:$0xff]  ;;  %v5543_v10 = vld [vmem:[%s8205_s24 + $0xb0] sm:$0xff]  ;;  %v5544_v32 = vld [vmem:[%s8205_s24 + $0xb8] sm:$0xff] }
0x1155   : > { %6545 = vmatpush3.bf16.msra.mxu0 %v6544_v19  ;;  %6577 = vmatpush3.bf16.msra.mxu1 %v6576_v21  ;;  %v6586_v19 = vpack.c.bf16 %v5540_v18, %v5539_v17  ;;  %v5560_v21 = vld [vmem:[%s8183_s5 + $0x98] sm:$0xff]  ;;  %v5583_v17 = vld [vmem:[%s8185_s7 + $0xb0] sm:$0xff] }
0x1156   : > { %6547 = vmatprep.subr.bf16.mxu0 %v6546_v25  ;;  %6579 = vmatprep.subr.bf16.mxu1 %v6578_v29  ;;  %v6592_v22 = vpack.c.bf16 %v5560_v21, %v5559_v20  ;;  %v5577_v29 = vld [vmem:[%s8185_s7 + $0x80] sm:$0xff]  ;;  %v5584_v18 = vld [vmem:[%s8185_s7 + $0xb8] sm:$0xff]  ;;  %v5562_v21 = vld [vmem:[%s8183_s5 + $0xa8] sm:$0xff] }
0x1157   : > { %v5561_v20 = vld [vmem:[%s8183_s5 + $0xa0] sm:$0xff] }
0x1159   : > { %6549 = vmatpush3.bf16.msra.mxu0 %v6548_v16  ;;  %6581 = vmatpush3.bf16.msra.mxu1 %v6580_v33  ;;  %v5578_v16 = vld [vmem:[%s8185_s7 + $0x88] sm:$0xff] }
0x115a   : > { %6582 = vmatprep.subr.bf16.mxu0 %v6794_v3  ;;  %6588 = vmatprep.subr.bf16.mxu1 %v6794_v3  ;;  %v6595_v33 = vpack.c.bf16 %v5578_v16, %v5577_v29 }
0x120f   : > { %v2755_v45 = vpop.f32.mrb[24].mxu0  ;;  %v2826_v46 = vpop.f32.mrb[24].mxu1 }
0x1210   : > { %v2756_v47 = vadd.f32 %v2755_v45, %v2669_v41  ;;  %v2827_v48 = vadd.f32 %v2826_v46, %v2677_v42  ;;  %v2757_v49 = vpop.f32.mrb[25].mxu0  ;;  %v2828_v50 = vpop.f32.mrb[25].mxu1  ;;  %v5580_v41 = vld [vmem:[%s8185_s7 + $0x98] sm:$0xff]  ;;  %v5602_v46 = vld [vmem:[%s8182_s4 + $0x4] ss:$0 sm:$0xff] }
0x1211   : > { %v2758_v51 = vadd.f32 %v2757_v49, %v2673_v43  ;;  %v2829_v52 = vadd.f32 %v2828_v50, %v2681_v44  ;;  %v6598_v42 = vpack.c.bf16 %v5580_v41, %v5579_v38  ;;  %v5604_v43 = vld [vmem:[%s8184_s6 + $0x4] ss:$0 sm:$0xff]  ;;  %v5615_v38 = vld [vmem:[%s8184_s6 + $0x5] ss:$0 sm:$0xff] }
0x1212   : > { %v2831_v55 = vmax.f32 %v2756_v47, 0.0  ;;  %v2833_v56 = vmax.f32 %v2827_v48, 0.0 }
0x1213   : > { %v2832_v53 = vmax.f32 %v2758_v51, 0.0  ;;  %v2834_v54 = vmax.f32 %v2829_v52, 0.0  ;;  %v5606_v51 = vld [vmem:[%s8186_s8 + $0x4] ss:$0 sm:$0xff] }
0x1215   : > { %2905 = vmatprep.mubr.f32.mxu0 %v2832_v53  ;;  %2975 = vmatprep.mubr.f32.mxu1 %v2834_v54 }
0x1216   : > { %2906 = vmatmul.mubr.f32.vlgmr.msra.gmra.mrb[26].mxu0 %v2831_v55  ;;  %2976 = vmatmul.mubr.f32.vlgmr.msra.gmra.mrb[26].mxu1 %v2833_v56 }
0x1217   : > { %6246 = vmatprep.mubr.msk.f32.mxu0 %vm6795_vm0, %v6796_v11  ;;  %6257 = vmatprep.mubr.msk.f32.mxu1 %vm6795_vm0, %v6796_v11 }
0x1218   : > { %6584 = vmatpush3.bf16.msra.mxu0 %v6583_v12  ;;  %v6604_v12 = vpack.c.bf16 %v5544_v32, %v5543_v10  ;;  %v5588_v10 = vld [vmem:[%s8185_s7 + $0xd8] sm:$0xff] }
0x1219   : > { %6585 = vmatprep.subr.bf16.mxu0 %v6794_v3 }
0x121c   : > { %6587 = vmatpush3.bf16.msra.mxu0 %v6586_v19  ;;  %v6616_v19 = vpack.c.bf16 %v5584_v18, %v5583_v17  ;;  %v5568_v17 = vld [vmem:[%s8183_s5 + $0xd8] sm:$0xff] }
0x121d   : > { %6594 = vmatprep.subr.bf16.mxu0 %v6794_v3 }
0x12e9   : > { %v5854_v57 = vpop.f32.mrb[26].mxu0  ;;  %v5889_v58 = vpop.f32.mrb[26].mxu1 }
0x12ea   : > { %v5855_v60 = vpop.f32.mrb[27].mxu0  ;;  %v5890_v61 = vpop.f32.mrb[27].mxu1 }
0x12eb   : > { %v5856_v62 = vadd.f32 %v5855_v60, %v5854_v57  ;;  %v5891_v63 = vadd.f32 %v5890_v61, %v5889_v58  ;;  %v7626_v58 = vld [vmem:[%s6991_s22] ss:$0 sm:$0xff] }
0x12ed   : > { %v2908_v0 = vadd.f32 %v5856_v62, %v5534_v59 }
0x12ef   : > { %v2978_v1 = vadd.f32 %v5891_v63, %v2908_v0 }
0x12f1   : > { %v2981_v2 = vadd.f32 %v2978_v1, %v7363_v15  ;;  %v5557_v15 = vld [vmem:[%s8183_s5 + $0x80] sm:$0xff] }
0x12f2   : > { %v6589_v14 = vpack.c.bf16 %v5558_v13, %v5557_v15  ;;  %v5581_v15 = vld [vmem:[%s8185_s7 + $0xa0] sm:$0xff]  ;;  %v5582_v13 = vld [vmem:[%s8185_s7 + $0xa8] sm:$0xff] }
0x12f3   : > { %v2984_v4 = vsel %vm685_vm1, %v2981_v2, 0.0 }
0x12f4   : > { %2985 = vadd.xlane.f32.xlu0 %v2984_v4  ;;  %6590 = vmatpush3.bf16.msra.mxu1 %v6589_v14  ;;  %v6613_v14 = vpack.c.bf16 %v5582_v13, %v5581_v15  ;;  %v5566_v15 = vld [vmem:[%s8183_s5 + $0xc8] sm:$0xff] }
0x12f5   : > { %6591 = vmatprep.subr.bf16.mxu1 %v6794_v3 }
0x12f8   : > { %6593 = vmatpush3.bf16.msra.mxu1 %v6592_v22  ;;  %v6607_v22 = vpack.c.bf16 %v5562_v21, %v5561_v20 }
0x12f9   : > { %6271 = vmatprep.subr.mxu1 %v6796_v11 }
0x1381   : > { %v2986_v5 = vpop.xlane.xlu0 %2985 }
0x1382   : > { %v2987_v6 = vmul.f32 0.03125, %v2986_v5  ;;  %v5541_v5 = vld [vmem:[%s8205_s24 + $0xa0] sm:$0xff] }
0x1384   : > { %v2988_v7 = vsub.f32 %v2981_v2, %v2987_v6  ;;  %v5597_v2 = vld [vmem:[%s8187_s9 + $0x20] sm:$0xff]  ;;  %v5542_v6 = vld [vmem:[%s8205_s24 + $0xa8] sm:$0xff] }
0x1386   : > { %v2989_v8 = vmul.f32 %v2988_v7, %v2988_v7 }
0x1388   : > { %v2990_v9 = vsel %vm685_vm1, %v2989_v8, 0.0  ;;  %v6601_v8 = vpack.c.bf16 %v5542_v6, %v5541_v5  ;;  %v5585_v6 = vld [vmem:[%s8185_s7 + $0xc0] sm:$0xff] }
0x1389   : > { %2991 = vadd.xlane.f32.xlu1 %v2990_v9 }
0x1416   : > { %v2992_v23 = vpop.xlane.xlu1 %2991 }
0x1417   : > { %v2993_v24 = vmul.f32 0.03125, %v2992_v23  ;;  %v5563_v23 = vld [vmem:[%s8183_s5 + $0xb0] sm:$0xff] }
0x1419   : > { %v2994_v25 = vadd.f32 1e-05, %v2993_v24  ;;  %v5564_v24 = vld [vmem:[%s8183_s5 + $0xb8] sm:$0xff] }
0x141b   : > { %6763 = vrsqrt.f32 %v2994_v25 }
0x1425   : > { %v6764_v26 = vpop.eup %6763 }
0x1426   : > { %v2996_v28 = vmul.f32 %v6764_v26, %v2988_v7 }
0x1428   : > { %v3003_v31 = vmul.f32 %v5535_v27, %v2996_v28  ;;  %v6610_v27 = vpack.c.bf16 %v5564_v24, %v5563_v23 }
0x142a   : > { %v7588_v34 = vadd.f32 %v5536_v30, %v3003_v31 }
0x142c   : > { %6247 = vmatmul.mubr.msk.f32.vlgmr.msra.gmra.mrb[28].mxu0 %vm685_vm1, %v7588_v34  ;;  %6258 = vmatmul.mubr.msk.f32.vlgmr.msra.gmra.mrb[28].mxu1 %vm685_vm1, %v7588_v34 }
0x142d   : > { %6596 = vmatpush3.bf16.msra.mxu0 %v6595_v33  ;;  %6268 = vmatprep.mubr.msk.f32.mxu0 %vm6795_vm0, %v6796_v11 }
0x142e   : > { %6597 = vmatprep.subr.bf16.mxu0 %v6794_v3  ;;  %6273 = vmatprep.mubr.msk.f32.mxu1 %vm6795_vm0, %v6796_v11 }
0x1431   : > { %6599 = vmatpush3.bf16.msra.mxu0 %v6598_v42  ;;  %v5613_v42 = vld [vmem:[%s8182_s4 + $0x5] ss:$0 sm:$0xff] }
0x1432   : > { %6281 = vmatprep.subr.mxu0 %v6796_v11 }
0x1434   : > { %6269 = vmatmul.mubr.msk.f32.vlgmr.msra.gmra.mrb[30].mxu0 %vm685_vm1, %v7588_v34 }
0x1435   : > { %6283 = vmatprep.mubr.msk.f32.mxu0 %vm6795_vm0, %v6796_v11  ;;  %6282 = vmatpush3.msra.mxu0 %v5597_v2  ;;  %v5547_v2 = vld [vmem:[%s8205_s24 + $0xd0] sm:$0xff] }
0x1436   : > { %6606 = vmatprep.subr.bf16.mxu0 %v6794_v3 }
0x14ff   : > { %v3159_v44 = vpop.f32.mrb[28].mxu0  ;;  %v3235_v45 = vpop.f32.mrb[28].mxu1 }
0x1500   : > { %v3236_v47 = vadd.f32 %v5604_v43, %v3235_v45  ;;  %v6248_v48 = vpop.f32.mrb[29].mxu0  ;;  %v6259_v49 = vpop.f32.mrb[29].mxu1  ;;  %v3160_v50 = vadd.f32 %v5602_v46, %v3159_v44  ;;  %v5617_v45 = vld [vmem:[%s8186_s8 + $0x5] ss:$0 sm:$0xff] }
0x1502   : > { %6272 = vmatpush3.xpose.msk.msra.mxu1 %vm911_vm2, %v3236_v47 }
0x1503   : > { %6276 = vmatprep.subr.mxu1 %v6796_v11 }
0x1505   : > { %6274 = vmatmul.mubr.msk.f32.vlgmr.msra.gmra.mrb[30].mxu1 %vm911_vm2, %v3160_v50 }
0x1506   : > { %6278 = vmatprep.mubr.msk.f32.mxu1 %vm6795_vm0, %v6796_v11 }
0x1507   : > { %v3311_v52 = vpop.f32.mrb[30].mxu0 }
0x1508   : > { %v3312_v53 = vadd.f32 %v5606_v51, %v3311_v52  ;;  %v6270_v54 = vpop.f32.mrb[31].mxu0 }
0x150a   : > { %6277 = vmatpush3.msra.mxu1 %v3312_v53 }
0x150b   : > { %6600 = vmatprep.subr.bf16.mxu1 %v6794_v3 }
0x15d8   : > { %v3387_v55 = vpop.f32.mrb[30].mxu1 }
0x15d9   : > { %v3391_v56 = vmul.f32 0.35355338, %v3387_v55  ;;  %v6275_v57 = vpop.f32.mrb[31].mxu1 }
0x15db   : > { %v3392_v59 = vadd.f32 %v7626_v58, %v3391_v56 }
0x15dd   : > { %v3393_v60 = vsel %vm911_vm2, %v3392_v59, -inf }
0x15de   : > { %3394 = vmax.xlane.f32.xlu0 %v3393_v60 }
0x166b   : > { %v3395_v61 = vpop.xlane.xlu0 %3394 }
0x166c   : > { %v3396_v62 = vsub.f32 %v3392_v59, %v3395_v61  ;;  %v5598_v59 = vld [vmem:[%s8187_s9 + $0x28] sm:$0xff]  ;;  %v5545_v61 = vld [vmem:[%s8205_s24 + $0xc0] sm:$0xff] }
0x166e   : > { %v3397_v63 = vmul.f32 1.442695, %v3396_v62  ;;  %v5546_v62 = vld [vmem:[%s8205_s24 + $0xc8] sm:$0xff] }
0x1670   : > { %6765 = vpow2.f32 %v3397_v63 }
0x167a   : > { %v6766_v0 = vpop.eup %6765 }
0x167b   : > { %v3399_v1 = vsel %vm911_vm2, %v6766_v0, 0.0 }
0x167c   : > { %3400 = vadd.xlane.f32.xlu1 %v3399_v1 }
0x1709   : > { %v3401_v4 = vpop.xlane.xlu1 %3400 }
0x170a   : > { %6767 = vrcp.f32 %v3401_v4  ;;  %v5548_v4 = vld [vmem:[%s8205_s24 + $0xd8] sm:$0xff] }
0x170b   : > { %v6622_v5 = vpack.c.bf16 %v5548_v4, %v5547_v2  ;;  %v5590_v2 = vld [vmem:[%s8185_s7 + $0xe8] sm:$0xff] }
0x1714   : > { %v6768_v7 = vpop.eup %6767 }
0x1715   : > { %v3403_v9 = vmul.f32 %v6768_v7, %v6766_v0  ;;  %v6619_v0 = vpack.c.bf16 %v5546_v62, %v5545_v61  ;;  %v5586_v7 = vld [vmem:[%s8185_s7 + $0xc8] sm:$0xff]  ;;  %v5551_v62 = vld [vmem:[%s8205_s24 + $0xf0] sm:$0xff] }
0x1717   : > { %6279 = vmatmul.mubr.msk.f32.vlgmr.msra.gmra.mrb[32].mxu1 %vm911_vm2, %v3403_v9  ;;  %v5587_v9 = vld [vmem:[%s8185_s7 + $0xd0] sm:$0xff] }
0x1718   : > { %6602 = vmatpush3.bf16.msra.mxu1 %v6601_v8  ;;  %6294 = vmatprep.mubr.msk.f32.mxu1 %vm6795_vm0, %v6796_v11  ;;  %v6631_v8 = vpack.c.bf16 %v5586_v7, %v5585_v6  ;;  %v6634_v32 = vpack.c.bf16 %v5588_v10, %v5587_v9  ;;  %v5592_v6 = vld [vmem:[%s8185_s7 + $0xf8] sm:$0xff]  ;;  %v5570_v9 = vld [vmem:[%s8183_s5 + $0xe8] sm:$0xff] }
0x1719   : > { %6603 = vmatprep.subr.bf16.mxu1 %v6794_v3 }
0x171c   : > { %6605 = vmatpush3.bf16.msra.mxu1 %v6604_v12  ;;  %v5565_v12 = vld [vmem:[%s8183_s5 + $0xc0] sm:$0xff] }
0x171d   : > { %6612 = vmatprep.subr.bf16.mxu1 %v6794_v3  ;;  %v6625_v13 = vpack.c.bf16 %v5566_v15, %v5565_v12  ;;  %v5572_v12 = vld [vmem:[%s8183_s5 + $0xf8] sm:$0xff] }
0x171f   : > { %6295 = vmatmul.mubr.msk.f32.vlgmr.msra.gmra.mrb[34].mxu1 %vm685_vm1, %v7588_v34 }
0x1720   : > { %6614 = vmatpush3.bf16.msra.mxu1 %v6613_v14  ;;  %6316 = vmatprep.mubr.msk.f32.mxu1 %vm6795_vm0, %v6796_v11  ;;  %v5567_v14 = vld [vmem:[%s8183_s5 + $0xd0] sm:$0xff] }
0x1721   : > { %6615 = vmatprep.subr.bf16.mxu1 %v6794_v3  ;;  %v6628_v20 = vpack.c.bf16 %v5568_v17, %v5567_v14 }
0x1724   : > { %6617 = vmatpush3.bf16.msra.mxu1 %v6616_v19 }
0x1725   : > { %6329 = vmatprep.subr.mxu1 %v6796_v11 }
0x1727   : > { %6317 = vmatmul.mubr.msk.f32.vlgmr.msra.gmra.mrb[36].mxu1 %vm685_vm1, %v7588_v34 }
0x1728   : > { %6331 = vmatprep.mubr.msk.f32.mxu1 %vm6795_vm0, %v6796_v11  ;;  %6330 = vmatpush3.msra.mxu1 %v5598_v59 }
0x1729   : > { %6624 = vmatprep.subr.bf16.mxu1 %v6794_v3 }
0x17ea   : > { %v3473_v25 = vpop.f32.mrb[32].mxu1 }
0x17eb   : > { %v6280_v26 = vpop.f32.mrb[33].mxu1  ;;  %6284 = vmatmul.mubr.msk.f32.vlgmr.msra.gmra.mrb[32].mxu0 %vm911_vm2, %v3473_v25  ;;  %v5612_v25 = vld [vmem:[%s8188_s10 + $0x1] ss:$0 sm:$0xff] }
0x17ec   : > { %6608 = vmatpush3.bf16.msra.mxu0 %v6607_v22  ;;  %6305 = vmatprep.mubr.msk.f32.mxu0 %vm6795_vm0, %v6796_v11 }
0x17ed   : > { %6609 = vmatprep.subr.bf16.mxu0 %v6794_v3 }
0x17f0   : > { %6611 = vmatpush3.bf16.msra.mxu0 %v6610_v27 }
0x17f1   : > { %6319 = vmatprep.subr.mxu0 %v6796_v11 }
0x17f2   : > { %v3629_v28 = vpop.f32.mrb[34].mxu1 }
0x17f3   : > { %v6296_v29 = vpop.f32.mrb[35].mxu1  ;;  %6306 = vmatmul.mubr.msk.f32.vlgmr.msra.gmra.mrb[34].mxu0 %vm685_vm1, %v7588_v34  ;;  %v3630_v46 = vadd.f32 %v5613_v42, %v3629_v28  ;;  %v5627_v42 = vld [vmem:[%s8186_s8 + $0x6] ss:$0 sm:$0xff] }
0x17f4   : > { %6321 = vmatprep.mubr.msk.f32.mxu0 %vm6795_vm0, %v6796_v11 }
0x17fa   : > { %v3781_v16 = vpop.f32.mrb[36].mxu1 }
0x17fb   : > { %v6318_v30 = vpop.f32.mrb[37].mxu1  ;;  %v3782_v47 = vadd.f32 %v5617_v45, %v3781_v16  ;;  %v5625_v16 = vld [vmem:[%s8184_s6 + $0x6] ss:$0 sm:$0xff] }
0x18be   : > { %v7695_v31 = vpop.f32.mrb[32].mxu0 }
0x18bf   : > { %v6285_v33 = vpop.f32.mrb[33].mxu0  ;;  %v3556_v26 = vadd.f32 %v5612_v25, %v7695_v31  ;;  %v5633_v25 = vld [vmem:[%s8182_s4 + $0x7] ss:$0 sm:$0xff] }
0x18c0   : > { %v5623_v33 = vld [vmem:[%s8182_s4 + $0x6] ss:$0 sm:$0xff] }
0x18c6   : > { %v3705_v41 = vpop.f32.mrb[34].mxu0 }
0x18c7   : > { %v3706_v43 = vadd.f32 %v5615_v38, %v3705_v41  ;;  %v6307_v44 = vpop.f32.mrb[35].mxu0 }
0x18c9   : > { %6320 = vmatpush3.xpose.msk.msra.mxu0 %vm911_vm2, %v3706_v43 }
0x18ca   : > { %6324 = vmatprep.subr.mxu0 %v6796_v11 }
0x18cc   : > { %6322 = vmatmul.mubr.msk.f32.vlgmr.msra.gmra.mrb[36].mxu0 %vm911_vm2, %v3630_v46 }
0x18cd   : > { %6325 = vmatpush3.msra.mxu0 %v3782_v47  ;;  %6326 = vmatprep.mubr.msk.f32.mxu0 %vm6795_vm0, %v6796_v11 }
0x18ce   : > { %6618 = vmatprep.subr.bf16.mxu0 %v6794_v3 }
0x199f   : > { %v3857_v48 = vpop.f32.mrb[36].mxu0 }
0x19a0   : > { %v3861_v49 = vmul.f32 0.35355338, %v3857_v48  ;;  %v6323_v50 = vpop.f32.mrb[37].mxu0 }
0x19a2   : > { %v3862_v51 = vadd.f32 %v7626_v58, %v3861_v49 }
0x19a4   : > { %v3863_v52 = vsel %vm911_vm2, %v3862_v51, -inf }
0x19a5   : > { %3864 = vmax.xlane.f32.xlu0 %v3863_v52 }
0x1a32   : > { %v3865_v53 = vpop.xlane.xlu0 %3864 }
0x1a33   : > { %v3866_v54 = vsub.f32 %v3862_v51, %v3865_v53 }
0x1a35   : > { %v3867_v55 = vmul.f32 1.442695, %v3866_v54  ;;  %v5599_v54 = vld [vmem:[%s8187_s9 + $0x30] sm:$0xff] }
0x1a37   : > { %6769 = vpow2.f32 %v3867_v55 }
0x1a41   : > { %v6770_v56 = vpop.eup %6769 }
0x1a42   : > { %v3869_v57 = vsel %vm911_vm2, %v6770_v56, 0.0 }
0x1a43   : > { %3870 = vadd.xlane.f32.xlu1 %v3869_v57  ;;  %v5550_v57 = vld [vmem:[%s8205_s24 + $0xe8] sm:$0xff] }
0x1ad0   : > { %v3871_v60 = vpop.xlane.xlu1 %3870 }
0x1ad1   : > { %6771 = vrcp.f32 %v3871_v60 }
0x1adb   : > { %v6772_v63 = vpop.eup %6771 }
0x1adc   : > { %v3873_v1 = vmul.f32 %v6772_v63, %v6770_v56  ;;  %v5549_v56 = vld [vmem:[%s8205_s24 + $0xe0] sm:$0xff]  ;;  %v5552_v63 = vld [vmem:[%s8205_s24 + $0xf8] sm:$0xff] }
0x1add   : > { %v6637_v60 = vpack.c.bf16 %v5550_v57, %v5549_v56 }
0x1ade   : > { %6327 = vmatmul.mubr.msk.f32.vlgmr.msra.gmra.mrb[38].mxu0 %vm911_vm2, %v3873_v1  ;;  %v5589_v1 = vld [vmem:[%s8185_s7 + $0xe0] sm:$0xff] }
0x1adf   : > { %6620 = vmatpush3.bf16.msra.mxu0 %v6619_v0  ;;  %6342 = vmatprep.mubr.msk.f32.mxu0 %vm6795_vm0, %v6796_v11  ;;  %v6640_v0 = vpack.c.bf16 %v5552_v63, %v5551_v62  ;;  %v6649_v4 = vpack.c.bf16 %v5590_v2, %v5589_v1  ;;  %v5648_v63 = vld [vmem:[%s8191_s13 + $0x88] sm:$0xff]  ;;  %v5654_v1 = vld [vmem:[%s8191_s13 + $0xb8] sm:$0xff]  ;;  %v5647_v2 = vld [vmem:[%s8191_s13 + $0x80] sm:$0xff] }
0x1ae0   : > { %6621 = vmatprep.subr.bf16.mxu0 %v6794_v3 }
0x1ae3   : > { %6623 = vmatpush3.bf16.msra.mxu0 %v6622_v5  ;;  %v5591_v5 = vld [vmem:[%s8185_s7 + $0xf0] sm:$0xff] }
0x1ae4   : > { %6630 = vmatprep.subr.bf16.mxu0 %v6794_v3  ;;  %v6652_v7 = vpack.c.bf16 %v5592_v6, %v5591_v5 }
0x1ae6   : > { %6343 = vmatmul.mubr.msk.f32.vlgmr.msra.gmra.mrb[40].mxu0 %vm685_vm1, %v7588_v34 }
0x1ae7   : > { %6632 = vmatpush3.bf16.msra.mxu0 %v6631_v8  ;;  %6364 = vmatprep.mubr.msk.f32.mxu0 %vm6795_vm0, %v6796_v11  ;;  %v5569_v8 = vld [vmem:[%s8183_s5 + $0xe0] sm:$0xff] }
0x1ae8   : > { %6633 = vmatprep.subr.bf16.mxu0 %v6794_v3  ;;  %v6643_v10 = vpack.c.bf16 %v5570_v9, %v5569_v8  ;;  %v5653_v8 = vld [vmem:[%s8191_s13 + $0xb0] sm:$0xff] }
0x1aeb   : > { %6635 = vmatpush3.bf16.msra.mxu0 %v6634_v32  ;;  %v5571_v32 = vld [vmem:[%s8183_s5 + $0xf0] sm:$0xff] }
0x1aec   : > { %6377 = vmatprep.subr.mxu0 %v6796_v11  ;;  %v6646_v14 = vpack.c.bf16 %v5572_v12, %v5571_v32  ;;  %v5660_v32 = vld [vmem:[%s8191_s13 + $0xe8] sm:$0xff]  ;;  %v5658_v12 = vld [vmem:[%s8191_s13 + $0xd8] sm:$0xff] }
0x1aee   : > { %6365 = vmatmul.mubr.msk.f32.vlgmr.msra.gmra.mrb[42].mxu0 %vm685_vm1, %v7588_v34 }
0x1aef   : > { %6379 = vmatprep.mubr.msk.f32.mxu0 %vm6795_vm0, %v6796_v11  ;;  %6378 = vmatpush3.msra.mxu0 %v5599_v54 }
0x1af0   : > { %6642 = vmatprep.subr.bf16.mxu0 %v6794_v3 }
0x1bb1   : > { %v3943_v18 = vpop.f32.mrb[38].mxu0 }
0x1bb2   : > { %v6328_v19 = vpop.f32.mrb[39].mxu0  ;;  %6332 = vmatmul.mubr.msk.f32.vlgmr.msra.gmra.mrb[38].mxu1 %vm911_vm2, %v3943_v18 }
0x1bb3   : > { %6626 = vmatpush3.bf16.msra.mxu1 %v6625_v13  ;;  %6353 = vmatprep.mubr.msk.f32.mxu1 %vm6795_vm0, %v6796_v11 }
0x1bb4   : > { %6627 = vmatprep.subr.bf16.mxu1 %v6794_v3 }
0x1bb7   : > { %6629 = vmatpush3.bf16.msra.mxu1 %v6628_v20 }
0x1bb8   : > { %6367 = vmatprep.subr.mxu1 %v6796_v11 }
0x1bb9   : > { %v4093_v21 = vpop.f32.mrb[40].mxu0 }
0x1bba   : > { %v6344_v22 = vpop.f32.mrb[41].mxu0  ;;  %6354 = vmatmul.mubr.msk.f32.vlgmr.msra.gmra.mrb[40].mxu1 %vm685_vm1, %v7588_v34  ;;  %v4094_v31 = vadd.f32 %v5623_v33, %v4093_v21 }
0x1bbb   : > { %6369 = vmatprep.mubr.msk.f32.mxu1 %vm6795_vm0, %v6796_v11 }
0x1bc1   : > { %v4245_v23 = vpop.f32.mrb[42].mxu0 }
0x1bc2   : > { %v6366_v24 = vpop.f32.mrb[43].mxu0  ;;  %v4246_v43 = vadd.f32 %v5627_v42, %v4245_v23 }
0x1c85   : > { %v4016_v27 = vpop.f32.mrb[38].mxu1 }
0x1c86   : > { %v7783_v28 = vadd.f32 %v4016_v27, %v3556_v26  ;;  %v6333_v29 = vpop.f32.mrb[39].mxu1 }
0x1c87   : > { %v5637_v29 = vld [vmem:[%s8186_s8 + $0x7] ss:$0 sm:$0xff] }
0x1c8d   : > { %v4169_v30 = vpop.f32.mrb[40].mxu1 }
0x1c8e   : > { %v4170_v38 = vadd.f32 %v5625_v16, %v4169_v30  ;;  %v6355_v41 = vpop.f32.mrb[41].mxu1 }
0x1c90   : > { %6368 = vmatpush3.xpose.msk.msra.mxu1 %vm911_vm2, %v4170_v38 }
0x1c91   : > { %6372 = vmatprep.subr.mxu1 %v6796_v11 }
0x1c93   : > { %6370 = vmatmul.mubr.msk.f32.vlgmr.msra.gmra.mrb[42].mxu1 %vm911_vm2, %v4094_v31 }
0x1c94   : > { %6373 = vmatpush3.msra.mxu1 %v4246_v43  ;;  %6374 = vmatprep.mubr.msk.f32.mxu1 %vm6795_vm0, %v6796_v11 }
0x1c95   : > { %6636 = vmatprep.subr.bf16.mxu1 %v6794_v3 }
0x1d66   : > { %v4321_v44 = vpop.f32.mrb[42].mxu1 }
0x1d67   : > { %v4325_v45 = vmul.f32 0.35355338, %v4321_v44  ;;  %v6371_v46 = vpop.f32.mrb[43].mxu1 }
0x1d69   : > { %v4326_v47 = vadd.f32 %v7626_v58, %v4325_v45 }
0x1d6b   : > { %v4327_v48 = vsel %vm911_vm2, %v4326_v47, -inf }
0x1d6c   : > { %4328 = vmax.xlane.f32.xlu0 %v4327_v48 }
0x1df9   : > { %v4329_v49 = vpop.xlane.xlu0 %4328 }
0x1dfa   : > { %v4330_v50 = vsub.f32 %v4326_v47, %v4329_v49  ;;  %v5600_v47 = vld [vmem:[%s8187_s9 + $0x38] sm:$0xff] }
0x1dfc   : > { %v4331_v51 = vmul.f32 1.442695, %v4330_v50 }
0x1dfe   : > { %6773 = vpow2.f32 %v4331_v51 }
0x1e08   : > { %v6774_v52 = vpop.eup %6773 }
0x1e09   : > { %v4333_v53 = vsel %vm911_vm2, %v6774_v52, 0.0 }
0x1e0a   : > { %4334 = vadd.xlane.f32.xlu1 %v4333_v53 }
0x1e97   : > { %v4335_v55 = vpop.xlane.xlu1 %4334 }
0x1e98   : > { %6775 = vrcp.f32 %v4335_v55 }
0x1ea2   : > { %v6776_v59 = vpop.eup %6775 }
0x1ea3   : > { %v4337_v61 = vmul.f32 %v6776_v59, %v6774_v52 }
0x1ea5   : > { %6375 = vmatmul.mubr.msk.f32.vlgmr.msra.gmra.mrb[44].mxu1 %vm911_vm2, %v4337_v61 }
0x1ea6   : > { %6638 = vmatpush3.bf16.msra.mxu1 %v6637_v60  ;;  %6390 = vmatprep.mubr.msk.f32.mxu1 %vm6795_vm0, %v6796_v11 }
0x1ea7   : > { %6639 = vmatprep.subr.bf16.mxu1 %v6794_v3 }
0x1eaa   : > { %6641 = vmatpush3.bf16.msra.mxu1 %v6640_v0 }
0x1eab   : > { %6648 = vmatprep.subr.bf16.mxu1 %v6794_v3 }
0x1ead   : > { %6391 = vmatmul.mubr.msk.f32.vlgmr.msra.gmra.mrb[46].mxu1 %vm685_vm1, %v7588_v34 }
0x1eae   : > { %6650 = vmatpush3.bf16.msra.mxu1 %v6649_v4  ;;  %6412 = vmatprep.mubr.msk.f32.mxu1 %vm6795_vm0, %v6796_v11  ;;  %v5651_v4 = vld [vmem:[%s8191_s13 + $0xa0] sm:$0xff] }
0x1eaf   : > { %6651 = vmatprep.subr.bf16.mxu1 %v6794_v3  ;;  %v6656_v6 = vpack.c.bf16 %v5651_v4, %v5647_v2  ;;  %v5700_v4 = vld [vmem:[%s8193_s15 + $0x320] sm:$0xff] }
0x1eb2   : > { %6653 = vmatpush3.bf16.msra.mxu1 %v6652_v7  ;;  %v5649_v7 = vld [vmem:[%s8191_s13 + $0x90] sm:$0xff] }
0x1eb3   : > { %6425 = vmatprep.subr.mxu1 %v6796_v11  ;;  %v6664_v9 = vpack.c.bf16 %v5653_v8, %v5649_v7  ;;  %v5687_v7 = vld [vmem:[%s8193_s15 + $0x2b8] sm:$0xff]  ;;  %v5718_v8 = vld [vmem:[%s8193_s15 + $0x3b0] sm:$0xff] }
0x1eb5   : > { %6413 = vmatmul.mubr.msk.f32.vlgmr.msra.gmra.mrb[48].mxu1 %vm685_vm1, %v7588_v34 }
0x1eb6   : > { %6427 = vmatprep.mubr.msk.f32.mxu1 %vm6795_vm0, %v6796_v11  ;;  %6426 = vmatpush3.msra.mxu1 %v5600_v47  ;;  %v5714_v47 = vld [vmem:[%s8193_s15 + $0x390] sm:$0xff] }
0x1f78   : > { %v4407_v15 = vpop.f32.mrb[44].mxu1 }
0x1f79   : > { %v6376_v13 = vpop.f32.mrb[45].mxu1  ;;  %6380 = vmatmul.mubr.msk.f32.vlgmr.msra.gmra.mrb[44].mxu0 %vm911_vm2, %v4407_v15 }
0x1f7a   : > { %6644 = vmatpush3.bf16.msra.mxu0 %v6643_v10  ;;  %6401 = vmatprep.mubr.msk.f32.mxu0 %vm6795_vm0, %v6796_v11  ;;  %v5656_v10 = vld [vmem:[%s8191_s13 + $0xc8] sm:$0xff]  ;;  %v5662_v13 = vld [vmem:[%s8191_s13 + $0xf8] sm:$0xff] }
0x1f7b   : > { %6645 = vmatprep.subr.bf16.mxu0 %v6794_v3  ;;  %v5635_v3 = vld [vmem:[%s8184_s6 + $0x7] ss:$0 sm:$0xff]  ;;  %v6658_v15 = vpack.c.bf16 %v5660_v32, %v5656_v10 }
0x1f7e   : > { %6647 = vmatpush3.bf16.msra.mxu0 %v6646_v14  ;;  %v5655_v14 = vld [vmem:[%s8191_s13 + $0xc0] sm:$0xff] }
0x1f7f   : > { %6415 = vmatprep.subr.mxu0 %v6796_v11 }
0x1f80   : > { %v4557_v17 = vpop.f32.mrb[46].mxu1 }
0x1f81   : > { %v6392_v18 = vpop.f32.mrb[47].mxu1  ;;  %6402 = vmatmul.mubr.msk.f32.vlgmr.msra.gmra.mrb[46].mxu0 %vm685_vm1, %v7588_v34  ;;  %v4558_v16 = vadd.f32 %v5633_v25, %v4557_v17  ;;  %v5659_v17 = vld [vmem:[%s8191_s13 + $0xe0] sm:$0xff] }
0x1f82   : > { %6417 = vmatprep.mubr.msk.f32.mxu0 %vm6795_vm0, %v6796_v11  ;;  %v6666_v18 = vpack.c.bf16 %v5662_v13, %v5658_v12  ;;  %v5670_v12 = vld [vmem:[%s8193_s15 + $0x230] sm:$0xff] }
0x1f88   : > { %v4709_v19 = vpop.f32.mrb[48].mxu1 }
0x1f89   : > { %v6414_v20 = vpop.f32.mrb[49].mxu1 }
0x1f8a   : > { %v5657_v20 = vld [vmem:[%s8191_s13 + $0xd0] sm:$0xff] }
0x204c   : > { %v4480_v21 = vpop.f32.mrb[44].mxu0 }
0x204d   : > { %v4484_v22 = vadd.f32 %v4480_v21, %v7783_v28  ;;  %v6381_v23 = vpop.f32.mrb[45].mxu0  ;;  %v4710_v28 = vadd.f32 %v5637_v29, %v4709_v19  ;;  %v6660_v19 = vpack.c.bf16 %v5659_v17, %v5655_v14  ;;  %v5661_v21 = vld [vmem:[%s8191_s13 + $0xf0] sm:$0xff] }
0x204e   : > { %v5680_v23 = vld [vmem:[%s8193_s15 + $0x280] sm:$0xff]  ;;  %v5702_v17 = vld [vmem:[%s8193_s15 + $0x330] sm:$0xff] }
0x2054   : > { %v4633_v24 = vpop.f32.mrb[46].mxu0 }
0x2055   : > { %v4634_v26 = vadd.f32 %v5635_v3, %v4633_v24  ;;  %v6403_v27 = vpop.f32.mrb[47].mxu0  ;;  %v5681_v3 = vld [vmem:[%s8193_s15 + $0x288] sm:$0xff]  ;;  %v5712_v24 = vld [vmem:[%s8193_s15 + $0x380] sm:$0xff] }
0x2056   : > { %v6670_v25 = vpack.c.bf16 %v5681_v3, %v5680_v23 }
0x2057   : > { %6416 = vmatpush3.xpose.msk.msra.mxu0 %vm911_vm2, %v4634_v26  ;;  %v5713_v26 = vld [vmem:[%s8193_s15 + $0x388] sm:$0xff] }
0x2058   : > { %6420 = vmatprep.subr.mxu0 %v6796_v11  ;;  %v6702_v27 = vpack.c.bf16 %v5713_v26, %v5712_v24  ;;  %v5672_v24 = vld [vmem:[%s8193_s15 + $0x240] sm:$0xff] }
0x205a   : > { %6418 = vmatmul.mubr.msk.f32.vlgmr.msra.gmra.mrb[48].mxu0 %vm911_vm2, %v4558_v16 }
0x205b   : > { %6421 = vmatpush3.msra.mxu0 %v4710_v28  ;;  %6422 = vmatprep.mubr.msk.f32.mxu0 %vm6795_vm0, %v6796_v11 }
0x212d   : > { %v4785_v30 = vpop.f32.mrb[48].mxu0 }
0x212e   : > { %v4789_v33 = vmul.f32 0.35355338, %v4785_v30  ;;  %v6419_v38 = vpop.f32.mrb[49].mxu0  ;;  %v5645_v30 = vld [vmem:[%s8189_s11 + $0x1] ss:$0 sm:$0xff] }
0x212f   : > { %v5646_v38 = vld [vmem:[%s8190_s12 + $0x1] ss:$0 sm:$0xff] }
0x2130   : > { %v4790_v41 = vadd.f32 %v7626_v58, %v4789_v33 }
0x2132   : > { %v4791_v42 = vsel %vm911_vm2, %v4790_v41, -inf }
0x2133   : > { %4792 = vmax.xlane.f32.xlu0 %v4791_v42  ;;  %v5665_v42 = vld [vmem:[%s8193_s15 + $0x208] sm:$0xff] }
0x21c0   : > { %v4793_v31 = vpop.xlane.xlu0 %4792 }
0x21c1   : > { %v4794_v43 = vsub.f32 %v4790_v41, %v4793_v31  ;;  %v5664_v41 = vld [vmem:[%s8193_s15 + $0x200] sm:$0xff] }
0x21c3   : > { %v4795_v44 = vmul.f32 1.442695, %v4794_v43  ;;  %v5696_v43 = vld [vmem:[%s8193_s15 + $0x300] sm:$0xff] }
0x21c5   : > { %6777 = vpow2.f32 %v4795_v44  ;;  %v5697_v44 = vld [vmem:[%s8193_s15 + $0x308] sm:$0xff] }
0x21cf   : > { %v6778_v45 = vpop.eup %6777 }
0x21d0   : > { %v4797_v46 = vsel %vm911_vm2, %v6778_v45, 0.0 }
0x21d1   : > { %4798 = vadd.xlane.f32.xlu1 %v4797_v46  ;;  %v5683_v46 = vld [vmem:[%s8193_s15 + $0x298] sm:$0xff] }
0x225e   : > { %v4799_v48 = vpop.xlane.xlu1 %4798 }
0x225f   : > { %6779 = vrcp.f32 %v4799_v48  ;;  %v5715_v48 = vld [vmem:[%s8193_s15 + $0x398] sm:$0xff] }
0x2269   : > { %v6780_v49 = vpop.eup %6779 }
0x226a   : > { %v4801_v58 = vmul.f32 %v6780_v49, %v6778_v45  ;;  %v5682_v45 = vld [vmem:[%s8193_s15 + $0x290] sm:$0xff] }
0x226c   : > { %6423 = vmatmul.mubr.msk.f32.vlgmr.msra.gmra.mrb[50].mxu0 %vm911_vm2, %v4801_v58  ;;  %v6672_v58 = vpack.c.bf16 %v5665_v42, %v5664_v41 }
0x226d   : > { %5155 = vmatprep.mubr.f32.mxu0 %v6796_v11 }
0x233f   : > { %v4871_v50 = vpop.f32.mrb[50].mxu0 }
0x2340   : > { %v6424_v51 = vpop.f32.mrb[51].mxu0  ;;  %6428 = vmatmul.mubr.msk.f32.vlgmr.msra.gmra.mrb[50].mxu1 %vm911_vm2, %v4871_v50  ;;  %v6704_v50 = vpack.c.bf16 %v5697_v44, %v5696_v43  ;;  %v5675_v43 = vld [vmem:[%s8193_s15 + $0x258] sm:$0xff] }
0x2341   : > { %5226 = vmatprep.mubr.f32.mxu1 %v6796_v11  ;;  %v5652_v11 = vld [vmem:[%s8191_s13 + $0xa8] sm:$0xff]  ;;  %v5666_v51 = vld [vmem:[%s8193_s15 + $0x210] sm:$0xff] }
0x2342   : > { %v6654_v0 = vpack.c.bf16 %v5652_v11, %v5648_v63 }
0x2344   : > { %6655 = vmatprep.subr.bf16.mxu0 %v6654_v0  ;;  %v5669_v0 = vld [vmem:[%s8193_s15 + $0x228] sm:$0xff] }
0x2345   : > { %6657 = vmatpush1.bf16.msra.mxu0 %v6656_v6  ;;  %v5686_v6 = vld [vmem:[%s8193_s15 + $0x2b0] sm:$0xff] }
0x2346   : > { %6659 = vmatprep.subr.bf16.mxu0 %v6658_v15  ;;  %v5671_v15 = vld [vmem:[%s8193_s15 + $0x238] sm:$0xff]  ;;  %v6682_v13 = vpack.c.bf16 %v5687_v7, %v5686_v6  ;;  %v5710_v7 = vld [vmem:[%s8193_s15 + $0x370] sm:$0xff] }
0x2347   : > { %v6684_v23 = vpack.c.bf16 %v5671_v15, %v5670_v12 }
0x2349   : > { %6661 = vmatpush1.bf16.msra.mxu0 %v6660_v19  ;;  %v5688_v19 = vld [vmem:[%s8193_s15 + $0x2c0] sm:$0xff] }
0x234a   : > { %6671 = vmatprep.subr.bf16.mxu0 %v6670_v25  ;;  %v5673_v25 = vld [vmem:[%s8193_s15 + $0x248] sm:$0xff] }
0x234b   : > { %v6688_v41 = vpack.c.bf16 %v5673_v25, %v5672_v24 }
0x2413   : > { %v4944_v52 = vpop.f32.mrb[50].mxu1 }
0x2414   : > { %v4948_v53 = vadd.f32 %v4944_v52, %v4484_v22  ;;  %v6429_v54 = vpop.f32.mrb[51].mxu1  ;;  %v6668_v22 = vpack.c.bf16 %v5661_v21, %v5657_v20  ;;  %v5667_v52 = vld [vmem:[%s8193_s15 + $0x218] sm:$0xff]  ;;  %v5689_v20 = vld [vmem:[%s8193_s15 + $0x2c8] sm:$0xff]  ;;  %v5720_v21 = vld [vmem:[%s8193_s15 + $0x3c0] sm:$0xff] }
0x2415   : > { %v6674_v54 = vpack.c.bf16 %v5683_v46, %v5682_v45  ;;  %v6676_v63 = vpack.c.bf16 %v5667_v52, %v5666_v51  ;;  %v6686_v26 = vpack.c.bf16 %v5689_v20, %v5688_v19  ;;  %v5706_v46 = vld [vmem:[%s8193_s15 + $0x350] sm:$0xff] }
0x2416   : > { %v4949_v55 = vadd.f32 %v4948_v53, %v7588_v34  ;;  %v5650_v34 = vld [vmem:[%s8191_s13 + $0x98] sm:$0xff] }
0x2417   : > { %v6662_v5 = vpack.c.bf16 %v5654_v1, %v5650_v34  ;;  %v5668_v34 = vld [vmem:[%s8193_s15 + $0x220] sm:$0xff] }
0x2418   : > { %v4954_v56 = vsel %vm685_vm1, %v4949_v55, 0.0  ;;  %v6680_v10 = vpack.c.bf16 %v5669_v0, %v5668_v34  ;;  %v5726_v34 = vld [vmem:[%s8193_s15 + $0x3f0] sm:$0xff] }
0x2419   : > { %4955 = vadd.xlane.f32.xlu0 %v4954_v56  ;;  %6663 = vmatprep.subr.bf16.mxu1 %v6662_v5  ;;  %v5698_v56 = vld [vmem:[%s8193_s15 + $0x310] sm:$0xff]  ;;  %v5701_v5 = vld [vmem:[%s8193_s15 + $0x328] sm:$0xff] }
0x241a   : > { %6665 = vmatpush1.bf16.msra.mxu1 %v6664_v9  ;;  %v5719_v9 = vld [vmem:[%s8193_s15 + $0x3b8] sm:$0xff]  ;;  %v6712_v32 = vpack.c.bf16 %v5701_v5, %v5700_v4 }
0x241b   : > { %6667 = vmatprep.subr.bf16.mxu1 %v6666_v18  ;;  %v6714_v14 = vpack.c.bf16 %v5719_v9, %v5718_v8  ;;  %v5703_v18 = vld [vmem:[%s8193_s15 + $0x338] sm:$0xff] }
0x241c   : > { %v6716_v3 = vpack.c.bf16 %v5703_v18, %v5702_v17  ;;  %v5679_v4 = vld [vmem:[%s8193_s15 + $0x278] sm:$0xff] }
0x241d   : > { %v5711_v8 = vld [vmem:[%s8193_s15 + $0x378] sm:$0xff] }
0x241e   : > { %6669 = vmatpush1.bf16.msra.mxu1 %v6668_v22  ;;  %v5721_v22 = vld [vmem:[%s8193_s15 + $0x3c8] sm:$0xff]  ;;  %v6732_v9 = vpack.c.bf16 %v5711_v8, %v5710_v7 }
0x241f   : > { %6703 = vmatprep.subr.bf16.mxu1 %v6702_v27  ;;  %v6718_v27 = vpack.c.bf16 %v5721_v22, %v5720_v21 }
0x24a6   : > { %v4956_v57 = vpop.xlane.xlu0 %4955 }
0x24a7   : > { %v4957_v59 = vmul.f32 0.03125, %v4956_v57  ;;  %v5699_v57 = vld [vmem:[%s8193_s15 + $0x318] sm:$0xff] }
0x24a8   : > { %v6708_v11 = vpack.c.bf16 %v5699_v57, %v5698_v56  ;;  %v5676_v56 = vld [vmem:[%s8193_s15 + $0x260] sm:$0xff]  ;;  %v5677_v57 = vld [vmem:[%s8193_s15 + $0x268] sm:$0xff] }
0x24a9   : > { %v4958_v60 = vsub.f32 %v4949_v55, %v4957_v59  ;;  %v6706_v55 = vpack.c.bf16 %v5715_v48, %v5714_v47  ;;  %v5684_v59 = vld [vmem:[%s8193_s15 + $0x2a0] sm:$0xff]  ;;  %v5707_v47 = vld [vmem:[%s8193_s15 + $0x358] sm:$0xff] }
0x24aa   : > { %v5692_v48 = vld [vmem:[%s8193_s15 + $0x2e0] sm:$0xff]  ;;  %v6724_v52 = vpack.c.bf16 %v5707_v47, %v5706_v46 }
0x24ab   : > { %v4959_v61 = vmul.f32 %v4958_v60, %v4958_v60 }
0x24ad   : > { %v4960_v62 = vsel %vm685_vm1, %v4959_v61, 0.0  ;;  %v5716_v61 = vld [vmem:[%s8193_s15 + $0x3a0] sm:$0xff] }
0x24ae   : > { %4961 = vadd.xlane.f32.xlu1 %v4960_v62  ;;  %v5717_v62 = vld [vmem:[%s8193_s15 + $0x3a8] sm:$0xff] }
0x24af   : > { %v6710_v2 = vpack.c.bf16 %v5717_v62, %v5716_v61  ;;  %v5709_v61 = vld [vmem:[%s8193_s15 + $0x368] sm:$0xff] }
0x253b   : > { %v4962_v29 = vpop.xlane.xlu1 %4961 }
0x253c   : > { %v4963_v16 = vmul.f32 0.03125, %v4962_v29  ;;  %v5704_v29 = vld [vmem:[%s8193_s15 + $0x340] sm:$0xff] }
0x253e   : > { %v4964_v28 = vadd.f32 1e-05, %v4963_v16  ;;  %v5705_v16 = vld [vmem:[%s8193_s15 + $0x348] sm:$0xff] }
0x253f   : > { %v6720_v42 = vpack.c.bf16 %v5705_v16, %v5704_v29 }
0x2540   : > { %6781 = vrsqrt.f32 %v4964_v28  ;;  %v5690_v28 = vld [vmem:[%s8193_s15 + $0x2d0] sm:$0xff] }
0x254a   : > { %v6782_v33 = vpop.eup %6781 }
0x254b   : > { %v4966_v31 = vmul.f32 %v6782_v33, %v4958_v60  ;;  %v5685_v60 = vld [vmem:[%s8193_s15 + $0x2a8] sm:$0xff]  ;;  %v5722_v33 = vld [vmem:[%s8193_s15 + $0x3d0] sm:$0xff] }
0x254c   : > { %v6678_v1 = vpack.c.bf16 %v5685_v60, %v5684_v59  ;;  %v5708_v59 = vld [vmem:[%s8193_s15 + $0x360] sm:$0xff]  ;;  %v6696_v60 = vpack.c.bf16 %v5677_v57, %v5676_v56 }
0x254d   : > { %v4973_v49 = vmul.f32 %v5645_v30, %v4966_v31  ;;  %v5691_v30 = vld [vmem:[%s8193_s15 + $0x2d8] sm:$0xff]  ;;  %v5674_v31 = vld [vmem:[%s8193_s15 + $0x250] sm:$0xff]  ;;  %v6728_v62 = vpack.c.bf16 %v5709_v61, %v5708_v59 }
0x254e   : > { %v6690_v44 = vpack.c.bf16 %v5691_v30, %v5690_v28  ;;  %v6692_v51 = vpack.c.bf16 %v5675_v43, %v5674_v31 }
0x254f   : > { %v7991_v53 = vadd.f32 %v5646_v38, %v4973_v49  ;;  %v5723_v38 = vld [vmem:[%s8193_s15 + $0x3d8] sm:$0xff]  ;;  %v5693_v49 = vld [vmem:[%s8193_s15 + $0x2e8] sm:$0xff] }
0x2550   : > { %v6722_v45 = vpack.c.bf16 %v5723_v38, %v5722_v33 }
0x2551   : > { %5729 = vmatmul.mubr.msk.f32.vlgmr.msra.gmra.mrb[52].mxu0 %vm685_vm1, %v7991_v53  ;;  %5730 = vmatmul.mubr.msk.f32.vlgmr.msra.gmra.mrb[52].mxu1 %vm685_vm1, %v7991_v53 }
0x2552   : > { %6673 = vmatpush3.bf16.msra.mxu0 %v6672_v58  ;;  %6705 = vmatpush3.bf16.msra.mxu1 %v6704_v50  ;;  %v5724_v58 = vld [vmem:[%s8193_s15 + $0x3e0] sm:$0xff]  ;;  %v5725_v50 = vld [vmem:[%s8193_s15 + $0x3e8] sm:$0xff] }
0x2553   : > { %6675 = vmatprep.subr.bf16.mxu0 %v6674_v54  ;;  %6707 = vmatprep.subr.bf16.mxu1 %v6706_v55  ;;  %v6694_v54 = vpack.c.bf16 %v5693_v49, %v5692_v48  ;;  %v6726_v55 = vpack.c.bf16 %v5725_v50, %v5724_v58  ;;  %v5735_v49 = vld [vmem:[%s8196_s18 + $0x1] ss:$0 sm:$0xff] }
0x2556   : > { %6677 = vmatpush3.bf16.msra.mxu0 %v6676_v63  ;;  %6709 = vmatpush3.bf16.msra.mxu1 %v6708_v11  ;;  %v5694_v63 = vld [vmem:[%s8193_s15 + $0x2f0] sm:$0xff]  ;;  %v5695_v11 = vld [vmem:[%s8193_s15 + $0x2f8] sm:$0xff] }
0x2557   : > { %6679 = vmatprep.subr.bf16.mxu0 %v6678_v1  ;;  %6711 = vmatprep.subr.bf16.mxu1 %v6710_v2  ;;  %v6698_v0 = vpack.c.bf16 %v5695_v11, %v5694_v63  ;;  %v5727_v1 = vld [vmem:[%s8193_s15 + $0x3f8] sm:$0xff]  ;;  %v5678_v2 = vld [vmem:[%s8193_s15 + $0x270] sm:$0xff] }
0x2558   : > { %v6730_v5 = vpack.c.bf16 %v5727_v1, %v5726_v34  ;;  %v6700_v6 = vpack.c.bf16 %v5679_v4, %v5678_v2 }
0x255a   : > { %6681 = vmatpush3.bf16.msra.mxu0 %v6680_v10  ;;  %6713 = vmatpush3.bf16.msra.mxu1 %v6712_v32  ;;  %v5663_v10 = vld [vmem:[%s8192_s14 + $0x4] sm:$0xf] }
0x255b   : > { %6683 = vmatprep.subr.bf16.mxu0 %v6682_v13  ;;  %6715 = vmatprep.subr.bf16.mxu1 %v6714_v14  ;;  %v5071_v32 = vrot.slane %v5663_v10, %v2668_v36  ;;  %v5079_v12 = vrot.slane %v5663_v10, %v2676_v37  ;;  %v5075_v15 = vrot.slane %v5663_v10, %v2672_v39 }
0x255c   : > { %v5083_v13 = vrot.slane %v5663_v10, %v2680_v40 }
0x255e   : > { %6685 = vmatpush3.bf16.msra.mxu0 %v6684_v23  ;;  %6717 = vmatpush3.bf16.msra.mxu1 %v6716_v3 }
0x255f   : > { %6687 = vmatprep.subr.bf16.mxu0 %v6686_v26  ;;  %6719 = vmatprep.subr.bf16.mxu1 %v6718_v27 }
0x2562   : > { %6689 = vmatpush3.bf16.msra.mxu0 %v6688_v41  ;;  %6721 = vmatpush3.bf16.msra.mxu1 %v6720_v42 }
0x2563   : > { %6691 = vmatprep.subr.bf16.mxu0 %v6690_v44  ;;  %6723 = vmatprep.subr.bf16.mxu1 %v6722_v45 }
0x2566   : > { %6693 = vmatpush3.bf16.msra.mxu0 %v6692_v51  ;;  %6725 = vmatpush3.bf16.msra.mxu1 %v6724_v52 }
0x2567   : > { %6695 = vmatprep.subr.bf16.mxu0 %v6694_v54  ;;  %6727 = vmatprep.subr.bf16.mxu1 %v6726_v55 }
0x256a   : > { %6697 = vmatpush3.bf16.msra.mxu0 %v6696_v60  ;;  %6729 = vmatpush3.bf16.msra.mxu1 %v6728_v62 }
0x256b   : > { %6699 = vmatprep.subr.bf16.mxu0 %v6698_v0  ;;  %6731 = vmatprep.subr.bf16.mxu1 %v6730_v5 }
0x256e   : > { %6701 = vmatpush3.bf16.msra.mxu0 %v6700_v6  ;;  %6733 = vmatpush3.bf16.msra.mxu1 %v6732_v9 }
0x2624   : > { %v5157_v14 = vpop.f32.mrb[52].mxu0  ;;  %v5228_v17 = vpop.f32.mrb[52].mxu1 }
0x2625   : > { %v5158_v18 = vadd.f32 %v5157_v14, %v5071_v32  ;;  %v5229_v19 = vadd.f32 %v5228_v17, %v5079_v12  ;;  %v5159_v20 = vpop.f32.mrb[53].mxu0  ;;  %v5230_v21 = vpop.f32.mrb[53].mxu1 }
0x2626   : > { %v5160_v22 = vadd.f32 %v5159_v20, %v5075_v15  ;;  %v5231_v23 = vadd.f32 %v5230_v21, %v5083_v13 }
0x2627   : > { %v5233_v36 = vmax.f32 %v5158_v18, 0.0  ;;  %v5235_v25 = vmax.f32 %v5229_v19, 0.0 }
0x2628   : > { %v5234_v3 = vmax.f32 %v5160_v22, 0.0  ;;  %v5236_v24 = vmax.f32 %v5231_v23, 0.0 }
0x262a   : > { %5307 = vmatprep.mubr.f32.mxu0 %v5234_v3  ;;  %5377 = vmatprep.mubr.f32.mxu1 %v5236_v24 }
0x262b   : > { %5308 = vmatmul.mubr.f32.vlgmr.msra.gmra.mrb[54].mxu0 %v5233_v36  ;;  %5378 = vmatmul.mubr.f32.vlgmr.msra.gmra.mrb[54].mxu1 %v5235_v25 }
0x26fe   : > { %v6008_v37 = vpop.f32.mrb[54].mxu0  ;;  %v6043_v39 = vpop.f32.mrb[54].mxu1 }
0x26ff   : > { %v6009_v40 = vpop.f32.mrb[55].mxu0  ;;  %v6044_v26 = vpop.f32.mrb[55].mxu1 }
0x2700   : > { %v6010_v27 = vadd.f32 %v6009_v40, %v6008_v37  ;;  %v6045_v29 = vadd.f32 %v6044_v26, %v6043_v39 }
0x2702   : > { %v5310_v16 = vadd.f32 %v6010_v27, %v5731_v35 }
0x2704   : > { %v5380_v28 = vadd.f32 %v6045_v29, %v5310_v16 }
0x2706   : > { %v5383_v30 = vadd.f32 %v5380_v28, %v7991_v53  ;;  %v5734_v53 = vld [vmem:[%s8195_s17 + $0x1] ss:$0 sm:$0xff] }
0x2708   : > { %v5388_v33 = vsel %vm685_vm1, %v5383_v30, 0.0 }
0x2709   : > { %5389 = vadd.xlane.f32.xlu0 %v5388_v33 }
0x2796   : > { %v5390_v38 = vpop.xlane.xlu0 %5389 }
0x2797   : > { %v5391_v41 = vmul.f32 0.03125, %v5390_v38 }
0x2799   : > { %v5392_v42 = vsub.f32 %v5383_v30, %v5391_v41 }
0x279b   : > { %v5393_v31 = vmul.f32 %v5392_v42, %v5392_v42 }
0x279d   : > { %v5394_v43 = vsel %vm685_vm1, %v5393_v31, 0.0 }
0x279e   : > { %5395 = vadd.xlane.f32.xlu1 %v5394_v43 }
0x282b   : > { %v5396_v44 = vpop.xlane.xlu1 %5395 }
0x282c   : > { %v5397_v45 = vmul.f32 0.03125, %v5396_v44 }
0x282e   : > { %v5398_v46 = vadd.f32 1e-05, %v5397_v45 }
0x2830   : > { %6783 = vrsqrt.f32 %v5398_v46 }
0x283a   : > { %v6784_v47 = vpop.eup %6783 }
0x283b   : > { %v5400_v48 = vmul.f32 %v6784_v47, %v5392_v42 }
0x283d   : > { %v5407_v58 = vmul.f32 %v5734_v53, %v5400_v48 }
0x283f   : > { %v5414_v50 = vadd.f32 %v5735_v49, %v5407_v58 }
0x2841   : > { %v5415_v51 = vsel %vm685_vm1, %v5414_v50, 0.0 }
0x2842   : > { %v5416_v52 = vrot.slane %v5415_v51, 4 }
0x2844   : > { %v5417_v54 = vadd.f32 %v5416_v52, %v5415_v51 }
0x2846   : > { %v5418_v55 = vrot.slane %v5417_v54, 2 }
0x2848   : > { %v5419_v56 = vadd.f32 %v5418_v55, %v5417_v54 }
0x284a   : > { %v5420_v57 = vrot.slane %v5419_v56, 1 }
0x284c   : > { %v5421_v59 = vadd.f32 %v5420_v57, %v5419_v56 }
0x284e   : > { %v5423_v60 = vmul.f32 0.125, %v5421_v59 }
0x2850   : > { %5425 = vst.msk [vmem:[%s609_s28] sm:$0x1] %vm5424_vm3, %v5423_v60 }
0x2851 PF: > { %s8209_s22 = sld [smem:[#allocation2_spill]] }
0x2857   : > { %s29_s0 = sadd.s32 1, %s8209_s22  }
0x2858   : > { %p26_p4 = scmp.ge.s32.totalorder %s29_s0, 12  }
0x285a   :  { %28 = sbr.rel (!%p26_p4) target bundleno = 5 (0x5), region = 145 }

// kernel: ae_transformer_forward.3
= control target key start
LH: loop header
LB: loop body
LE: loop exit
PB: predicated region body
PF: predicated region fallthrough
CT: control target
= control target key end

     0   :  { %s14021_s6 = smov 1   ;;  %s14022_s10 = smov 2   ;;  %s15410_s0 = inlined_call_operand.smem [shape: u32[36], index: -1, kind: input, shape index: {}] }
   0x1   :  { %s14068_s5 = sld [smem:[%s15410_s0]]   ;;  %s14023_s14 = smov 3  }
   0x2   :  { %s14073_s9 = sld [smem:[%s15410_s0 + %s14021_s6]]   ;;  %s14024_s18 = smov 4  }
   0x3   :  { %s14078_s13 = sld [smem:[%s15410_s0 + %s14022_s10]]   ;;  %s14025_s22 = smov 5  }
   0x4   :  { %s14083_s17 = sld [smem:[%s15410_s0 + %s14023_s14]]   ;;  %s14026_s26 = smov 6  }
   0x5   :  { %s14088_s21 = sld [smem:[%s15410_s0 + %s14024_s18]]   ;;  %s14027_s30 = smov 7  }
   0x6   :  { %s14093_s25 = sld [smem:[%s15410_s0 + %s14025_s22]]   ;;  %s14028_s4 = smov 8  }
   0x7   :  { %15432 = sst [smem:[#allocation2_spill]] %s14068_s5  ;;  %s14029_s10 = smov 9  }
   0x8   :  { %15433 = sst [smem:[#allocation3_spill]] %s14073_s9  ;;  %s14030_s15 = smov 10  }
   0x9   :  { %15434 = sst [smem:[#allocation4_spill]] %s14078_s13  ;;  %s14031_s20 = smov 11  }
   0xa   :  { %15435 = sst [smem:[#allocation5_spill]] %s14083_s17  ;;  %s14033_s1 = smov 13  }
   0xb   :  { %15436 = sst [smem:[#allocation6_spill]] %s14088_s21  ;;  %s14034_s7 = smov 14  }
   0xc   :  { %15437 = sst [smem:[#allocation7_spill]] %s14093_s25  ;;  %s14036_s22 = smov 16  }
   0xd   :  { %s14098_s29 = sld [smem:[%s15410_s0 + %s14026_s26]]   ;;  %s14032_s26 = smov 12  }
   0xe   :  { %s14103_s3 = sld [smem:[%s15410_s0 + %s14027_s30]]   ;;  %s14037_s28 = smov 17  }
   0xf   :  { %s14108_s8 = sld [smem:[%s15410_s0 + %s14028_s4]]  }
  0x10   :  { %s14113_s14 = sld [smem:[%s15410_s0 + %s14029_s10]]  }
  0x11   :  { %s14118_s19 = sld [smem:[%s15410_s0 + %s14030_s15]]   ;;  %s14035_s15 = smov 15  }
  0x12   :  { %s14123_s24 = sld [smem:[%s15410_s0 + %s14031_s20]]  }
  0x13   :  { %15438 = sst [smem:[#allocation8_spill]] %s14098_s29 }
  0x14   :  { %s14128_s30 = sld [smem:[%s15410_s0 + %s14032_s26]]  }
  0x15   :  { %s14133_s6 = sld [smem:[%s15410_s0 + %s14033_s1]]  }
  0x16   :  { %s14138_s12 = sld [smem:[%s15410_s0 + %s14034_s7]]   ;;  %s14038_s7 = smov 18  }
  0x17   :  { %s14143_s20 = sld [smem:[%s15410_s0 + %s14035_s15]]   ;;  %s14039_s15 = smov 19  }
  0x18   :  { %s14148_s27 = sld [smem:[%s15410_s0 + %s14036_s22]]   ;;  %s14040_s22 = smov 20  }
  0x19   :  { %s14153_s4 = sld [smem:[%s15410_s0 + %s14037_s28]]   ;;  %s14041_s28 = smov 21  }
  0x1a   :  { %s14158_s17 = sld [smem:[%s15410_s0 + %s14038_s7]]   ;;  %s14042_s7 = smov 22  }
  0x1b   :  { %s14173_s9 = sld [smem:[%s15410_s0 + %s14041_s28]]   ;;  %s14045_s28 = smov 25  }
  0x1d   :  { %15439 = sst [smem:[#allocation9_spill]] %s14143_s20 }
  0x1e   :  { %15440 = sst [smem:[#allocation10_spill]] %s14148_s27 }
  0x1f   :  { %15441 = sst [smem:[#allocation11_spill]] %s14153_s4 }
  0x20   :  { %15442 = sst [smem:[#allocation12_spill]] %s14158_s17 }
  0x21   :  { %s14163_s20 = sld [smem:[%s15410_s0 + %s14039_s15]]   ;;  %s14043_s15 = smov 23  }
  0x22   :  { %s14168_s27 = sld [smem:[%s15410_s0 + %s14040_s22]]   ;;  %s14044_s22 = smov 24  }
  0x23   :  { %15444 = sst [smem:[#allocation14_spill]] %s14173_s9 }
  0x24   :  { %s14178_s17 = sld [smem:[%s15410_s0 + %s14042_s7]]   ;;  %s14046_s7 = smov 26  }
  0x25   :  { %s14183_s4 = sld [smem:[%s15410_s0 + %s14043_s15]]   ;;  %s14047_s15 = smov 27  }
  0x26   :  { %s14193_s9 = sld [smem:[%s15410_s0 + %s14045_s28]]   ;;  %s14049_s28 = smov 29  }
  0x28   :  { %15443 = sst [smem:[#allocation13_spill]] %s14168_s27 }
  0x29   :  { %s14188_s27 = sld [smem:[%s15410_s0 + %s14044_s22]]   ;;  %s14048_s22 = smov 28  }
  0x2a   :  { %15445 = sst [smem:[#allocation15_spill]] %s14178_s17 }
  0x2b   :  { %15446 = sst [smem:[#allocation16_spill]] %s14183_s4 }
  0x2c   :  { %15448 = sst [smem:[#allocation18_spill]] %s14193_s9 }
  0x2d   :  { %s14198_s17 = sld [smem:[%s15410_s0 + %s14046_s7]]   ;;  %s14050_s7 = smov 30  }
  0x2e   :  { %s14203_s4 = sld [smem:[%s15410_s0 + %s14047_s15]]   ;;  %s14051_s15 = smov 31  }
  0x2f   :  { %15447 = sst [smem:[#allocation17_spill]] %s14188_s27 }
  0x30   :  { %s14208_s27 = sld [smem:[%s15410_s0 + %s14048_s22]]   ;;  %s14052_s22 = smov 32  }
  0x31   :  { %s14213_s9 = sld [smem:[%s15410_s0 + %s14049_s28]]   ;;  %s14053_s28 = smov 33  }
  0x33   :  { %15449 = sst [smem:[#allocation19_spill]] %s14198_s17 }
  0x34   :  { %15450 = sst [smem:[#allocation20_spill]] %s14203_s4 }
  0x35   :  { %s14218_s17 = sld [smem:[%s15410_s0 + %s14050_s7]]   ;;  %s14054_s7 = smov 34  }
  0x36   :  { %15451 = sst [smem:[#allocation21_spill]] %s14208_s27 }
  0x37   :  { %15452 = sst [smem:[#allocation22_spill]] %s14213_s9 }
  0x38   :  { %s14223_s4 = sld [smem:[%s15410_s0 + %s14051_s15]]   ;;  %s14055_s15 = smov 35  }
  0x39   :  { %s14228_s27 = sld [smem:[%s15410_s0 + %s14052_s22]]   ;;  %s14245_s22 = smov 0  }
  0x3a   :  { %s14233_s9 = sld [smem:[%s15410_s0 + %s14053_s28]]  }
  0x3b   :  { %15453 = sst [smem:[#allocation23_spill]] %s14218_s17 }
  0x3c   :  { %s14238_s17 = sld [smem:[%s15410_s0 + %s14054_s7]]  }
  0x3e   :  { %15454 = sst [smem:[#allocation24_spill]] %s14223_s4 }
  0x3f   :  { %s14243_s4 = sld [smem:[%s15410_s0 + %s14055_s15]]  }
  0x42   :  { %15455 = sst [smem:[#allocation25_spill]] %s14238_s17 }
  0x45   :  { %15456 = sst [smem:[#allocation26_spill]] %s14243_s4 }
  0x46 LB: > { %s15457_s25 = sld [smem:[#allocation7_spill]]  ;;  %s15458_s21 = sld [smem:[#allocation6_spill]]  ;;  %s14019_s22 = sphi %s14245_s22, %s81_s22  }
  0x47   : > { %15459 = sst [smem:[#allocation27_spill]] %s14019_s22  ;;  %s11194_s23 = sadd.s32 4294967295, %s14019_s22  }
  0x48   : > { %p11198_p0 = scmp.ge.s32.totalorder %s14019_s22, 1  ;;  %p1000_p1 = scmp.lt.s32.totalorder %s14019_s22, 3 }
  0x4a   : > { %p1001_p2 = pnand %p11198_p0, %p1000_p1 }
  0x4c   : > { %1004 = sbr.rel (%p1001_p2) target bundleno = 19751 (0x4d27), region = 160 }
  0x53   : > { %v1128_v0 = vld [vmem:[%s15457_s25] sm:$0xff]  ;;  %s15460_s5 = sld [smem:[#allocation2_spill]]  ;;  %v1129_v1 = vld [vmem:[%s15457_s25 + $0x8] sm:$0xff]  ;;  %v1130_v2 = vld [vmem:[%s15457_s25 + $0x10] sm:$0xff]  ;;  %p1100_p3 = scmp.lt.s32.totalorder %s11194_s23, 1  ;;  %vm1141_vm0 = vcmask 392192  }
  0x54   : > { %v13150_v3 = vpack.c.bf16 %v1129_v1, %v1128_v0  ;;  %v1131_v4 = vld [vmem:[%s15457_s25 + $0x18] sm:$0xff]  ;;  %v1132_v6 = vld [vmem:[%s15457_s25 + $0x20] sm:$0xff]  ;;  %v1133_v7 = vld [vmem:[%s15457_s25 + $0x28] sm:$0xff]  ;;  %s15462_s29 = sld [smem:[#allocation8_spill]]  ;;  %vm1300_vm1 = vcmask 261120   ;;  %vm1666_vm2 = vcmask 1041408  }
  0x55   : > { %v13154_v5 = vpack.c.bf16 %v1131_v4, %v1130_v2  ;;  %s15494_s23 = smov (!%p1100_p3, %s11194_s23), 1  ;;  %v13158_v8 = vpack.c.bf16 %v1133_v7, %v1132_v6  ;;  %v1229_v11 = vld [vmem:[%s14103_s3] sm:$0xff]  ;;  %v1230_v12 = vld [vmem:[%s14103_s3 + $0x8] sm:$0xff]  ;;  %v1231_v17 = vld [vmem:[%s14103_s3 + $0x10] sm:$0xff]  ;;  %vm1544_vm3 = vcmask 64512   ;;  %vm14056_vm4 = vmmov 1  }
  0x56   : > { %13151 = vmatprep.subr.bf16.mxu0 %v13150_v3  ;;  %s14262_s0 = sshll.u32 %s15494_s23, 4  ;;  %v13162_v13 = vpack.c.bf16 %v1230_v12, %v1229_v11  ;;  %v1269_v14 = vld [vmem:[%s14123_s24] sm:$0xff]  ;;  %v1270_v15 = vld [vmem:[%s14123_s24 + $0x8] sm:$0xff]  ;;  %v1232_v18 = vld [vmem:[%s14103_s3 + $0x18] sm:$0xff]  ;;  %s15467_s13 = sld [smem:[#allocation4_spill]]  ;;  %vm1636_vm7 = vcmask 80896  }
  0x57   : > { %13153 = vmatpush3.bf16.msra.mxu0 %v13150_v3  ;;  %15461 = sst [smem:[#allocation28_spill]] %s14262_s0  ;;  %v13178_v16 = vpack.c.bf16 %v1270_v15, %v1269_v14  ;;  %v13166_v19 = vpack.c.bf16 %v1232_v18, %v1231_v17  ;;  %v1271_v20 = vld [vmem:[%s14123_s24 + $0x10] sm:$0xff]  ;;  %v1272_v21 = vld [vmem:[%s14123_s24 + $0x18] sm:$0xff]  ;;  %v1249_v23 = vld [vmem:[%s14113_s14] sm:$0xff]  ;;  %vm1640_vm8 = vcmask 74752   ;;  %vm3410_vm9 = vcmask 254976  }
  0x58   : > { %13155 = vmatprep.subr.bf16.mxu0 %v13154_v5  ;;  %13163 = vmatprep.subr.bf16.mxu1 %v13162_v13  ;;  %v13182_v22 = vpack.c.bf16 %v1272_v21, %v1271_v20  ;;  %v1250_v24 = vld [vmem:[%s14113_s14 + $0x8] sm:$0xff]  ;;  %v1225_v32 = vld [vmem:[%s15458_s21] sm:$0xff]  ;;  %v1251_v35 = vld [vmem:[%s14113_s14 + $0x10] sm:$0xff]  ;;  %s15468_s1 = sld [smem:[#allocation11_spill]]  ;;  %s11201_s7 = sshll.u32 %s15494_s23, 3  ;;  %vm14058_vm10 = vmmov 0  }
  0x59   : > { %s1104_s26 = scalar_lea.vmem %s15460_s5, %s14262_s0  ;;  %13165 = vmatpush3.bf16.msra.mxu1 %v13162_v13  ;;  %v13170_v25 = vpack.c.bf16 %v1250_v24, %v1249_v23  ;;  %v1226_v33 = vld [vmem:[%s15458_s21 + $0x8] sm:$0x3]  ;;  %v1252_v36 = vld [vmem:[%s14113_s14 + $0x18] sm:$0xff]  ;;  %v11215_v40 = vld [vmem:[%s14128_s30] ss:$0 sm:$0xff]  ;;  %s15469_s2 = sld [smem:[#allocation3_spill]] }
  0x5a   : > { %v1122_v9 = vld [vmem:[%s1104_s26] sm:$0xff]  ;;  %v1123_v10 = vld [vmem:[%s1104_s26 + $0x8] sm:$0x3]  ;;  %13167 = vmatprep.subr.bf16.mxu1 %v13166_v19  ;;  %v13174_v39 = vpack.c.bf16 %v1252_v36, %v1251_v35  ;;  %vm14301_vm5 = vmpackc.low %vm1666_vm2, %vm14056_vm4  ;;  %s15470_s11 = sld [smem:[#allocation9_spill]]  ;;  %s15471_s15 = sld [smem:[#allocation10_spill]]  ;;  %vm3856_vm11 = vcmask 33792  }
  0x5b   : > { %12336 = vmatprep.mubr.msk.f32.mxu0 %vm1141_vm0, %v1122_v9  ;;  %13157 = vmatpush3.bf16.msra.mxu0 %v13154_v5  ;;  %v11206_v26 = vld [vmem:[%s15462_s29] ss:$0 sm:$0xff]  ;;  %v1234_v56 = vld [vmem:[%s14103_s3 + $0x28] sm:$0xff]  ;;  %vm14315_vm6 = vmpackc.low %vm1544_vm3, %vm1544_vm3  ;;  %s15472_s16 = sld [smem:[#allocation13_spill]]  ;;  %s15473_s18 = sld [smem:[#allocation12_spill]]  ;;  %vm3852_vm12 = vcmask 39936  }
  0x5c   : > { %13159 = vmatprep.subr.bf16.mxu0 %v13158_v8  ;;  %v11209_v41 = vld [vmem:[%s14108_s8] ss:$0 sm:$0xff]  ;;  %v1235_v61 = vld [vmem:[%s14103_s3 + $0x30] sm:$0xff]  ;;  %v1236_v62 = vld [vmem:[%s14103_s3 + $0x38] sm:$0xff]  ;;  %s14340_s28 = scalar_lea.vmem %s15467_s13, %s14262_s0  ;;  %s15474_s26 = sld [smem:[#allocation14_spill]]  ;;  %vm3882_vm13 = vcmask 1044480  }
  0x5d   : > { %13169 = vmatpush3.bf16.msra.mxu1 %v13166_v19  ;;  %v11212_v51 = vld [vmem:[%s14118_s19] ss:$0 sm:$0xff]  ;;  %v13202_v0 = vpack.c.bf16 %v1236_v62, %v1235_v61  ;;  %v1274_v2 = vld [vmem:[%s14123_s24 + $0x28] sm:$0xff]  ;;  %v1275_v4 = vld [vmem:[%s14123_s24 + $0x30] sm:$0xff]  ;;  %s15478_s5 = sld [smem:[#allocation17_spill]]  ;;  %s15479_s13 = sld [smem:[#allocation20_spill]] }
  0x5e   : > { %13171 = vmatprep.subr.bf16.mxu1 %v13170_v25  ;;  %v1233_v55 = vld [vmem:[%s14103_s3 + $0x20] sm:$0xff]  ;;  %v1276_v5 = vld [vmem:[%s14123_s24 + $0x38] sm:$0xff]  ;;  %v14346_v12 = vld [vmem:[%s14340_s28 + $0x8] sm:$0x3]  ;;  %s15480_s21 = sld [smem:[#allocation22_spill]]  ;;  %s15481_s25 = sld [smem:[#allocation18_spill]] }
  0x5f   : > { %13161 = vmatpush3.bf16.msra.mxu0 %v13158_v8  ;;  %v13198_v60 = vpack.c.bf16 %v1234_v56, %v1233_v55  ;;  %v1273_v1 = vld [vmem:[%s14123_s24 + $0x20] sm:$0xff]  ;;  %v13218_v6 = vpack.c.bf16 %v1276_v5, %v1275_v4  ;;  %s14504_s10 = scalar_lea.vmem %s15469_s2, %s11201_s7  ;;  %s15475_s2 = sld [smem:[#allocation5_spill]]  ;;  %vm11069_vm14 = vcmask 386048  }
  0x60   : > { %13179 = vmatprep.subr.bf16.mxu0 %v13178_v16  ;;  %v13214_v3 = vpack.c.bf16 %v1274_v2, %v1273_v1  ;;  %v14343_v8 = vld [vmem:[%s14340_s28] sm:$0xff]  ;;  %s15482_s29 = sld [smem:[#allocation19_spill]]  ;;  %s15483_s22 = sld [smem:[#allocation21_spill]] }
  0x61   : > { %v11228_v15 = vld [vmem:[%s14108_s8 + $0x1] ss:$0 sm:$0xff] }
  0x62   : > { %12337 = vmatmul.mubr.msk.f32.vlgmr.msra.gmra.mrb[0].mxu0 %vm1141_vm0, %v1123_v10  ;;  %v11234_v21 = vld [vmem:[%s14128_s30 + $0x1] ss:$0 sm:$0xff] }
  0x63   : > { %13181 = vmatpush3.bf16.msra.mxu0 %v13178_v16  ;;  %v11231_v56 = vld [vmem:[%s14118_s19 + $0x1] ss:$0 sm:$0xff] }
  0x64   : > { %13183 = vmatprep.subr.bf16.mxu0 %v13182_v22 }
  0x65   : > { %s14546_s7 = scalar_lea.vmem %s15475_s2, %s15494_s23  ;;  %s15476_s23 = sld [smem:[#allocation15_spill]] }
  0x66   : > { %s15477_s2 = sld [smem:[#allocation16_spill]]  ;;  %s15484_s4 = smov %s15483_s22 }
  0x67   : > { %13185 = vmatpush3.bf16.msra.mxu0 %v13182_v22 }
 0x135   : > { %v12338_v27 = vpop.f32.mrb[0].mxu0 }
 0x136   : > { %v1220_v28 = vadd.f32 %v12338_v27, %v11206_v26  ;;  %v1214_v29 = vpop.f32.mrb[1].mxu0 }
 0x137   : > { %v1215_v30 = vadd.f32 %v11206_v26, %v1214_v29 }
 0x138   : > { %v1224_v31 = vmax.f32 %v1220_v28, 0.0 }
 0x139   : > { %v1223_v34 = vmax.f32 %v1215_v30, 0.0 }
 0x13a   : > { %v14285_v38 = vadd.f32 %v1226_v33, %v1224_v31 }
 0x13b   : > { %v14283_v37 = vadd.f32 %v1225_v32, %v1223_v34 }
 0x13d   : > { %12347 = vmatprep.mubr.msk.f32.mxu1 %vm1300_vm1, %v14283_v37  ;;  %12369 = vmatprep.mubr.msk.f32.mxu0 %vm1300_vm1, %v14283_v37 }
 0x13e   : > { %12348 = vmatmul.mubr.msk.f32.vlgmr.msra.gmra.mrb[0].mxu1 %vm1300_vm1, %v14285_v38  ;;  %12370 = vmatmul.mubr.msk.f32.vlgmr.msra.gmra.mrb[2].mxu0 %vm1300_vm1, %v14285_v38 }
 0x13f   : > { %13173 = vmatpush3.bf16.msra.mxu1 %v13170_v25  ;;  %12358 = vmatprep.mubr.msk.f32.mxu1 %vm1300_vm1, %v14283_v37 }
 0x140   : > { %13175 = vmatprep.subr.bf16.mxu1 %v13174_v39 }
 0x143   : > { %13177 = vmatpush3.bf16.msra.mxu1 %v13174_v39  ;;  %v1289_v39 = vld [vmem:[%s14133_s6] sm:$0xff] }
 0x146   : > { %12359 = vmatmul.mubr.msk.f32.vlgmr.msra.gmra.mrb[2].mxu1 %vm1300_vm1, %v14285_v38 }
 0x211   : > { %v12349_v42 = vpop.f32.mrb[0].mxu1  ;;  %v12371_v43 = vpop.f32.mrb[2].mxu0 }
 0x212   : > { %v1541_v44 = vadd.f32 %v12371_v43, %v11215_v40  ;;  %v1373_v45 = vpop.f32.mrb[1].mxu1  ;;  %v1535_v46 = vpop.f32.mrb[3].mxu0  ;;  %v1379_v63 = vadd.f32 %v12349_v42, %v11209_v41 }
 0x213   : > { %v1374_v47 = vadd.f32 %v11209_v41, %v1373_v45  ;;  %v1536_v48 = vadd.f32 %v11215_v40, %v1535_v46  ;;  %v1253_v46 = vld [vmem:[%s14113_s14 + $0x20] sm:$0xff] }
 0x215   : > { %v13192_v50 = vpack.c.bf16 %v1541_v44, %v1536_v48  ;;  %12376 = vmatprep.mubr.msk.f32.mxu1 %vm1544_vm3, %v1374_v47  ;;  %v1254_v47 = vld [vmem:[%s14113_s14 + $0x28] sm:$0xff] }
 0x216   : > { %v13206_v48 = vpack.c.bf16 %v1254_v47, %v1253_v46 }
 0x217   : > { %13194 = vmatprep.subr.msk.bf16.mxu0 %vm14301_vm5, %v13192_v50 }
 0x218   : > { %13197 = vmatpush3.bf16.msk.msra.mxu0 %vm14301_vm5, %v13192_v50  ;;  %v1255_v50 = vld [vmem:[%s14113_s14 + $0x30] sm:$0xff] }
 0x219   : > { %v12360_v52 = vpop.f32.mrb[2].mxu1  ;;  %12386 = vmatprep.subr.mxu0 %v1289_v39 }
 0x21a   : > { %v1460_v53 = vadd.f32 %v12360_v52, %v11212_v51  ;;  %v1454_v54 = vpop.f32.mrb[3].mxu1 }
 0x21b   : > { %v1455_v57 = vadd.f32 %v11212_v51, %v1454_v54  ;;  %v1256_v51 = vld [vmem:[%s14113_s14 + $0x38] sm:$0xff] }
 0x21c   : > { %v13210_v54 = vpack.c.bf16 %v1256_v51, %v1255_v50 }
 0x21d   : > { %v13186_v59 = vpack.c.bf16 %v1460_v53, %v1455_v57 }
 0x21f   : > { %13188 = vmatprep.subr.msk.bf16.mxu1 %vm14315_vm6, %v13186_v59 }
 0x220   : > { %13191 = vmatpush3.bf16.xpose.msk.msra.mxu1 %vm14315_vm6, %v13186_v59 }
 0x221   : > { %13199 = vmatprep.subr.bf16.mxu1 %v13198_v60 }
 0x227   : > { %12377 = vmatmul.mubr.msk.f32.vlgmr.msra.gmra.mrb[4].mxu1 %vm1544_vm3, %v1379_v63 }
 0x228   : > { %13201 = vmatpush3.bf16.msra.mxu1 %v13198_v60  ;;  %12399 = vmatprep.mubr.msk.f32.mxu1 %vm1300_vm1, %v14283_v37 }
 0x229   : > { %13203 = vmatprep.subr.bf16.mxu1 %v13202_v0 }
 0x22c   : > { %13205 = vmatpush3.bf16.msra.mxu1 %v13202_v0 }
 0x22d   : > { %13215 = vmatprep.subr.bf16.mxu1 %v13214_v3 }
 0x22f   : > { %12400 = vmatmul.mubr.msk.f32.vlgmr.msra.gmra.mrb[6].mxu1 %vm1300_vm1, %v14285_v38 }
 0x230   : > { %13217 = vmatpush3.bf16.msra.mxu1 %v13214_v3  ;;  %12421 = vmatprep.mubr.msk.f32.mxu1 %vm1300_vm1, %v14283_v37 }
 0x231   : > { %13219 = vmatprep.subr.bf16.mxu1 %v13218_v6 }
 0x234   : > { %13221 = vmatpush3.bf16.msra.mxu1 %v13218_v6 }
 0x237   : > { %12422 = vmatmul.mubr.msk.f32.vlgmr.msra.gmra.mrb[8].mxu1 %vm1300_vm1, %v14285_v38 }
 0x2fa   : > { %v12378_v7 = vpop.f32.mrb[4].mxu1 }
 0x2fb   : > { %v1623_v9 = vpop.f32.mrb[5].mxu1  ;;  %v1633_v10 = vmul.f32 0.35355338, %v12378_v7 }
 0x2fc   : > { %v1632_v11 = vmul.f32 0.35355338, %v1623_v9 }
 0x2fd   : > { %v1635_v16 = vadd.f32 %v1633_v10, %v14346_v12 }
 0x2fe   : > { %v1634_v13 = vadd.f32 %v1632_v11, %v14343_v8 }
 0x2ff   : > { %v1641_v20 = vsel %vm1640_vm8, %v1635_v16, -inf }
 0x300   : > { %v1637_v14 = vsel %vm1636_vm7, %v1634_v13, -inf }
 0x301   : > { %1638 = vmax.xlane.f32.xlu0 %v1637_v14 }
 0x302   : > { %v12401_v17 = vpop.f32.mrb[6].mxu1 }
 0x303   : > { %v14352_v18 = vadd.f32 %v12401_v17, %v11228_v15  ;;  %v1906_v19 = vpop.f32.mrb[7].mxu1 }
 0x304   : > { %v1907_v55 = vadd.f32 %v11228_v15, %v1906_v19  ;;  %v1237_v19 = vld [vmem:[%s14103_s3 + $0x40] sm:$0xff] }
 0x305   : > { %1642 = vmax.xlane.f32.xlu0 %v1641_v20  ;;  %v1238_v20 = vld [vmem:[%s14103_s3 + $0x48] sm:$0xff] }
 0x30a   : > { %v12423_v22 = vpop.f32.mrb[8].mxu1 }
 0x30b   : > { %v2074_v23 = vadd.f32 %v12423_v22, %v11234_v21  ;;  %v2068_v24 = vpop.f32.mrb[9].mxu1  ;;  %v1290_v22 = vld [vmem:[%s14133_s6 + $0x8] sm:$0xff] }
 0x30c   : > { %v2069_v25 = vadd.f32 %v11234_v21, %v2068_v24  ;;  %v13234_v21 = vpack.c.bf16 %v1238_v20, %v1237_v19 }
 0x30e   : > { %v13228_v26 = vpack.c.bf16 %v2074_v23, %v2069_v25 }
 0x310   : > { %13230 = vmatprep.subr.msk.bf16.mxu1 %vm14301_vm5, %v13228_v26 }
 0x311   : > { %13233 = vmatpush3.bf16.msk.msra.mxu1 %vm14301_vm5, %v13228_v26  ;;  %v1239_v26 = vld [vmem:[%s14103_s3 + $0x50] sm:$0xff] }
 0x312   : > { %13235 = vmatprep.subr.bf16.mxu1 %v13234_v21 }
 0x38e   : > { %v1639_v27 = vpop.xlane.xlu0 %1638 }
 0x38f   : > { %v1644_v28 = vsub.f32 %v1634_v13, %v1639_v27  ;;  %v1240_v27 = vld [vmem:[%s14103_s3 + $0x58] sm:$0xff] }
 0x391   : > { %v1646_v29 = vmul.f32 1.442695, %v1644_v28 }
 0x392   : > { %v1643_v30 = vpop.xlane.xlu0 %1642 }
 0x393   : > { %13857 = vpow2.f32 %v1646_v29  ;;  %v1645_v31 = vsub.f32 %v1635_v16, %v1643_v30 }
 0x395   : > { %v1648_v32 = vmul.f32 1.442695, %v1645_v31  ;;  %v13238_v31 = vpack.c.bf16 %v1240_v27, %v1239_v26  ;;  %v1291_v26 = vld [vmem:[%s14133_s6 + $0x10] sm:$0xff] }
 0x397   : > { %13859 = vpow2.f32 %v1648_v32  ;;  %v1277_v32 = vld [vmem:[%s14123_s24 + $0x40] sm:$0xff] }
 0x39d   : > { %v13858_v33 = vpop.eup %13857 }
 0x39e   : > { %v1650_v34 = vsel %vm1636_vm7, %v13858_v33, 0.0 }
 0x39f   : > { %1651 = vadd.xlane.f32.xlu1 %v1650_v34 }
 0x3a1   : > { %v13860_v35 = vpop.eup %13859 }
 0x3a2   : > { %v1653_v36 = vsel %vm1640_vm8, %v13860_v35, 0.0 }
 0x3a3   : > { %1654 = vadd.xlane.f32.xlu1 %v1653_v36  ;;  %v1280_v36 = vld [vmem:[%s14123_s24 + $0x58] sm:$0xff] }
 0x42c   : > { %v1652_v40 = vpop.xlane.xlu1 %1651 }
 0x42d   : > { %13861 = vrcp.f32 %v1652_v40  ;;  %v1257_v40 = vld [vmem:[%s14113_s14 + $0x40] sm:$0xff] }
 0x430   : > { %v1655_v41 = vpop.xlane.xlu1 %1654 }
 0x431   : > { %13863 = vrcp.f32 %v1655_v41  ;;  %v1258_v41 = vld [vmem:[%s14113_s14 + $0x48] sm:$0xff] }
 0x437   : > { %v13862_v42 = vpop.eup %13861 }
 0x438   : > { %v1658_v43 = vmul.f32 %v13862_v42, %v13858_v33  ;;  %v1278_v33 = vld [vmem:[%s14123_s24 + $0x48] sm:$0xff]  ;;  %v13242_v42 = vpack.c.bf16 %v1258_v41, %v1257_v40  ;;  %v1283_v41 = vld [vmem:[%s14123_s24 + $0x70] sm:$0xff] }
 0x439   : > { %v13250_v34 = vpack.c.bf16 %v1278_v33, %v1277_v32 }
 0x43a   : > { %12383 = vmatprep.mubr.msk.f32.mxu0 %vm1636_vm7, %v1658_v43  ;;  %v1259_v43 = vld [vmem:[%s14113_s14 + $0x50] sm:$0xff] }
 0x43b   : > { %v13864_v44 = vpop.eup %13863 }
 0x43c   : > { %v1659_v45 = vmul.f32 %v13864_v44, %v13860_v35  ;;  %v1279_v35 = vld [vmem:[%s14123_s24 + $0x50] sm:$0xff]  ;;  %v1260_v44 = vld [vmem:[%s14113_s14 + $0x58] sm:$0xff] }
 0x43d   : > { %v13246_v47 = vpack.c.bf16 %v1260_v44, %v1259_v43  ;;  %v1261_v44 = vld [vmem:[%s14113_s14 + $0x60] sm:$0xff] }
 0x43e   : > { %12384 = vmatmul.mubr.msk.f32.vlgmr.msra.gmra.mrb[4].mxu0 %vm1636_vm7, %v1659_v45 }
 0x43f   : > { %12387 = vmatpush3.msra.mxu0 %v1289_v39  ;;  %v13254_v39 = vpack.c.bf16 %v1280_v36, %v1279_v35  ;;  %v1281_v36 = vld [vmem:[%s14123_s24 + $0x60] sm:$0xff] }
 0x440   : > { %13207 = vmatprep.subr.bf16.mxu0 %v13206_v48 }
 0x511   : > { %v12385_v52 = vpop.f32.mrb[4].mxu0 }
 0x512   : > { %v1736_v53 = vpop.f32.mrb[5].mxu0 }
 0x513   : > { %12388 = vmatprep.mubr.msk.f32.mxu0 %vm1544_vm3, %v1736_v53 }
 0x514   : > { %12389 = vmatmul.mubr.msk.f32.vlgmr.msra.gmra.mrb[6].mxu0 %vm1544_vm3, %v12385_v52 }
 0x515   : > { %13209 = vmatpush3.bf16.msra.mxu0 %v13206_v48  ;;  %12410 = vmatprep.mubr.msk.f32.mxu0 %vm1300_vm1, %v14283_v37  ;;  %v11246_v48 = vld [vmem:[%s14108_s8 + $0x2] ss:$0 sm:$0xff] }
 0x516   : > { %13211 = vmatprep.subr.bf16.mxu0 %v13210_v54 }
 0x519   : > { %13213 = vmatpush3.bf16.msra.mxu0 %v13210_v54  ;;  %v11252_v54 = vld [vmem:[%s14128_s30 + $0x2] ss:$0 sm:$0xff] }
 0x51c   : > { %12411 = vmatmul.mubr.msk.f32.vlgmr.msra.gmra.mrb[8].mxu0 %vm1300_vm1, %v14285_v38 }
 0x51d   : > { %12428 = vmatprep.mubr.msk.f32.mxu0 %vm1544_vm3, %v1907_v55 }
 0x5ef   : > { %v12412_v57 = vpop.f32.mrb[8].mxu0 }
 0x5f0   : > { %v1993_v59 = vadd.f32 %v12412_v57, %v11231_v56  ;;  %v1987_v60 = vpop.f32.mrb[9].mxu0 }
 0x5f1   : > { %v1988_v61 = vadd.f32 %v11231_v56, %v1987_v60 }
 0x5f3   : > { %v13222_v62 = vpack.c.bf16 %v1993_v59, %v1988_v61  ;;  %v11249_v61 = vld [vmem:[%s14118_s19 + $0x2] ss:$0 sm:$0xff] }
 0x5f5   : > { %13224 = vmatprep.subr.msk.bf16.mxu0 %vm14315_vm6, %v13222_v62 }
 0x5f6   : > { %13227 = vmatpush3.bf16.xpose.msk.msra.mxu0 %vm14315_vm6, %v13222_v62 }
 0x5f7   : > { %12438 = vmatprep.subr.mxu0 %v1290_v22 }
 0x5fd   : > { %12429 = vmatmul.mubr.msk.f32.vlgmr.msra.gmra.mrb[10].mxu0 %vm1544_vm3, %v14352_v18 }
 0x5fe   : > { %12439 = vmatpush3.msra.mxu0 %v1290_v22 }
 0x5ff   : > { %13243 = vmatprep.subr.bf16.mxu0 %v13242_v42 }
 0x6d0   : > { %v12430_v63 = vpop.f32.mrb[10].mxu0 }
 0x6d1   : > { %v2165_v0 = vmul.f32 0.35355338, %v12430_v63  ;;  %v2155_v1 = vpop.f32.mrb[11].mxu0 }
 0x6d2   : > { %v2164_v2 = vmul.f32 0.35355338, %v2155_v1 }
 0x6d3   : > { %v2167_v3 = vadd.f32 %v2165_v0, %v14346_v12 }
 0x6d4   : > { %v2166_v4 = vadd.f32 %v2164_v2, %v14343_v8 }
 0x6d5   : > { %v2171_v5 = vsel %vm1640_vm8, %v2167_v3, -inf }
 0x6d6   : > { %2172 = vmax.xlane.f32.xlu1 %v2171_v5  ;;  %v2168_v6 = vsel %vm1636_vm7, %v2166_v4, -inf }
 0x6d7   : > { %2169 = vmax.xlane.f32.xlu0 %v2168_v6 }
 0x763   : > { %v2173_v7 = vpop.xlane.xlu1 %2172 }
 0x764   : > { %v2175_v9 = vsub.f32 %v2167_v3, %v2173_v7  ;;  %v2170_v10 = vpop.xlane.xlu0 %2169 }
 0x765   : > { %v2174_v11 = vsub.f32 %v2166_v4, %v2170_v10 }
 0x766   : > { %v2178_v13 = vmul.f32 1.442695, %v2175_v9 }
 0x767   : > { %v2176_v14 = vmul.f32 1.442695, %v2174_v11 }
 0x768   : > { %13865 = vpow2.f32 %v2178_v13 }
 0x769   : > { %13867 = vpow2.f32 %v2176_v14 }
 0x772   : > { %v13866_v15 = vpop.eup %13865 }
 0x773   : > { %v13868_v16 = vpop.eup %13867  ;;  %v2183_v17 = vsel %vm1640_vm8, %v13866_v15, 0.0 }
 0x774   : > { %2184 = vadd.xlane.f32.xlu1 %v2183_v17  ;;  %v2180_v18 = vsel %vm1636_vm7, %v13868_v16, 0.0 }
 0x775   : > { %2181 = vadd.xlane.f32.xlu0 %v2180_v18 }
 0x801   : > { %v2185_v23 = vpop.xlane.xlu1 %2184 }
 0x802   : > { %13869 = vrcp.f32 %v2185_v23  ;;  %v2182_v24 = vpop.xlane.xlu0 %2181  ;;  %v1241_v23 = vld [vmem:[%s14103_s3 + $0x60] sm:$0xff] }
 0x803   : > { %13871 = vrcp.f32 %v2182_v24  ;;  %v1242_v24 = vld [vmem:[%s14103_s3 + $0x68] sm:$0xff] }
 0x80c   : > { %v13870_v25 = vpop.eup %13869 }
 0x80d   : > { %v13872_v28 = vpop.eup %13871  ;;  %v2189_v30 = vmul.f32 %v13870_v25, %v13866_v15  ;;  %v13270_v25 = vpack.c.bf16 %v1242_v24, %v1241_v23 }
 0x80e   : > { %v2188_v29 = vmul.f32 %v13872_v28, %v13868_v16 }
 0x810   : > { %12435 = vmatprep.mubr.msk.f32.mxu1 %vm1636_vm7, %v2188_v29 }
 0x811   : > { %12436 = vmatmul.mubr.msk.f32.vlgmr.msra.gmra.mrb[10].mxu1 %vm1636_vm7, %v2189_v30  ;;  %v1243_v30 = vld [vmem:[%s14103_s3 + $0x70] sm:$0xff] }
 0x812   : > { %13237 = vmatpush3.bf16.msra.mxu1 %v13234_v21  ;;  %12451 = vmatprep.mubr.msk.f32.mxu1 %vm1300_vm1, %v14283_v37 }
 0x813   : > { %13239 = vmatprep.subr.bf16.mxu1 %v13238_v31 }
 0x816   : > { %13241 = vmatpush3.bf16.msra.mxu1 %v13238_v31  ;;  %v1244_v31 = vld [vmem:[%s14103_s3 + $0x78] sm:$0xff] }
 0x817   : > { %13251 = vmatprep.subr.bf16.mxu1 %v13250_v34  ;;  %v13274_v35 = vpack.c.bf16 %v1244_v31, %v1243_v30 }
 0x819   : > { %12452 = vmatmul.mubr.msk.f32.vlgmr.msra.gmra.mrb[12].mxu1 %vm1300_vm1, %v14285_v38 }
 0x81a   : > { %13253 = vmatpush3.bf16.msra.mxu1 %v13250_v34  ;;  %12473 = vmatprep.mubr.msk.f32.mxu1 %vm1300_vm1, %v14283_v37 }
 0x81b   : > { %13255 = vmatprep.subr.bf16.mxu1 %v13254_v39 }
 0x81e   : > { %13257 = vmatpush3.bf16.msra.mxu1 %v13254_v39  ;;  %v1282_v39 = vld [vmem:[%s14123_s24 + $0x68] sm:$0xff] }
 0x81f   : > { %v13286_v40 = vpack.c.bf16 %v1282_v39, %v1281_v36 }
 0x821   : > { %12474 = vmatmul.mubr.msk.f32.vlgmr.msra.gmra.mrb[14].mxu1 %vm1300_vm1, %v14285_v38 }
 0x8e4   : > { %v12437_v45 = vpop.f32.mrb[10].mxu1 }
 0x8e5   : > { %v2265_v46 = vpop.f32.mrb[11].mxu1 }
 0x8e6   : > { %12440 = vmatprep.mubr.msk.f32.mxu0 %vm1544_vm3, %v2265_v46 }
 0x8e7   : > { %12441 = vmatmul.mubr.msk.f32.vlgmr.msra.gmra.mrb[6].mxu0 %vm1544_vm3, %v12437_v45  ;;  %v1262_v45 = vld [vmem:[%s14113_s14 + $0x68] sm:$0xff] }
 0x8e8   : > { %13245 = vmatpush3.bf16.msra.mxu0 %v13242_v42  ;;  %12462 = vmatprep.mubr.msk.f32.mxu0 %vm1300_vm1, %v14283_v37  ;;  %v1284_v42 = vld [vmem:[%s14123_s24 + $0x78] sm:$0xff]  ;;  %v13278_v46 = vpack.c.bf16 %v1262_v45, %v1261_v44 }
 0x8e9   : > { %13247 = vmatprep.subr.bf16.mxu0 %v13246_v47  ;;  %v13290_v43 = vpack.c.bf16 %v1284_v42, %v1283_v41 }
 0x8ec   : > { %v12453_v50 = vpop.f32.mrb[12].mxu1  ;;  %13249 = vmatpush3.bf16.msra.mxu0 %v13246_v47  ;;  %v1263_v47 = vld [vmem:[%s14113_s14 + $0x70] sm:$0xff] }
 0x8ed   : > { %v2435_v51 = vadd.f32 %v12453_v50, %v11246_v48  ;;  %v2429_v52 = vpop.f32.mrb[13].mxu1 }
 0x8ee   : > { %v2430_v53 = vadd.f32 %v11246_v48, %v2429_v52  ;;  %v1264_v48 = vld [vmem:[%s14113_s14 + $0x78] sm:$0xff] }
 0x8ef   : > { %12463 = vmatmul.mubr.msk.f32.vlgmr.msra.gmra.mrb[12].mxu0 %vm1300_vm1, %v14285_v38  ;;  %v13282_v52 = vpack.c.bf16 %v1264_v48, %v1263_v47 }
 0x8f0   : > { %12480 = vmatprep.mubr.msk.f32.mxu0 %vm1544_vm3, %v2430_v53  ;;  %v11264_v53 = vld [vmem:[%s14108_s8 + $0x3] ss:$0 sm:$0xff] }
 0x8f4   : > { %v12475_v55 = vpop.f32.mrb[14].mxu1 }
 0x8f5   : > { %v2597_v56 = vadd.f32 %v12475_v55, %v11252_v54  ;;  %v2591_v57 = vpop.f32.mrb[15].mxu1 }
 0x8f6   : > { %v2592_v59 = vadd.f32 %v11252_v54, %v2591_v57 }
 0x8f8   : > { %v13264_v60 = vpack.c.bf16 %v2597_v56, %v2592_v59  ;;  %v11270_v59 = vld [vmem:[%s14128_s30 + $0x3] ss:$0 sm:$0xff] }
 0x8fa   : > { %13266 = vmatprep.subr.msk.bf16.mxu1 %vm14301_vm5, %v13264_v60 }
 0x8fb   : > { %13269 = vmatpush3.bf16.msk.msra.mxu1 %vm14301_vm5, %v13264_v60 }
 0x8fc   : > { %13271 = vmatprep.subr.bf16.mxu1 %v13270_v25 }
 0x9c2   : > { %v12464_v62 = vpop.f32.mrb[12].mxu0 }
 0x9c3   : > { %v2516_v63 = vadd.f32 %v12464_v62, %v11249_v61  ;;  %v2510_v0 = vpop.f32.mrb[13].mxu0 }
 0x9c4   : > { %v2511_v1 = vadd.f32 %v11249_v61, %v2510_v0 }
 0x9c6   : > { %v13258_v2 = vpack.c.bf16 %v2516_v63, %v2511_v1  ;;  %v11267_v1 = vld [vmem:[%s14118_s19 + $0x3] ss:$0 sm:$0xff] }
 0x9c8   : > { %13260 = vmatprep.subr.msk.bf16.mxu0 %vm14315_vm6, %v13258_v2 }
 0x9c9   : > { %13263 = vmatpush3.bf16.xpose.msk.msra.mxu0 %vm14315_vm6, %v13258_v2 }
 0x9ca   : > { %12490 = vmatprep.subr.mxu0 %v1291_v26 }
 0x9d0   : > { %12481 = vmatmul.mubr.msk.f32.vlgmr.msra.gmra.mrb[14].mxu0 %vm1544_vm3, %v2435_v51 }
 0x9d1   : > { %12491 = vmatpush3.msra.mxu0 %v1291_v26 }
 0x9d2   : > { %13279 = vmatprep.subr.bf16.mxu0 %v13278_v46 }
 0xaa3   : > { %v12482_v3 = vpop.f32.mrb[14].mxu0 }
 0xaa4   : > { %v2688_v4 = vmul.f32 0.35355338, %v12482_v3  ;;  %v2678_v5 = vpop.f32.mrb[15].mxu0 }
 0xaa5   : > { %v2687_v6 = vmul.f32 0.35355338, %v2678_v5 }
 0xaa6   : > { %v2690_v7 = vadd.f32 %v2688_v4, %v14346_v12 }
 0xaa7   : > { %v2689_v9 = vadd.f32 %v2687_v6, %v14343_v8 }
 0xaa8   : > { %v2694_v10 = vsel %vm1640_vm8, %v2690_v7, -inf }
 0xaa9   : > { %2695 = vmax.xlane.f32.xlu1 %v2694_v10  ;;  %v2691_v11 = vsel %vm1636_vm7, %v2689_v9, -inf }
 0xaaa   : > { %2692 = vmax.xlane.f32.xlu0 %v2691_v11 }
 0xb36   : > { %v2696_v13 = vpop.xlane.xlu1 %2695 }
 0xb37   : > { %v2698_v14 = vsub.f32 %v2690_v7, %v2696_v13  ;;  %v2693_v15 = vpop.xlane.xlu0 %2692 }
 0xb38   : > { %v2697_v16 = vsub.f32 %v2689_v9, %v2693_v15 }
 0xb39   : > { %v2701_v17 = vmul.f32 1.442695, %v2698_v14 }
 0xb3a   : > { %v2699_v18 = vmul.f32 1.442695, %v2697_v16 }
 0xb3b   : > { %13873 = vpow2.f32 %v2701_v17 }
 0xb3c   : > { %13875 = vpow2.f32 %v2699_v18 }
 0xb45   : > { %v13874_v19 = vpop.eup %13873 }
 0xb46   : > { %v13876_v20 = vpop.eup %13875  ;;  %v2706_v21 = vsel %vm1640_vm8, %v13874_v19, 0.0 }
 0xb47   : > { %2707 = vadd.xlane.f32.xlu1 %v2706_v21  ;;  %v2703_v22 = vsel %vm1636_vm7, %v13876_v20, 0.0 }
 0xb48   : > { %2704 = vadd.xlane.f32.xlu0 %v2703_v22 }
 0xbd4   : > { %v2708_v27 = vpop.xlane.xlu1 %2707 }
 0xbd5   : > { %13877 = vrcp.f32 %v2708_v27  ;;  %v2705_v28 = vpop.xlane.xlu0 %2704 }
 0xbd6   : > { %13879 = vrcp.f32 %v2705_v28 }
 0xbdf   : > { %v13878_v29 = vpop.eup %13877 }
 0xbe0   : > { %v13880_v32 = vpop.eup %13879  ;;  %v2712_v34 = vmul.f32 %v13878_v29, %v13874_v19 }
 0xbe1   : > { %v2711_v33 = vmul.f32 %v13880_v32, %v13876_v20 }
 0xbe3   : > { %12487 = vmatprep.mubr.msk.f32.mxu1 %vm1636_vm7, %v2711_v33 }
 0xbe4   : > { %12488 = vmatmul.mubr.msk.f32.vlgmr.msra.gmra.mrb[16].mxu1 %vm1636_vm7, %v2712_v34  ;;  %v11227_v34 = vld [vmem:[%s14138_s12] ss:$0 sm:$0xff] }
 0xbe5   : > { %13273 = vmatpush3.bf16.msra.mxu1 %v13270_v25  ;;  %12503 = vmatprep.mubr.msk.f32.mxu1 %vm1300_vm1, %v14283_v37  ;;  %v1292_v25 = vld [vmem:[%s14133_s6 + $0x18] sm:$0xff] }
 0xbe6   : > { %13275 = vmatprep.subr.bf16.mxu1 %v13274_v35 }
 0xbe9   : > { %13277 = vmatpush3.bf16.msra.mxu1 %v13274_v35 }
 0xbea   : > { %13287 = vmatprep.subr.bf16.mxu1 %v13286_v40 }
 0xbec   : > { %12504 = vmatmul.mubr.msk.f32.vlgmr.msra.gmra.mrb[18].mxu1 %vm1300_vm1, %v14285_v38 }
 0xbed   : > { %13289 = vmatpush3.bf16.msra.mxu1 %v13286_v40  ;;  %12525 = vmatprep.mubr.msk.f32.mxu1 %vm1300_vm1, %v14283_v37 }
 0xbee   : > { %13291 = vmatprep.subr.bf16.mxu1 %v13290_v43 }
 0xbf1   : > { %13293 = vmatpush3.bf16.msra.mxu1 %v13290_v43 }
 0xbf4   : > { %12526 = vmatmul.mubr.msk.f32.vlgmr.msra.gmra.mrb[20].mxu1 %vm1300_vm1, %v14285_v38 }
 0xcb7   : > { %v12489_v50 = vpop.f32.mrb[16].mxu1 }
 0xcb8   : > { %v2788_v51 = vpop.f32.mrb[17].mxu1 }
 0xcb9   : > { %12492 = vmatprep.mubr.msk.f32.mxu0 %vm1544_vm3, %v2788_v51 }
 0xcba   : > { %12493 = vmatmul.mubr.msk.f32.vlgmr.msra.gmra.mrb[6].mxu0 %vm1544_vm3, %v12489_v50 }
 0xcbb   : > { %13281 = vmatpush3.bf16.msra.mxu0 %v13278_v46  ;;  %12514 = vmatprep.mubr.msk.f32.mxu0 %vm1300_vm1, %v14283_v37 }
 0xcbc   : > { %13283 = vmatprep.subr.bf16.mxu0 %v13282_v52 }
 0xcbf   : > { %v12505_v54 = vpop.f32.mrb[18].mxu1  ;;  %13285 = vmatpush3.bf16.msra.mxu0 %v13282_v52 }
 0xcc0   : > { %v2958_v55 = vadd.f32 %v12505_v54, %v11264_v53  ;;  %v2952_v56 = vpop.f32.mrb[19].mxu1  ;;  %v3471_v54 = vld [vmem:[%s14163_s20] sm:$0xff] }
 0xcc1   : > { %v2953_v57 = vadd.f32 %v11264_v53, %v2952_v56 }
 0xcc2   : > { %12515 = vmatmul.mubr.msk.f32.vlgmr.msra.gmra.mrb[16].mxu0 %vm1300_vm1, %v14285_v38 }
 0xcc3   : > { %12532 = vmatprep.mubr.msk.f32.mxu0 %vm1544_vm3, %v2953_v57  ;;  %v14057_v57 = vmov 0.0|0.0  }
 0xcc7   : > { %v12527_v60 = vpop.f32.mrb[20].mxu1 }
 0xcc8   : > { %v3120_v61 = vadd.f32 %v12527_v60, %v11270_v59  ;;  %v3114_v62 = vpop.f32.mrb[21].mxu1  ;;  %v3452_v60 = vld [vmem:[%s15468_s1 + $0x8] sm:$0xff] }
 0xcc9   : > { %v3115_v63 = vadd.f32 %v11270_v59, %v3114_v62  ;;  %v3451_v59 = vld [vmem:[%s15468_s1] sm:$0xff]  ;;  %v3473_v62 = vld [vmem:[%s14163_s20 + $0x10] sm:$0xff] }
 0xccb   : > { %v13300_v0 = vpack.c.bf16 %v3120_v61, %v3115_v63  ;;  %v13306_v61 = vpack.c.bf16 %v3452_v60, %v3451_v59  ;;  %v3474_v63 = vld [vmem:[%s14163_s20 + $0x18] sm:$0xff]  ;;  %v11289_v59 = vld [vmem:[%s15476_s23] ss:$0 sm:$0xff] }
 0xccd   : > { %13302 = vmatprep.subr.msk.bf16.mxu1 %vm14301_vm5, %v13300_v0 }
 0xcce   : > { %13305 = vmatpush3.bf16.msk.msra.mxu1 %vm14301_vm5, %v13300_v0  ;;  %v13318_v0 = vpack.c.bf16 %v3474_v63, %v3473_v62  ;;  %v3455_v63 = vld [vmem:[%s15468_s1 + $0x20] sm:$0xff] }
 0xccf   : > { %13307 = vmatprep.subr.bf16.mxu1 %v13306_v61 }
 0xd95   : > { %v12516_v2 = vpop.f32.mrb[16].mxu0 }
 0xd96   : > { %v3039_v3 = vadd.f32 %v12516_v2, %v11267_v1  ;;  %v3033_v4 = vpop.f32.mrb[17].mxu0  ;;  %v3454_v2 = vld [vmem:[%s15468_s1 + $0x18] sm:$0xff] }
 0xd97   : > { %v3034_v5 = vadd.f32 %v11267_v1, %v3033_v4  ;;  %v3453_v1 = vld [vmem:[%s15468_s1 + $0x10] sm:$0xff] }
 0xd98   : > { %v13310_v4 = vpack.c.bf16 %v3454_v2, %v3453_v1  ;;  %v3511_v2 = vld [vmem:[%s15477_s2] sm:$0xff] }
 0xd99   : > { %v13294_v6 = vpack.c.bf16 %v3039_v3, %v3034_v5  ;;  %v14512_v3 = vld [vmem:[%s14504_s10] sm:$0x1f]  ;;  %v14059_v5 = vmov 0.0  }
 0xd9b   : > { %13296 = vmatprep.subr.msk.bf16.mxu0 %vm14315_vm6, %v13294_v6 }
 0xd9c   : > { %13299 = vmatpush3.bf16.xpose.msk.msra.mxu0 %vm14315_vm6, %v13294_v6 }
 0xd9d   : > { %12542 = vmatprep.subr.mxu0 %v1292_v25 }
 0xda3   : > { %12533 = vmatmul.mubr.msk.f32.vlgmr.msra.gmra.mrb[18].mxu0 %vm1544_vm3, %v2958_v55  ;;  %v3472_v55 = vld [vmem:[%s14163_s20 + $0x8] sm:$0xff] }
 0xda4   : > { %12543 = vmatpush3.msra.mxu0 %v1292_v25  ;;  %v13315_v56 = vpack.c.bf16 %v3472_v55, %v3471_v54 }
 0xda5   : > { %13314 = vmatprep.subr.bf16.mxu0 %v14057_v57 }
 0xe76   : > { %v12534_v7 = vpop.f32.mrb[18].mxu0 }
 0xe77   : > { %v3211_v9 = vmul.f32 0.35355338, %v12534_v7  ;;  %v3201_v10 = vpop.f32.mrb[19].mxu0 }
 0xe78   : > { %v3210_v11 = vmul.f32 0.35355338, %v3201_v10 }
 0xe79   : > { %v3213_v13 = vadd.f32 %v3211_v9, %v14346_v12 }
 0xe7a   : > { %v3212_v14 = vadd.f32 %v3210_v11, %v14343_v8 }
 0xe7b   : > { %v3217_v15 = vsel %vm1640_vm8, %v3213_v13, -inf }
 0xe7c   : > { %3218 = vmax.xlane.f32.xlu1 %v3217_v15  ;;  %v3214_v16 = vsel %vm1636_vm7, %v3212_v14, -inf  ;;  %v11282_v15 = vld [vmem:[%s15470_s11] ss:$0 sm:$0xff] }
 0xe7d   : > { %3215 = vmax.xlane.f32.xlu0 %v3214_v16 }
 0xf09   : > { %v3219_v17 = vpop.xlane.xlu1 %3218 }
 0xf0a   : > { %v3221_v18 = vsub.f32 %v3213_v13, %v3219_v17  ;;  %v3216_v19 = vpop.xlane.xlu0 %3215 }
 0xf0b   : > { %v3220_v20 = vsub.f32 %v3212_v14, %v3216_v19  ;;  %v11283_v19 = vld [vmem:[%s15471_s15] ss:$0 sm:$0xff] }
 0xf0c   : > { %v3224_v21 = vmul.f32 1.442695, %v3221_v18 }
 0xf0d   : > { %v3222_v22 = vmul.f32 1.442695, %v3220_v20 }
 0xf0e   : > { %13881 = vpow2.f32 %v3224_v21 }
 0xf0f   : > { %13883 = vpow2.f32 %v3222_v22 }
 0xf18   : > { %v13882_v23 = vpop.eup %13881 }
 0xf19   : > { %v13884_v24 = vpop.eup %13883  ;;  %v3229_v12 = vsel %vm1640_vm8, %v13882_v23, 0.0 }
 0xf1a   : > { %3230 = vadd.xlane.f32.xlu1 %v3229_v12  ;;  %v3226_v8 = vsel %vm1636_vm7, %v13884_v24, 0.0 }
 0xf1b   : > { %3227 = vadd.xlane.f32.xlu0 %v3226_v8 }
 0xfa7   : > { %v3231_v26 = vpop.xlane.xlu1 %3230 }
 0xfa8   : > { %13885 = vrcp.f32 %v3231_v26  ;;  %v3228_v27 = vpop.xlane.xlu0 %3227  ;;  %v11284_v26 = vld [vmem:[%s15473_s18] ss:$0 sm:$0xff] }
 0xfa9   : > { %13887 = vrcp.f32 %v3228_v27 }
 0xfb2   : > { %v13886_v28 = vpop.eup %13885 }
 0xfb3   : > { %v13888_v29 = vpop.eup %13887  ;;  %v3235_v31 = vmul.f32 %v13886_v28, %v13882_v23 }
 0xfb4   : > { %v3234_v30 = vmul.f32 %v13888_v29, %v13884_v24  ;;  %v11287_v24 = vld [vmem:[%s15472_s16] ss:$0 sm:$0xff] }
 0xfb6   : > { %12539 = vmatprep.mubr.msk.f32.mxu1 %vm1636_vm7, %v3234_v30 }
 0xfb7   : > { %12540 = vmatmul.mubr.msk.f32.vlgmr.msra.gmra.mrb[22].mxu1 %vm1636_vm7, %v3235_v31  ;;  %v3491_v31 = vld [vmem:[%s15474_s26] sm:$0xff] }
 0xfb8   : > { %13309 = vmatpush3.bf16.msra.mxu1 %v13306_v61 }
 0xfb9   : > { %13311 = vmatprep.subr.bf16.mxu1 %v13310_v4 }
 0xfbc   : > { %13313 = vmatpush3.bf16.msra.mxu1 %v13310_v4 }
 0xfbd   : > { %13320 = vmatprep.subr.bf16.mxu1 %v14057_v57 }
0x108a   : > { %v12541_v32 = vpop.f32.mrb[22].mxu1 }
0x108b   : > { %v3311_v33 = vpop.f32.mrb[23].mxu1 }
0x108c   : > { %12544 = vmatprep.mubr.msk.f32.mxu0 %vm1544_vm3, %v3311_v33  ;;  %v3493_v33 = vld [vmem:[%s15474_s26 + $0x10] sm:$0xff] }
0x108d   : > { %12545 = vmatmul.mubr.msk.f32.vlgmr.msra.gmra.mrb[6].mxu0 %vm1544_vm3, %v12541_v32  ;;  %v3492_v32 = vld [vmem:[%s15474_s26 + $0x8] sm:$0xff] }
0x108e   : > { %13316 = vmatpush3.bf16.msra.mxu0 %v13315_v56  ;;  %12566 = vmatprep.mubr.msk.f32.mxu0 %vm14058_vm10, %v14059_v5 }
0x108f   : > { %13317 = vmatprep.subr.bf16.mxu0 %v14057_v57 }
0x1092   : > { %13319 = vmatpush3.bf16.msra.mxu0 %v13318_v0  ;;  %v3456_v0 = vld [vmem:[%s15468_s1 + $0x28] sm:$0xff] }
0x1093   : > { %v13326_v1 = vpack.c.bf16 %v3456_v0, %v3455_v63 }
0x1095   : > { %12567 = vmatmul.mubr.msk.f32.vlgmr.msra.gmra.mrb[20].mxu0 %vm1300_vm1, %v14512_v3 }
0x1160   : > { %v12546_v35 = vpop.f32.mrb[6].mxu0 }
0x1161   : > { %v13778_v36 = vadd.f32 %v12546_v35, %v11227_v34  ;;  %v3392_v39 = vpop.f32.mrb[7].mxu0  ;;  %v3494_v35 = vld [vmem:[%s15474_s26 + $0x18] sm:$0xff] }
0x1162   : > { %v13779_v40 = vadd.f32 %v11227_v34, %v3392_v39  ;;  %v13321_v34 = vpack.c.bf16 %v3492_v32, %v3491_v31  ;;  %v14549_v39 = vld [vmem:[%s14546_s7] ss:$0 sm:$0xff] }
0x1163   : > { %v3404_v41 = vadd.f32 %v13778_v36, %v14285_v38  ;;  %v13324_v36 = vpack.c.bf16 %v3494_v35, %v3493_v33  ;;  %v3477_v33 = vld [vmem:[%s14163_s20 + $0x30] sm:$0xff] }
0x1164   : > { %v3403_v42 = vadd.f32 %v13779_v40, %v14283_v37 }
0x1165   : > { %v3411_v43 = vsel %vm3410_vm9, %v3404_v41, 0.0 }
0x1166   : > { %3412 = vadd.xlane.f32.xlu1 %v3411_v43  ;;  %v3407_v44 = vsel %vm1300_vm1, %v3403_v42, 0.0 }
0x1167   : > { %3408 = vadd.xlane.f32.xlu0 %v3407_v44 }
0x1168   : > { %v3678_v12 = vpop.f32.mrb[20].mxu0 }
0x1169   : > { %v3679_v8 = vadd.f32 %v11287_v24, %v3678_v12  ;;  %v12568_v25 = vpop.f32.mrb[21].mxu0  ;;  %v3460_v24 = vld [vmem:[%s15468_s1 + $0x48] sm:$0xff] }
0x116a   : > { %v3461_v25 = vld [vmem:[%s15468_s1 + $0x50] sm:$0xff] }
0x116b   : > { %12580 = vmatprep.subr.msk.mxu0 %vm1544_vm3, %v3679_v8 }
0x116c   : > { %12581 = vmatpush3.xpose.msk.msra.mxu0 %vm1544_vm3, %v3679_v8 }
0x11f3   : > { %v3413_v45 = vpop.xlane.xlu1 %3412 }
0x11f4   : > { %v3416_v46 = vmul.f32 0.03125, %v3413_v45  ;;  %v3409_v47 = vpop.xlane.xlu0 %3408 }
0x11f5   : > { %v3415_v48 = vmul.f32 0.03125, %v3409_v47 }
0x11f6   : > { %v3418_v50 = vsub.f32 %v3404_v41, %v3416_v46 }
0x11f7   : > { %v3417_v51 = vsub.f32 %v3403_v42, %v3415_v48 }
0x11f8   : > { %v3420_v38 = vmul.f32 %v3418_v50, %v3418_v50 }
0x11f9   : > { %v3419_v37 = vmul.f32 %v3417_v51, %v3417_v51 }
0x11fa   : > { %v3424_v52 = vsel %vm3410_vm9, %v3420_v38, 0.0 }
0x11fb   : > { %3425 = vadd.xlane.f32.xlu1 %v3424_v52  ;;  %v3421_v53 = vsel %vm1300_vm1, %v3419_v37, 0.0 }
0x11fc   : > { %3422 = vadd.xlane.f32.xlu0 %v3421_v53 }
0x1288   : > { %v3426_v6 = vpop.xlane.xlu1 %3425 }
0x1289   : > { %v3428_v7 = vmul.f32 0.03125, %v3426_v6  ;;  %v3423_v9 = vpop.xlane.xlu0 %3422 }
0x128a   : > { %v3427_v10 = vmul.f32 0.03125, %v3423_v9  ;;  %v3457_v9 = vld [vmem:[%s15468_s1 + $0x30] sm:$0xff] }
0x128b   : > { %v3430_v11 = vadd.f32 1e-05, %v3428_v7 }
0x128c   : > { %v3429_v13 = vadd.f32 1e-05, %v3427_v10  ;;  %v3458_v10 = vld [vmem:[%s15468_s1 + $0x38] sm:$0xff] }
0x128d   : > { %13889 = vrsqrt.f32 %v3430_v11 }
0x128e   : > { %13891 = vrsqrt.f32 %v3429_v13 }
0x1297   : > { %v13890_v14 = vpop.eup %13889 }
0x1298   : > { %v13892_v16 = vpop.eup %13891  ;;  %v3434_v17 = vmul.f32 %v13890_v14, %v3418_v50 }
0x1299   : > { %v3433_v18 = vmul.f32 %v13892_v16, %v3417_v51  ;;  %v3495_v16 = vld [vmem:[%s15474_s26 + $0x20] sm:$0xff] }
0x129a   : > { %v3442_v20 = vmul.f32 %v11282_v15, %v3434_v17  ;;  %v3496_v17 = vld [vmem:[%s15474_s26 + $0x28] sm:$0xff] }
0x129b   : > { %v3441_v21 = vmul.f32 %v11282_v15, %v3433_v18  ;;  %v13330_v15 = vpack.c.bf16 %v3458_v10, %v3457_v9  ;;  %v13341_v18 = vpack.c.bf16 %v3496_v17, %v3495_v16 }
0x129c   : > { %v14523_v23 = vadd.f32 %v11283_v19, %v3442_v20  ;;  %v3498_v20 = vld [vmem:[%s15474_s26 + $0x38] sm:$0xff] }
0x129d   : > { %v14521_v22 = vadd.f32 %v11283_v19, %v3441_v21  ;;  %v3497_v19 = vld [vmem:[%s15474_s26 + $0x30] sm:$0xff]  ;;  %v3459_v21 = vld [vmem:[%s15468_s1 + $0x40] sm:$0xff] }
0x129e   : > { %v13344_v12 = vpack.c.bf16 %v3498_v20, %v3497_v19  ;;  %v13346_v8 = vpack.c.bf16 %v3460_v24, %v3459_v21  ;;  %v3479_v24 = vld [vmem:[%s14163_s20 + $0x40] sm:$0xff] }
0x129f   : > { %12555 = vmatprep.mubr.msk.f32.mxu1 %vm1300_vm1, %v14521_v22 }
0x12a0   : > { %12556 = vmatmul.mubr.msk.f32.vlgmr.msra.gmra.mrb[24].mxu1 %vm1300_vm1, %v14523_v23 }
0x12a1   : > { %12577 = vmatprep.mubr.msk.f32.mxu1 %vm14058_vm10, %v14059_v5  ;;  %13322 = vmatpush3.bf16.msra.mxu1 %v13321_v34  ;;  %v3478_v34 = vld [vmem:[%s14163_s20 + $0x38] sm:$0xff] }
0x12a2   : > { %13323 = vmatprep.subr.bf16.mxu1 %v14057_v57  ;;  %v13338_v35 = vpack.c.bf16 %v3478_v34, %v3477_v33 }
0x12a5   : > { %13325 = vmatpush3.bf16.msra.mxu1 %v13324_v36  ;;  %v11301_v36 = vld [vmem:[%s15473_s18 + $0x1] ss:$0 sm:$0xff] }
0x12a6   : > { %12590 = vmatprep.subr.mxu1 %v3511_v2 }
0x12a8   : > { %12578 = vmatmul.mubr.msk.f32.vlgmr.msra.gmra.mrb[26].mxu1 %vm1300_vm1, %v14512_v3 }
0x12a9   : > { %12591 = vmatpush3.msra.mxu1 %v3511_v2 }
0x12aa   : > { %13334 = vmatprep.subr.bf16.mxu1 %v14057_v57 }
0x1373   : > { %v12557_v27 = vpop.f32.mrb[24].mxu1 }
0x1374   : > { %v3594_v28 = vpop.f32.mrb[25].mxu1  ;;  %v3600_v30 = vadd.f32 %v12557_v27, %v11284_v26 }
0x1375   : > { %v3595_v29 = vadd.f32 %v11284_v26, %v3594_v28  ;;  %v3462_v26 = vld [vmem:[%s15468_s1 + $0x58] sm:$0xff]  ;;  %v3475_v28 = vld [vmem:[%s14163_s20 + $0x20] sm:$0xff] }
0x1376   : > { %v13350_v27 = vpack.c.bf16 %v3462_v26, %v3461_v25 }
0x1377   : > { %12582 = vmatprep.mubr.msk.f32.mxu0 %vm1544_vm3, %v3595_v29  ;;  %v3476_v29 = vld [vmem:[%s14163_s20 + $0x28] sm:$0xff] }
0x1378   : > { %12583 = vmatmul.mubr.msk.f32.vlgmr.msra.gmra.mrb[22].mxu0 %vm1544_vm3, %v3600_v30  ;;  %v13335_v31 = vpack.c.bf16 %v3476_v29, %v3475_v28  ;;  %v3482_v28 = vld [vmem:[%s14163_s20 + $0x58] sm:$0xff] }
0x137b   : > { %v3754_v60 = vpop.f32.mrb[26].mxu1 }
0x137c   : > { %v3755_v61 = vadd.f32 %v11289_v59, %v3754_v60  ;;  %v12579_v62 = vpop.f32.mrb[27].mxu1 }
0x137e   : > { %12585 = vmatprep.subr.msk.mxu0 %vm3882_vm13, %v3755_v61 }
0x137f   : > { %12586 = vmatpush3.msk.msra.mxu0 %vm3882_vm13, %v3755_v61 }
0x1380   : > { %13327 = vmatprep.subr.bf16.mxu0 %v13326_v1 }
0x144b   : > { %v12584_v40 = vpop.f32.mrb[22].mxu0 }
0x144c   : > { %v3843_v41 = vmul.f32 0.35355338, %v12584_v40  ;;  %v3833_v42 = vpop.f32.mrb[23].mxu0 }
0x144d   : > { %v3842_v43 = vmul.f32 0.35355338, %v3833_v42 }
0x144e   : > { %v3851_v44 = vadd.f32 %v14549_v39, %v3843_v41 }
0x144f   : > { %v3850_v45 = vadd.f32 %v14549_v39, %v3842_v43 }
0x1450   : > { %v3857_v46 = vsel %vm3856_vm11, %v3851_v44, -inf }
0x1451   : > { %3858 = vmax.xlane.f32.xlu1 %v3857_v46  ;;  %v3853_v47 = vsel %vm3852_vm12, %v3850_v45, -inf  ;;  %v14607_v46 = vld [vmem:[%s15473_s18 + $0x2] ss:$0 sm:$0xff] }
0x1452   : > { %3854 = vmax.xlane.f32.xlu0 %v3853_v47 }
0x14de   : > { %v3859_v48 = vpop.xlane.xlu1 %3858 }
0x14df   : > { %v3861_v50 = vsub.f32 %v3851_v44, %v3859_v48  ;;  %v3855_v51 = vpop.xlane.xlu0 %3854 }
0x14e0   : > { %v3860_v38 = vsub.f32 %v3850_v45, %v3855_v51  ;;  %v11306_v51 = vld [vmem:[%s15476_s23 + $0x1] ss:$0 sm:$0xff] }
0x14e1   : > { %v3864_v37 = vmul.f32 1.442695, %v3861_v50 }
0x14e2   : > { %v3862_v52 = vmul.f32 1.442695, %v3860_v38  ;;  %v11304_v38 = vld [vmem:[%s15472_s16 + $0x1] ss:$0 sm:$0xff] }
0x14e3   : > { %13893 = vpow2.f32 %v3864_v37 }
0x14e4   : > { %13895 = vpow2.f32 %v3862_v52 }
0x14ed   : > { %v13894_v53 = vpop.eup %13893 }
0x14ee   : > { %v13896_v54 = vpop.eup %13895  ;;  %v3869_v55 = vsel %vm3856_vm11, %v13894_v53, 0.0 }
0x14ef   : > { %3870 = vadd.xlane.f32.xlu1 %v3869_v55  ;;  %v3866_v56 = vsel %vm3852_vm12, %v13896_v54, 0.0 }
0x14f0   : > { %3867 = vadd.xlane.f32.xlu0 %v3866_v56 }
0x157c   : > { %v3871_v4 = vpop.xlane.xlu1 %3870 }
0x157d   : > { %13897 = vrcp.f32 %v3871_v4  ;;  %v3868_v6 = vpop.xlane.xlu0 %3867 }
0x157e   : > { %13899 = vrcp.f32 %v3868_v6 }
0x1587   : > { %v13898_v7 = vpop.eup %13897 }
0x1588   : > { %v13900_v11 = vpop.eup %13899  ;;  %v3875_v14 = vmul.f32 %v13898_v7, %v13894_v53 }
0x1589   : > { %v3874_v13 = vmul.f32 %v13900_v11, %v13896_v54 }
0x158b   : > { %12587 = vmatprep.mubr.msk.f32.mxu0 %vm3852_vm12, %v3874_v13 }
0x158c   : > { %12588 = vmatmul.mubr.msk.f32.vlgmr.msra.gmra.mrb[24].mxu0 %vm3852_vm12, %v3875_v14 }
0x158d   : > { %13329 = vmatpush3.bf16.msra.mxu0 %v13326_v1  ;;  %12603 = vmatprep.mubr.msk.f32.mxu0 %vm1300_vm1, %v14521_v22 }
0x158e   : > { %13331 = vmatprep.subr.bf16.mxu0 %v13330_v15 }
0x1591   : > { %13333 = vmatpush3.bf16.msra.mxu0 %v13330_v15  ;;  %v3512_v15 = vld [vmem:[%s15477_s2 + $0x8] sm:$0xff] }
0x1592   : > { %13340 = vmatprep.subr.bf16.mxu0 %v14057_v57 }
0x1594   : > { %12604 = vmatmul.mubr.msk.f32.vlgmr.msra.gmra.mrb[26].mxu0 %vm1300_vm1, %v14523_v23 }
0x1595   : > { %13342 = vmatpush3.bf16.msra.mxu0 %v13341_v18  ;;  %12625 = vmatprep.mubr.msk.f32.mxu0 %vm14058_vm10, %v14059_v5 }
0x1596   : > { %13343 = vmatprep.subr.bf16.mxu0 %v14057_v57 }
0x1599   : > { %13345 = vmatpush3.bf16.msra.mxu0 %v13344_v12  ;;  %v3480_v12 = vld [vmem:[%s14163_s20 + $0x48] sm:$0xff] }
0x159a   : > { %13347 = vmatprep.subr.bf16.mxu0 %v13346_v8  ;;  %v13355_v25 = vpack.c.bf16 %v3480_v12, %v3479_v24 }
0x159c   : > { %12626 = vmatmul.mubr.msk.f32.vlgmr.msra.gmra.mrb[28].mxu0 %vm1300_vm1, %v14512_v3 }
0x159d   : > { %13349 = vmatpush3.bf16.msra.mxu0 %v13346_v8  ;;  %12651 = vmatprep.mubr.msk.f32.mxu0 %vm1300_vm1, %v14521_v22 }
0x159e   : > { %13351 = vmatprep.subr.bf16.mxu0 %v13350_v27 }
0x15a1   : > { %13353 = vmatpush3.bf16.msra.mxu0 %v13350_v27  ;;  %v3481_v27 = vld [vmem:[%s14163_s20 + $0x50] sm:$0xff] }
0x15a2   : > { %13360 = vmatprep.subr.bf16.mxu0 %v14057_v57  ;;  %v13358_v29 = vpack.c.bf16 %v3482_v28, %v3481_v27  ;;  %v11331_v28 = vld [vmem:[%s15473_s18 + $0x3] ss:$0 sm:$0xff] }
0x15a4   : > { %12652 = vmatmul.mubr.msk.f32.vlgmr.msra.gmra.mrb[30].mxu0 %vm1300_vm1, %v14523_v23 }
0x15a5   : > { %12673 = vmatprep.mubr.msk.f32.mxu0 %vm14058_vm10, %v14059_v5 }
0x165f   : > { %v12589_v30 = vpop.f32.mrb[24].mxu0 }
0x1660   : > { %v3952_v32 = vpop.f32.mrb[25].mxu0 }
0x1661   : > { %12592 = vmatprep.mubr.msk.f32.mxu1 %vm1544_vm3, %v3952_v32 }
0x1662   : > { %12593 = vmatmul.mubr.msk.f32.vlgmr.msra.gmra.mrb[28].mxu1 %vm1544_vm3, %v12589_v30 }
0x1663   : > { %13336 = vmatpush3.bf16.msra.mxu1 %v13335_v31  ;;  %12614 = vmatprep.mubr.msk.f32.mxu1 %vm14058_vm10, %v14059_v5  ;;  %v11319_v31 = vld [vmem:[%s15472_s16 + $0x2] ss:$0 sm:$0xff] }
0x1664   : > { %13337 = vmatprep.subr.bf16.mxu1 %v14057_v57 }
0x1667   : > { %v12605_v40 = vpop.f32.mrb[26].mxu0  ;;  %13339 = vmatpush3.bf16.msra.mxu1 %v13338_v35  ;;  %v3499_v35 = vld [vmem:[%s15474_s26 + $0x40] sm:$0xff] }
0x1668   : > { %v4128_v41 = vadd.f32 %v12605_v40, %v11301_v36  ;;  %v4122_v42 = vpop.f32.mrb[27].mxu0  ;;  %v3501_v40 = vld [vmem:[%s15474_s26 + $0x50] sm:$0xff] }
0x1669   : > { %v4123_v43 = vadd.f32 %v11301_v36, %v4122_v42  ;;  %v3500_v36 = vld [vmem:[%s15474_s26 + $0x48] sm:$0xff]  ;;  %v3502_v42 = vld [vmem:[%s15474_s26 + $0x58] sm:$0xff] }
0x166a   : > { %12615 = vmatmul.mubr.msk.f32.vlgmr.msra.gmra.mrb[30].mxu1 %vm1300_vm1, %v14512_v3 }
0x166b   : > { %12630 = vmatprep.mubr.msk.f32.mxu1 %vm1544_vm3, %v4123_v43  ;;  %v13364_v43 = vpack.c.bf16 %v3502_v42, %v3501_v40  ;;  %v3503_v40 = vld [vmem:[%s15474_s26 + $0x60] sm:$0xff]  ;;  %v3505_v42 = vld [vmem:[%s15474_s26 + $0x70] sm:$0xff] }
0x166f   : > { %v4279_v44 = vpop.f32.mrb[28].mxu0 }
0x1670   : > { %v12627_v45 = vpop.f32.mrb[29].mxu0  ;;  %v4280_v52 = vadd.f32 %v11306_v51, %v4279_v44 }
0x1677   : > { %v12653_v47 = vpop.f32.mrb[30].mxu0 }
0x1678   : > { %v14610_v48 = vadd.f32 %v12653_v47, %v14607_v46  ;;  %v14612_v50 = vpop.f32.mrb[31].mxu0 }
0x1679   : > { %v4633_v30 = vadd.f32 %v14607_v46, %v14612_v50 }
0x173d   : > { %v4203_v37 = vpop.f32.mrb[30].mxu1 }
0x173e   : > { %v4204_v53 = vadd.f32 %v11304_v38, %v4203_v37  ;;  %v12616_v54 = vpop.f32.mrb[31].mxu1 }
0x1740   : > { %12628 = vmatprep.subr.msk.mxu1 %vm1544_vm3, %v4204_v53 }
0x1741   : > { %12629 = vmatpush3.xpose.msk.msra.mxu1 %vm1544_vm3, %v4204_v53 }
0x1742   : > { %12633 = vmatprep.subr.msk.mxu1 %vm3882_vm13, %v4280_v52 }
0x1744   : > { %12631 = vmatmul.mubr.msk.f32.vlgmr.msra.gmra.mrb[32].mxu1 %vm1544_vm3, %v4128_v41  ;;  %v13361_v41 = vpack.c.bf16 %v3500_v36, %v3499_v35 }
0x1745   : > { %12634 = vmatpush3.msk.msra.mxu1 %vm3882_vm13, %v4280_v52 }
0x1746   : > { %12638 = vmatprep.subr.mxu1 %v3512_v15  ;;  %13362 = vmatpush3.bf16.msra.mxu0 %v13361_v41  ;;  %v3504_v41 = vld [vmem:[%s15474_s26 + $0x68] sm:$0xff] }
0x1747   : > { %13363 = vmatprep.subr.bf16.mxu0 %v14057_v57 }
0x174a   : > { %13365 = vmatpush3.bf16.msra.mxu0 %v13364_v43  ;;  %v13381_v43 = vpack.c.bf16 %v3504_v41, %v3503_v40  ;;  %v5633_v40 = vld [vmem:[%s15479_s13 + $0x38] sm:$0xff]  ;;  %v5626_v41 = vld [vmem:[%s15479_s13] sm:$0xff] }
0x174d   : > { %12674 = vmatmul.mubr.msk.f32.vlgmr.msra.gmra.mrb[32].mxu0 %vm1300_vm1, %v14512_v3 }
0x1817   : > { %v12632_v55 = vpop.f32.mrb[32].mxu1 }
0x1818   : > { %v4368_v56 = vmul.f32 0.35355338, %v12632_v55  ;;  %v4358_v59 = vpop.f32.mrb[33].mxu1 }
0x1819   : > { %v4367_v60 = vmul.f32 0.35355338, %v4358_v59 }
0x181a   : > { %v4370_v61 = vadd.f32 %v14549_v39, %v4368_v56 }
0x181b   : > { %v4369_v62 = vadd.f32 %v14549_v39, %v4367_v60 }
0x181c   : > { %v4374_v63 = vsel %vm3856_vm11, %v4370_v61, -inf }
0x181d   : > { %4375 = vmax.xlane.f32.xlu1 %v4374_v63  ;;  %v4371_v0 = vsel %vm3852_vm12, %v4369_v62, -inf  ;;  %v11321_v63 = vld [vmem:[%s15476_s23 + $0x2] ss:$0 sm:$0xff] }
0x181e   : > { %4372 = vmax.xlane.f32.xlu0 %v4371_v0 }
0x1820   : > { %v4789_v0 = vpop.f32.mrb[32].mxu0 }
0x18aa   : > { %v4376_v1 = vpop.xlane.xlu1 %4375 }
0x18ab   : > { %v4378_v2 = vsub.f32 %v4370_v61, %v4376_v1  ;;  %v4373_v4 = vpop.xlane.xlu0 %4372  ;;  %v4790_v1 = vadd.f32 %v11321_v63, %v4789_v0  ;;  %v11336_v63 = vld [vmem:[%s15476_s23 + $0x3] ss:$0 sm:$0xff] }
0x18ac   : > { %v4377_v6 = vsub.f32 %v4369_v62, %v4373_v4  ;;  %v3463_v4 = vld [vmem:[%s15468_s1 + $0x60] sm:$0xff] }
0x18ad   : > { %v4381_v7 = vmul.f32 1.442695, %v4378_v2  ;;  %v12675_v2 = vpop.f32.mrb[33].mxu0  ;;  %12681 = vmatprep.subr.msk.mxu0 %vm3882_vm13, %v4790_v1 }
0x18ae   : > { %v4379_v9 = vmul.f32 1.442695, %v4377_v6  ;;  %v3464_v6 = vld [vmem:[%s15468_s1 + $0x68] sm:$0xff]  ;;  %12682 = vmatpush3.msk.msra.mxu0 %vm3882_vm13, %v4790_v1 }
0x18af   : > { %13901 = vpow2.f32 %v4381_v7  ;;  %v13366_v7 = vpack.c.bf16 %v3464_v6, %v3463_v4  ;;  %v3514_v4 = vld [vmem:[%s15477_s2 + $0x18] sm:$0xff] }
0x18b0   : > { %13903 = vpow2.f32 %v4379_v9  ;;  %v3513_v9 = vld [vmem:[%s15477_s2 + $0x10] sm:$0xff] }
0x18b1   : > { %13367 = vmatprep.subr.bf16.mxu0 %v13366_v7 }
0x18b9   : > { %v13902_v10 = vpop.eup %13901 }
0x18ba   : > { %v13904_v11 = vpop.eup %13903  ;;  %v4386_v13 = vsel %vm3856_vm11, %v13902_v10, 0.0 }
0x18bb   : > { %4387 = vadd.xlane.f32.xlu1 %v4386_v13  ;;  %v4383_v14 = vsel %vm3852_vm12, %v13904_v11, 0.0 }
0x18bc   : > { %4384 = vadd.xlane.f32.xlu0 %v4383_v14  ;;  %v3465_v14 = vld [vmem:[%s15468_s1 + $0x70] sm:$0xff] }
0x1948   : > { %v4388_v16 = vpop.xlane.xlu1 %4387 }
0x1949   : > { %13905 = vrcp.f32 %v4388_v16  ;;  %v4385_v17 = vpop.xlane.xlu0 %4384 }
0x194a   : > { %13907 = vrcp.f32 %v4385_v17 }
0x1953   : > { %v13906_v18 = vpop.eup %13905 }
0x1954   : > { %v13908_v19 = vpop.eup %13907  ;;  %v4392_v21 = vmul.f32 %v13906_v18, %v13902_v10 }
0x1955   : > { %v4391_v20 = vmul.f32 %v13908_v19, %v13904_v11 }
0x1957   : > { %12635 = vmatprep.mubr.msk.f32.mxu1 %vm3852_vm12, %v4391_v20  ;;  %v3483_v20 = vld [vmem:[%s14163_s20 + $0x60] sm:$0xff] }
0x1958   : > { %12636 = vmatmul.mubr.msk.f32.vlgmr.msra.gmra.mrb[34].mxu1 %vm3852_vm12, %v4392_v21  ;;  %v3484_v21 = vld [vmem:[%s14163_s20 + $0x68] sm:$0xff] }
0x1959   : > { %12639 = vmatpush3.msra.mxu1 %v3512_v15  ;;  %v3466_v15 = vld [vmem:[%s15468_s1 + $0x78] sm:$0xff]  ;;  %v13375_v12 = vpack.c.bf16 %v3484_v21, %v3483_v20 }
0x195a   : > { %13354 = vmatprep.subr.bf16.mxu1 %v14057_v57  ;;  %v13370_v19 = vpack.c.bf16 %v3466_v15, %v3465_v14 }
0x1a2b   : > { %v12637_v8 = vpop.f32.mrb[34].mxu1 }
0x1a2c   : > { %v4468_v26 = vpop.f32.mrb[35].mxu1 }
0x1a2d   : > { %12640 = vmatprep.mubr.msk.f32.mxu1 %vm1544_vm3, %v4468_v26  ;;  %v3486_v26 = vld [vmem:[%s14163_s20 + $0x78] sm:$0xff] }
0x1a2e   : > { %12641 = vmatmul.mubr.msk.f32.vlgmr.msra.gmra.mrb[28].mxu1 %vm1544_vm3, %v12637_v8 }
0x1a2f   : > { %13356 = vmatpush3.bf16.msra.mxu1 %v13355_v25  ;;  %12662 = vmatprep.mubr.msk.f32.mxu1 %vm14058_vm10, %v14059_v5  ;;  %v3485_v25 = vld [vmem:[%s14163_s20 + $0x70] sm:$0xff] }
0x1a30   : > { %13357 = vmatprep.subr.bf16.mxu1 %v14057_v57  ;;  %v13378_v27 = vpack.c.bf16 %v3486_v26, %v3485_v25 }
0x1a33   : > { %13359 = vmatpush3.bf16.msra.mxu1 %v13358_v29 }
0x1a36   : > { %12663 = vmatmul.mubr.msk.f32.vlgmr.msra.gmra.mrb[36].mxu1 %vm1300_vm1, %v14512_v3 }
0x1a37   : > { %12678 = vmatprep.mubr.msk.f32.mxu1 %vm1544_vm3, %v4633_v30 }
0x1b09   : > { %v4713_v32 = vpop.f32.mrb[36].mxu1 }
0x1b0a   : > { %v4714_v33 = vadd.f32 %v11319_v31, %v4713_v32  ;;  %v12664_v34 = vpop.f32.mrb[37].mxu1 }
0x1b0c   : > { %12676 = vmatprep.subr.msk.mxu1 %vm1544_vm3, %v4714_v33 }
0x1b0d   : > { %12677 = vmatpush3.xpose.msk.msra.mxu1 %vm1544_vm3, %v4714_v33  ;;  %v11334_v33 = vld [vmem:[%s15472_s16 + $0x3] ss:$0 sm:$0xff] }
0x1b0e   : > { %12686 = vmatprep.subr.mxu1 %v3513_v9 }
0x1b10   : > { %12679 = vmatmul.mubr.msk.f32.vlgmr.msra.gmra.mrb[38].mxu1 %vm1544_vm3, %v14610_v48 }
0x1b11   : > { %12687 = vmatpush3.msra.mxu1 %v3513_v9 }
0x1b12   : > { %13374 = vmatprep.subr.bf16.mxu1 %v14057_v57 }
0x1be3   : > { %v12680_v44 = vpop.f32.mrb[38].mxu1 }
0x1be4   : > { %v4878_v45 = vmul.f32 0.35355338, %v12680_v44  ;;  %v4868_v46 = vpop.f32.mrb[39].mxu1  ;;  %v3506_v44 = vld [vmem:[%s15474_s26 + $0x78] sm:$0xff] }
0x1be5   : > { %v4877_v47 = vmul.f32 0.35355338, %v4868_v46 }
0x1be6   : > { %v4880_v50 = vadd.f32 %v14549_v39, %v4878_v45  ;;  %v13384_v45 = vpack.c.bf16 %v3506_v44, %v3505_v42  ;;  %v5630_v42 = vld [vmem:[%s15479_s13 + $0x20] sm:$0xff] }
0x1be7   : > { %v4879_v48 = vadd.f32 %v14549_v39, %v4877_v47  ;;  %v13388_v44 = vpack.c.bf16 %v5630_v42, %v5626_v41 }
0x1be8   : > { %v4884_v51 = vsel %vm3856_vm11, %v4880_v50, -inf }
0x1be9   : > { %4885 = vmax.xlane.f32.xlu1 %v4884_v51  ;;  %v4881_v38 = vsel %vm3852_vm12, %v4879_v48, -inf }
0x1bea   : > { %4882 = vmax.xlane.f32.xlu0 %v4881_v38 }
0x1c76   : > { %v4886_v37 = vpop.xlane.xlu1 %4885 }
0x1c77   : > { %v4888_v52 = vsub.f32 %v4880_v50, %v4886_v37  ;;  %v4883_v53 = vpop.xlane.xlu0 %4882 }
0x1c78   : > { %v4887_v54 = vsub.f32 %v4879_v48, %v4883_v53 }
0x1c79   : > { %v4891_v55 = vmul.f32 1.442695, %v4888_v52 }
0x1c7a   : > { %v4889_v56 = vmul.f32 1.442695, %v4887_v54 }
0x1c7b   : > { %13909 = vpow2.f32 %v4891_v55 }
0x1c7c   : > { %13911 = vpow2.f32 %v4889_v56 }
0x1c85   : > { %v13910_v59 = vpop.eup %13909 }
0x1c86   : > { %v13912_v60 = vpop.eup %13911  ;;  %v4896_v61 = vsel %vm3856_vm11, %v13910_v59, 0.0 }
0x1c87   : > { %4897 = vadd.xlane.f32.xlu1 %v4896_v61  ;;  %v4893_v62 = vsel %vm3852_vm12, %v13912_v60, 0.0 }
0x1c88   : > { %4894 = vadd.xlane.f32.xlu0 %v4893_v62 }
0x1d14   : > { %v4898_v10 = vpop.xlane.xlu1 %4897 }
0x1d15   : > { %13913 = vrcp.f32 %v4898_v10  ;;  %v4895_v11 = vpop.xlane.xlu0 %4894 }
0x1d16   : > { %13915 = vrcp.f32 %v4895_v11 }
0x1d1f   : > { %v13914_v13 = vpop.eup %13913 }
0x1d20   : > { %v13916_v16 = vpop.eup %13915  ;;  %v4902_v18 = vmul.f32 %v13914_v13, %v13910_v59 }
0x1d21   : > { %v4901_v17 = vmul.f32 %v13916_v16, %v13912_v60  ;;  %v11300_v16 = vld [vmem:[%s15478_s5] ss:$0 sm:$0xff] }
0x1d23   : > { %12683 = vmatprep.mubr.msk.f32.mxu0 %vm3852_vm12, %v4901_v17 }
0x1d24   : > { %12684 = vmatmul.mubr.msk.f32.vlgmr.msra.gmra.mrb[34].mxu0 %vm3852_vm12, %v4902_v18 }
0x1d25   : > { %13369 = vmatpush3.bf16.msra.mxu0 %v13366_v7  ;;  %12699 = vmatprep.mubr.msk.f32.mxu0 %vm1300_vm1, %v14521_v22 }
0x1d26   : > { %13371 = vmatprep.subr.bf16.mxu0 %v13370_v19 }
0x1d29   : > { %13373 = vmatpush3.bf16.msra.mxu0 %v13370_v19 }
0x1d2a   : > { %13380 = vmatprep.subr.bf16.mxu0 %v14057_v57 }
0x1d2c   : > { %12700 = vmatmul.mubr.msk.f32.vlgmr.msra.gmra.mrb[36].mxu0 %vm1300_vm1, %v14523_v23 }
0x1d2d   : > { %12721 = vmatprep.mubr.msk.f32.mxu0 %vm14058_vm10, %v14059_v5  ;;  %13382 = vmatpush3.bf16.msra.mxu0 %v13381_v43 }
0x1d2e   : > { %13383 = vmatprep.subr.bf16.mxu0 %v14057_v57 }
0x1d31   : > { %13385 = vmatpush3.bf16.msra.mxu0 %v13384_v45  ;;  %v5628_v45 = vld [vmem:[%s15479_s13 + $0x10] sm:$0xff] }
0x1d34   : > { %12722 = vmatmul.mubr.msk.f32.vlgmr.msra.gmra.mrb[38].mxu0 %vm1300_vm1, %v14512_v3 }
0x1d35   : > { %5799 = vmatprep.mubr.f32.mxu0 %v14059_v5 }
0x1df7   : > { %v12685_v24 = vpop.f32.mrb[34].mxu0 }
0x1df8   : > { %v4978_v8 = vpop.f32.mrb[35].mxu0 }
0x1df9   : > { %12688 = vmatprep.mubr.msk.f32.mxu1 %vm1544_vm3, %v4978_v8 }
0x1dfa   : > { %12689 = vmatmul.mubr.msk.f32.vlgmr.msra.gmra.mrb[28].mxu1 %vm1544_vm3, %v12685_v24 }
0x1dfb   : > { %13376 = vmatpush3.bf16.msra.mxu1 %v13375_v12  ;;  %12710 = vmatprep.mubr.msk.f32.mxu1 %vm14058_vm10, %v14059_v5 }
0x1dfc   : > { %13377 = vmatprep.subr.bf16.mxu1 %v14057_v57 }
0x1dff   : > { %v12701_v29 = vpop.f32.mrb[36].mxu0  ;;  %13379 = vmatpush3.bf16.msra.mxu1 %v13378_v27 }
0x1e00   : > { %v5148_v30 = vadd.f32 %v12701_v29, %v11331_v28  ;;  %v5142_v31 = vpop.f32.mrb[37].mxu0 }
0x1e01   : > { %v5143_v32 = vadd.f32 %v11331_v28, %v5142_v31 }
0x1e02   : > { %12711 = vmatmul.mubr.msk.f32.vlgmr.msra.gmra.mrb[40].mxu1 %vm1300_vm1, %v14512_v3 }
0x1e03   : > { %12726 = vmatprep.mubr.msk.f32.mxu1 %vm1544_vm3, %v5143_v32 }
0x1e07   : > { %v5299_v0 = vpop.f32.mrb[38].mxu0 }
0x1e08   : > { %v5300_v1 = vadd.f32 %v11336_v63, %v5299_v0  ;;  %v12723_v2 = vpop.f32.mrb[39].mxu0  ;;  %v5692_v63 = vld [vmem:[%s15480_s21 + $0x188] sm:$0xff] }
0x1ed5   : > { %v5223_v34 = vpop.f32.mrb[40].mxu1 }
0x1ed6   : > { %v5224_v35 = vadd.f32 %v11334_v33, %v5223_v34  ;;  %v12712_v36 = vpop.f32.mrb[41].mxu1  ;;  %v5627_v33 = vld [vmem:[%s15479_s13 + $0x8] sm:$0xff] }
0x1ed7   : > { %v5631_v34 = vld [vmem:[%s15479_s13 + $0x28] sm:$0xff] }
0x1ed8   : > { %12724 = vmatprep.subr.msk.mxu1 %vm1544_vm3, %v5224_v35  ;;  %v13386_v36 = vpack.c.bf16 %v5631_v34, %v5627_v33  ;;  %v5678_v33 = vld [vmem:[%s15480_s21 + $0x118] sm:$0xff]  ;;  %v5663_v34 = vld [vmem:[%s15480_s21 + $0xa0] sm:$0xff] }
0x1ed9   : > { %12725 = vmatpush3.xpose.msk.msra.mxu1 %vm1544_vm3, %v5224_v35  ;;  %v5629_v35 = vld [vmem:[%s15479_s13 + $0x18] sm:$0xff] }
0x1eda   : > { %12729 = vmatprep.subr.msk.mxu1 %vm3882_vm13, %v5300_v1  ;;  %v13394_v43 = vpack.c.bf16 %v5633_v40, %v5629_v35  ;;  %13387 = vmatprep.subr.bf16.mxu0 %v13386_v36  ;;  %v5664_v35 = vld [vmem:[%s15480_s21 + $0xa8] sm:$0xff]  ;;  %v5695_v36 = vld [vmem:[%s15480_s21 + $0x1a0] sm:$0xff] }
0x1edb   : > { %13389 = vmatpush1.bf16.msra.mxu0 %v13388_v44  ;;  %v5696_v40 = vld [vmem:[%s15480_s21 + $0x1a8] sm:$0xff]  ;;  %v5647_v44 = vld [vmem:[%s15480_s21 + $0x20] sm:$0xff] }
0x1edc   : > { %12727 = vmatmul.mubr.msk.f32.vlgmr.msra.gmra.mrb[42].mxu1 %vm1544_vm3, %v5148_v30 }
0x1edd   : > { %12730 = vmatpush3.msk.msra.mxu1 %vm3882_vm13, %v5300_v1 }
0x1ede   : > { %12734 = vmatprep.subr.mxu1 %v3514_v4 }
0x1faf   : > { %v12728_v46 = vpop.f32.mrb[42].mxu1 }
0x1fb0   : > { %v5388_v47 = vmul.f32 0.35355338, %v12728_v46  ;;  %v5378_v50 = vpop.f32.mrb[43].mxu1  ;;  %v5632_v46 = vld [vmem:[%s15479_s13 + $0x30] sm:$0xff] }
0x1fb1   : > { %v5387_v48 = vmul.f32 0.35355338, %v5378_v50  ;;  %v5635_v50 = vld [vmem:[%s15479_s13 + $0x48] sm:$0xff] }
0x1fb2   : > { %v5390_v51 = vadd.f32 %v14549_v39, %v5388_v47  ;;  %v13396_v47 = vpack.c.bf16 %v5632_v46, %v5628_v45  ;;  %v5648_v45 = vld [vmem:[%s15480_s21 + $0x28] sm:$0xff]  ;;  %v13410_v46 = vpack.c.bf16 %v5664_v35, %v5663_v34  ;;  %v5687_v34 = vld [vmem:[%s15480_s21 + $0x160] sm:$0xff] }
0x1fb3   : > { %v5389_v38 = vadd.f32 %v14549_v39, %v5387_v48  ;;  %v5639_v48 = vld [vmem:[%s15479_s13 + $0x68] sm:$0xff] }
0x1fb4   : > { %v5394_v37 = vsel %vm3856_vm11, %v5390_v51, -inf }
0x1fb5   : > { %5395 = vmax.xlane.f32.xlu1 %v5394_v37  ;;  %v5391_v52 = vsel %vm3852_vm12, %v5389_v38, -inf  ;;  %v5641_v37 = vld [vmem:[%s15479_s13 + $0x78] sm:$0xff] }
0x1fb6   : > { %5392 = vmax.xlane.f32.xlu0 %v5391_v52  ;;  %v5634_v52 = vld [vmem:[%s15479_s13 + $0x40] sm:$0xff] }
0x2042   : > { %v5396_v53 = vpop.xlane.xlu1 %5395 }
0x2043   : > { %v5398_v54 = vsub.f32 %v5390_v51, %v5396_v53  ;;  %v5393_v3 = vpop.xlane.xlu0 %5392  ;;  %v5637_v51 = vld [vmem:[%s15479_s13 + $0x58] sm:$0xff]  ;;  %v5638_v53 = vld [vmem:[%s15479_s13 + $0x60] sm:$0xff] }
0x2044   : > { %v5397_v55 = vsub.f32 %v5389_v38, %v5393_v3  ;;  %v13390_v38 = vpack.c.bf16 %v5639_v48, %v5635_v50  ;;  %v13392_v3 = vpack.c.bf16 %v5638_v53, %v5634_v52  ;;  %v5679_v50 = vld [vmem:[%s15480_s21 + $0x120] sm:$0xff]  ;;  %v5680_v48 = vld [vmem:[%s15480_s21 + $0x128] sm:$0xff]  ;;  %v5698_v52 = vld [vmem:[%s15480_s21 + $0x1b8] sm:$0xff]  ;;  %v13412_v53 = vpack.c.bf16 %v5648_v45, %v5647_v44 }
0x2045   : > { %v5401_v56 = vmul.f32 1.442695, %v5398_v54  ;;  %v13398_v54 = vpack.c.bf16 %v5641_v37, %v5637_v51  ;;  %v5665_v51 = vld [vmem:[%s15480_s21 + $0xb0] sm:$0xff] }
0x2046   : > { %v5399_v59 = vmul.f32 1.442695, %v5397_v55  ;;  %v5636_v55 = vld [vmem:[%s15479_s13 + $0x50] sm:$0xff]  ;;  %13391 = vmatprep.subr.bf16.mxu0 %v13390_v38  ;;  %v5666_v38 = vld [vmem:[%s15480_s21 + $0xb8] sm:$0xff] }
0x2047   : > { %13917 = vpow2.f32 %v5401_v56  ;;  %v5640_v56 = vld [vmem:[%s15479_s13 + $0x70] sm:$0xff]  ;;  %13393 = vmatpush1.bf16.msra.mxu0 %v13392_v3 }
0x2048   : > { %13919 = vpow2.f32 %v5399_v59  ;;  %v13400_v59 = vpack.c.bf16 %v5640_v56, %v5636_v55  ;;  %v5697_v37 = vld [vmem:[%s15480_s21 + $0x1b0] sm:$0xff]  ;;  %v5650_v55 = vld [vmem:[%s15480_s21 + $0x38] sm:$0xff]  ;;  %v13414_v56 = vpack.c.bf16 %v5666_v38, %v5665_v51 }
0x2049   : > { %v5649_v3 = vld [vmem:[%s15480_s21 + $0x30] sm:$0xff] }
0x204a   : > { %v5705_v44 = vld [vmem:[%s15480_s21 + $0x1f0] sm:$0xff] }
0x204b   : > { %v5689_v38 = vld [vmem:[%s15480_s21 + $0x170] sm:$0xff] }
0x2051   : > { %v13918_v60 = vpop.eup %13917 }
0x2052   : > { %v13920_v61 = vpop.eup %13919  ;;  %v5406_v39 = vsel %vm3856_vm11, %v13918_v60, 0.0 }
0x2053   : > { %5407 = vadd.xlane.f32.xlu1 %v5406_v39  ;;  %v5403_v62 = vsel %vm3852_vm12, %v13920_v61, 0.0  ;;  %v5691_v39 = vld [vmem:[%s15480_s21 + $0x180] sm:$0xff] }
0x2054   : > { %5404 = vadd.xlane.f32.xlu0 %v5403_v62  ;;  %v13434_v0 = vpack.c.bf16 %v5692_v63, %v5691_v39  ;;  %v5667_v39 = vld [vmem:[%s15480_s21 + $0xc0] sm:$0xff] }
0x2055   : > { %v5699_v63 = vld [vmem:[%s15480_s21 + $0x1c0] sm:$0xff] }
0x20e0   : > { %v5408_v6 = vpop.xlane.xlu1 %5407 }
0x20e1   : > { %13921 = vrcp.f32 %v5408_v6  ;;  %v5405_v7 = vpop.xlane.xlu0 %5404 }
0x20e2   : > { %13923 = vrcp.f32 %v5405_v7 }
0x20eb   : > { %v13922_v9 = vpop.eup %13921 }
0x20ec   : > { %v13924_v10 = vpop.eup %13923  ;;  %v5412_v13 = vmul.f32 %v13922_v9, %v13918_v60  ;;  %v5659_v60 = vld [vmem:[%s15480_s21 + $0x80] sm:$0xff] }
0x20ed   : > { %v5411_v11 = vmul.f32 %v13924_v10, %v13920_v61  ;;  %v5660_v61 = vld [vmem:[%s15480_s21 + $0x88] sm:$0xff] }
0x20ee   : > { %v13402_v62 = vpack.c.bf16 %v5660_v61, %v5659_v60  ;;  %v5681_v60 = vld [vmem:[%s15480_s21 + $0x130] sm:$0xff]  ;;  %v5682_v61 = vld [vmem:[%s15480_s21 + $0x138] sm:$0xff] }
0x20ef   : > { %12731 = vmatprep.mubr.msk.f32.mxu1 %vm3852_vm12, %v5411_v11 }
0x20f0   : > { %12732 = vmatmul.mubr.msk.f32.vlgmr.msra.gmra.mrb[44].mxu1 %vm3852_vm12, %v5412_v13  ;;  %13403 = vmatprep.subr.bf16.mxu0 %v13402_v62  ;;  %v11346_v13 = vld [vmem:[%s15481_s25] ss:$0 sm:$0xff]  ;;  %v5668_v62 = vld [vmem:[%s15480_s21 + $0xc8] sm:$0xff] }
0x20f1   : > { %12735 = vmatpush3.msra.mxu1 %v3514_v4 }
0x20f2   : > { %13395 = vmatprep.subr.bf16.mxu1 %v13394_v43 }
0x21c3   : > { %v12733_v14 = vpop.f32.mrb[44].mxu1 }
0x21c4   : > { %v5488_v15 = vpop.f32.mrb[45].mxu1 }
0x21c5   : > { %12736 = vmatprep.mubr.msk.f32.mxu1 %vm1544_vm3, %v5488_v15  ;;  %v11347_v15 = vld [vmem:[%s15482_s29] ss:$0 sm:$0xff] }
0x21c6   : > { %12737 = vmatmul.mubr.msk.f32.vlgmr.msra.gmra.mrb[28].mxu1 %vm1544_vm3, %v12733_v14 }
0x21c7   : > { %5876 = vmatprep.mubr.f32.mxu1 %v14059_v5  ;;  %13397 = vmatpush1.bf16.msra.mxu1 %v13396_v47  ;;  %v13442_v47 = vpack.c.bf16 %v5696_v40, %v5695_v36  ;;  %v5688_v36 = vld [vmem:[%s15480_s21 + $0x168] sm:$0xff] }
0x21c8   : > { %13399 = vmatprep.subr.bf16.mxu1 %v13398_v54  ;;  %v13444_v54 = vpack.c.bf16 %v5680_v48, %v5679_v50  ;;  %v13460_v40 = vpack.c.bf16 %v5688_v36, %v5687_v34  ;;  %v5658_v50 = vld [vmem:[%s15480_s21 + $0x78] sm:$0xff] }
0x21cb   : > { %13401 = vmatpush1.bf16.msra.mxu1 %v13400_v59  ;;  %v13446_v59 = vpack.c.bf16 %v5698_v52, %v5697_v37  ;;  %v5690_v37 = vld [vmem:[%s15480_s21 + $0x178] sm:$0xff] }
0x21cc   : > { %13435 = vmatprep.subr.bf16.mxu1 %v13434_v0  ;;  %v5700_v0 = vld [vmem:[%s15480_s21 + $0x1c8] sm:$0xff]  ;;  %v13464_v52 = vpack.c.bf16 %v5690_v37, %v5689_v38 }
0x2299   : > { %v12738_v17 = vpop.f32.mrb[28].mxu1 }
0x229a   : > { %v13780_v18 = vadd.f32 %v12738_v17, %v11300_v16  ;;  %v5569_v19 = vpop.f32.mrb[29].mxu1  ;;  %v5643_v17 = vld [vmem:[%s15480_s21] sm:$0xff] }
0x229b   : > { %v13781_v20 = vadd.f32 %v11300_v16, %v5569_v19  ;;  %v5675_v19 = vld [vmem:[%s15480_s21 + $0x100] sm:$0xff] }
0x229c   : > { %v5581_v21 = vadd.f32 %v13780_v18, %v14523_v23  ;;  %v5644_v18 = vld [vmem:[%s15480_s21 + $0x8] sm:$0xff] }
0x229d   : > { %v5580_v24 = vadd.f32 %v13781_v20, %v14521_v22  ;;  %v5676_v20 = vld [vmem:[%s15480_s21 + $0x108] sm:$0xff] }
0x229e   : > { %v5587_v12 = vsel %vm3410_vm9, %v5581_v21, 0.0 }
0x229f   : > { %5588 = vadd.xlane.f32.xlu1 %v5587_v12  ;;  %v5584_v8 = vsel %vm1300_vm1, %v5580_v24, 0.0  ;;  %v5662_v12 = vld [vmem:[%s15480_s21 + $0x98] sm:$0xff] }
0x22a0   : > { %5585 = vadd.xlane.f32.xlu0 %v5584_v8  ;;  %v5693_v8 = vld [vmem:[%s15480_s21 + $0x190] sm:$0xff] }
0x232c   : > { %v5589_v25 = vpop.xlane.xlu1 %5588 }
0x232d   : > { %v5591_v26 = vmul.f32 0.03125, %v5589_v25  ;;  %v5586_v27 = vpop.xlane.xlu0 %5585  ;;  %v5694_v25 = vld [vmem:[%s15480_s21 + $0x198] sm:$0xff] }
0x232e   : > { %v5590_v28 = vmul.f32 0.03125, %v5586_v27 }
0x232f   : > { %v5593_v29 = vsub.f32 %v5581_v21, %v5591_v26  ;;  %v5661_v21 = vld [vmem:[%s15480_s21 + $0x90] sm:$0xff] }
0x2330   : > { %v5592_v23 = vsub.f32 %v5580_v24, %v5590_v28  ;;  %v13404_v28 = vpack.c.bf16 %v5644_v18, %v5643_v17 }
0x2331   : > { %v5595_v22 = vmul.f32 %v5593_v29, %v5593_v29 }
0x2332   : > { %v5594_v30 = vmul.f32 %v5592_v23, %v5592_v23 }
0x2333   : > { %v5599_v31 = vsel %vm3410_vm9, %v5595_v22, 0.0  ;;  %v5646_v22 = vld [vmem:[%s15480_s21 + $0x18] sm:$0xff] }
0x2334   : > { %5600 = vadd.xlane.f32.xlu1 %v5599_v31  ;;  %v5596_v32 = vsel %vm1300_vm1, %v5594_v30, 0.0  ;;  %v13406_v30 = vpack.c.bf16 %v5662_v12, %v5661_v21  ;;  %v13438_v31 = vpack.c.bf16 %v5694_v25, %v5693_v8  ;;  %v5685_v12 = vld [vmem:[%s15480_s21 + $0x150] sm:$0xff]  ;;  %v5686_v8 = vld [vmem:[%s15480_s21 + $0x158] sm:$0xff]  ;;  %v5671_v25 = vld [vmem:[%s15480_s21 + $0xe0] sm:$0xff] }
0x2335   : > { %5597 = vadd.xlane.f32.xlu0 %v5596_v32  ;;  %v5677_v32 = vld [vmem:[%s15480_s21 + $0x110] sm:$0xff] }
0x2336   : > { %v13440_v43 = vpack.c.bf16 %v5678_v33, %v5677_v32  ;;  %v5655_v32 = vld [vmem:[%s15480_s21 + $0x60] sm:$0xff]  ;;  %v5656_v33 = vld [vmem:[%s15480_s21 + $0x68] sm:$0xff] }
0x2337   : > { %v13428_v35 = vpack.c.bf16 %v5656_v33, %v5655_v32 }
0x23c1   : > { %v5601_v1 = vpop.xlane.xlu1 %5600 }
0x23c2   : > { %v5603_v2 = vmul.f32 0.03125, %v5601_v1  ;;  %v5598_v4 = vpop.xlane.xlu0 %5597  ;;  %v13416_v1 = vpack.c.bf16 %v5650_v55, %v5649_v3 }
0x23c3   : > { %v5602_v6 = vmul.f32 0.03125, %v5598_v4  ;;  %v5651_v4 = vld [vmem:[%s15480_s21 + $0x40] sm:$0xff] }
0x23c4   : > { %v5605_v7 = vadd.f32 1e-05, %v5603_v2  ;;  %v13448_v2 = vpack.c.bf16 %v5682_v61, %v5681_v60 }
0x23c5   : > { %v5604_v9 = vadd.f32 1e-05, %v5602_v6  ;;  %v5652_v6 = vld [vmem:[%s15480_s21 + $0x48] sm:$0xff] }
0x23c6   : > { %13925 = vrsqrt.f32 %v5605_v7  ;;  %v13418_v7 = vpack.c.bf16 %v5668_v62, %v5667_v39  ;;  %v13420_v17 = vpack.c.bf16 %v5652_v6, %v5651_v4 }
0x23c7   : > { %13927 = vrsqrt.f32 %v5604_v9  ;;  %v13450_v9 = vpack.c.bf16 %v5700_v0, %v5699_v63 }
0x23d0   : > { %v13926_v10 = vpop.eup %13925 }
0x23d1   : > { %v13928_v11 = vpop.eup %13927  ;;  %v5609_v16 = vmul.f32 %v13926_v10, %v5593_v29  ;;  %v13436_v29 = vpack.c.bf16 %v5676_v20, %v5675_v19  ;;  %v5683_v10 = vld [vmem:[%s15480_s21 + $0x140] sm:$0xff]  ;;  %v5653_v19 = vld [vmem:[%s15480_s21 + $0x50] sm:$0xff]  ;;  %v5654_v20 = vld [vmem:[%s15480_s21 + $0x58] sm:$0xff] }
0x23d2   : > { %v5608_v14 = vmul.f32 %v13928_v11, %v5592_v23  ;;  %v5645_v23 = vld [vmem:[%s15480_s21 + $0x10] sm:$0xff]  ;;  %v5684_v11 = vld [vmem:[%s15480_s21 + $0x148] sm:$0xff] }
0x23d3   : > { %v5617_v27 = vmul.f32 %v11346_v13, %v5609_v16  ;;  %v13408_v42 = vpack.c.bf16 %v5646_v22, %v5645_v23  ;;  %v5702_v16 = vld [vmem:[%s15480_s21 + $0x1d8] sm:$0xff]  ;;  %v13452_v18 = vpack.c.bf16 %v5684_v11, %v5683_v10  ;;  %v13424_v23 = vpack.c.bf16 %v5654_v20, %v5653_v19 }
0x23d4   : > { %v5616_v24 = vmul.f32 %v11346_v13, %v5608_v14  ;;  %v5669_v13 = vld [vmem:[%s15480_s21 + $0xd0] sm:$0xff]  ;;  %v5670_v14 = vld [vmem:[%s15480_s21 + $0xd8] sm:$0xff]  ;;  %v13456_v22 = vpack.c.bf16 %v5686_v8, %v5685_v12 }
0x23d5   : > { %v14774_v41 = vadd.f32 %v11347_v15, %v5617_v27  ;;  %v13422_v21 = vpack.c.bf16 %v5670_v14, %v5669_v13  ;;  %v5672_v27 = vld [vmem:[%s15480_s21 + $0xe8] sm:$0xff] }
0x23d6   : > { %v14758_v26 = vadd.f32 %v11347_v15, %v5616_v24  ;;  %v5701_v15 = vld [vmem:[%s15480_s21 + $0x1d0] sm:$0xff] }
0x23d7   : > { %v13454_v24 = vpack.c.bf16 %v5702_v16, %v5701_v15 }
0x23d8   : > { %11348 = vmatmul.mubr.msk.f32.vlgmr.msra.gmra.mrb[40].mxu0 %vm1300_vm1, %v14758_v26  ;;  %11350 = vmatmul.mubr.msk.f32.vlgmr.msra.gmra.mrb[46].mxu1 %vm1300_vm1, %v14758_v26 }
0x23d9   : > { %5805 = vmatprep.mubr.f32.mxu0 %v14059_v5  ;;  %5882 = vmatprep.mubr.f32.mxu1 %v14059_v5 }
0x23da   : > { %13405 = vmatpush3.bf16.msra.mxu0 %v13404_v28  ;;  %13437 = vmatpush3.bf16.msra.mxu1 %v13436_v29  ;;  %v5703_v28 = vld [vmem:[%s15480_s21 + $0x1e0] sm:$0xff]  ;;  %v5704_v29 = vld [vmem:[%s15480_s21 + $0x1e8] sm:$0xff] }
0x23db   : > { %13407 = vmatprep.subr.bf16.mxu0 %v13406_v30  ;;  %13439 = vmatprep.subr.bf16.mxu1 %v13438_v31  ;;  %v13426_v30 = vpack.c.bf16 %v5672_v27, %v5671_v25  ;;  %v13458_v31 = vpack.c.bf16 %v5704_v29, %v5703_v28 }
0x23dc   : > { %11349 = vmatmul.mubr.msk.f32.gmra.mrb[42].mxu0 %vm1300_vm1, %v14774_v41  ;;  %11351 = vmatmul.mubr.msk.f32.gmra.mrb[48].mxu1 %vm1300_vm1, %v14774_v41 }
0x23de   : > { %13409 = vmatpush3.bf16.msra.mxu0 %v13408_v42  ;;  %13441 = vmatpush3.bf16.msra.mxu1 %v13440_v43  ;;  %v5673_v42 = vld [vmem:[%s15480_s21 + $0xf0] sm:$0xff]  ;;  %v5674_v43 = vld [vmem:[%s15480_s21 + $0xf8] sm:$0xff] }
0x23df   : > { %13411 = vmatprep.subr.bf16.mxu0 %v13410_v46  ;;  %13443 = vmatprep.subr.bf16.mxu1 %v13442_v47  ;;  %v13430_v45 = vpack.c.bf16 %v5674_v43, %v5673_v42  ;;  %v5706_v46 = vld [vmem:[%s15480_s21 + $0x1f8] sm:$0xff]  ;;  %v5657_v47 = vld [vmem:[%s15480_s21 + $0x70] sm:$0xff] }
0x23e0   : > { %v13462_v48 = vpack.c.bf16 %v5706_v46, %v5705_v44  ;;  %v13432_v51 = vpack.c.bf16 %v5658_v50, %v5657_v47 }
0x23e2   : > { %13413 = vmatpush3.bf16.msra.mxu0 %v13412_v53  ;;  %13445 = vmatpush3.bf16.msra.mxu1 %v13444_v54  ;;  %v5709_v53 = vlaneseq }
0x23e3   : > { %13415 = vmatprep.subr.bf16.mxu0 %v13414_v56  ;;  %13447 = vmatprep.subr.bf16.mxu1 %v13446_v59  ;;  %v5642_v56 = vld [vmem:[%s15483_s22] sm:$0xf]  ;;  %s15485_s22 = sld [smem:[#allocation23_spill]] }
0x23e4   : > { %v14824_v54 = vshrl.u32 %v5709_v53, 7 }
0x23e6   : > { %13417 = vmatpush3.bf16.msra.mxu0 %v13416_v1  ;;  %13449 = vmatpush3.bf16.msra.mxu1 %v13448_v2  ;;  %v5711_v3 = vsub.s32 0, %v14824_v54  ;;  %v5719_v55 = vsub.s32 2, %v14824_v54  ;;  %v5715_v59 = vsub.s32 1, %v14824_v54  ;;  %v5723_v60 = vsub.s32 3, %v14824_v54 }
0x23e7   : > { %13419 = vmatprep.subr.bf16.mxu0 %v13418_v7  ;;  %13451 = vmatprep.subr.bf16.mxu1 %v13450_v9 }
0x23e8   : > { %v5712_v61 = vrot.slane %v5642_v56, %v5711_v3  ;;  %v5720_v39 = vrot.slane %v5642_v56, %v5719_v55  ;;  %v5716_v62 = vrot.slane %v5642_v56, %v5715_v59  ;;  %v5724_v63 = vrot.slane %v5642_v56, %v5723_v60 }
0x23e9   : > { %s15486_s0 = smov %s15485_s22 }
0x23ea   : > { %13421 = vmatpush3.bf16.msra.mxu0 %v13420_v17  ;;  %13453 = vmatpush3.bf16.msra.mxu1 %v13452_v18 }
0x23eb   : > { %13423 = vmatprep.subr.bf16.mxu0 %v13422_v21  ;;  %13455 = vmatprep.subr.bf16.mxu1 %v13454_v24 }
0x23ee   : > { %13425 = vmatpush3.bf16.msra.mxu0 %v13424_v23  ;;  %13457 = vmatpush3.bf16.msra.mxu1 %v13456_v22  ;;  %v11352_v22 = vld [vmem:[%s15485_s22] ss:$0 sm:$0xff]  ;;  %s15487_s22 = sld [smem:[#allocation24_spill]] }
0x23ef   : > { %13427 = vmatprep.subr.bf16.mxu0 %v13426_v30  ;;  %13459 = vmatprep.subr.bf16.mxu1 %v13458_v31 }
0x23f2   : > { %13429 = vmatpush3.bf16.msra.mxu0 %v13428_v35  ;;  %13461 = vmatpush3.bf16.msra.mxu1 %v13460_v40 }
0x23f3   : > { %13431 = vmatprep.subr.bf16.mxu0 %v13430_v45  ;;  %13463 = vmatprep.subr.bf16.mxu1 %v13462_v48 }
0x23f4   : > { %s15488_s17 = smov %s15487_s22 }
0x23f6   : > { %13433 = vmatpush3.bf16.msra.mxu0 %v13432_v51  ;;  %13465 = vmatpush3.bf16.msra.mxu1 %v13464_v52 }
0x24ab   : > { %v5801_v0 = vpop.f32.mrb[40].mxu0  ;;  %v5878_v1 = vpop.f32.mrb[46].mxu1 }
0x24ac   : > { %v5802_v2 = vadd.f32 %v5801_v0, %v5712_v61  ;;  %v5879_v4 = vadd.f32 %v5878_v1, %v5720_v39  ;;  %v5803_v6 = vpop.f32.mrb[41].mxu0  ;;  %v5880_v7 = vpop.f32.mrb[47].mxu1  ;;  %v11355_v0 = vld [vmem:[%s14103_s3 + $0x80] sm:$0xff]  ;;  %v11356_v1 = vld [vmem:[%s14103_s3 + $0x88] sm:$0xff] }
0x24ad   : > { %v5804_v9 = vadd.f32 %v5803_v6, %v5716_v62  ;;  %v5881_v10 = vadd.f32 %v5880_v7, %v5724_v63  ;;  %v11376_v6 = vld [vmem:[%s14113_s14 + $0x88] sm:$0xff] }
0x24ae   : > { %v5889_v16 = vmax.f32 %v5802_v2, 0.0  ;;  %v5891_v17 = vmax.f32 %v5879_v4, 0.0  ;;  %v13466_v2 = vpack.c.bf16 %v11356_v1, %v11355_v0  ;;  %v11375_v4 = vld [vmem:[%s14113_s14 + $0x80] sm:$0xff] }
0x24af   : > { %v5890_v11 = vmax.f32 %v5804_v9, 0.0  ;;  %v5892_v13 = vmax.f32 %v5881_v10, 0.0  ;;  %v5807_v14 = vpop.f32.mrb[42].mxu0  ;;  %v5884_v15 = vpop.f32.mrb[48].mxu1  ;;  %v13474_v7 = vpack.c.bf16 %v11376_v6, %v11375_v4  ;;  %v11357_v9 = vld [vmem:[%s14103_s3 + $0x90] sm:$0xff]  ;;  %v11358_v10 = vld [vmem:[%s14103_s3 + $0x98] sm:$0xff] }
0x24b0   : > { %v5808_v18 = vadd.f32 %v5807_v14, %v5712_v61  ;;  %v5885_v19 = vadd.f32 %v5884_v15, %v5720_v39  ;;  %v5809_v20 = vpop.f32.mrb[43].mxu0  ;;  %v5886_v21 = vpop.f32.mrb[49].mxu1  ;;  %13467 = vmatprep.subr.bf16.mxu0 %v13466_v2  ;;  %v11378_v14 = vld [vmem:[%s14113_s14 + $0x98] sm:$0xff]  ;;  %v11400_v4 = vld [vmem:[%s14123_s24 + $0xa8] sm:$0xff] }
0x24b1   : > { %v5810_v24 = vadd.f32 %v5809_v20, %v5716_v62  ;;  %v5887_v12 = vadd.f32 %v5886_v21, %v5724_v63  ;;  %5967 = vmatprep.mubr.f32.mxu0 %v5890_v11  ;;  %6042 = vmatprep.mubr.f32.mxu1 %v5892_v13  ;;  %v13470_v11 = vpack.c.bf16 %v11358_v10, %v11357_v9  ;;  %v11377_v13 = vld [vmem:[%s14113_s14 + $0x90] sm:$0xff]  ;;  %v11402_v9 = vld [vmem:[%s14123_s24 + $0xb8] sm:$0xff] }
0x24b2   : > { %5968 = vmatmul.mubr.f32.vlgmr.msra.gmra.mrb[44].mxu0 %v5889_v16  ;;  %6043 = vmatmul.mubr.f32.vlgmr.msra.gmra.mrb[50].mxu1 %v5891_v17  ;;  %v5893_v27 = vmax.f32 %v5808_v18, 0.0  ;;  %v5895_v28 = vmax.f32 %v5885_v19, 0.0  ;;  %v13478_v15 = vpack.c.bf16 %v11378_v14, %v11377_v13  ;;  %v11395_v16 = vld [vmem:[%s14123_s24 + $0x80] sm:$0xff]  ;;  %v11396_v17 = vld [vmem:[%s14123_s24 + $0x88] sm:$0xff] }
0x24b3   : > { %v5894_v8 = vmax.f32 %v5810_v24, 0.0  ;;  %v5896_v25 = vmax.f32 %v5887_v12, 0.0  ;;  %13469 = vmatpush3.bf16.msra.mxu0 %v13466_v2  ;;  %13475 = vmatprep.subr.bf16.mxu1 %v13474_v7  ;;  %v13482_v18 = vpack.c.bf16 %v11396_v17, %v11395_v16  ;;  %v11399_v2 = vld [vmem:[%s14123_s24 + $0xa0] sm:$0xff]  ;;  %v14906_v16 = vld [vmem:[%s14340_s28 + $0x8] sm:$0x3] }
0x24b4   : > { %13477 = vmatpush3.bf16.msra.mxu1 %v13474_v7  ;;  %13471 = vmatprep.subr.bf16.mxu0 %v13470_v11  ;;  %v13518_v6 = vpack.c.bf16 %v11400_v4, %v11399_v2  ;;  %v11401_v7 = vld [vmem:[%s14123_s24 + $0xb0] sm:$0xff] }
0x24b5   : > { %5972 = vmatprep.mubr.f32.mxu0 %v5894_v8  ;;  %6047 = vmatprep.mubr.f32.mxu1 %v5896_v25  ;;  %v13522_v10 = vpack.c.bf16 %v11402_v9, %v11401_v7 }
0x24b6   : > { %5973 = vmatmul.mubr.f32.gmra.mrb[46].mxu0 %v5893_v27  ;;  %6048 = vmatmul.mubr.f32.gmra.mrb[52].mxu1 %v5895_v28  ;;  %v11353_v27 = vld [vmem:[%s15487_s22] ss:$0 sm:$0xff] }
0x24b7   : > { %13473 = vmatpush3.bf16.msra.mxu0 %v13470_v11  ;;  %13479 = vmatprep.subr.bf16.mxu1 %v13478_v15 }
0x24b8   : > { %13481 = vmatpush3.bf16.msra.mxu1 %v13478_v15  ;;  %13483 = vmatprep.subr.bf16.mxu0 %v13482_v18 }
0x2585   : > { %v11982_v29 = vpop.f32.mrb[44].mxu0  ;;  %v12020_v23 = vpop.f32.mrb[50].mxu1 }
0x2586   : > { %v11983_v30 = vpop.f32.mrb[45].mxu0  ;;  %v12021_v31 = vpop.f32.mrb[51].mxu1 }
0x2587   : > { %v11984_v32 = vadd.f32 %v11983_v30, %v11982_v29  ;;  %v12022_v33 = vadd.f32 %v12021_v31, %v12020_v23  ;;  %v11354_v29 = vld [vmem:[%s14228_s27] ss:$0 sm:$0xff] }
0x2589   : > { %v5970_v34 = vadd.f32 %v11984_v32, %v11352_v22  ;;  %v11985_v35 = vpop.f32.mrb[46].mxu0  ;;  %v12023_v36 = vpop.f32.mrb[52].mxu1  ;;  %v11397_v32 = vld [vmem:[%s14123_s24 + $0x90] sm:$0xff] }
0x258a   : > { %v11986_v40 = vpop.f32.mrb[47].mxu0  ;;  %v12024_v42 = vpop.f32.mrb[53].mxu1 }
0x258b   : > { %v6045_v43 = vadd.f32 %v12022_v33, %v5970_v34  ;;  %v11987_v44 = vadd.f32 %v11986_v40, %v11985_v35  ;;  %v12025_v45 = vadd.f32 %v12024_v42, %v12023_v36  ;;  %v11398_v33 = vld [vmem:[%s14123_s24 + $0x98] sm:$0xff]  ;;  %v11423_v40 = vld [vmem:[%s14118_s19 + $0x4] ss:$0 sm:$0xff] }
0x258c   : > { %v13486_v36 = vpack.c.bf16 %v11398_v33, %v11397_v32  ;;  %v11420_v42 = vld [vmem:[%s14108_s8 + $0x4] ss:$0 sm:$0xff] }
0x258d   : > { %v5975_v46 = vadd.f32 %v11987_v44, %v11352_v22  ;;  %v6053_v47 = vadd.f32 %v6045_v43, %v14758_v26 }
0x258f   : > { %v6050_v50 = vadd.f32 %v12025_v45, %v5975_v46  ;;  %v6057_v48 = vsel %vm1300_vm1, %v6053_v47, 0.0 }
0x2590   : > { %6058 = vadd.xlane.f32.xlu0 %v6057_v48  ;;  %v11360_v48 = vld [vmem:[%s14103_s3 + $0xa8] sm:$0xff] }
0x2591   : > { %v6054_v51 = vadd.f32 %v6050_v50, %v14774_v41  ;;  %v11359_v50 = vld [vmem:[%s14103_s3 + $0xa0] sm:$0xff] }
0x2593   : > { %v6060_v38 = vsel %vm3410_vm9, %v6054_v51, 0.0 }
0x2594   : > { %6061 = vadd.xlane.f32.xlu1 %v6060_v38 }
0x261d   : > { %v6059_v37 = vpop.xlane.xlu0 %6058 }
0x261e   : > { %v6063_v52 = vmul.f32 0.03125, %v6059_v37 }
0x2620   : > { %v6065_v53 = vsub.f32 %v6053_v47, %v6063_v52  ;;  %v13502_v52 = vpack.c.bf16 %v11360_v48, %v11359_v50 }
0x2621   : > { %v6062_v56 = vpop.xlane.xlu1 %6061 }
0x2622   : > { %v6064_v61 = vmul.f32 0.03125, %v6062_v56  ;;  %v6067_v39 = vmul.f32 %v6065_v53, %v6065_v53 }
0x2624   : > { %v6066_v26 = vsub.f32 %v6054_v51, %v6064_v61  ;;  %v6069_v62 = vsel %vm1300_vm1, %v6067_v39, 0.0 }
0x2625   : > { %6070 = vadd.xlane.f32.xlu0 %v6069_v62  ;;  %v11362_v62 = vld [vmem:[%s14103_s3 + $0xb8] sm:$0xff] }
0x2626   : > { %v6068_v63 = vmul.f32 %v6066_v26, %v6066_v26 }
0x2628   : > { %v6072_v41 = vsel %vm3410_vm9, %v6068_v63, 0.0 }
0x2629   : > { %6073 = vadd.xlane.f32.xlu1 %v6072_v41 }
0x26b2   : > { %v6071_v19 = vpop.xlane.xlu0 %6070 }
0x26b3   : > { %v6075_v20 = vmul.f32 0.03125, %v6071_v19 }
0x26b5   : > { %v6077_v21 = vadd.f32 1e-05, %v6075_v20 }
0x26b6   : > { %v6074_v24 = vpop.xlane.xlu1 %6073 }
0x26b7   : > { %13929 = vrsqrt.f32 %v6077_v21  ;;  %v6076_v12 = vmul.f32 0.03125, %v6074_v24  ;;  %v11439_v24 = vld [vmem:[%s14108_s8 + $0x5] ss:$0 sm:$0xff] }
0x26b9   : > { %v6078_v8 = vadd.f32 1e-05, %v6076_v12 }
0x26bb   : > { %13931 = vrsqrt.f32 %v6078_v8 }
0x26c1   : > { %v13930_v25 = vpop.eup %13929 }
0x26c2   : > { %v6081_v28 = vmul.f32 %v13930_v25, %v6065_v53  ;;  %v11426_v53 = vld [vmem:[%s14128_s30 + $0x4] ss:$0 sm:$0xff] }
0x26c4   : > { %v6089_v23 = vmul.f32 %v11353_v27, %v6081_v28 }
0x26c5   : > { %v13932_v22 = vpop.eup %13931 }
0x26c6   : > { %v14858_v30 = vadd.f32 %v11354_v29, %v6089_v23  ;;  %v6082_v31 = vmul.f32 %v13932_v22, %v6066_v26  ;;  %v11361_v26 = vld [vmem:[%s14103_s3 + $0xb0] sm:$0xff] }
0x26c7   : > { %v13506_v1 = vpack.c.bf16 %v11362_v62, %v11361_v26  ;;  %v11382_v26 = vld [vmem:[%s14113_s14 + $0xb8] sm:$0xff] }
0x26c8   : > { %v6090_v34 = vmul.f32 %v11353_v27, %v6082_v31  ;;  %12747 = vmatprep.mubr.msk.f32.mxu0 %vm1300_vm1, %v14858_v30  ;;  %12758 = vmatprep.mubr.msk.f32.mxu1 %vm1300_vm1, %v14858_v30  ;;  %v11445_v27 = vld [vmem:[%s14128_s30 + $0x5] ss:$0 sm:$0xff] }
0x26ca   : > { %v14866_v35 = vadd.f32 %v11354_v29, %v6090_v34 }
0x26cc   : > { %12748 = vmatmul.mubr.msk.f32.vlgmr.msra.gmra.mrb[48].mxu0 %vm1300_vm1, %v14866_v35  ;;  %12759 = vmatmul.mubr.msk.f32.vlgmr.msra.gmra.mrb[54].mxu1 %vm1300_vm1, %v14866_v35 }
0x26cd   : > { %13485 = vmatpush3.bf16.msra.mxu0 %v13482_v18  ;;  %12769 = vmatprep.mubr.msk.f32.mxu0 %vm1300_vm1, %v14858_v30  ;;  %v14910_v18 = vld [vmem:[%s14340_s28] sm:$0xff]  ;;  %s15489_s28 = sld [smem:[#allocation25_spill]] }
0x26ce   : > { %13487 = vmatprep.subr.bf16.mxu0 %v13486_v36 }
0x26d1   : > { %13489 = vmatpush3.bf16.msra.mxu0 %v13486_v36 }
0x26d4   : > { %12770 = vmatmul.mubr.msk.f32.vlgmr.msra.gmra.mrb[50].mxu0 %vm1300_vm1, %v14866_v35 }
0x279f   : > { %v12749_v43 = vpop.f32.mrb[48].mxu0  ;;  %v12760_v44 = vpop.f32.mrb[54].mxu1 }
0x27a0   : > { %v6337_v45 = vadd.f32 %v12760_v44, %v11423_v40  ;;  %v6250_v46 = vpop.f32.mrb[49].mxu0  ;;  %v6331_v47 = vpop.f32.mrb[55].mxu1  ;;  %v6256_v41 = vadd.f32 %v12749_v43, %v11420_v42 }
0x27a1   : > { %v6251_v51 = vadd.f32 %v11420_v42, %v6250_v46  ;;  %v6332_v38 = vadd.f32 %v11423_v40, %v6331_v47  ;;  %v11415_v47 = vld [vmem:[%s14133_s6 + $0x20] sm:$0xff] }
0x27a3   : > { %v13490_v37 = vpack.c.bf16 %v6337_v45, %v6332_v38  ;;  %12776 = vmatprep.mubr.msk.f32.mxu1 %vm1544_vm3, %v6251_v51 }
0x27a5   : > { %13492 = vmatprep.subr.msk.bf16.mxu1 %vm14315_vm6, %v13490_v37 }
0x27a6   : > { %13495 = vmatpush3.bf16.xpose.msk.msra.mxu1 %vm14315_vm6, %v13490_v37 }
0x27a7   : > { %v12771_v56 = vpop.f32.mrb[50].mxu0  ;;  %13503 = vmatprep.subr.bf16.mxu1 %v13502_v52 }
0x27a8   : > { %v6418_v61 = vadd.f32 %v12771_v56, %v11426_v53  ;;  %v6412_v39 = vpop.f32.mrb[51].mxu0  ;;  %v11380_v56 = vld [vmem:[%s14113_s14 + $0xa8] sm:$0xff] }
0x27a9   : > { %v6413_v63 = vadd.f32 %v11426_v53, %v6412_v39  ;;  %v11379_v53 = vld [vmem:[%s14113_s14 + $0xa0] sm:$0xff]  ;;  %v11381_v39 = vld [vmem:[%s14113_s14 + $0xb0] sm:$0xff] }
0x27ab   : > { %v13496_v0 = vpack.c.bf16 %v6418_v61, %v6413_v63  ;;  %v13510_v61 = vpack.c.bf16 %v11380_v56, %v11379_v53  ;;  %v11383_v56 = vld [vmem:[%s14113_s14 + $0xc0] sm:$0xff] }
0x27ad   : > { %13498 = vmatprep.subr.msk.bf16.mxu0 %vm14301_vm5, %v13496_v0  ;;  %12777 = vmatmul.mubr.msk.f32.vlgmr.msra.gmra.mrb[56].mxu1 %vm1544_vm3, %v6256_v41  ;;  %v13514_v41 = vpack.c.bf16 %v11382_v26, %v11381_v39  ;;  %v11385_v26 = vld [vmem:[%s14113_s14 + $0xd0] sm:$0xff] }
0x27ae   : > { %13501 = vmatpush3.bf16.msk.msra.mxu0 %vm14301_vm5, %v13496_v0  ;;  %13505 = vmatpush3.bf16.msra.mxu1 %v13502_v52 }
0x27af   : > { %12799 = vmatprep.mubr.msk.f32.mxu1 %vm1300_vm1, %v14858_v30  ;;  %13507 = vmatprep.subr.bf16.mxu1 %v13506_v1 }
0x27b0   : > { %12786 = vmatprep.subr.mxu0 %v11415_v47 }
0x27b2   : > { %13509 = vmatpush3.bf16.msra.mxu1 %v13506_v1  ;;  %v11442_v1 = vld [vmem:[%s14118_s19 + $0x5] ss:$0 sm:$0xff] }
0x27b3   : > { %13519 = vmatprep.subr.bf16.mxu1 %v13518_v6 }
0x27b5   : > { %12800 = vmatmul.mubr.msk.f32.vlgmr.msra.gmra.mrb[58].mxu1 %vm1300_vm1, %v14866_v35 }
0x27b6   : > { %13521 = vmatpush3.bf16.msra.mxu1 %v13518_v6  ;;  %12821 = vmatprep.mubr.msk.f32.mxu1 %vm1300_vm1, %v14858_v30 }
0x27b7   : > { %13523 = vmatprep.subr.bf16.mxu1 %v13522_v10 }
0x27ba   : > { %13525 = vmatpush3.bf16.msra.mxu1 %v13522_v10 }
0x27bd   : > { %12822 = vmatmul.mubr.msk.f32.vlgmr.msra.gmra.mrb[60].mxu1 %vm1300_vm1, %v14866_v35 }
0x2880   : > { %v12778_v11 = vpop.f32.mrb[56].mxu1 }
0x2881   : > { %v6509_v13 = vmul.f32 0.35355338, %v12778_v11  ;;  %v6499_v14 = vpop.f32.mrb[57].mxu1 }
0x2882   : > { %v6508_v15 = vmul.f32 0.35355338, %v6499_v14 }
0x2883   : > { %v6511_v17 = vadd.f32 %v14906_v16, %v6509_v13 }
0x2884   : > { %v6510_v19 = vadd.f32 %v14910_v18, %v6508_v15 }
0x2885   : > { %v6515_v20 = vsel %vm1640_vm8, %v6511_v17, -inf }
0x2886   : > { %6516 = vmax.xlane.f32.xlu1 %v6515_v20  ;;  %v6512_v21 = vsel %vm1636_vm7, %v6510_v19, -inf }
0x2887   : > { %6513 = vmax.xlane.f32.xlu0 %v6512_v21 }
0x2888   : > { %v12801_v12 = vpop.f32.mrb[58].mxu1 }
0x2889   : > { %v14916_v8 = vadd.f32 %v12801_v12, %v11439_v24  ;;  %v6779_v25 = vpop.f32.mrb[59].mxu1 }
0x288a   : > { %v6780_v0 = vadd.f32 %v11439_v24, %v6779_v25 }
0x2890   : > { %v12823_v28 = vpop.f32.mrb[60].mxu1 }
0x2891   : > { %v6947_v29 = vadd.f32 %v12823_v28, %v11445_v27  ;;  %v6941_v23 = vpop.f32.mrb[61].mxu1 }
0x2892   : > { %v6942_v22 = vadd.f32 %v11445_v27, %v6941_v23 }
0x2894   : > { %v13532_v31 = vpack.c.bf16 %v6947_v29, %v6942_v22 }
0x2896   : > { %13534 = vmatprep.subr.msk.bf16.mxu1 %vm14301_vm5, %v13532_v31 }
0x2897   : > { %13537 = vmatpush3.bf16.msk.msra.mxu1 %vm14301_vm5, %v13532_v31  ;;  %v11363_v31 = vld [vmem:[%s14103_s3 + $0xc0] sm:$0xff] }
0x2913   : > { %v6517_v32 = vpop.xlane.xlu1 %6516 }
0x2914   : > { %v6519_v33 = vsub.f32 %v6511_v17, %v6517_v32  ;;  %v6514_v34 = vpop.xlane.xlu0 %6513  ;;  %v11364_v32 = vld [vmem:[%s14103_s3 + $0xc8] sm:$0xff] }
0x2915   : > { %v6518_v36 = vsub.f32 %v6510_v19, %v6514_v34  ;;  %v11416_v34 = vld [vmem:[%s14133_s6 + $0x28] sm:$0xff] }
0x2916   : > { %v6522_v40 = vmul.f32 1.442695, %v6519_v33  ;;  %v13538_v33 = vpack.c.bf16 %v11364_v32, %v11363_v31 }
0x2917   : > { %v6520_v42 = vmul.f32 1.442695, %v6518_v36 }
0x2918   : > { %13933 = vpow2.f32 %v6522_v40  ;;  %13539 = vmatprep.subr.bf16.mxu1 %v13538_v33 }
0x2919   : > { %13935 = vpow2.f32 %v6520_v42 }
0x2922   : > { %v13934_v43 = vpop.eup %13933 }
0x2923   : > { %v13936_v44 = vpop.eup %13935  ;;  %v6527_v45 = vsel %vm1640_vm8, %v13934_v43, 0.0 }
0x2924   : > { %6528 = vadd.xlane.f32.xlu1 %v6527_v45  ;;  %v6524_v46 = vsel %vm1636_vm7, %v13936_v44, 0.0 }
0x2925   : > { %6525 = vadd.xlane.f32.xlu0 %v6524_v46 }
0x29b1   : > { %v6529_v50 = vpop.xlane.xlu1 %6528 }
0x29b2   : > { %13937 = vrcp.f32 %v6529_v50  ;;  %v6526_v48 = vpop.xlane.xlu0 %6525 }
0x29b3   : > { %13939 = vrcp.f32 %v6526_v48  ;;  %v11403_v48 = vld [vmem:[%s14123_s24 + $0xc0] sm:$0xff] }
0x29bc   : > { %v13938_v51 = vpop.eup %13937 }
0x29bd   : > { %v13940_v38 = vpop.eup %13939  ;;  %v6533_v52 = vmul.f32 %v13938_v51, %v13934_v43  ;;  %v11365_v43 = vld [vmem:[%s14103_s3 + $0xd0] sm:$0xff]  ;;  %v11404_v51 = vld [vmem:[%s14123_s24 + $0xc8] sm:$0xff] }
0x29be   : > { %v6532_v37 = vmul.f32 %v13940_v38, %v13936_v44  ;;  %v11366_v44 = vld [vmem:[%s14103_s3 + $0xd8] sm:$0xff]  ;;  %v13554_v38 = vpack.c.bf16 %v11404_v51, %v11403_v48  ;;  %v11417_v51 = vld [vmem:[%s14133_s6 + $0x30] sm:$0xff] }
0x29bf   : > { %v13542_v50 = vpack.c.bf16 %v11366_v44, %v11365_v43 }
0x29c0   : > { %12783 = vmatprep.mubr.msk.f32.mxu0 %vm1636_vm7, %v6532_v37  ;;  %v11405_v37 = vld [vmem:[%s14123_s24 + $0xd0] sm:$0xff] }
0x29c1   : > { %12784 = vmatmul.mubr.msk.f32.vlgmr.msra.gmra.mrb[52].mxu0 %vm1636_vm7, %v6533_v52  ;;  %v11406_v52 = vld [vmem:[%s14123_s24 + $0xd8] sm:$0xff] }
0x29c2   : > { %12787 = vmatpush3.msra.mxu0 %v11415_v47  ;;  %v13558_v53 = vpack.c.bf16 %v11406_v52, %v11405_v37 }
0x29c3   : > { %13511 = vmatprep.subr.bf16.mxu0 %v13510_v61 }
0x2a94   : > { %v12785_v62 = vpop.f32.mrb[52].mxu0 }
0x2a95   : > { %v6609_v63 = vpop.f32.mrb[53].mxu0 }
0x2a96   : > { %12788 = vmatprep.mubr.msk.f32.mxu0 %vm1544_vm3, %v6609_v63 }
0x2a97   : > { %12789 = vmatmul.mubr.msk.f32.vlgmr.msra.gmra.mrb[54].mxu0 %vm1544_vm3, %v12785_v62  ;;  %v11386_v62 = vld [vmem:[%s14113_s14 + $0xd8] sm:$0xff] }
0x2a98   : > { %13513 = vmatpush3.bf16.msra.mxu0 %v13510_v61  ;;  %12810 = vmatprep.mubr.msk.f32.mxu0 %vm1300_vm1, %v14858_v30  ;;  %v11384_v61 = vld [vmem:[%s14113_s14 + $0xc8] sm:$0xff] }
0x2a99   : > { %13515 = vmatprep.subr.bf16.mxu0 %v13514_v41  ;;  %v13546_v39 = vpack.c.bf16 %v11384_v61, %v11383_v56  ;;  %v11370_v56 = vld [vmem:[%s14103_s3 + $0xf8] sm:$0xff] }
0x2a9c   : > { %13517 = vmatpush3.bf16.msra.mxu0 %v13514_v41 }
0x2a9f   : > { %12811 = vmatmul.mubr.msk.f32.vlgmr.msra.gmra.mrb[56].mxu0 %vm1300_vm1, %v14866_v35 }
0x2aa0   : > { %12828 = vmatprep.mubr.msk.f32.mxu0 %vm1544_vm3, %v6780_v0  ;;  %v13550_v0 = vpack.c.bf16 %v11386_v62, %v11385_v26 }
0x2b72   : > { %v12812_v2 = vpop.f32.mrb[56].mxu0 }
0x2b73   : > { %v6866_v4 = vadd.f32 %v12812_v2, %v11442_v1  ;;  %v6860_v6 = vpop.f32.mrb[57].mxu0 }
0x2b74   : > { %v6861_v7 = vadd.f32 %v11442_v1, %v6860_v6  ;;  %v11457_v1 = vld [vmem:[%s14108_s8 + $0x6] ss:$0 sm:$0xff] }
0x2b76   : > { %v13526_v9 = vpack.c.bf16 %v6866_v4, %v6861_v7 }
0x2b78   : > { %13528 = vmatprep.subr.msk.bf16.mxu0 %vm14315_vm6, %v13526_v9 }
0x2b79   : > { %13531 = vmatpush3.bf16.xpose.msk.msra.mxu0 %vm14315_vm6, %v13526_v9  ;;  %v11463_v9 = vld [vmem:[%s14128_s30 + $0x6] ss:$0 sm:$0xff] }
0x2b7a   : > { %12838 = vmatprep.subr.mxu0 %v11416_v34 }
0x2b80   : > { %12829 = vmatmul.mubr.msk.f32.vlgmr.msra.gmra.mrb[58].mxu0 %vm1544_vm3, %v14916_v8 }
0x2b81   : > { %12839 = vmatpush3.msra.mxu0 %v11416_v34 }
0x2b82   : > { %13547 = vmatprep.subr.bf16.mxu0 %v13546_v39 }
0x2c53   : > { %v12830_v10 = vpop.f32.mrb[58].mxu0 }
0x2c54   : > { %v7038_v11 = vmul.f32 0.35355338, %v12830_v10  ;;  %v7028_v13 = vpop.f32.mrb[59].mxu0 }
0x2c55   : > { %v7037_v14 = vmul.f32 0.35355338, %v7028_v13 }
0x2c56   : > { %v7040_v15 = vadd.f32 %v14906_v16, %v7038_v11 }
0x2c57   : > { %v7039_v17 = vadd.f32 %v14910_v18, %v7037_v14 }
0x2c58   : > { %v7044_v19 = vsel %vm1640_vm8, %v7040_v15, -inf }
0x2c59   : > { %7045 = vmax.xlane.f32.xlu1 %v7044_v19  ;;  %v7041_v20 = vsel %vm1636_vm7, %v7039_v17, -inf }
0x2c5a   : > { %7042 = vmax.xlane.f32.xlu0 %v7041_v20 }
0x2ce6   : > { %v7046_v21 = vpop.xlane.xlu1 %7045 }
0x2ce7   : > { %v7048_v24 = vsub.f32 %v7040_v15, %v7046_v21  ;;  %v7043_v12 = vpop.xlane.xlu0 %7042 }
0x2ce8   : > { %v7047_v8 = vsub.f32 %v7039_v17, %v7043_v12  ;;  %v11460_v17 = vld [vmem:[%s14118_s19 + $0x6] ss:$0 sm:$0xff] }
0x2ce9   : > { %v7051_v25 = vmul.f32 1.442695, %v7048_v24 }
0x2cea   : > { %v7049_v27 = vmul.f32 1.442695, %v7047_v8 }
0x2ceb   : > { %13941 = vpow2.f32 %v7051_v25 }
0x2cec   : > { %13943 = vpow2.f32 %v7049_v27 }
0x2cf5   : > { %v13942_v28 = vpop.eup %13941 }
0x2cf6   : > { %v13944_v29 = vpop.eup %13943  ;;  %v7056_v23 = vsel %vm1640_vm8, %v13942_v28, 0.0 }
0x2cf7   : > { %7057 = vadd.xlane.f32.xlu1 %v7056_v23  ;;  %v7053_v22 = vsel %vm1636_vm7, %v13944_v29, 0.0 }
0x2cf8   : > { %7054 = vadd.xlane.f32.xlu0 %v7053_v22 }
0x2d84   : > { %v7058_v36 = vpop.xlane.xlu1 %7057 }
0x2d85   : > { %13945 = vrcp.f32 %v7058_v36  ;;  %v7055_v40 = vpop.xlane.xlu0 %7054 }
0x2d86   : > { %13947 = vrcp.f32 %v7055_v40 }
0x2d8f   : > { %v13946_v42 = vpop.eup %13945 }
0x2d90   : > { %v13948_v45 = vpop.eup %13947  ;;  %v7062_v47 = vmul.f32 %v13946_v42, %v13942_v28 }
0x2d91   : > { %v7061_v46 = vmul.f32 %v13948_v45, %v13944_v29 }
0x2d93   : > { %12835 = vmatprep.mubr.msk.f32.mxu1 %vm1636_vm7, %v7061_v46 }
0x2d94   : > { %12836 = vmatmul.mubr.msk.f32.vlgmr.msra.gmra.mrb[62].mxu1 %vm1636_vm7, %v7062_v47  ;;  %v11367_v47 = vld [vmem:[%s14103_s3 + $0xe0] sm:$0xff] }
0x2d95   : > { %13541 = vmatpush3.bf16.msra.mxu1 %v13538_v33  ;;  %12851 = vmatprep.mubr.msk.f32.mxu1 %vm1300_vm1, %v14858_v30 }
0x2d96   : > { %13543 = vmatprep.subr.bf16.mxu1 %v13542_v50 }
0x2d99   : > { %13545 = vmatpush3.bf16.msra.mxu1 %v13542_v50  ;;  %v11368_v50 = vld [vmem:[%s14103_s3 + $0xe8] sm:$0xff] }
0x2d9a   : > { %13555 = vmatprep.subr.bf16.mxu1 %v13554_v38  ;;  %v13574_v48 = vpack.c.bf16 %v11368_v50, %v11367_v47 }
0x2d9c   : > { %12852 = vmatmul.mubr.msk.f32.vlgmr.msra.gmra.mrb[64].mxu1 %vm1300_vm1, %v14866_v35 }
0x2d9d   : > { %13557 = vmatpush3.bf16.msra.mxu1 %v13554_v38  ;;  %12873 = vmatprep.mubr.msk.f32.mxu1 %vm1300_vm1, %v14858_v30 }
0x2d9e   : > { %13559 = vmatprep.subr.bf16.mxu1 %v13558_v53 }
0x2da1   : > { %13561 = vmatpush3.bf16.msra.mxu1 %v13558_v53  ;;  %v11369_v53 = vld [vmem:[%s14103_s3 + $0xf0] sm:$0xff] }
0x2da2   : > { %v13578_v62 = vpack.c.bf16 %v11370_v56, %v11369_v53  ;;  %v11418_v53 = vld [vmem:[%s14133_s6 + $0x38] sm:$0xff] }
0x2da4   : > { %12874 = vmatmul.mubr.msk.f32.vlgmr.msra.gmra.mrb[66].mxu1 %vm1300_vm1, %v14866_v35 }
0x2e67   : > { %v12837_v63 = vpop.f32.mrb[62].mxu1 }
0x2e68   : > { %v7138_v41 = vpop.f32.mrb[63].mxu1 }
0x2e69   : > { %12840 = vmatprep.mubr.msk.f32.mxu0 %vm1544_vm3, %v7138_v41  ;;  %v11408_v41 = vld [vmem:[%s14123_s24 + $0xe8] sm:$0xff] }
0x2e6a   : > { %12841 = vmatmul.mubr.msk.f32.vlgmr.msra.gmra.mrb[54].mxu0 %vm1544_vm3, %v12837_v63  ;;  %v11407_v63 = vld [vmem:[%s14123_s24 + $0xe0] sm:$0xff] }
0x2e6b   : > { %13549 = vmatpush3.bf16.msra.mxu0 %v13546_v39  ;;  %12862 = vmatprep.mubr.msk.f32.mxu0 %vm1300_vm1, %v14858_v30 }
0x2e6c   : > { %13551 = vmatprep.subr.bf16.mxu0 %v13550_v0 }
0x2e6f   : > { %v12853_v2 = vpop.f32.mrb[64].mxu1  ;;  %13553 = vmatpush3.bf16.msra.mxu0 %v13550_v0  ;;  %v13590_v0 = vpack.c.bf16 %v11408_v41, %v11407_v63 }
0x2e70   : > { %v7308_v4 = vadd.f32 %v12853_v2, %v11457_v1  ;;  %v7302_v6 = vpop.f32.mrb[65].mxu1  ;;  %v11410_v2 = vld [vmem:[%s14123_s24 + $0xf8] sm:$0xff] }
0x2e71   : > { %v7303_v7 = vadd.f32 %v11457_v1, %v7302_v6  ;;  %v11409_v1 = vld [vmem:[%s14123_s24 + $0xf0] sm:$0xff]  ;;  %v11387_v6 = vld [vmem:[%s14113_s14 + $0xe0] sm:$0xff] }
0x2e72   : > { %12863 = vmatmul.mubr.msk.f32.vlgmr.msra.gmra.mrb[60].mxu0 %vm1300_vm1, %v14866_v35 }
0x2e73   : > { %12880 = vmatprep.mubr.msk.f32.mxu0 %vm1544_vm3, %v7303_v7  ;;  %v11388_v7 = vld [vmem:[%s14113_s14 + $0xe8] sm:$0xff] }
0x2e77   : > { %v12875_v10 = vpop.f32.mrb[66].mxu1 }
0x2e78   : > { %v7470_v11 = vadd.f32 %v12875_v10, %v11463_v9  ;;  %v7464_v13 = vpop.f32.mrb[67].mxu1  ;;  %v11389_v10 = vld [vmem:[%s14113_s14 + $0xf0] sm:$0xff] }
0x2e79   : > { %v7465_v14 = vadd.f32 %v11463_v9, %v7464_v13  ;;  %v13582_v9 = vpack.c.bf16 %v11388_v7, %v11387_v6 }
0x2e7b   : > { %v13568_v15 = vpack.c.bf16 %v7470_v11, %v7465_v14  ;;  %v11390_v11 = vld [vmem:[%s14113_s14 + $0xf8] sm:$0xff] }
0x2e7d   : > { %13570 = vmatprep.subr.msk.bf16.mxu1 %vm14301_vm5, %v13568_v15 }
0x2e7e   : > { %13573 = vmatpush3.bf16.msk.msra.mxu1 %vm14301_vm5, %v13568_v15  ;;  %v13586_v15 = vpack.c.bf16 %v11390_v11, %v11389_v10 }
0x2e7f   : > { %13575 = vmatprep.subr.bf16.mxu1 %v13574_v48 }
0x2f45   : > { %v12864_v19 = vpop.f32.mrb[60].mxu0 }
0x2f46   : > { %v7389_v20 = vadd.f32 %v12864_v19, %v11460_v17  ;;  %v7383_v21 = vpop.f32.mrb[61].mxu0 }
0x2f47   : > { %v7384_v24 = vadd.f32 %v11460_v17, %v7383_v21  ;;  %v11475_v17 = vld [vmem:[%s14108_s8 + $0x7] ss:$0 sm:$0xff] }
0x2f49   : > { %v13562_v12 = vpack.c.bf16 %v7389_v20, %v7384_v24 }
0x2f4b   : > { %13564 = vmatprep.subr.msk.bf16.mxu0 %vm14315_vm6, %v13562_v12 }
0x2f4c   : > { %13567 = vmatpush3.bf16.xpose.msk.msra.mxu0 %vm14315_vm6, %v13562_v12  ;;  %v11481_v12 = vld [vmem:[%s14128_s30 + $0x7] ss:$0 sm:$0xff] }
0x2f4d   : > { %12890 = vmatprep.subr.mxu0 %v11417_v51 }
0x2f53   : > { %12881 = vmatmul.mubr.msk.f32.vlgmr.msra.gmra.mrb[62].mxu0 %vm1544_vm3, %v7308_v4  ;;  %v13594_v4 = vpack.c.bf16 %v11410_v2, %v11409_v1  ;;  %v11438_v1 = vld [vmem:[%s14138_s12 + $0x1] ss:$0 sm:$0xff] }
0x2f54   : > { %12891 = vmatpush3.msra.mxu0 %v11417_v51 }
0x2f55   : > { %13583 = vmatprep.subr.bf16.mxu0 %v13582_v9 }
0x3026   : > { %v12882_v8 = vpop.f32.mrb[62].mxu0 }
0x3027   : > { %v7561_v25 = vmul.f32 0.35355338, %v12882_v8  ;;  %v7551_v27 = vpop.f32.mrb[63].mxu0 }
0x3028   : > { %v7560_v28 = vmul.f32 0.35355338, %v7551_v27 }
0x3029   : > { %v7563_v29 = vadd.f32 %v14906_v16, %v7561_v25 }
0x302a   : > { %v7562_v23 = vadd.f32 %v14910_v18, %v7560_v28 }
0x302b   : > { %v7567_v22 = vsel %vm1640_vm8, %v7563_v29, -inf }
0x302c   : > { %7568 = vmax.xlane.f32.xlu1 %v7567_v22  ;;  %v7564_v31 = vsel %vm1636_vm7, %v7562_v23, -inf }
0x302d   : > { %7565 = vmax.xlane.f32.xlu0 %v7564_v31 }
0x30b9   : > { %v7569_v32 = vpop.xlane.xlu1 %7568 }
0x30ba   : > { %v7571_v33 = vsub.f32 %v7563_v29, %v7569_v32  ;;  %v7566_v34 = vpop.xlane.xlu0 %7565 }
0x30bb   : > { %v7570_v36 = vsub.f32 %v7562_v23, %v7566_v34  ;;  %v11478_v23 = vld [vmem:[%s14118_s19 + $0x7] ss:$0 sm:$0xff] }
0x30bc   : > { %v7574_v40 = vmul.f32 1.442695, %v7571_v33 }
0x30bd   : > { %v7572_v42 = vmul.f32 1.442695, %v7570_v36 }
0x30be   : > { %13949 = vpow2.f32 %v7574_v40 }
0x30bf   : > { %13951 = vpow2.f32 %v7572_v42 }
0x30c8   : > { %v13950_v43 = vpop.eup %13949 }
0x30c9   : > { %v13952_v44 = vpop.eup %13951  ;;  %v7579_v45 = vsel %vm1640_vm8, %v13950_v43, 0.0 }
0x30ca   : > { %7580 = vadd.xlane.f32.xlu1 %v7579_v45  ;;  %v7576_v46 = vsel %vm1636_vm7, %v13952_v44, 0.0 }
0x30cb   : > { %7577 = vadd.xlane.f32.xlu0 %v7576_v46 }
0x3157   : > { %v7581_v38 = vpop.xlane.xlu1 %7580 }
0x3158   : > { %13953 = vrcp.f32 %v7581_v38  ;;  %v7578_v37 = vpop.xlane.xlu0 %7577 }
0x3159   : > { %13955 = vrcp.f32 %v7578_v37 }
0x3162   : > { %v13954_v52 = vpop.eup %13953 }
0x3163   : > { %v13956_v61 = vpop.eup %13955  ;;  %v7585_v26 = vmul.f32 %v13954_v52, %v13950_v43 }
0x3164   : > { %v7584_v39 = vmul.f32 %v13956_v61, %v13952_v44 }
0x3166   : > { %12887 = vmatprep.mubr.msk.f32.mxu1 %vm1636_vm7, %v7584_v39 }
0x3167   : > { %12888 = vmatmul.mubr.msk.f32.vlgmr.msra.gmra.mrb[68].mxu1 %vm1636_vm7, %v7585_v26 }
0x3168   : > { %13577 = vmatpush3.bf16.msra.mxu1 %v13574_v48  ;;  %12903 = vmatprep.mubr.msk.f32.mxu1 %vm1300_vm1, %v14858_v30 }
0x3169   : > { %13579 = vmatprep.subr.bf16.mxu1 %v13578_v62 }
0x316c   : > { %13581 = vmatpush3.bf16.msra.mxu1 %v13578_v62 }
0x316d   : > { %13591 = vmatprep.subr.bf16.mxu1 %v13590_v0 }
0x316f   : > { %12904 = vmatmul.mubr.msk.f32.vlgmr.msra.gmra.mrb[70].mxu1 %vm1300_vm1, %v14866_v35 }
0x3170   : > { %13593 = vmatpush3.bf16.msra.mxu1 %v13590_v0  ;;  %12925 = vmatprep.mubr.msk.f32.mxu1 %vm1300_vm1, %v14858_v30 }
0x3171   : > { %13595 = vmatprep.subr.bf16.mxu1 %v13594_v4 }
0x3174   : > { %13597 = vmatpush3.bf16.msra.mxu1 %v13594_v4 }
0x3177   : > { %12926 = vmatmul.mubr.msk.f32.vlgmr.msra.gmra.mrb[72].mxu1 %vm1300_vm1, %v14866_v35 }
0x323a   : > { %v12889_v13 = vpop.f32.mrb[68].mxu1 }
0x323b   : > { %v7661_v14 = vpop.f32.mrb[69].mxu1 }
0x323c   : > { %12892 = vmatprep.mubr.msk.f32.mxu0 %vm1544_vm3, %v7661_v14 }
0x323d   : > { %12893 = vmatmul.mubr.msk.f32.vlgmr.msra.gmra.mrb[54].mxu0 %vm1544_vm3, %v12889_v13 }
0x323e   : > { %13585 = vmatpush3.bf16.msra.mxu0 %v13582_v9  ;;  %12914 = vmatprep.mubr.msk.f32.mxu0 %vm1300_vm1, %v14858_v30 }
0x323f   : > { %13587 = vmatprep.subr.bf16.mxu0 %v13586_v15 }
0x3242   : > { %v12905_v19 = vpop.f32.mrb[70].mxu1  ;;  %13589 = vmatpush3.bf16.msra.mxu0 %v13586_v15 }
0x3243   : > { %v7831_v20 = vadd.f32 %v12905_v19, %v11475_v17  ;;  %v7825_v21 = vpop.f32.mrb[71].mxu1 }
0x3244   : > { %v7826_v24 = vadd.f32 %v11475_v17, %v7825_v21 }
0x3245   : > { %12915 = vmatmul.mubr.msk.f32.vlgmr.msra.gmra.mrb[64].mxu0 %vm1300_vm1, %v14866_v35 }
0x3246   : > { %12932 = vmatprep.mubr.msk.f32.mxu0 %vm1544_vm3, %v7826_v24 }
0x324a   : > { %v12927_v8 = vpop.f32.mrb[72].mxu1 }
0x324b   : > { %v7993_v25 = vadd.f32 %v12927_v8, %v11481_v12  ;;  %v7987_v27 = vpop.f32.mrb[73].mxu1  ;;  %v11517_v8 = vld [vmem:[%s14163_s20 + $0x80] sm:$0xff] }
0x324c   : > { %v7988_v28 = vadd.f32 %v11481_v12, %v7987_v27 }
0x324e   : > { %v13604_v29 = vpack.c.bf16 %v7993_v25, %v7988_v28  ;;  %v11518_v25 = vld [vmem:[%s14163_s20 + $0x88] sm:$0xff]  ;;  %v11497_v28 = vld [vmem:[%s15468_s1 + $0x80] sm:$0xff] }
0x324f   : > { %v13619_v27 = vpack.c.bf16 %v11518_v25, %v11517_v8 }
0x3250   : > { %13606 = vmatprep.subr.msk.bf16.mxu1 %vm14301_vm5, %v13604_v29 }
0x3251   : > { %13609 = vmatpush3.bf16.msk.msra.mxu1 %vm14301_vm5, %v13604_v29  ;;  %v11498_v29 = vld [vmem:[%s15468_s1 + $0x88] sm:$0xff] }
0x3318   : > { %v12916_v22 = vpop.f32.mrb[64].mxu0 }
0x3319   : > { %v7912_v31 = vadd.f32 %v12916_v22, %v11478_v23  ;;  %v7906_v32 = vpop.f32.mrb[65].mxu0  ;;  %v11519_v22 = vld [vmem:[%s14163_s20 + $0x90] sm:$0xff] }
0x331a   : > { %v7907_v33 = vadd.f32 %v11478_v23, %v7906_v32  ;;  %v13610_v23 = vpack.c.bf16 %v11498_v29, %v11497_v28 }
0x331c   : > { %v13598_v34 = vpack.c.bf16 %v7912_v31, %v7907_v33  ;;  %v11520_v31 = vld [vmem:[%s14163_s20 + $0x98] sm:$0xff]  ;;  %13611 = vmatprep.subr.bf16.mxu1 %v13610_v23  ;;  %v11499_v33 = vld [vmem:[%s15468_s1 + $0x90] sm:$0xff] }
0x331d   : > { %v13622_v32 = vpack.c.bf16 %v11520_v31, %v11519_v22  ;;  %v11567_v22 = vld [vmem:[%s15476_s23 + $0x4] ss:$0 sm:$0xff] }
0x331e   : > { %13600 = vmatprep.subr.msk.bf16.mxu0 %vm14315_vm6, %v13598_v34 }
0x331f   : > { %13603 = vmatpush3.bf16.xpose.msk.msra.mxu0 %vm14315_vm6, %v13598_v34  ;;  %v11500_v34 = vld [vmem:[%s15468_s1 + $0x98] sm:$0xff] }
0x3320   : > { %12942 = vmatprep.subr.mxu0 %v11418_v53 }
0x3326   : > { %12933 = vmatmul.mubr.msk.f32.vlgmr.msra.gmra.mrb[66].mxu0 %vm1544_vm3, %v7831_v20 }
0x3327   : > { %12943 = vmatpush3.msra.mxu0 %v11418_v53  ;;  %v11565_v53 = vld [vmem:[%s15472_s16 + $0x4] ss:$0 sm:$0xff] }
0x3328   : > { %13618 = vmatprep.subr.bf16.mxu0 %v14057_v57 }
0x33f9   : > { %v12934_v36 = vpop.f32.mrb[66].mxu0 }
0x33fa   : > { %v8084_v40 = vmul.f32 0.35355338, %v12934_v36  ;;  %v8074_v42 = vpop.f32.mrb[67].mxu0  ;;  %v13614_v36 = vpack.c.bf16 %v11500_v34, %v11499_v33  ;;  %v11501_v34 = vld [vmem:[%s15468_s1 + $0xa0] sm:$0xff] }
0x33fb   : > { %v8083_v43 = vmul.f32 0.35355338, %v8074_v42 }
0x33fc   : > { %v8086_v49 = vadd.f32 %v14906_v16, %v8084_v40  ;;  %v15073_v40 = vld [vmem:[%s14504_s10] sm:$0x1f]  ;;  %s15490_s10 = sld [smem:[#allocation28_spill]] }
0x33fd   : > { %v8085_v44 = vadd.f32 %v14910_v18, %v8083_v43 }
0x33fe   : > { %v8090_v45 = vsel %vm1640_vm8, %v8086_v49, -inf }
0x33ff   : > { %8091 = vmax.xlane.f32.xlu1 %v8090_v45  ;;  %v8087_v46 = vsel %vm1636_vm7, %v8085_v44, -inf }
0x3400   : > { %8088 = vmax.xlane.f32.xlu0 %v8087_v46 }
0x348c   : > { %v8092_v47 = vpop.xlane.xlu1 %8091 }
0x348d   : > { %v8094_v58 = vsub.f32 %v8086_v49, %v8092_v47  ;;  %v8089_v50 = vpop.xlane.xlu0 %8088 }
0x348e   : > { %v8093_v48 = vsub.f32 %v8085_v44, %v8089_v50 }
0x348f   : > { %v8097_v51 = vmul.f32 1.442695, %v8094_v58  ;;  %v11495_v58 = vld [vmem:[%s15470_s11 + $0x1] ss:$0 sm:$0xff] }
0x3490   : > { %v8095_v38 = vmul.f32 1.442695, %v8093_v48 }
0x3491   : > { %13957 = vpow2.f32 %v8097_v51 }
0x3492   : > { %13959 = vpow2.f32 %v8095_v38  ;;  %v11496_v38 = vld [vmem:[%s15471_s15 + $0x1] ss:$0 sm:$0xff] }
0x349b   : > { %v13958_v37 = vpop.eup %13957 }
0x349c   : > { %v13960_v52 = vpop.eup %13959  ;;  %v8102_v16 = vsel %vm1640_vm8, %v13958_v37, 0.0 }
0x349d   : > { %8103 = vadd.xlane.f32.xlu1 %v8102_v16  ;;  %v8099_v18 = vsel %vm1636_vm7, %v13960_v52, 0.0 }
0x349e   : > { %8100 = vadd.xlane.f32.xlu0 %v8099_v18 }
0x352a   : > { %v8104_v56 = vpop.xlane.xlu1 %8103 }
0x352b   : > { %13961 = vrcp.f32 %v8104_v56  ;;  %v8101_v61 = vpop.xlane.xlu0 %8100 }
0x352c   : > { %13963 = vrcp.f32 %v8101_v61 }
0x3535   : > { %v13962_v39 = vpop.eup %13961 }
0x3536   : > { %v13964_v26 = vpop.eup %13963  ;;  %v8108_v63 = vmul.f32 %v13962_v39, %v13958_v37 }
0x3537   : > { %v8107_v62 = vmul.f32 %v13964_v26, %v13960_v52  ;;  %v11562_v26 = vld [vmem:[%s15473_s18 + $0x4] ss:$0 sm:$0xff] }
0x3539   : > { %12939 = vmatprep.mubr.msk.f32.mxu1 %vm1636_vm7, %v8107_v62 }
0x353a   : > { %12940 = vmatmul.mubr.msk.f32.vlgmr.msra.gmra.mrb[74].mxu1 %vm1636_vm7, %v8108_v63 }
0x353b   : > { %13613 = vmatpush3.bf16.msra.mxu1 %v13610_v23 }
0x353c   : > { %13615 = vmatprep.subr.bf16.mxu1 %v13614_v36 }
0x353f   : > { %13617 = vmatpush3.bf16.msra.mxu1 %v13614_v36  ;;  %v11502_v36 = vld [vmem:[%s15468_s1 + $0xa8] sm:$0xff] }
0x3540   : > { %13624 = vmatprep.subr.bf16.mxu1 %v14057_v57 }
0x360d   : > { %v12941_v41 = vpop.f32.mrb[74].mxu1 }
0x360e   : > { %v8184_v0 = vpop.f32.mrb[75].mxu1 }
0x360f   : > { %12944 = vmatprep.mubr.msk.f32.mxu0 %vm1544_vm3, %v8184_v0 }
0x3610   : > { %12945 = vmatmul.mubr.msk.f32.vlgmr.msra.gmra.mrb[54].mxu0 %vm1544_vm3, %v12941_v41 }
0x3611   : > { %12966 = vmatprep.mubr.msk.f32.mxu0 %vm14058_vm10, %v14059_v5  ;;  %13620 = vmatpush3.bf16.msra.mxu0 %v13619_v27 }
0x3612   : > { %13621 = vmatprep.subr.bf16.mxu0 %v14057_v57 }
0x3615   : > { %13623 = vmatpush3.bf16.msra.mxu0 %v13622_v32 }
0x3618   : > { %12967 = vmatmul.mubr.msk.f32.vlgmr.msra.gmra.mrb[68].mxu0 %vm1300_vm1, %v15073_v40 }
0x36e3   : > { %v12946_v2 = vpop.f32.mrb[54].mxu0 }
0x36e4   : > { %v13782_v4 = vadd.f32 %v12946_v2, %v11438_v1  ;;  %v8265_v6 = vpop.f32.mrb[55].mxu0  ;;  %v11538_v2 = vld [vmem:[%s15474_s26 + $0x88] sm:$0xff] }
0x36e5   : > { %v13783_v7 = vadd.f32 %v11438_v1, %v8265_v6  ;;  %v11537_v1 = vld [vmem:[%s15474_s26 + $0x80] sm:$0xff] }
0x36e6   : > { %v8277_v9 = vadd.f32 %v13782_v4, %v14866_v35  ;;  %v11539_v4 = vld [vmem:[%s15474_s26 + $0x90] sm:$0xff]  ;;  %v13625_v6 = vpack.c.bf16 %v11538_v2, %v11537_v1  ;;  %v11521_v1 = vld [vmem:[%s14163_s20 + $0xa0] sm:$0xff]  ;;  %v11522_v2 = vld [vmem:[%s14163_s20 + $0xa8] sm:$0xff] }
0x36e7   : > { %v8276_v10 = vadd.f32 %v13783_v7, %v14858_v30  ;;  %v11540_v7 = vld [vmem:[%s15474_s26 + $0x98] sm:$0xff] }
0x36e8   : > { %v8285_v11 = vsel %vm3410_vm9, %v8277_v9, 0.0 }
0x36e9   : > { %8286 = vadd.xlane.f32.xlu1 %v8285_v11  ;;  %v8282_v13 = vsel %vm1300_vm1, %v8276_v10, 0.0 }
0x36ea   : > { %8283 = vadd.xlane.f32.xlu0 %v8282_v13 }
0x36eb   : > { %v8556_v56 = vpop.f32.mrb[68].mxu0 }
0x36ec   : > { %v8557_v61 = vadd.f32 %v11565_v53, %v8556_v56  ;;  %v12968_v39 = vpop.f32.mrb[69].mxu0  ;;  %v11543_v53 = vld [vmem:[%s15474_s26 + $0xb0] sm:$0xff]  ;;  %v11544_v56 = vld [vmem:[%s15474_s26 + $0xb8] sm:$0xff] }
0x36ed   : > { %v11506_v39 = vld [vmem:[%s15468_s1 + $0xc8] sm:$0xff] }
0x36ee   : > { %12980 = vmatprep.subr.msk.mxu0 %vm1544_vm3, %v8557_v61 }
0x36ef   : > { %12981 = vmatpush3.xpose.msk.msra.mxu0 %vm1544_vm3, %v8557_v61  ;;  %v11505_v61 = vld [vmem:[%s15468_s1 + $0xc0] sm:$0xff] }
0x3776   : > { %v8287_v14 = vpop.xlane.xlu1 %8286 }
0x3777   : > { %v8289_v15 = vmul.f32 0.03125, %v8287_v14  ;;  %v8284_v17 = vpop.xlane.xlu0 %8283 }
0x3778   : > { %v8288_v19 = vmul.f32 0.03125, %v8284_v17 }
0x3779   : > { %v8291_v20 = vsub.f32 %v8277_v9, %v8289_v15  ;;  %v13628_v9 = vpack.c.bf16 %v11540_v7, %v11539_v4  ;;  %v15104_v15 = vld [vmem:[%s14546_s7] ss:$0 sm:$0xff]  ;;  %s15491_s7 = sld [smem:[#allocation26_spill]] }
0x377a   : > { %v8290_v21 = vsub.f32 %v8276_v10, %v8288_v19 }
0x377b   : > { %v8293_v35 = vmul.f32 %v8291_v20, %v8291_v20 }
0x377c   : > { %v8292_v30 = vmul.f32 %v8290_v21, %v8290_v21 }
0x377d   : > { %v8297_v24 = vsel %vm3410_vm9, %v8293_v35, 0.0 }
0x377e   : > { %8298 = vadd.xlane.f32.xlu1 %v8297_v24  ;;  %v8294_v12 = vsel %vm1300_vm1, %v8292_v30, 0.0 }
0x377f   : > { %8295 = vadd.xlane.f32.xlu0 %v8294_v12  ;;  %s1121_s22 = scalar_lea.vmem %s15491_s7, %s15490_s10 }
0x380b   : > { %v8299_v42 = vpop.xlane.xlu1 %8298 }
0x380c   : > { %v8301_v43 = vmul.f32 0.03125, %v8299_v42  ;;  %v8296_v49 = vpop.xlane.xlu0 %8295  ;;  %v13630_v42 = vpack.c.bf16 %v11502_v36, %v11501_v34 }
0x380d   : > { %v8300_v44 = vmul.f32 0.03125, %v8296_v49 }
0x380e   : > { %v8303_v45 = vadd.f32 1e-05, %v8301_v43  ;;  %v11557_v43 = vld [vmem:[%s15477_s2 + $0x20] sm:$0xff] }
0x380f   : > { %v8302_v46 = vadd.f32 1e-05, %v8300_v44 }
0x3810   : > { %13965 = vrsqrt.f32 %v8303_v45 }
0x3811   : > { %13967 = vrsqrt.f32 %v8302_v46  ;;  %v11503_v46 = vld [vmem:[%s15468_s1 + $0xb0] sm:$0xff] }
0x381a   : > { %v13966_v47 = vpop.eup %13965 }
0x381b   : > { %v13968_v50 = vpop.eup %13967  ;;  %v8307_v48 = vmul.f32 %v13966_v47, %v8291_v20  ;;  %v11504_v47 = vld [vmem:[%s15468_s1 + $0xb8] sm:$0xff] }
0x381c   : > { %v8306_v51 = vmul.f32 %v13968_v50, %v8290_v21 }
0x381d   : > { %v8315_v37 = vmul.f32 %v11495_v58, %v8307_v48 }
0x381e   : > { %v8314_v52 = vmul.f32 %v11495_v58, %v8306_v51  ;;  %v13634_v51 = vpack.c.bf16 %v11504_v47, %v11503_v46 }
0x381f   : > { %v15082_v18 = vadd.f32 %v11496_v38, %v8315_v37  ;;  %v11542_v37 = vld [vmem:[%s15474_s26 + $0xa8] sm:$0xff] }
0x3820   : > { %v15080_v16 = vadd.f32 %v11496_v38, %v8314_v52  ;;  %v11541_v38 = vld [vmem:[%s15474_s26 + $0xa0] sm:$0xff] }
0x3821   : > { %v13645_v52 = vpack.c.bf16 %v11542_v37, %v11541_v38 }
0x3822   : > { %12955 = vmatprep.mubr.msk.f32.mxu1 %vm1300_vm1, %v15080_v16 }
0x3823   : > { %12956 = vmatmul.mubr.msk.f32.vlgmr.msra.gmra.mrb[76].mxu1 %vm1300_vm1, %v15082_v18 }
0x3824   : > { %12977 = vmatprep.mubr.msk.f32.mxu1 %vm14058_vm10, %v14059_v5  ;;  %13626 = vmatpush3.bf16.msra.mxu1 %v13625_v6  ;;  %v13639_v6 = vpack.c.bf16 %v11522_v2, %v11521_v1 }
0x3825   : > { %13627 = vmatprep.subr.bf16.mxu1 %v14057_v57 }
0x3828   : > { %13629 = vmatpush3.bf16.msra.mxu1 %v13628_v9  ;;  %v11523_v9 = vld [vmem:[%s14163_s20 + $0xb0] sm:$0xff] }
0x3829   : > { %12990 = vmatprep.subr.mxu1 %v11557_v43 }
0x382b   : > { %12978 = vmatmul.mubr.msk.f32.vlgmr.msra.gmra.mrb[78].mxu1 %vm1300_vm1, %v15073_v40 }
0x382c   : > { %12991 = vmatpush3.msra.mxu1 %v11557_v43 }
0x382d   : > { %13638 = vmatprep.subr.bf16.mxu1 %v14057_v57 }
0x38f6   : > { %v12957_v62 = vpop.f32.mrb[76].mxu1 }
0x38f7   : > { %v8475_v63 = vpop.f32.mrb[77].mxu1  ;;  %v8481_v0 = vadd.f32 %v12957_v62, %v11562_v26  ;;  %v13650_v62 = vpack.c.bf16 %v11506_v39, %v11505_v61 }
0x38f8   : > { %v8476_v41 = vadd.f32 %v11562_v26, %v8475_v63  ;;  %v13648_v26 = vpack.c.bf16 %v11544_v56, %v11543_v53  ;;  %v11507_v63 = vld [vmem:[%s15468_s1 + $0xd0] sm:$0xff] }
0x38fa   : > { %12982 = vmatprep.mubr.msk.f32.mxu0 %vm1544_vm3, %v8476_v41  ;;  %v11508_v41 = vld [vmem:[%s15468_s1 + $0xd8] sm:$0xff] }
0x38fb   : > { %12983 = vmatmul.mubr.msk.f32.vlgmr.msra.gmra.mrb[70].mxu0 %vm1544_vm3, %v8481_v0  ;;  %v13654_v0 = vpack.c.bf16 %v11508_v41, %v11507_v63  ;;  %v11525_v63 = vld [vmem:[%s14163_s20 + $0xc0] sm:$0xff]  ;;  %v11526_v41 = vld [vmem:[%s14163_s20 + $0xc8] sm:$0xff] }
0x38fc   : > { %v13659_v1 = vpack.c.bf16 %v11526_v41, %v11525_v63  ;;  %v11529_v41 = vld [vmem:[%s14163_s20 + $0xe0] sm:$0xff] }
0x38fe   : > { %v8632_v31 = vpop.f32.mrb[78].mxu1 }
0x38ff   : > { %v8633_v32 = vadd.f32 %v11567_v22, %v8632_v31  ;;  %v12979_v33 = vpop.f32.mrb[79].mxu1 }
0x3901   : > { %12985 = vmatprep.subr.msk.mxu0 %vm3882_vm13, %v8633_v32 }
0x3902   : > { %12986 = vmatpush3.msk.msra.mxu0 %vm3882_vm13, %v8633_v32 }
0x3903   : > { %13631 = vmatprep.subr.bf16.mxu0 %v13630_v42 }
0x39ce   : > { %v12984_v10 = vpop.f32.mrb[70].mxu0 }
0x39cf   : > { %v8721_v11 = vmul.f32 0.35355338, %v12984_v10  ;;  %v8711_v13 = vpop.f32.mrb[71].mxu0  ;;  %v11524_v10 = vld [vmem:[%s14163_s20 + $0xb8] sm:$0xff] }
0x39d0   : > { %v8720_v14 = vmul.f32 0.35355338, %v8711_v13  ;;  %v11578_v13 = vld [vmem:[%s15473_s18 + $0x5] ss:$0 sm:$0xff] }
0x39d1   : > { %v8723_v17 = vadd.f32 %v15104_v15, %v8721_v11  ;;  %v13642_v11 = vpack.c.bf16 %v11524_v10, %v11523_v9  ;;  %v11596_v10 = vld [vmem:[%s15472_s16 + $0x6] ss:$0 sm:$0xff] }
0x39d2   : > { %v8722_v19 = vadd.f32 %v15104_v15, %v8720_v14 }
0x39d3   : > { %v8727_v20 = vsel %vm3856_vm11, %v8723_v17, -inf }
0x39d4   : > { %8728 = vmax.xlane.f32.xlu1 %v8727_v20  ;;  %v8724_v21 = vsel %vm3852_vm12, %v8722_v19, -inf }
0x39d5   : > { %8725 = vmax.xlane.f32.xlu0 %v8724_v21 }
0x3a61   : > { %v8729_v35 = vpop.xlane.xlu1 %8728 }
0x3a62   : > { %v8731_v30 = vsub.f32 %v8723_v17, %v8729_v35  ;;  %v8726_v24 = vpop.xlane.xlu0 %8725 }
0x3a63   : > { %v8730_v12 = vsub.f32 %v8722_v19, %v8726_v24 }
0x3a64   : > { %v8734_v8 = vmul.f32 1.442695, %v8731_v30  ;;  %v15162_v30 = vld [vmem:[%s15473_s18 + $0x6] ss:$0 sm:$0xff] }
0x3a65   : > { %v8732_v25 = vmul.f32 1.442695, %v8730_v12 }
0x3a66   : > { %13969 = vpow2.f32 %v8734_v8 }
0x3a67   : > { %13971 = vpow2.f32 %v8732_v25  ;;  %v11583_v25 = vld [vmem:[%s15476_s23 + $0x5] ss:$0 sm:$0xff] }
0x3a70   : > { %v13970_v27 = vpop.eup %13969 }
0x3a71   : > { %v13972_v28 = vpop.eup %13971  ;;  %v8739_v29 = vsel %vm3856_vm11, %v13970_v27, 0.0 }
0x3a72   : > { %8740 = vadd.xlane.f32.xlu1 %v8739_v29  ;;  %v8736_v23 = vsel %vm3852_vm12, %v13972_v28, 0.0 }
0x3a73   : > { %8737 = vadd.xlane.f32.xlu0 %v8736_v23 }
0x3aff   : > { %v8741_v49 = vpop.xlane.xlu1 %8740 }
0x3b00   : > { %13973 = vrcp.f32 %v8741_v49  ;;  %v8738_v44 = vpop.xlane.xlu0 %8737 }
0x3b01   : > { %13975 = vrcp.f32 %v8738_v44 }
0x3b0a   : > { %v13974_v45 = vpop.eup %13973 }
0x3b0b   : > { %v13976_v58 = vpop.eup %13975  ;;  %v8745_v48 = vmul.f32 %v13974_v45, %v13970_v27  ;;  %v11581_v27 = vld [vmem:[%s15472_s16 + $0x5] ss:$0 sm:$0xff] }
0x3b0c   : > { %v8744_v50 = vmul.f32 %v13976_v58, %v13972_v28 }
0x3b0e   : > { %12987 = vmatprep.mubr.msk.f32.mxu0 %vm3852_vm12, %v8744_v50 }
0x3b0f   : > { %12988 = vmatmul.mubr.msk.f32.vlgmr.msra.gmra.mrb[72].mxu0 %vm3852_vm12, %v8745_v48 }
0x3b10   : > { %13633 = vmatpush3.bf16.msra.mxu0 %v13630_v42  ;;  %13003 = vmatprep.mubr.msk.f32.mxu0 %vm1300_vm1, %v15080_v16 }
0x3b11   : > { %13635 = vmatprep.subr.bf16.mxu0 %v13634_v51 }
0x3b14   : > { %13637 = vmatpush3.bf16.msra.mxu0 %v13634_v51 }
0x3b15   : > { %13644 = vmatprep.subr.bf16.mxu0 %v14057_v57 }
0x3b17   : > { %13004 = vmatmul.mubr.msk.f32.vlgmr.msra.gmra.mrb[74].mxu0 %vm1300_vm1, %v15082_v18 }
0x3b18   : > { %13646 = vmatpush3.bf16.msra.mxu0 %v13645_v52  ;;  %13025 = vmatprep.mubr.msk.f32.mxu0 %vm14058_vm10, %v14059_v5  ;;  %v11558_v52 = vld [vmem:[%s15477_s2 + $0x28] sm:$0xff] }
0x3b19   : > { %13647 = vmatprep.subr.bf16.mxu0 %v14057_v57 }
0x3b1c   : > { %13649 = vmatpush3.bf16.msra.mxu0 %v13648_v26 }
0x3b1d   : > { %13651 = vmatprep.subr.bf16.mxu0 %v13650_v62 }
0x3b1f   : > { %13026 = vmatmul.mubr.msk.f32.vlgmr.msra.gmra.mrb[76].mxu0 %vm1300_vm1, %v15073_v40 }
0x3b20   : > { %13653 = vmatpush3.bf16.msra.mxu0 %v13650_v62  ;;  %13051 = vmatprep.mubr.msk.f32.mxu0 %vm1300_vm1, %v15080_v16 }
0x3b21   : > { %13655 = vmatprep.subr.bf16.mxu0 %v13654_v0 }
0x3b24   : > { %13657 = vmatpush3.bf16.msra.mxu0 %v13654_v0 }
0x3b25   : > { %13664 = vmatprep.subr.bf16.mxu0 %v14057_v57 }
0x3b27   : > { %13052 = vmatmul.mubr.msk.f32.vlgmr.msra.gmra.mrb[78].mxu0 %vm1300_vm1, %v15082_v18 }
0x3b28   : > { %13073 = vmatprep.mubr.msk.f32.mxu0 %vm14058_vm10, %v14059_v5 }
0x3be2   : > { %v12989_v4 = vpop.f32.mrb[72].mxu0 }
0x3be3   : > { %v8821_v7 = vpop.f32.mrb[73].mxu0 }
0x3be4   : > { %12992 = vmatprep.mubr.msk.f32.mxu1 %vm1544_vm3, %v8821_v7 }
0x3be5   : > { %12993 = vmatmul.mubr.msk.f32.vlgmr.msra.gmra.mrb[80].mxu1 %vm1544_vm3, %v12989_v4  ;;  %v11527_v4 = vld [vmem:[%s14163_s20 + $0xd0] sm:$0xff] }
0x3be6   : > { %13640 = vmatpush3.bf16.msra.mxu1 %v13639_v6  ;;  %13014 = vmatprep.mubr.msk.f32.mxu1 %vm14058_vm10, %v14059_v5  ;;  %v11528_v6 = vld [vmem:[%s14163_s20 + $0xd8] sm:$0xff] }
0x3be7   : > { %13641 = vmatprep.subr.bf16.mxu1 %v14057_v57  ;;  %v13662_v7 = vpack.c.bf16 %v11528_v6, %v11527_v4  ;;  %v11531_v6 = vld [vmem:[%s14163_s20 + $0xf0] sm:$0xff] }
0x3bea   : > { %v13005_v14 = vpop.f32.mrb[74].mxu0  ;;  %13643 = vmatpush3.bf16.msra.mxu1 %v13642_v11 }
0x3beb   : > { %v8997_v17 = vadd.f32 %v13005_v14, %v11578_v13  ;;  %v8991_v19 = vpop.f32.mrb[75].mxu0 }
0x3bec   : > { %v8992_v20 = vadd.f32 %v11578_v13, %v8991_v19  ;;  %v11546_v19 = vld [vmem:[%s15474_s26 + $0xc8] sm:$0xff] }
0x3bed   : > { %13015 = vmatmul.mubr.msk.f32.vlgmr.msra.gmra.mrb[82].mxu1 %vm1300_vm1, %v15073_v40 }
0x3bee   : > { %13030 = vmatprep.mubr.msk.f32.mxu1 %vm1544_vm3, %v8992_v20  ;;  %v11547_v20 = vld [vmem:[%s15474_s26 + $0xd0] sm:$0xff] }
0x3bf2   : > { %v9148_v21 = vpop.f32.mrb[76].mxu0 }
0x3bf3   : > { %v13027_v35 = vpop.f32.mrb[77].mxu0  ;;  %v9149_v29 = vadd.f32 %v11583_v25, %v9148_v21 }
0x3bf4   : > { %v11548_v35 = vld [vmem:[%s15474_s26 + $0xd8] sm:$0xff] }
0x3bfa   : > { %v13053_v24 = vpop.f32.mrb[78].mxu0 }
0x3bfb   : > { %v15165_v12 = vadd.f32 %v13053_v24, %v15162_v30  ;;  %v15167_v8 = vpop.f32.mrb[79].mxu0 }
0x3bfc   : > { %v9502_v9 = vadd.f32 %v15162_v30, %v15167_v8  ;;  %v13668_v30 = vpack.c.bf16 %v11548_v35, %v11547_v20 }
0x3cc0   : > { %v9072_v28 = vpop.f32.mrb[82].mxu1 }
0x3cc1   : > { %v9073_v23 = vadd.f32 %v11581_v27, %v9072_v28  ;;  %v13016_v22 = vpop.f32.mrb[83].mxu1 }
0x3cc3   : > { %13028 = vmatprep.subr.msk.mxu1 %vm1544_vm3, %v9073_v23 }
0x3cc4   : > { %13029 = vmatpush3.xpose.msk.msra.mxu1 %vm1544_vm3, %v9073_v23 }
0x3cc5   : > { %13033 = vmatprep.subr.msk.mxu1 %vm3882_vm13, %v9149_v29 }
0x3cc7   : > { %13031 = vmatmul.mubr.msk.f32.vlgmr.msra.gmra.mrb[84].mxu1 %vm1544_vm3, %v8997_v17  ;;  %v11545_v17 = vld [vmem:[%s15474_s26 + $0xc0] sm:$0xff] }
0x3cc8   : > { %13034 = vmatpush3.msk.msra.mxu1 %vm3882_vm13, %v9149_v29  ;;  %v13665_v21 = vpack.c.bf16 %v11546_v19, %v11545_v17  ;;  %v11611_v19 = vld [vmem:[%s15472_s16 + $0x7] ss:$0 sm:$0xff] }
0x3cc9   : > { %13038 = vmatprep.subr.mxu1 %v11558_v52 }
0x3cca   : > { %13666 = vmatpush3.bf16.msra.mxu0 %v13665_v21 }
0x3ccb   : > { %13667 = vmatprep.subr.bf16.mxu0 %v14057_v57 }
0x3cce   : > { %13669 = vmatpush3.bf16.msra.mxu0 %v13668_v30  ;;  %v11549_v30 = vld [vmem:[%s15474_s26 + $0xe0] sm:$0xff] }
0x3cd1   : > { %13074 = vmatmul.mubr.msk.f32.vlgmr.msra.gmra.mrb[80].mxu0 %vm1300_vm1, %v15073_v40 }
0x3d9a   : > { %v13032_v31 = vpop.f32.mrb[84].mxu1 }
0x3d9b   : > { %v9237_v32 = vmul.f32 0.35355338, %v13032_v31  ;;  %v9227_v33 = vpop.f32.mrb[85].mxu1 }
0x3d9c   : > { %v9236_v34 = vmul.f32 0.35355338, %v9227_v33 }
0x3d9d   : > { %v9239_v36 = vadd.f32 %v15104_v15, %v9237_v32 }
0x3d9e   : > { %v9238_v42 = vadd.f32 %v15104_v15, %v9236_v34 }
0x3d9f   : > { %v9243_v43 = vsel %vm3856_vm11, %v9239_v36, -inf }
0x3da0   : > { %9244 = vmax.xlane.f32.xlu1 %v9243_v43  ;;  %v9240_v49 = vsel %vm3852_vm12, %v9238_v42, -inf }
0x3da1   : > { %9241 = vmax.xlane.f32.xlu0 %v9240_v49 }
0x3e2d   : > { %v9245_v44 = vpop.xlane.xlu1 %9244 }
0x3e2e   : > { %v9247_v45 = vsub.f32 %v9239_v36, %v9245_v44  ;;  %v9242_v46 = vpop.xlane.xlu0 %9241 }
0x3e2f   : > { %v9246_v47 = vsub.f32 %v9238_v42, %v9242_v46  ;;  %v9658_v46 = vpop.f32.mrb[80].mxu0 }
0x3e30   : > { %v9250_v58 = vmul.f32 1.442695, %v9247_v45  ;;  %v11598_v45 = vld [vmem:[%s15476_s23 + $0x6] ss:$0 sm:$0xff] }
0x3e31   : > { %v9248_v50 = vmul.f32 1.442695, %v9246_v47  ;;  %v9659_v47 = vadd.f32 %v11598_v45, %v9658_v46 }
0x3e32   : > { %13977 = vpow2.f32 %v9250_v58  ;;  %v13075_v58 = vpop.f32.mrb[81].mxu0 }
0x3e33   : > { %13979 = vpow2.f32 %v9248_v50  ;;  %v11509_v50 = vld [vmem:[%s15468_s1 + $0xe0] sm:$0xff]  ;;  %13081 = vmatprep.subr.msk.mxu0 %vm3882_vm13, %v9659_v47 }
0x3e34   : > { %13082 = vmatpush3.msk.msra.mxu0 %vm3882_vm13, %v9659_v47  ;;  %v11613_v47 = vld [vmem:[%s15476_s23 + $0x7] ss:$0 sm:$0xff] }
0x3e3c   : > { %v13978_v48 = vpop.eup %13977 }
0x3e3d   : > { %v13980_v51 = vpop.eup %13979  ;;  %v9255_v38 = vsel %vm3856_vm11, %v13978_v48, 0.0 }
0x3e3e   : > { %9256 = vadd.xlane.f32.xlu1 %v9255_v38  ;;  %v9252_v37 = vsel %vm3852_vm12, %v13980_v51, 0.0  ;;  %v11559_v38 = vld [vmem:[%s15477_s2 + $0x30] sm:$0xff] }
0x3e3f   : > { %9253 = vadd.xlane.f32.xlu0 %v9252_v37 }
0x3ecb   : > { %v9257_v53 = vpop.xlane.xlu1 %9256 }
0x3ecc   : > { %13981 = vrcp.f32 %v9257_v53  ;;  %v9254_v56 = vpop.xlane.xlu0 %9253 }
0x3ecd   : > { %13983 = vrcp.f32 %v9254_v56  ;;  %v11511_v56 = vld [vmem:[%s15468_s1 + $0xf0] sm:$0xff] }
0x3ed6   : > { %v13982_v61 = vpop.eup %13981 }
0x3ed7   : > { %v13984_v39 = vpop.eup %13983  ;;  %v9261_v62 = vmul.f32 %v13982_v61, %v13978_v48  ;;  %v11510_v48 = vld [vmem:[%s15468_s1 + $0xe8] sm:$0xff]  ;;  %v11512_v61 = vld [vmem:[%s15468_s1 + $0xf8] sm:$0xff] }
0x3ed8   : > { %v9260_v26 = vmul.f32 %v13984_v39, %v13980_v51  ;;  %v13670_v51 = vpack.c.bf16 %v11510_v48, %v11509_v50  ;;  %v13674_v63 = vpack.c.bf16 %v11512_v61, %v11511_v56 }
0x3eda   : > { %13035 = vmatprep.mubr.msk.f32.mxu1 %vm3852_vm12, %v9260_v26  ;;  %13671 = vmatprep.subr.bf16.mxu0 %v13670_v51 }
0x3edb   : > { %13036 = vmatmul.mubr.msk.f32.vlgmr.msra.gmra.mrb[86].mxu1 %vm3852_vm12, %v9261_v62 }
0x3edc   : > { %13039 = vmatpush3.msra.mxu1 %v11558_v52 }
0x3edd   : > { %13658 = vmatprep.subr.bf16.mxu1 %v14057_v57 }
0x3fae   : > { %v13037_v0 = vpop.f32.mrb[86].mxu1 }
0x3faf   : > { %v9337_v2 = vpop.f32.mrb[87].mxu1 }
0x3fb0   : > { %13040 = vmatprep.mubr.msk.f32.mxu1 %vm1544_vm3, %v9337_v2 }
0x3fb1   : > { %13041 = vmatmul.mubr.msk.f32.vlgmr.msra.gmra.mrb[80].mxu1 %vm1544_vm3, %v13037_v0  ;;  %v11530_v0 = vld [vmem:[%s14163_s20 + $0xe8] sm:$0xff] }
0x3fb2   : > { %13660 = vmatpush3.bf16.msra.mxu1 %v13659_v1  ;;  %13062 = vmatprep.mubr.msk.f32.mxu1 %vm14058_vm10, %v14059_v5  ;;  %v13679_v2 = vpack.c.bf16 %v11530_v0, %v11529_v41 }
0x3fb3   : > { %13661 = vmatprep.subr.bf16.mxu1 %v14057_v57 }
0x3fb6   : > { %13663 = vmatpush3.bf16.msra.mxu1 %v13662_v7  ;;  %v11532_v7 = vld [vmem:[%s14163_s20 + $0xf8] sm:$0xff] }
0x3fb9   : > { %13063 = vmatmul.mubr.msk.f32.vlgmr.msra.gmra.mrb[88].mxu1 %vm1300_vm1, %v15073_v40 }
0x3fba   : > { %13078 = vmatprep.mubr.msk.f32.mxu1 %vm1544_vm3, %v9502_v9  ;;  %v13682_v9 = vpack.c.bf16 %v11532_v7, %v11531_v6 }
0x408c   : > { %v9582_v11 = vpop.f32.mrb[88].mxu1 }
0x408d   : > { %v9583_v13 = vadd.f32 %v11596_v10, %v9582_v11  ;;  %v13064_v14 = vpop.f32.mrb[89].mxu1  ;;  %v11608_v10 = vld [vmem:[%s15473_s18 + $0x7] ss:$0 sm:$0xff] }
0x408f   : > { %13076 = vmatprep.subr.msk.mxu1 %vm1544_vm3, %v9583_v13 }
0x4090   : > { %13077 = vmatpush3.xpose.msk.msra.mxu1 %vm1544_vm3, %v9583_v13 }
0x4091   : > { %13086 = vmatprep.subr.mxu1 %v11559_v38 }
0x4093   : > { %13079 = vmatmul.mubr.msk.f32.vlgmr.msra.gmra.mrb[90].mxu1 %vm1544_vm3, %v15165_v12 }
0x4094   : > { %13087 = vmatpush3.msra.mxu1 %v11559_v38 }
0x4095   : > { %13678 = vmatprep.subr.bf16.mxu1 %v14057_v57 }
0x4166   : > { %v13080_v24 = vpop.f32.mrb[90].mxu1 }
0x4167   : > { %v9747_v8 = vmul.f32 0.35355338, %v13080_v24  ;;  %v9737_v25 = vpop.f32.mrb[91].mxu1  ;;  %v11550_v24 = vld [vmem:[%s15474_s26 + $0xe8] sm:$0xff] }
0x4168   : > { %v9746_v27 = vmul.f32 0.35355338, %v9737_v25  ;;  %v13685_v25 = vpack.c.bf16 %v11550_v24, %v11549_v30  ;;  %v11630_v30 = vld [vmem:[%s15479_s13 + $0x98] sm:$0xff] }
0x4169   : > { %v9749_v28 = vadd.f32 %v15104_v15, %v9747_v8  ;;  %v11551_v8 = vld [vmem:[%s15474_s26 + $0xf0] sm:$0xff] }
0x416a   : > { %v9748_v12 = vadd.f32 %v15104_v15, %v9746_v27  ;;  %v11552_v27 = vld [vmem:[%s15474_s26 + $0xf8] sm:$0xff] }
0x416b   : > { %v9753_v29 = vsel %vm3856_vm11, %v9749_v28, -inf }
0x416c   : > { %9754 = vmax.xlane.f32.xlu1 %v9753_v29  ;;  %v9750_v23 = vsel %vm3852_vm12, %v9748_v12, -inf }
0x416d   : > { %9751 = vmax.xlane.f32.xlu0 %v9750_v23 }
0x41f9   : > { %v9755_v22 = vpop.xlane.xlu1 %9754 }
0x41fa   : > { %v9757_v31 = vsub.f32 %v9749_v28, %v9755_v22  ;;  %v9752_v32 = vpop.xlane.xlu0 %9751  ;;  %v13688_v28 = vpack.c.bf16 %v11552_v27, %v11551_v8  ;;  %v11634_v8 = vld [vmem:[%s15479_s13 + $0xb8] sm:$0xff]  ;;  %v11631_v27 = vld [vmem:[%s15479_s13 + $0xa0] sm:$0xff] }
0x41fb   : > { %v9756_v33 = vsub.f32 %v9748_v12, %v9752_v32 }
0x41fc   : > { %v9760_v34 = vmul.f32 1.442695, %v9757_v31 }
0x41fd   : > { %v9758_v36 = vmul.f32 1.442695, %v9756_v33 }
0x41fe   : > { %13985 = vpow2.f32 %v9760_v34 }
0x41ff   : > { %13987 = vpow2.f32 %v9758_v36 }
0x4208   : > { %v13986_v42 = vpop.eup %13985 }
0x4209   : > { %v13988_v43 = vpop.eup %13987  ;;  %v9765_v49 = vsel %vm3856_vm11, %v13986_v42, 0.0 }
0x420a   : > { %9766 = vadd.xlane.f32.xlu1 %v9765_v49  ;;  %v9762_v44 = vsel %vm3852_vm12, %v13988_v43, 0.0 }
0x420b   : > { %9763 = vadd.xlane.f32.xlu0 %v9762_v44 }
0x4297   : > { %v9767_v37 = vpop.xlane.xlu1 %9766 }
0x4298   : > { %13989 = vrcp.f32 %v9767_v37  ;;  %v9764_v52 = vpop.xlane.xlu0 %9763 }
0x4299   : > { %13991 = vrcp.f32 %v9764_v52 }
0x42a2   : > { %v13990_v53 = vpop.eup %13989 }
0x42a3   : > { %v13992_v39 = vpop.eup %13991  ;;  %v9771_v62 = vmul.f32 %v13990_v53, %v13986_v42 }
0x42a4   : > { %v9770_v26 = vmul.f32 %v13992_v39, %v13988_v43 }
0x42a6   : > { %13083 = vmatprep.mubr.msk.f32.mxu0 %vm3852_vm12, %v9770_v26 }
0x42a7   : > { %13084 = vmatmul.mubr.msk.f32.vlgmr.msra.gmra.mrb[82].mxu0 %vm3852_vm12, %v9771_v62  ;;  %v11577_v62 = vld [vmem:[%s15478_s5 + $0x1] ss:$0 sm:$0xff] }
0x42a8   : > { %13673 = vmatpush3.bf16.msra.mxu0 %v13670_v51  ;;  %13099 = vmatprep.mubr.msk.f32.mxu0 %vm1300_vm1, %v15080_v16  ;;  %v11560_v51 = vld [vmem:[%s15477_s2 + $0x38] sm:$0xff] }
0x42a9   : > { %13675 = vmatprep.subr.bf16.mxu0 %v13674_v63 }
0x42ac   : > { %13677 = vmatpush3.bf16.msra.mxu0 %v13674_v63 }
0x42ad   : > { %13684 = vmatprep.subr.bf16.mxu0 %v14057_v57 }
0x42af   : > { %13100 = vmatmul.mubr.msk.f32.vlgmr.msra.gmra.mrb[84].mxu0 %vm1300_vm1, %v15082_v18 }
0x42b0   : > { %13121 = vmatprep.mubr.msk.f32.mxu0 %vm14058_vm10, %v14059_v5  ;;  %13686 = vmatpush3.bf16.msra.mxu0 %v13685_v25  ;;  %v11627_v25 = vld [vmem:[%s15479_s13 + $0x80] sm:$0xff] }
0x42b1   : > { %13687 = vmatprep.subr.bf16.mxu0 %v14057_v57 }
0x42b4   : > { %13689 = vmatpush3.bf16.msra.mxu0 %v13688_v28  ;;  %v13698_v28 = vpack.c.bf16 %v11634_v8, %v11630_v30  ;;  %v11679_v30 = vld [vmem:[%s15480_s21 + $0x318] sm:$0xff]  ;;  %v11665_v8 = vld [vmem:[%s15480_s21 + $0x2a8] sm:$0xff] }
0x42b7   : > { %13122 = vmatmul.mubr.msk.f32.vlgmr.msra.gmra.mrb[86].mxu0 %vm1300_vm1, %v15073_v40 }
0x42b8   : > { %10674 = vmatprep.mubr.f32.mxu0 %v14059_v5 }
0x437a   : > { %v13085_v1 = vpop.f32.mrb[82].mxu0 }
0x437b   : > { %v9847_v4 = vpop.f32.mrb[83].mxu0 }
0x437c   : > { %13088 = vmatprep.mubr.msk.f32.mxu1 %vm1544_vm3, %v9847_v4 }
0x437d   : > { %13089 = vmatmul.mubr.msk.f32.vlgmr.msra.gmra.mrb[80].mxu1 %vm1544_vm3, %v13085_v1 }
0x437e   : > { %13680 = vmatpush3.bf16.msra.mxu1 %v13679_v2  ;;  %13110 = vmatprep.mubr.msk.f32.mxu1 %vm14058_vm10, %v14059_v5 }
0x437f   : > { %13681 = vmatprep.subr.bf16.mxu1 %v14057_v57 }
0x4382   : > { %v13101_v11 = vpop.f32.mrb[84].mxu0  ;;  %13683 = vmatpush3.bf16.msra.mxu1 %v13682_v9 }
0x4383   : > { %v10017_v13 = vadd.f32 %v13101_v11, %v11608_v10  ;;  %v10011_v14 = vpop.f32.mrb[85].mxu0 }
0x4384   : > { %v10012_v17 = vadd.f32 %v11608_v10, %v10011_v14 }
0x4385   : > { %13111 = vmatmul.mubr.msk.f32.vlgmr.msra.gmra.mrb[92].mxu1 %vm1300_vm1, %v15073_v40 }
0x4386   : > { %13126 = vmatprep.mubr.msk.f32.mxu1 %vm1544_vm3, %v10012_v17 }
0x438a   : > { %v10168_v58 = vpop.f32.mrb[86].mxu0 }
0x438b   : > { %v10169_v50 = vadd.f32 %v11613_v47, %v10168_v58  ;;  %v13123_v48 = vpop.f32.mrb[87].mxu0  ;;  %v11692_v47 = vld [vmem:[%s15480_s21 + $0x380] sm:$0xff] }
0x4458   : > { %v10092_v20 = vpop.f32.mrb[92].mxu1 }
0x4459   : > { %v10093_v21 = vadd.f32 %v11611_v19, %v10092_v20  ;;  %v13112_v35 = vpop.f32.mrb[93].mxu1 }
0x445a   : > { %v11632_v35 = vld [vmem:[%s15479_s13 + $0xa8] sm:$0xff] }
0x445b   : > { %13124 = vmatprep.subr.msk.mxu1 %vm1544_vm3, %v10093_v21 }
0x445c   : > { %13125 = vmatpush3.xpose.msk.msra.mxu1 %vm1544_vm3, %v10093_v21  ;;  %v11628_v21 = vld [vmem:[%s15479_s13 + $0x88] sm:$0xff] }
0x445d   : > { %13129 = vmatprep.subr.msk.mxu1 %vm3882_vm13, %v10169_v50  ;;  %v13690_v24 = vpack.c.bf16 %v11632_v35, %v11628_v21  ;;  %v11678_v35 = vld [vmem:[%s15480_s21 + $0x310] sm:$0xff] }
0x445f   : > { %13127 = vmatmul.mubr.msk.f32.vlgmr.msra.gmra.mrb[94].mxu1 %vm1544_vm3, %v10017_v13  ;;  %13691 = vmatprep.subr.bf16.mxu0 %v13690_v24  ;;  %v11664_v24 = vld [vmem:[%s15480_s21 + $0x2a0] sm:$0xff] }
0x4460   : > { %13130 = vmatpush3.msk.msra.mxu1 %vm3882_vm13, %v10169_v50  ;;  %v11693_v50 = vld [vmem:[%s15480_s21 + $0x388] sm:$0xff] }
0x4461   : > { %13134 = vmatprep.subr.mxu1 %v11560_v51  ;;  %v13738_v48 = vpack.c.bf16 %v11693_v50, %v11692_v47  ;;  %v11683_v47 = vld [vmem:[%s15480_s21 + $0x338] sm:$0xff]  ;;  %v11669_v50 = vld [vmem:[%s15480_s21 + $0x2c8] sm:$0xff] }
0x4532   : > { %v13128_v12 = vpop.f32.mrb[94].mxu1 }
0x4533   : > { %v10257_v29 = vmul.f32 0.35355338, %v13128_v12  ;;  %v10247_v23 = vpop.f32.mrb[95].mxu1  ;;  %v13692_v12 = vpack.c.bf16 %v11631_v27, %v11627_v25  ;;  %v11696_v25 = vld [vmem:[%s15480_s21 + $0x3a0] sm:$0xff]  ;;  %v11697_v27 = vld [vmem:[%s15480_s21 + $0x3a8] sm:$0xff] }
0x4534   : > { %v10256_v22 = vmul.f32 0.35355338, %v10247_v23  ;;  %v11633_v23 = vld [vmem:[%s15479_s13 + $0xb0] sm:$0xff] }
0x4535   : > { %v10259_v31 = vadd.f32 %v15104_v15, %v10257_v29  ;;  %v11629_v29 = vld [vmem:[%s15479_s13 + $0x90] sm:$0xff]  ;;  %13693 = vmatpush1.bf16.msra.mxu0 %v13692_v12 }
0x4536   : > { %v10258_v32 = vadd.f32 %v15104_v15, %v10256_v22  ;;  %v13700_v22 = vpack.c.bf16 %v11633_v23, %v11629_v29  ;;  %v13744_v29 = vpack.c.bf16 %v11679_v30, %v11678_v35  ;;  %v11648_v23 = vld [vmem:[%s15480_s21 + $0x220] sm:$0xff] }
0x4537   : > { %v10263_v33 = vsel %vm3856_vm11, %v10259_v31, -inf  ;;  %v11656_v30 = vld [vmem:[%s15480_s21 + $0x260] sm:$0xff] }
0x4538   : > { %10264 = vmax.xlane.f32.xlu1 %v10263_v33  ;;  %v10260_v34 = vsel %vm3852_vm12, %v10258_v32, -inf  ;;  %v11638_v33 = vld [vmem:[%s15479_s13 + $0xd8] sm:$0xff] }
0x4539   : > { %10261 = vmax.xlane.f32.xlu0 %v10260_v34 }
0x45c5   : > { %v10265_v57 = vpop.xlane.xlu1 %10264 }
0x45c6   : > { %v10267_v36 = vsub.f32 %v10259_v31, %v10265_v57  ;;  %v10262_v40 = vpop.xlane.xlu0 %10261  ;;  %v11636_v31 = vld [vmem:[%s15479_s13 + $0xc8] sm:$0xff]  ;;  %v11642_v57 = vld [vmem:[%s15479_s13 + $0xf8] sm:$0xff] }
0x45c7   : > { %v10266_v42 = vsub.f32 %v10258_v32, %v10262_v40  ;;  %v11640_v32 = vld [vmem:[%s15479_s13 + $0xe8] sm:$0xff]  ;;  %v11639_v40 = vld [vmem:[%s15479_s13 + $0xe0] sm:$0xff] }
0x45c8   : > { %v10270_v43 = vmul.f32 1.442695, %v10267_v36  ;;  %v13694_v34 = vpack.c.bf16 %v11640_v32, %v11636_v31  ;;  %v11635_v36 = vld [vmem:[%s15479_s13 + $0xc0] sm:$0xff]  ;;  %v13714_v31 = vpack.c.bf16 %v11665_v8, %v11664_v24  ;;  %v13746_v32 = vpack.c.bf16 %v11697_v27, %v11696_v25  ;;  %v11657_v24 = vld [vmem:[%s15480_s21 + $0x268] sm:$0xff] }
0x45c9   : > { %v10268_v49 = vmul.f32 1.442695, %v10266_v42  ;;  %v13702_v42 = vpack.c.bf16 %v11642_v57, %v11638_v33  ;;  %v11680_v33 = vld [vmem:[%s15480_s21 + $0x320] sm:$0xff]  ;;  %v11667_v57 = vld [vmem:[%s15480_s21 + $0x2b8] sm:$0xff]  ;;  %v13732_v25 = vpack.c.bf16 %v11657_v24, %v11656_v30  ;;  %v11689_v27 = vld [vmem:[%s15480_s21 + $0x368] sm:$0xff] }
0x45ca   : > { %13993 = vpow2.f32 %v10270_v43  ;;  %v13696_v43 = vpack.c.bf16 %v11639_v40, %v11635_v36  ;;  %13695 = vmatprep.subr.bf16.mxu0 %v13694_v34  ;;  %v11681_v34 = vld [vmem:[%s15480_s21 + $0x328] sm:$0xff]  ;;  %v11698_v36 = vld [vmem:[%s15480_s21 + $0x3b0] sm:$0xff]  ;;  %v11699_v40 = vld [vmem:[%s15480_s21 + $0x3b8] sm:$0xff] }
0x45cb   : > { %13995 = vpow2.f32 %v10268_v49  ;;  %v11637_v49 = vld [vmem:[%s15479_s13 + $0xd0] sm:$0xff]  ;;  %v11688_v8 = vld [vmem:[%s15480_s21 + $0x360] sm:$0xff] }
0x45cc   : > { %13697 = vmatpush1.bf16.msra.mxu0 %v13696_v43  ;;  %v13748_v43 = vpack.c.bf16 %v11681_v34, %v11680_v33  ;;  %v11658_v33 = vld [vmem:[%s15480_s21 + $0x270] sm:$0xff]  ;;  %v11659_v34 = vld [vmem:[%s15480_s21 + $0x278] sm:$0xff] }
0x45d4   : > { %v13994_v44 = vpop.eup %13993 }
0x45d5   : > { %v13996_v45 = vpop.eup %13995  ;;  %v10275_v15 = vsel %vm3856_vm11, %v13994_v44, 0.0 }
0x45d6   : > { %10276 = vadd.xlane.f32.xlu1 %v10275_v15  ;;  %v10272_v46 = vsel %vm3852_vm12, %v13996_v45, 0.0  ;;  %v11660_v15 = vld [vmem:[%s15480_s21 + $0x280] sm:$0xff] }
0x45d7   : > { %10273 = vadd.xlane.f32.xlu0 %v10272_v46  ;;  %v11661_v46 = vld [vmem:[%s15480_s21 + $0x288] sm:$0xff] }
0x45d8   : > { %v13706_v58 = vpack.c.bf16 %v11661_v46, %v11660_v15  ;;  %v13750_v15 = vpack.c.bf16 %v11699_v40, %v11698_v36  ;;  %v11682_v46 = vld [vmem:[%s15480_s21 + $0x330] sm:$0xff]  ;;  %v11691_v40 = vld [vmem:[%s15480_s21 + $0x378] sm:$0xff] }
0x45d9   : > { %v11690_v36 = vld [vmem:[%s15480_s21 + $0x370] sm:$0xff] }
0x45da   : > { %13707 = vmatprep.subr.bf16.mxu0 %v13706_v58  ;;  %v11668_v58 = vld [vmem:[%s15480_s21 + $0x2c0] sm:$0xff] }
0x4663   : > { %v10277_v38 = vpop.xlane.xlu1 %10276 }
0x4664   : > { %13997 = vrcp.f32 %v10277_v38  ;;  %v10274_v37 = vpop.xlane.xlu0 %10273 }
0x4665   : > { %13999 = vrcp.f32 %v10274_v37 }
0x466e   : > { %v13998_v52 = vpop.eup %13997 }
0x466f   : > { %v14000_v53 = vpop.eup %13999  ;;  %v10281_v61 = vmul.f32 %v13998_v52, %v13994_v44  ;;  %v11641_v44 = vld [vmem:[%s15479_s13 + $0xf0] sm:$0xff] }
0x4670   : > { %v10280_v56 = vmul.f32 %v14000_v53, %v13996_v45  ;;  %v13704_v45 = vpack.c.bf16 %v11641_v44, %v11637_v49  ;;  %v11650_v49 = vld [vmem:[%s15480_s21 + $0x230] sm:$0xff]  ;;  %v11651_v44 = vld [vmem:[%s15480_s21 + $0x238] sm:$0xff] }
0x4672   : > { %13131 = vmatprep.mubr.msk.f32.mxu1 %vm3852_vm12, %v10280_v56 }
0x4673   : > { %13132 = vmatmul.mubr.msk.f32.vlgmr.msra.gmra.mrb[96].mxu1 %vm3852_vm12, %v10281_v61 }
0x4674   : > { %13135 = vmatpush3.msra.mxu1 %v11560_v51 }
0x4675   : > { %13699 = vmatprep.subr.bf16.mxu1 %v13698_v28 }
0x4746   : > { %v13133_v39 = vpop.f32.mrb[96].mxu1 }
0x4747   : > { %v10357_v26 = vpop.f32.mrb[97].mxu1 }
0x4748   : > { %13136 = vmatprep.mubr.msk.f32.mxu1 %vm1544_vm3, %v10357_v26  ;;  %v11625_v26 = vld [vmem:[%s15481_s25 + $0x1] ss:$0 sm:$0xff] }
0x4749   : > { %13137 = vmatmul.mubr.msk.f32.vlgmr.msra.gmra.mrb[80].mxu1 %vm1544_vm3, %v13133_v39 }
0x474a   : > { %10751 = vmatprep.mubr.f32.mxu1 %v14059_v5  ;;  %13701 = vmatpush1.bf16.msra.mxu1 %v13700_v22  ;;  %v11649_v22 = vld [vmem:[%s15480_s21 + $0x228] sm:$0xff] }
0x474b   : > { %13703 = vmatprep.subr.bf16.mxu1 %v13702_v42  ;;  %v13716_v42 = vpack.c.bf16 %v11649_v22, %v11648_v23  ;;  %v11675_v23 = vld [vmem:[%s15480_s21 + $0x2f8] sm:$0xff]  ;;  %v11706_v22 = vld [vmem:[%s15480_s21 + $0x3f0] sm:$0xff] }
0x474e   : > { %13705 = vmatpush1.bf16.msra.mxu1 %v13704_v45 }
0x474f   : > { %13739 = vmatprep.subr.bf16.mxu1 %v13738_v48  ;;  %v11700_v48 = vld [vmem:[%s15480_s21 + $0x3c0] sm:$0xff] }
0x481c   : > { %v13138_v63 = vpop.f32.mrb[80].mxu1 }
0x481d   : > { %v13784_v41 = vadd.f32 %v13138_v63, %v11577_v62  ;;  %v10438_v0 = vpop.f32.mrb[81].mxu1  ;;  %v11626_v63 = vld [vmem:[%s15482_s29 + $0x1] ss:$0 sm:$0xff] }
0x481e   : > { %v13785_v1 = vadd.f32 %v11577_v62, %v10438_v0  ;;  %v11644_v0 = vld [vmem:[%s15480_s21 + $0x200] sm:$0xff] }
0x481f   : > { %v10450_v2 = vadd.f32 %v13784_v41, %v15082_v18 }
0x4820   : > { %v10449_v4 = vadd.f32 %v13785_v1, %v15080_v16  ;;  %v11645_v1 = vld [vmem:[%s15480_s21 + $0x208] sm:$0xff] }
0x4821   : > { %v10458_v6 = vsel %vm3410_vm9, %v10450_v2, 0.0 }
0x4822   : > { %10459 = vadd.xlane.f32.xlu1 %v10458_v6  ;;  %v10455_v7 = vsel %vm1300_vm1, %v10449_v4, 0.0  ;;  %v11662_v6 = vld [vmem:[%s15480_s21 + $0x290] sm:$0xff] }
0x4823   : > { %10456 = vadd.xlane.f32.xlu0 %v10455_v7 }
0x48af   : > { %v10460_v9 = vpop.xlane.xlu1 %10459 }
0x48b0   : > { %v10462_v10 = vmul.f32 0.03125, %v10460_v9  ;;  %v10457_v11 = vpop.xlane.xlu0 %10456  ;;  %v11663_v9 = vld [vmem:[%s15480_s21 + $0x298] sm:$0xff] }
0x48b1   : > { %v10461_v13 = vmul.f32 0.03125, %v10457_v11  ;;  %v11695_v11 = vld [vmem:[%s15480_s21 + $0x398] sm:$0xff] }
0x48b2   : > { %v10464_v14 = vsub.f32 %v10450_v2, %v10462_v10  ;;  %v11676_v2 = vld [vmem:[%s15480_s21 + $0x300] sm:$0xff]  ;;  %v11694_v10 = vld [vmem:[%s15480_s21 + $0x390] sm:$0xff] }
0x48b3   : > { %v10463_v18 = vsub.f32 %v10449_v4, %v10461_v13  ;;  %v11677_v4 = vld [vmem:[%s15480_s21 + $0x308] sm:$0xff]  ;;  %v13742_v21 = vpack.c.bf16 %v11695_v11, %v11694_v10  ;;  %v11686_v10 = vld [vmem:[%s15480_s21 + $0x350] sm:$0xff]  ;;  %v11687_v11 = vld [vmem:[%s15480_s21 + $0x358] sm:$0xff] }
0x48b4   : > { %v10466_v16 = vmul.f32 %v10464_v14, %v10464_v14 }
0x48b5   : > { %v10465_v17 = vmul.f32 %v10463_v18, %v10463_v18 }
0x48b6   : > { %v10470_v19 = vsel %vm3410_vm9, %v10466_v16, 0.0  ;;  %v13708_v16 = vpack.c.bf16 %v11645_v1, %v11644_v0  ;;  %v11703_v0 = vld [vmem:[%s15480_s21 + $0x3d8] sm:$0xff] }
0x48b7   : > { %10471 = vadd.xlane.f32.xlu1 %v10470_v19  ;;  %v10467_v20 = vsel %vm1300_vm1, %v10465_v17, 0.0  ;;  %v11646_v17 = vld [vmem:[%s15480_s21 + $0x210] sm:$0xff]  ;;  %v11647_v19 = vld [vmem:[%s15480_s21 + $0x218] sm:$0xff] }
0x48b8   : > { %10468 = vadd.xlane.f32.xlu0 %v10467_v20  ;;  %v13710_v20 = vpack.c.bf16 %v11663_v9, %v11662_v6  ;;  %v13712_v12 = vpack.c.bf16 %v11647_v19, %v11646_v17  ;;  %v11655_v6 = vld [vmem:[%s15480_s21 + $0x258] sm:$0xff]  ;;  %v11705_v17 = vld [vmem:[%s15480_s21 + $0x3e8] sm:$0xff] }
0x4944   : > { %v10472_v51 = vpop.xlane.xlu1 %10471 }
0x4945   : > { %v10474_v38 = vmul.f32 0.03125, %v10472_v51  ;;  %v10469_v37 = vpop.xlane.xlu0 %10468  ;;  %v11701_v51 = vld [vmem:[%s15480_s21 + $0x3c8] sm:$0xff] }
0x4946   : > { %v10473_v52 = vmul.f32 0.03125, %v10469_v37  ;;  %v13752_v37 = vpack.c.bf16 %v11683_v47, %v11682_v46 }
0x4947   : > { %v10476_v53 = vadd.f32 1e-05, %v10474_v38  ;;  %v13720_v38 = vpack.c.bf16 %v11651_v44, %v11650_v49 }
0x4948   : > { %v10475_v56 = vadd.f32 1e-05, %v10473_v52  ;;  %v11652_v52 = vld [vmem:[%s15480_s21 + $0x240] sm:$0xff] }
0x4949   : > { %14001 = vrsqrt.f32 %v10476_v53  ;;  %v11653_v53 = vld [vmem:[%s15480_s21 + $0x248] sm:$0xff] }
0x494a   : > { %14003 = vrsqrt.f32 %v10475_v56  ;;  %v13722_v56 = vpack.c.bf16 %v11669_v50, %v11668_v58  ;;  %v13724_v1 = vpack.c.bf16 %v11653_v53, %v11652_v52 }
0x4953   : > { %v14002_v61 = vpop.eup %14001 }
0x4954   : > { %v14004_v39 = vpop.eup %14003  ;;  %v10480_v41 = vmul.f32 %v14002_v61, %v10464_v14  ;;  %v13740_v14 = vpack.c.bf16 %v11677_v4, %v11676_v2  ;;  %v13754_v61 = vpack.c.bf16 %v11701_v51, %v11700_v48  ;;  %v11654_v4 = vld [vmem:[%s15480_s21 + $0x250] sm:$0xff] }
0x4955   : > { %v10479_v62 = vmul.f32 %v14004_v39, %v10463_v18  ;;  %v11684_v39 = vld [vmem:[%s15480_s21 + $0x340] sm:$0xff]  ;;  %v13728_v19 = vpack.c.bf16 %v11655_v6, %v11654_v4 }
0x4956   : > { %v10488_v18 = vmul.f32 %v11625_v26, %v10480_v41  ;;  %v11702_v41 = vld [vmem:[%s15480_s21 + $0x3d0] sm:$0xff]  ;;  %v11713_v6 = vld [vmem:[%s15486_s0 + $0x1] ss:$0 sm:$0xff] }
0x4957   : > { %v10487_v7 = vmul.f32 %v11625_v26, %v10479_v62  ;;  %v11685_v26 = vld [vmem:[%s15480_s21 + $0x348] sm:$0xff]  ;;  %v11670_v62 = vld [vmem:[%s15480_s21 + $0x2d0] sm:$0xff]  ;;  %v13758_v9 = vpack.c.bf16 %v11703_v0, %v11702_v41 }
0x4958   : > { %v15329_v28 = vadd.f32 %v11626_v63, %v10488_v18  ;;  %v13756_v2 = vpack.c.bf16 %v11685_v26, %v11684_v39  ;;  %v11672_v18 = vld [vmem:[%s15480_s21 + $0x2e0] sm:$0xff] }
0x4959   : > { %v15313_v13 = vadd.f32 %v11626_v63, %v10487_v7  ;;  %v11671_v63 = vld [vmem:[%s15480_s21 + $0x2d8] sm:$0xff] }
0x495a   : > { %v13726_v7 = vpack.c.bf16 %v11671_v63, %v11670_v62 }
0x495b   : > { %11709 = vmatmul.mubr.msk.f32.vlgmr.msra.gmra.mrb[88].mxu0 %vm1300_vm1, %v15313_v13  ;;  %11711 = vmatmul.mubr.msk.f32.vlgmr.msra.gmra.mrb[98].mxu1 %vm1300_vm1, %v15313_v13 }
0x495c   : > { %10680 = vmatprep.mubr.f32.mxu0 %v14059_v5  ;;  %10757 = vmatprep.mubr.f32.mxu1 %v14059_v5  ;;  %v11666_v5 = vld [vmem:[%s15480_s21 + $0x2b0] sm:$0xff] }
0x495d   : > { %13709 = vmatpush3.bf16.msra.mxu0 %v13708_v16  ;;  %13741 = vmatpush3.bf16.msra.mxu1 %v13740_v14  ;;  %v13718_v45 = vpack.c.bf16 %v11667_v57, %v11666_v5  ;;  %v11673_v16 = vld [vmem:[%s15480_s21 + $0x2e8] sm:$0xff]  ;;  %v11704_v14 = vld [vmem:[%s15480_s21 + $0x3e0] sm:$0xff]  ;;  %v13736_v57 = vpack.c.bf16 %v11659_v34, %v11658_v33 }
0x495e   : > { %13711 = vmatprep.subr.bf16.mxu0 %v13710_v20  ;;  %13743 = vmatprep.subr.bf16.mxu1 %v13742_v21  ;;  %v13760_v20 = vpack.c.bf16 %v11687_v11, %v11686_v10  ;;  %v13730_v21 = vpack.c.bf16 %v11673_v16, %v11672_v18  ;;  %v13762_v35 = vpack.c.bf16 %v11705_v17, %v11704_v14 }
0x495f   : > { %11710 = vmatmul.mubr.msk.f32.gmra.mrb[90].mxu0 %vm1300_vm1, %v15329_v28  ;;  %11712 = vmatmul.mubr.msk.f32.gmra.mrb[100].mxu1 %vm1300_vm1, %v15329_v28 }
0x4961   : > { %13713 = vmatpush3.bf16.msra.mxu0 %v13712_v12  ;;  %13745 = vmatpush3.bf16.msra.mxu1 %v13744_v29  ;;  %v13764_v12 = vpack.c.bf16 %v11689_v27, %v11688_v8  ;;  %v11674_v29 = vld [vmem:[%s15480_s21 + $0x2f0] sm:$0xff] }
0x4962   : > { %13715 = vmatprep.subr.bf16.mxu0 %v13714_v31  ;;  %13747 = vmatprep.subr.bf16.mxu1 %v13746_v32  ;;  %v13734_v31 = vpack.c.bf16 %v11675_v23, %v11674_v29  ;;  %v11707_v32 = vld [vmem:[%s15480_s21 + $0x3f8] sm:$0xff] }
0x4963   : > { %v13766_v5 = vpack.c.bf16 %v11707_v32, %v11706_v22 }
0x4965   : > { %13717 = vmatpush3.bf16.msra.mxu0 %v13716_v42  ;;  %13749 = vmatpush3.bf16.msra.mxu1 %v13748_v43  ;;  %v13768_v42 = vpack.c.bf16 %v11691_v40, %v11690_v36  ;;  %v11643_v43 = vld [vmem:[%s15484_s4 + $0x4] sm:$0xf]  ;;  %v10977_v36 = vld [vmem:[%s14233_s9 + $0x8] sm:$0xff] }
0x4966   : > { %13719 = vmatprep.subr.bf16.mxu0 %v13718_v45  ;;  %13751 = vmatprep.subr.bf16.mxu1 %v13750_v15  ;;  %v10587_v49 = vrot.slane %v11643_v43, %v5711_v3  ;;  %v10595_v44 = vrot.slane %v11643_v43, %v5719_v55  ;;  %v10591_v45 = vrot.slane %v11643_v43, %v5715_v59 }
0x4967   : > { %v10599_v15 = vrot.slane %v11643_v43, %v5723_v60  ;;  %v10979_v43 = vld [vmem:[%s14233_s9 + $0x18] sm:$0xff] }
0x4969   : > { %13721 = vmatpush3.bf16.msra.mxu0 %v13720_v38  ;;  %13753 = vmatpush3.bf16.msra.mxu1 %v13752_v37 }
0x496a   : > { %13723 = vmatprep.subr.bf16.mxu0 %v13722_v56  ;;  %13755 = vmatprep.subr.bf16.mxu1 %v13754_v61 }
0x496d   : > { %13725 = vmatpush3.bf16.msra.mxu0 %v13724_v1  ;;  %13757 = vmatpush3.bf16.msra.mxu1 %v13756_v2 }
0x496e   : > { %13727 = vmatprep.subr.bf16.mxu0 %v13726_v7  ;;  %13759 = vmatprep.subr.bf16.mxu1 %v13758_v9 }
0x4971   : > { %13729 = vmatpush3.bf16.msra.mxu0 %v13728_v19  ;;  %13761 = vmatpush3.bf16.msra.mxu1 %v13760_v20 }
0x4972   : > { %13731 = vmatprep.subr.bf16.mxu0 %v13730_v21  ;;  %13763 = vmatprep.subr.bf16.mxu1 %v13762_v35 }
0x4975   : > { %13733 = vmatpush3.bf16.msra.mxu0 %v13732_v25  ;;  %13765 = vmatpush3.bf16.msra.mxu1 %v13764_v12 }
0x4976   : > { %13735 = vmatprep.subr.bf16.mxu0 %v13734_v31  ;;  %13767 = vmatprep.subr.bf16.mxu1 %v13766_v5 }
0x4979   : > { %13737 = vmatpush3.bf16.msra.mxu0 %v13736_v57  ;;  %13769 = vmatpush3.bf16.msra.mxu1 %v13768_v42  ;;  %v10978_v42 = vld [vmem:[%s14233_s9 + $0x10] sm:$0xff] }
0x4a2e   : > { %v10676_v46 = vpop.f32.mrb[88].mxu0  ;;  %v10753_v47 = vpop.f32.mrb[98].mxu1 }
0x4a2f   : > { %v10677_v58 = vadd.f32 %v10676_v46, %v10587_v49  ;;  %v10754_v50 = vadd.f32 %v10753_v47, %v10595_v44  ;;  %v10678_v48 = vpop.f32.mrb[89].mxu0  ;;  %v10755_v51 = vpop.f32.mrb[99].mxu1 }
0x4a30   : > { %v10679_v38 = vadd.f32 %v10678_v48, %v10591_v45  ;;  %v10756_v37 = vadd.f32 %v10755_v51, %v10599_v15  ;;  %v11716_v48 = vld [vmem:[%s15488_s17 + $0x1] ss:$0 sm:$0xff] }
0x4a31   : > { %v10764_v61 = vmax.f32 %v10677_v58, 0.0  ;;  %v10766_v55 = vmax.f32 %v10754_v50, 0.0 }
0x4a32   : > { %v10765_v52 = vmax.f32 %v10679_v38, 0.0  ;;  %v10767_v53 = vmax.f32 %v10756_v37, 0.0  ;;  %v10682_v3 = vpop.f32.mrb[90].mxu0  ;;  %v10759_v56 = vpop.f32.mrb[100].mxu1  ;;  %v11717_v38 = vld [vmem:[%s14228_s27 + $0x1] ss:$0 sm:$0xff] }
0x4a33   : > { %v10683_v39 = vadd.f32 %v10682_v3, %v10587_v49  ;;  %v10760_v26 = vadd.f32 %v10759_v56, %v10595_v44  ;;  %v10684_v59 = vpop.f32.mrb[91].mxu0  ;;  %v10761_v62 = vpop.f32.mrb[101].mxu1  ;;  %v13774_v49 = vpack.c.bf16 %v10979_v43, %v10978_v42 }
0x4a34   : > { %v10685_v54 = vadd.f32 %v10684_v59, %v10591_v45  ;;  %v10762_v60 = vadd.f32 %v10761_v62, %v10599_v15  ;;  %10842 = vmatprep.mubr.f32.mxu0 %v10765_v52  ;;  %10917 = vmatprep.mubr.f32.mxu1 %v10767_v53 }
0x4a35   : > { %10843 = vmatmul.mubr.f32.vlgmr.msra.gmra.mrb[92].mxu0 %v10764_v61  ;;  %10918 = vmatmul.mubr.f32.vlgmr.msra.gmra.mrb[102].mxu1 %v10766_v55  ;;  %v10768_v0 = vmax.f32 %v10683_v39, 0.0  ;;  %v10770_v1 = vmax.f32 %v10760_v26, 0.0  ;;  %v11718_v55 = vld [vmem:[%s15489_s28] ss:$0 sm:$0xff] }
0x4a36   : > { %v10769_v63 = vmax.f32 %v10685_v54, 0.0  ;;  %v10771_v41 = vmax.f32 %v10762_v60, 0.0 }
0x4a38   : > { %10847 = vmatprep.mubr.f32.mxu0 %v10769_v63  ;;  %10922 = vmatprep.mubr.f32.mxu1 %v10771_v41 }
0x4a39   : > { %10848 = vmatmul.mubr.f32.gmra.mrb[94].mxu0 %v10768_v0  ;;  %10923 = vmatmul.mubr.f32.gmra.mrb[104].mxu1 %v10770_v1 }
0x4b08   : > { %v12274_v2 = vpop.f32.mrb[92].mxu0  ;;  %v12312_v4 = vpop.f32.mrb[102].mxu1 }
0x4b09   : > { %v12275_v7 = vpop.f32.mrb[93].mxu0  ;;  %v12313_v9 = vpop.f32.mrb[103].mxu1 }
0x4b0a   : > { %v12276_v10 = vadd.f32 %v12275_v7, %v12274_v2  ;;  %v12314_v11 = vadd.f32 %v12313_v9, %v12312_v4 }
0x4b0c   : > { %v10845_v18 = vadd.f32 %v12276_v10, %v11713_v6  ;;  %v12277_v16 = vpop.f32.mrb[94].mxu0  ;;  %v12315_v14 = vpop.f32.mrb[104].mxu1 }
0x4b0d   : > { %v12278_v17 = vpop.f32.mrb[95].mxu0  ;;  %v12316_v19 = vpop.f32.mrb[105].mxu1 }
0x4b0e   : > { %v10920_v20 = vadd.f32 %v12314_v11, %v10845_v18  ;;  %v12279_v21 = vadd.f32 %v12278_v17, %v12277_v16  ;;  %v12317_v35 = vadd.f32 %v12316_v19, %v12315_v14 }
0x4b10   : > { %v10850_v30 = vadd.f32 %v12279_v21, %v11713_v6  ;;  %v10928_v24 = vadd.f32 %v10920_v20, %v15313_v13 }
0x4b12   : > { %v10925_v8 = vadd.f32 %v12317_v35, %v10850_v30  ;;  %v10934_v25 = vsel %vm1300_vm1, %v10928_v24, 0.0 }
0x4b13   : > { %10935 = vadd.xlane.f32.xlu0 %v10934_v25 }
0x4b14   : > { %v10929_v27 = vadd.f32 %v10925_v8, %v15329_v28  ;;  %v10976_v28 = vld [vmem:[%s14233_s9] sm:$0xff] }
0x4b15   : > { %v13770_v40 = vpack.c.bf16 %v10977_v36, %v10976_v28 }
0x4b16   : > { %v10937_v12 = vsel %vm3410_vm9, %v10929_v27, 0.0 }
0x4b17   : > { %10938 = vadd.xlane.f32.xlu1 %v10937_v12  ;;  %13771 = vmatprep.subr.bf16.mxu0 %v13770_v40 }
0x4b18   : > { %13773 = vmatpush3.bf16.msra.mxu0 %v13770_v40 }
0x4b19   : > { %13775 = vmatprep.subr.bf16.mxu0 %v13774_v49 }
0x4b1c   : > { %13777 = vmatpush3.bf16.msra.mxu0 %v13774_v49 }
0x4ba0   : > { %v10936_v29 = vpop.xlane.xlu0 %10935 }
0x4ba1   : > { %v10940_v23 = vmul.f32 0.03125, %v10936_v29 }
0x4ba3   : > { %v10942_v22 = vsub.f32 %v10928_v24, %v10940_v23 }
0x4ba4   : > { %v10939_v31 = vpop.xlane.xlu1 %10938 }
0x4ba5   : > { %v10941_v32 = vmul.f32 0.03125, %v10939_v31  ;;  %v10944_v33 = vmul.f32 %v10942_v22, %v10942_v22 }
0x4ba7   : > { %v10943_v13 = vsub.f32 %v10929_v27, %v10941_v32  ;;  %v10946_v34 = vsel %vm1300_vm1, %v10944_v33, 0.0 }
0x4ba8   : > { %10947 = vadd.xlane.f32.xlu0 %v10946_v34 }
0x4ba9   : > { %v10945_v5 = vmul.f32 %v10943_v13, %v10943_v13 }
0x4bab   : > { %v10949_v57 = vsel %vm3410_vm9, %v10945_v5, 0.0 }
0x4bac   : > { %10950 = vadd.xlane.f32.xlu1 %v10949_v57 }
0x4c35   : > { %v10948_v44 = vpop.xlane.xlu0 %10947 }
0x4c36   : > { %v10952_v45 = vmul.f32 0.03125, %v10948_v44 }
0x4c38   : > { %v10954_v15 = vadd.f32 1e-05, %v10952_v45 }
0x4c39   : > { %v10951_v46 = vpop.xlane.xlu1 %10950 }
0x4c3a   : > { %14005 = vrsqrt.f32 %v10954_v15  ;;  %v10953_v47 = vmul.f32 0.03125, %v10951_v46 }
0x4c3c   : > { %v10955_v58 = vadd.f32 1e-05, %v10953_v47 }
0x4c3e   : > { %14007 = vrsqrt.f32 %v10955_v58 }
0x4c44   : > { %v14006_v50 = vpop.eup %14005 }
0x4c45   : > { %v10958_v51 = vmul.f32 %v14006_v50, %v10942_v22 }
0x4c47   : > { %v10966_v37 = vmul.f32 %v11716_v48, %v10958_v51 }
0x4c48   : > { %v14008_v52 = vpop.eup %14007 }
0x4c49   : > { %v10959_v53 = vmul.f32 %v14008_v52, %v10943_v13  ;;  %v10974_v3 = vadd.f32 %v11717_v38, %v10966_v37 }
0x4c4b   : > { %v10967_v56 = vmul.f32 %v11716_v48, %v10959_v53  ;;  %13147 = vmatprep.mubr.msk.f32.mxu0 %vm1300_vm1, %v10974_v3 }
0x4c4d   : > { %v10975_v61 = vadd.f32 %v11717_v38, %v10967_v56 }
0x4c4f   : > { %13148 = vmatmul.mubr.msk.f32.vlgmr.msra.gmra.mrb[96].mxu0 %vm1300_vm1, %v10975_v61 }
0x4d22   : > { %v13149_v39 = vpop.f32.mrb[96].mxu0 }
0x4d23   : > { %v11065_v26 = vadd.f32 %v13149_v39, %v11718_v55  ;;  %v11059_v59 = vpop.f32.mrb[97].mxu0 }
0x4d24   : > { %v11060_v62 = vadd.f32 %v11718_v55, %v11059_v59 }
0x4d25   : > { %11070 = vst.msk [vmem:[%s1121_s22 + $0x8] sm:$0x3] %vm11069_vm14, %v11065_v26 }
0x4d26   : > { %11068 = vst.msk [vmem:[%s1121_s22] sm:$0xff] %vm1141_vm0, %v11060_v62 }
0x4d27 PF: > { %s15492_s0 = sld [smem:[#allocation27_spill]] }
0x4d2d   : > { %s81_s22 = sadd.s32 1, %s15492_s0  }
0x4d2e   : > { %p78_p4 = scmp.ge.s32.totalorder %s81_s22, 4  }
0x4d30   :  { %80 = sbr.rel (!%p78_p4) target bundleno = 70 (0x46), region = 260 }

</bundles_post_ra>
